<compile_context>
chip_gen: v7x
topology: tpu7x:2x2x1
jax: 0.10.0
libtpu: 0.0.40
codegen_flags: <defaults>
</compile_context>

<pallas_src>
import functools
import math

import jax
import jax.numpy as jnp
from jax.experimental import pallas as pl
from jax.experimental.pallas import tpu as pltpu

HIGH = 128
LOW = 32
NUM_CLASSES = 5

RIDGE_K = 19                      # ridgelet kernel size
FOLD = 8                          # output pixels folded into the lane dim
DXA = RIDGE_K + FOLD - 1          # 26: input cols covered by one folded row
KF = RIDGE_K * DXA                # 494
KFP = 512                         # K padded to a lane multiple
FC1_TK = 2048                     # fc1 K tile (w1 pre-padded to a multiple)

VMEM_LIMIT = 32 * 1024 * 1024     # explicit; safe on v5e / v6e / v7x


def _round_up(x, m):
    return (x + m - 1) // m * m


# ----------------------------------------------------------------------------
# Pallas kernels: tiled matmul with fused bias add and optional ReLU
# ----------------------------------------------------------------------------
def _mm_full_k_kernel(x_ref, w_ref, b_ref, o_ref, *, relu):
    # Whole K in one block: no reduction grid axis, no accumulator scratch.
    out = jnp.dot(x_ref[...], w_ref[...], preferred_element_type=jnp.float32)
    out = out + b_ref[...]
    if relu:
        out = jnp.maximum(out, 0.0)
    o_ref[...] = out.astype(o_ref.dtype)


def _mm_reduce_kernel(x_ref, w_ref, b_ref, o_ref, acc_ref, *, relu):
    k = pl.program_id(2)

    @pl.when(k == 0)
    def _():
        acc_ref[...] = jnp.zeros_like(acc_ref)

    acc_ref[...] += jnp.dot(x_ref[...], w_ref[...],
                            preferred_element_type=jnp.float32)

    @pl.when(k == pl.num_programs(2) - 1)
    def _():
        out = acc_ref[...] + b_ref[...]
        if relu:
            out = jnp.maximum(out, 0.0)
        o_ref[...] = out.astype(o_ref.dtype)


def pallas_matmul(x, w, b, *, relu, tm, tn, tk=None):
    """out = relu?(x @ w + b).  Shapes must already be tile-aligned:
    M % tm == 0, N % tn == 0 and (if tk is given) K % tk == 0."""
    M, K = x.shape
    Kw, N = w.shape
    assert K == Kw and M % tm == 0 and N % tn == 0, (x.shape, w.shape, tm, tn)
    b2 = b.reshape(1, N).astype(jnp.float32)

    if tk is None or tk >= K:
        # Full-K single block: no reduction loop; weight block stays resident.
        return pl.pallas_call(
            functools.partial(_mm_full_k_kernel, relu=relu),
            out_shape=jax.ShapeDtypeStruct((M, N), jnp.float32),
            grid_spec=pltpu.PrefetchScalarGridSpec(
                num_scalar_prefetch=0,
                grid=(M // tm, N // tn),
                in_specs=[
                    pl.BlockSpec((tm, K), lambda i, j: (i, 0)),
                    pl.BlockSpec((K, tn), lambda i, j: (0, j)),
                    pl.BlockSpec((1, tn), lambda i, j: (0, j)),
                ],
                out_specs=pl.BlockSpec((tm, tn), lambda i, j: (i, j)),
            ),
            compiler_params=pltpu.CompilerParams(
                dimension_semantics=("parallel", "parallel"),
                vmem_limit_bytes=VMEM_LIMIT),
        )(x, w, b2)

    assert K % tk == 0, (K, tk)
    return pl.pallas_call(
        functools.partial(_mm_reduce_kernel, relu=relu),
        out_shape=jax.ShapeDtypeStruct((M, N), jnp.float32),
        grid_spec=pltpu.PrefetchScalarGridSpec(
            num_scalar_prefetch=0,
            grid=(M // tm, N // tn, K // tk),
            in_specs=[
                pl.BlockSpec((tm, tk), lambda i, j, k: (i, k)),
                pl.BlockSpec((tk, tn), lambda i, j, k: (k, j)),
                pl.BlockSpec((1, tn), lambda i, j, k: (0, j)),
            ],
            out_specs=pl.BlockSpec((tm, tn), lambda i, j, k: (i, j)),
            scratch_shapes=[pltpu.VMEM((tm, tn), jnp.float32)],
        ),
        compiler_params=pltpu.CompilerParams(
            dimension_semantics=("parallel", "parallel", "arbitrary"),
            vmem_limit_bytes=VMEM_LIMIT),
    )(x, w, b2)


# ----------------------------------------------------------------------------
# Parameter construction (deterministic) and one-time layout preparation
# ----------------------------------------------------------------------------
def init_params(key):
    ks = jax.random.split(key, 4)
    p = {}
    n = 16 * 8
    p["ridgelet_scales"] = jnp.ones((n,), jnp.float32)
    p["ridgelet_directions"] = jnp.linspace(0.0, math.pi, n, dtype=jnp.float32)
    p["ridgelet_positions"] = jnp.zeros((n,), jnp.float32)
    # Quaternion conv layer: 3 quaternion output channels, 4 components, 3x3.
    p["wq"] = 0.1 * jax.random.normal(ks[0], (3, 4, 3, 3), jnp.float32)
    # Fully-connected layers (stored as (in, out)).
    p["w1"] = 0.01 * jax.random.normal(ks[1], (66436, 1024), jnp.float32)
    p["b1"] = jnp.zeros((1024,), jnp.float32)
    p["w2"] = 0.01 * jax.random.normal(ks[2], (1024, 256), jnp.float32)
    p["b2"] = jnp.zeros((256,), jnp.float32)
    p["w3"] = 0.01 * jax.random.normal(ks[3], (256, NUM_CLASSES), jnp.float32)
    p["b3"] = jnp.zeros((NUM_CLASSES,), jnp.float32)
    return p


def prepare_params(p):
    """One-time layout prep (hoisted out of the jitted forward): pre-pad fc1's
    K to a multiple of FC1_TK and fc3's N to a lane multiple, so no large
    padding copies happen per forward pass."""
    pp = dict(p)
    k1 = p["w1"].shape[0]
    kp1 = _round_up(k1, FC1_TK)
    # TODO(synk): w1 could be streamed as bf16 (halves fc1 HBM time); kept fp32
    # to preserve reference numerics.
    pp["w1"] = jnp.pad(p["w1"], ((0, kp1 - k1), (0, 0)))
    pp["w3"] = jnp.pad(p["w3"], ((0, 0), (0, 128 - NUM_CLASSES)))
    pp["b3"] = jnp.pad(p["b3"], ((0, 128 - NUM_CLASSES),))
    return pp


# ----------------------------------------------------------------------------
# Ridgelet kernel construction (channel-summed, width-folded matmul form)
# ----------------------------------------------------------------------------
def build_ridgelet_kernel(scales, directions, positions,
                          out_ch=16, ksz=RIDGE_K, nk=8):
    """Per-output-channel ridgelet kernel (16, 19, 19).  The PyTorch layer
    copies the same kernel across all input channels, so the 3-channel conv
    equals a single-channel conv over the channel-summed input."""
    center = ksz // 2
    coords = jnp.arange(ksz, dtype=jnp.float32) - center
    x1 = jnp.broadcast_to(coords[:, None], (ksz, ksz))   # meshgrid 'ij'
    x2 = jnp.broadcast_to(coords[None, :], (ksz, ksz))
    d = directions[:, None, None]
    s = scales[:, None, None]
    pos = positions[:, None, None]
    t = (x1[None] * jnp.cos(d) + x2[None] * jnp.sin(d) - pos) / s
    vals = jnp.exp(-(t ** 2) / 2.0) - 0.5 * jnp.exp(-(t ** 2) / 8.0)
    return vals.reshape(out_ch, nk, ksz, ksz).sum(axis=1)   # (16, 19, 19)


def build_folded_ridgelet_weight(rk, out_ch=16):
    """(KFP, FOLD*out_ch): column (w_in*out_ch + o) holds channel o's (19,19)
    kernel shifted by w_in inside a (19, DXA) window, so one matmul row yields
    FOLD consecutive output pixels (lane-dense 128-wide output)."""
    rk_t = rk.transpose(1, 2, 0)                              # (19, 19, 16)
    wf = jnp.zeros((RIDGE_K, DXA, FOLD, out_ch), jnp.float32)
    for w_in in range(FOLD):
        wf = wf.at[:, w_in:w_in + RIDGE_K, w_in, :].set(rk_t)
    wf = wf.reshape(KF, FOLD * out_ch)
    return jnp.pad(wf, ((0, KFP - KF), (0, 0)))               # (512, 128)


def folded_ridgelet_patches(x):
    """x: (B, 3, H, W) -> width-folded patch matrix (B*H*(W//FOLD), KFP)."""
    B, _, H, W = x.shape
    G = W // FOLD
    pad = RIDGE_K // 2
    xs = x.sum(axis=1)                                         # channel sum
    xs_pad = jnp.pad(xs, ((0, 0), (pad, pad), (pad, pad)))     # (B, H+18, W+18)
    # height taps on the minor axis: rows[b, h, w, dy] = xs_pad[b, h+dy, w]
    rows = jnp.stack([xs_pad[:, dy:dy + H, :] for dy in range(RIDGE_K)], axis=-1)
    # width taps, group stride FOLD: cols[b,h,g,dy,dx] = xs_pad[b, h+dy, g*FOLD+dx]
    cols = jnp.stack([rows[:, :, dx::FOLD, :][:, :, :G, :] for dx in range(DXA)],
                     axis=-1)                                  # (B, H, G, 19, 26)
    p = cols.reshape(B * H * G, KF)
    return jnp.pad(p, ((0, 0), (0, KFP - KF)))                 # (B*H*G, 512)


# ----------------------------------------------------------------------------
# Low-res quaternion conv helpers (tiny; plain XLA per perf review)
# ----------------------------------------------------------------------------
def build_quat_weight_matrix(wq):
    """wq: (O=3, 4[r,i,j,k], 3, 3) -> real matrix (27, 9).  Pure-quaternion
    input (i,j,k)=(R,G,B); output keeps the 3 imaginary parts per channel."""
    wr, wi, wj, wk = wq[:, 0], wq[:, 1], wq[:, 2], wq[:, 3]
    row_i = jnp.stack([wr, -wk, wj], axis=1)     # (O, cin, ky, kx)
    row_j = jnp.stack([wk, wr, -wi], axis=1)
    row_k = jnp.stack([-wj, wi, wr], axis=1)
    m = jnp.stack([row_i, row_j, row_k], axis=1)  # (O, comp, cin, ky, kx)
    # in index = cin*9 + ky*3 + kx ; out index = o*3 + comp
    return m.transpose(2, 3, 4, 0, 1).reshape(27, 9)


def _im2col_3x3(x):
    B, C, H, W = x.shape
    xp = jnp.pad(x, ((0, 0), (0, 0), (1, 1), (1, 1)))
    cols = [xp[:, :, dy:dy + H, dx:dx + W] for dy in range(3) for dx in range(3)]
    patches = jnp.stack(cols, axis=2)                # (B, C, 9, H, W)
    patches = patches.transpose(0, 3, 4, 1, 2)       # (B, H, W, C, 9)
    return patches.reshape(B * H * W, C * 9)


# ----------------------------------------------------------------------------
# Forward pass
# ----------------------------------------------------------------------------
def mixed_resolution_cnn_forward(params, x):
    B = x.shape[0]

    # --- low-res path -------------------------------------------------------
    # bilinear 128 -> 32, align_corners=False: exact /4 => mean of the two
    # central samples of every 4x4 block.
    x_low = 0.25 * (x[:, :, 1::4, 1::4] + x[:, :, 1::4, 2::4] +
                    x[:, :, 2::4, 1::4] + x[:, :, 2::4, 2::4])       # (B,3,32,32)

    # tiny quaternion (Hamilton) conv: plain XLA matmul.
    q_out = _im2col_3x3(x_low) @ build_quat_weight_matrix(params["wq"])
    convout = q_out.reshape(B, LOW, LOW, 3, 3).transpose(0, 3, 4, 1, 2)
    # convout: (B, out_ch=3, quat_comp=3, 32, 32); quatmaxpool(k=3, s=3)
    pooled = convout[..., :30, :30].reshape(B, 3, 3, 10, 3, 10, 3).max(axis=(4, 6))
    x_low_flat = pooled.transpose(0, 2, 1, 3, 4).reshape(B, -1)       # (B, 900)

    # --- high-res ridgelet path (Pallas, width-folded conv-as-matmul) --------
    rk = build_ridgelet_kernel(params["ridgelet_scales"],
                               params["ridgelet_directions"],
                               params["ridgelet_positions"])          # (16,19,19)
    wf = build_folded_ridgelet_weight(rk)                             # (512, 128)
    p = folded_ridgelet_patches(x)                                    # (B*2048,512)
    h_out = pallas_matmul(p, wf, jnp.zeros((FOLD * 16,), jnp.float32),
                          relu=True, tm=512, tn=128)                  # (B*2048,128)
    G = HIGH // FOLD
    x_high = (h_out.reshape(B, HIGH, G, FOLD, 16)
              .transpose(0, 4, 1, 2, 3)
              .reshape(B, 16, HIGH, HIGH))                            # NCHW
    # MaxPool2d(kernel=2, stride=2)
    x_high = x_high.reshape(B, 16, HIGH // 2, 2, HIGH // 2, 2).max(axis=(3, 5))
    x_high_flat = x_high.reshape(B, -1)                               # (B, 65536)

    # --- fusion + MLP head (Pallas matmuls, bias+ReLU fused) ------------------
    fused = jnp.concatenate([x_low_flat, x_high_flat], axis=1)        # (B, 66436)
    # dropout(0.5): eval mode => identity

    mp = _round_up(B, 8)
    if mp > 128:
        mp = _round_up(mp, 128)
        tm_fc = 128
    else:
        tm_fc = mp
    kp1 = params["w1"].shape[0]                      # pre-padded at prep time
    fused_p = jnp.pad(fused, ((0, mp - B), (0, kp1 - fused.shape[1])))

    h = pallas_matmul(fused_p, params["w1"], params["b1"],
                      relu=True, tm=tm_fc, tn=512, tk=FC1_TK)         # (mp, 1024)
    h = pallas_matmul(h, params["w2"], params["b2"],
                      relu=True, tm=tm_fc, tn=256)                    # (mp, 256)
    out = pallas_matmul(h, params["w3"], params["b3"],
                        relu=False, tm=tm_fc, tn=128)                 # (mp, 128)
    return out[:B, :NUM_CLASSES]


if __name__ == "__main__":
    key = jax.random.PRNGKey(0)
    pkey, xkey = jax.random.split(key)
    params = prepare_params(init_params(pkey))
    # module is hardwired to high=128 resolution NCHW input (fc1 = 66436 feats)
    x = jax.random.normal(xkey, (2, 3, HIGH, HIGH), jnp.float32)

    fwd = jax.jit(mixed_resolution_cnn_forward)
    out = jax.block_until_ready(fwd(params, x))

    assert out.shape == (2, NUM_CLASSES)
    assert bool(jnp.all(jnp.isfinite(out)))
    print("KERNEL_OK")
</pallas_src>

<mosaic_0001>
module attributes {stable_mosaic.version = 11 : i64} {
  func.func @_mm_full_k_kernel(%arg0: i32, %arg1: i32, %arg2: memref<512x512xf32, #tpu.memory_space<vmem>>, %arg3: memref<512x128xf32, #tpu.memory_space<vmem>>, %arg4: memref<1x128xf32, #tpu.memory_space<vmem>>, %arg5: memref<512x128xf32, #tpu.memory_space<vmem>>) attributes {dimension_semantics = [#tpu.dimension_semantics<parallel>, #tpu.dimension_semantics<parallel>], iteration_bounds = array<i64: 8, 1>, scalar_prefetch = 0 : i64, scratch_operands = 0 : i64, tpu.core_type = #tpu.core_type<tc>, window_params = [{transform_indices = @transform_0, window_bounds = array<i64: 512, 512>}, {transform_indices = @transform_1, window_bounds = array<i64: 512, 128>}, {transform_indices = @transform_2, window_bounds = array<i64: 1, 128>}, {transform_indices = @transform_3, window_bounds = array<i64: 512, 128>}]} {
    %c0 = arith.constant 0 : index
    %c0_0 = arith.constant 0 : index
    %0 = vector.load %arg2[%c0, %c0_0] : memref<512x512xf32, #tpu.memory_space<vmem>>, vector<512x512xf32>
    %c0_1 = arith.constant 0 : index
    %c0_2 = arith.constant 0 : index
    %1 = vector.load %arg3[%c0_1, %c0_2] : memref<512x128xf32, #tpu.memory_space<vmem>>, vector<512x128xf32>
    %cst = arith.constant dense<0.000000e+00> : vector<512x128xf32>
    %2 = tpu.matmul %0, %1, %cst {dimension_numbers = #tpu.dot_dimension_numbers<[1], [0], [0], [1], [0, 0, 1, 1], [], []>} : vector<512x512xf32>, vector<512x128xf32>, vector<512x128xf32> -> vector<512x128xf32>
    %c0_3 = arith.constant 0 : index
    %c0_4 = arith.constant 0 : index
    %3 = vector.load %arg4[%c0_3, %c0_4] : memref<1x128xf32, #tpu.memory_space<vmem>>, vector<1x128xf32>
    %4 = vector.broadcast %3 : vector<1x128xf32> to vector<512x128xf32>
    %5 = arith.addf %2, %4 : vector<512x128xf32>
    %cst_5 = arith.constant 0.000000e+00 : f32
    %6 = vector.broadcast %cst_5 : f32 to vector<512x128xf32>
    %7 = arith.maximumf %5, %6 : vector<512x128xf32>
    %c0_6 = arith.constant 0 : index
    %c0_7 = arith.constant 0 : index
    %8 = vector.load %arg5[%c0_6, %c0_7] : memref<512x128xf32, #tpu.memory_space<vmem>>, vector<512x128xf32>
    tpu.vector_store %arg5[%c0_6, %c0_7], %7 {strides = array<i32>} : memref<512x128xf32, #tpu.memory_space<vmem>>, vector<512x128xf32>,
    return
  }
  func.func @transform_0(%arg0: i32, %arg1: i32) -> (i32, i32) {
    %c0_i32 = arith.constant 0 : i32
    %c0_i32_0 = arith.constant 0 : i32
    return %arg0, %c0_i32 : i32, i32
  }
  func.func @transform_1(%arg0: i32, %arg1: i32) -> (i32, i32) {
    %c0_i32 = arith.constant 0 : i32
    %c0_i32_0 = arith.constant 0 : i32
    return %c0_i32, %arg1 : i32, i32
  }
  func.func @transform_2(%arg0: i32, %arg1: i32) -> (i32, i32) {
    %c0_i32 = arith.constant 0 : i32
    %c0_i32_0 = arith.constant 0 : i32
    return %c0_i32, %arg1 : i32, i32
  }
  func.func @transform_3(%arg0: i32, %arg1: i32) -> (i32, i32) {
    %c0_i32 = arith.constant 0 : i32
    return %arg0, %arg1 : i32, i32
  }
}

module attributes {stable_mosaic.version = 11 : i64} {
  func.func @_mm_reduce_kernel(%arg0: i32, %arg1: i32, %arg2: i32, %arg3: memref<8x2048xf32, #tpu.memory_space<vmem>>, %arg4: memref<2048x512xf32, #tpu.memory_space<vmem>>, %arg5: memref<1x512xf32, #tpu.memory_space<vmem>>, %arg6: memref<8x512xf32, #tpu.memory_space<vmem>>, %arg7: memref<8x512xf32, #tpu.memory_space<vmem>>) attributes {dimension_semantics = [#tpu.dimension_semantics<parallel>, #tpu.dimension_semantics<parallel>, #tpu.dimension_semantics<arbitrary>], iteration_bounds = array<i64: 1, 2, 33>, scalar_prefetch = 0 : i64, scratch_operands = 1 : i64, tpu.core_type = #tpu.core_type<tc>, window_params = [{transform_indices = @transform_0, window_bounds = array<i64: 8, 2048>}, {transform_indices = @transform_1, window_bounds = array<i64: 2048, 512>}, {transform_indices = @transform_2, window_bounds = array<i64: 1, 512>}, {transform_indices = @transform_3, window_bounds = array<i64: 8, 512>}]} {
    %c0_i32 = arith.constant 0 : i32
    %0 = arith.cmpi eq, %arg2, %c0_i32 : i32
    %1 = arith.extui %0 : i1 to i32
    %c0_i32_0 = arith.constant 0 : i32
    %2 = arith.cmpi ne, %1, %c0_i32_0 : i32
    scf.if %2 {
      %cst_9 = arith.constant 0.000000e+00 : f32
      %12 = vector.broadcast %cst_9 : f32 to vector<8x512xf32>
      %c0_10 = arith.constant 0 : index
      %c0_11 = arith.constant 0 : index
      %13 = vector.load %arg7[%c0_10, %c0_11] : memref<8x512xf32, #tpu.memory_space<vmem>>, vector<8x512xf32>
      tpu.vector_store %arg7[%c0_10, %c0_11], %12 {strides = array<i32>} : memref<8x512xf32, #tpu.memory_space<vmem>>, vector<8x512xf32>,
    } else {
    }
    %c0 = arith.constant 0 : index
    %c0_1 = arith.constant 0 : index
    %3 = vector.load %arg7[%c0, %c0_1] : memref<8x512xf32, #tpu.memory_space<vmem>>, vector<8x512xf32>
    %c0_2 = arith.constant 0 : index
    %c0_3 = arith.constant 0 : index
    %4 = vector.load %arg3[%c0_2, %c0_3] : memref<8x2048xf32, #tpu.memory_space<vmem>>, vector<8x2048xf32>
    %c0_4 = arith.constant 0 : index
    %c0_5 = arith.constant 0 : index
    %5 = vector.load %arg4[%c0_4, %c0_5] : memref<2048x512xf32, #tpu.memory_space<vmem>>, vector<2048x512xf32>
    %cst = arith.constant dense<0.000000e+00> : vector<8x512xf32>
    %6 = tpu.matmul %4, %5, %cst {dimension_numbers = #tpu.dot_dimension_numbers<[1], [0], [0], [1], [0, 0, 1, 1], [], []>} : vector<8x2048xf32>, vector<2048x512xf32>, vector<8x512xf32> -> vector<8x512xf32>
    %7 = arith.addf %3, %6 : vector<8x512xf32>
    %c0_6 = arith.constant 0 : index
    %c0_7 = arith.constant 0 : index
    %8 = vector.load %arg7[%c0_6, %c0_7] : memref<8x512xf32, #tpu.memory_space<vmem>>, vector<8x512xf32>
    tpu.vector_store %arg7[%c0_6, %c0_7], %7 {strides = array<i32>} : memref<8x512xf32, #tpu.memory_space<vmem>>, vector<8x512xf32>,
    %c32_i32 = arith.constant 32 : i32
    %9 = arith.cmpi eq, %arg2, %c32_i32 : i32
    %10 = arith.extui %9 : i1 to i32
    %c0_i32_8 = arith.constant 0 : i32
    %11 = arith.cmpi ne, %10, %c0_i32_8 : i32
    scf.if %11 {
      %c0_9 = arith.constant 0 : index
      %c0_10 = arith.constant 0 : index
      %12 = vector.load %arg7[%c0_9, %c0_10] : memref<8x512xf32, #tpu.memory_space<vmem>>, vector<8x512xf32>
      %c0_11 = arith.constant 0 : index
      %c0_12 = arith.constant 0 : index
      %13 = vector.load %arg5[%c0_11, %c0_12] : memref<1x512xf32, #tpu.memory_space<vmem>>, vector<1x512xf32>
      %14 = vector.broadcast %13 : vector<1x512xf32> to vector<8x512xf32>
      %15 = arith.addf %12, %14 : vector<8x512xf32>
      %cst_13 = arith.constant 0.000000e+00 : f32
      %16 = vector.broadcast %cst_13 : f32 to vector<8x512xf32>
      %17 = arith.maximumf %15, %16 : vector<8x512xf32>
      %c0_14 = arith.constant 0 : index
      %c0_15 = arith.constant 0 : index
      %18 = vector.load %arg6[%c0_14, %c0_15] : memref<8x512xf32, #tpu.memory_space<vmem>>, vector<8x512xf32>
      tpu.vector_store %arg6[%c0_14, %c0_15], %17 {strides = array<i32>} : memref<8x512xf32, #tpu.memory_space<vmem>>, vector<8x512xf32>,
    } else {
    }
    return
  }
  func.func @transform_0(%arg0: i32, %arg1: i32, %arg2: i32) -> (i32, i32) {
    %c0_i32 = arith.constant 0 : i32
    return %arg0, %arg2 : i32, i32
  }
  func.func @transform_1(%arg0: i32, %arg1: i32, %arg2: i32) -> (i32, i32) {
    %c0_i32 = arith.constant 0 : i32
    return %arg2, %arg1 : i32, i32
  }
  func.func @transform_2(%arg0: i32, %arg1: i32, %arg2: i32) -> (i32, i32) {
    %c0_i32 = arith.constant 0 : i32
    %c0_i32_0 = arith.constant 0 : i32
    return %c0_i32, %arg1 : i32, i32
  }
  func.func @transform_3(%arg0: i32, %arg1: i32, %arg2: i32) -> (i32, i32) {
    %c0_i32 = arith.constant 0 : i32
    return %arg0, %arg1 : i32, i32
  }
}

module attributes {stable_mosaic.version = 11 : i64} {
  func.func @_mm_full_k_kernel(%arg0: i32, %arg1: i32, %arg2: memref<8x1024xf32, #tpu.memory_space<vmem>>, %arg3: memref<1024x256xf32, #tpu.memory_space<vmem>>, %arg4: memref<1x256xf32, #tpu.memory_space<vmem>>, %arg5: memref<8x256xf32, #tpu.memory_space<vmem>>) attributes {dimension_semantics = [#tpu.dimension_semantics<parallel>, #tpu.dimension_semantics<parallel>], iteration_bounds = array<i64: 1, 1>, scalar_prefetch = 0 : i64, scratch_operands = 0 : i64, tpu.core_type = #tpu.core_type<tc>, window_params = [{transform_indices = @transform_0, window_bounds = array<i64: 8, 1024>}, {transform_indices = @transform_1, window_bounds = array<i64: 1024, 256>}, {transform_indices = @transform_2, window_bounds = array<i64: 1, 256>}, {transform_indices = @transform_3, window_bounds = array<i64: 8, 256>}]} {
    %c0 = arith.constant 0 : index
    %c0_0 = arith.constant 0 : index
    %0 = vector.load %arg2[%c0, %c0_0] : memref<8x1024xf32, #tpu.memory_space<vmem>>, vector<8x1024xf32>
    %c0_1 = arith.constant 0 : index
    %c0_2 = arith.constant 0 : index
    %1 = vector.load %arg3[%c0_1, %c0_2] : memref<1024x256xf32, #tpu.memory_space<vmem>>, vector<1024x256xf32>
    %cst = arith.constant dense<0.000000e+00> : vector<8x256xf32>
    %2 = tpu.matmul %0, %1, %cst {dimension_numbers = #tpu.dot_dimension_numbers<[1], [0], [0], [1], [0, 0, 1, 1], [], []>} : vector<8x1024xf32>, vector<1024x256xf32>, vector<8x256xf32> -> vector<8x256xf32>
    %c0_3 = arith.constant 0 : index
    %c0_4 = arith.constant 0 : index
    %3 = vector.load %arg4[%c0_3, %c0_4] : memref<1x256xf32, #tpu.memory_space<vmem>>, vector<1x256xf32>
    %4 = vector.broadcast %3 : vector<1x256xf32> to vector<8x256xf32>
    %5 = arith.addf %2, %4 : vector<8x256xf32>
    %cst_5 = arith.constant 0.000000e+00 : f32
    %6 = vector.broadcast %cst_5 : f32 to vector<8x256xf32>
    %7 = arith.maximumf %5, %6 : vector<8x256xf32>
    %c0_6 = arith.constant 0 : index
    %c0_7 = arith.constant 0 : index
    %8 = vector.load %arg5[%c0_6, %c0_7] : memref<8x256xf32, #tpu.memory_space<vmem>>, vector<8x256xf32>
    tpu.vector_store %arg5[%c0_6, %c0_7], %7 {strides = array<i32>} : memref<8x256xf32, #tpu.memory_space<vmem>>, vector<8x256xf32>,
    return
  }
  func.func @transform_0(%arg0: i32, %arg1: i32) -> (i32, i32) {
    %c0_i32 = arith.constant 0 : i32
    %c0_i32_0 = arith.constant 0 : i32
    return %arg0, %c0_i32 : i32, i32
  }
  func.func @transform_1(%arg0: i32, %arg1: i32) -> (i32, i32) {
    %c0_i32 = arith.constant 0 : i32
    %c0_i32_0 = arith.constant 0 : i32
    return %c0_i32, %arg1 : i32, i32
  }
  func.func @transform_2(%arg0: i32, %arg1: i32) -> (i32, i32) {
    %c0_i32 = arith.constant 0 : i32
    %c0_i32_0 = arith.constant 0 : i32
    return %c0_i32, %arg1 : i32, i32
  }
  func.func @transform_3(%arg0: i32, %arg1: i32) -> (i32, i32) {
    %c0_i32 = arith.constant 0 : i32
    return %arg0, %arg1 : i32, i32
  }
}

module attributes {stable_mosaic.version = 11 : i64} {
  func.func @_mm_full_k_kernel(%arg0: i32, %arg1: i32, %arg2: memref<8x256xf32, #tpu.memory_space<vmem>>, %arg3: memref<256x128xf32, #tpu.memory_space<vmem>>, %arg4: memref<1x128xf32, #tpu.memory_space<vmem>>, %arg5: memref<8x128xf32, #tpu.memory_space<vmem>>) attributes {dimension_semantics = [#tpu.dimension_semantics<parallel>, #tpu.dimension_semantics<parallel>], iteration_bounds = array<i64: 1, 1>, scalar_prefetch = 0 : i64, scratch_operands = 0 : i64, tpu.core_type = #tpu.core_type<tc>, window_params = [{transform_indices = @transform_0, window_bounds = array<i64: 8, 256>}, {transform_indices = @transform_1, window_bounds = array<i64: 256, 128>}, {transform_indices = @transform_2, window_bounds = array<i64: 1, 128>}, {transform_indices = @transform_3, window_bounds = array<i64: 8, 128>}]} {
    %c0 = arith.constant 0 : index
    %c0_0 = arith.constant 0 : index
    %0 = vector.load %arg2[%c0, %c0_0] : memref<8x256xf32, #tpu.memory_space<vmem>>, vector<8x256xf32>
    %c0_1 = arith.constant 0 : index
    %c0_2 = arith.constant 0 : index
    %1 = vector.load %arg3[%c0_1, %c0_2] : memref<256x128xf32, #tpu.memory_space<vmem>>, vector<256x128xf32>
    %cst = arith.constant dense<0.000000e+00> : vector<8x128xf32>
    %2 = tpu.matmul %0, %1, %cst {dimension_numbers = #tpu.dot_dimension_numbers<[1], [0], [0], [1], [0, 0, 1, 1], [], []>} : vector<8x256xf32>, vector<256x128xf32>, vector<8x128xf32> -> vector<8x128xf32>
    %c0_3 = arith.constant 0 : index
    %c0_4 = arith.constant 0 : index
    %3 = vector.load %arg4[%c0_3, %c0_4] : memref<1x128xf32, #tpu.memory_space<vmem>>, vector<1x128xf32>
    %4 = vector.broadcast %3 : vector<1x128xf32> to vector<8x128xf32>
    %5 = arith.addf %2, %4 : vector<8x128xf32>
    %c0_5 = arith.constant 0 : index
    %c0_6 = arith.constant 0 : index
    %6 = vector.load %arg5[%c0_5, %c0_6] : memref<8x128xf32, #tpu.memory_space<vmem>>, vector<8x128xf32>
    tpu.vector_store %arg5[%c0_5, %c0_6], %5 {strides = array<i32>} : memref<8x128xf32, #tpu.memory_space<vmem>>, vector<8x128xf32>,
    return
  }
  func.func @transform_0(%arg0: i32, %arg1: i32) -> (i32, i32) {
    %c0_i32 = arith.constant 0 : i32
    %c0_i32_0 = arith.constant 0 : i32
    return %arg0, %c0_i32 : i32, i32
  }
  func.func @transform_1(%arg0: i32, %arg1: i32) -> (i32, i32) {
    %c0_i32 = arith.constant 0 : i32
    %c0_i32_0 = arith.constant 0 : i32
    return %c0_i32, %arg1 : i32, i32
  }
  func.func @transform_2(%arg0: i32, %arg1: i32) -> (i32, i32) {
    %c0_i32 = arith.constant 0 : i32
    %c0_i32_0 = arith.constant 0 : i32
    return %c0_i32, %arg1 : i32, i32
  }
  func.func @transform_3(%arg0: i32, %arg1: i32) -> (i32, i32) {
    %c0_i32 = arith.constant 0 : i32
    return %arg0, %arg1 : i32, i32
  }
}

</mosaic_0001>

<bundles_post_ra>
// kernel: mixed_resolution_cnn_forward.4
= control target key start
LH: loop header
LB: loop body
LE: loop exit
PB: predicated region body
PF: predicated region fallthrough
CT: control target
= control target key end

     0   :  { %s1866_s12 = smov 0   ;;  %s1868_s13 = smov 0   ;;  %s2528_s0 = inlined_call_operand.vmem [shape: f32[4096,512], index: 0, kind: input, shape index: {}]   ;;  %s2529_s1 = inlined_call_operand.vmem [shape: f32[512,128], index: 1, kind: input, shape index: {}]   ;;  %s2530_s2 = inlined_call_operand.vmem [shape: f32[1,128], index: 2, kind: input, shape index: {}]   ;;  %s2531_s3 = inlined_call_operand.vmem [shape: f32[4096,128], index: 3, kind: output, shape index: {}]  }
   0x1   :  { %s1870_s14 = smov 0  }
   0x2 LB: > { %s25_s15 = sadd.s32 1, %s1839_s13  ;;  %p1561_p0 = scmp.ge.s32.totalorder %s1843_s14, 1  ;;  %s1843_s14 = sphi %s1870_s14, %s13_s14   ;;  %s1839_s13 = sphi %s1868_s13, %s2533_s13   ;;  %s1835_s12 = sphi %s1866_s12, %s2532_s12  }
   0x3   : > { %p27_p1 = scmp.ge.s32.totalorder %s25_s15, 8  ;;  %p170_p2 = scmp.lt.s32.totalorder %s1843_s14, 9 }
   0x5   : > { %s2535_s15 = smov (%p27_p1, %s25_s15), 0  ;;  %p171_p3 = pnand %p1561_p0, %p170_p2 }
   0x6   : > { %v484_v0 = vld [vmem:[%s2529_s1] sm:$0xff] (!%p171_p3)  ;;  %v485_v1 = vld [vmem:[%s2529_s1 + $0x8] sm:$0xff] (!%p171_p3)  ;;  %v1845_v3 = vmov (!%p171_p3), 0.0|0.0   ;;  %v486_v6 = vld [vmem:[%s2529_s1 + $0x10] sm:$0xff] (!%p171_p3)  ;;  %s1562_s9 = sshll.u32 (!%p171_p3), %s1835_s12, 6 }
   0x7   : > { %174 = sbr.rel (%p171_p3) target bundleno = 543 (0x21f), region = 32  ;;  %v516_v2 = vld [vmem:[%s2529_s1 + $0x100] sm:$0xff] (!%p171_p3)  ;;  %1571 = vmatprep.subr.bf16.mxu1 (!%p171_p3), %v1845_v3  ;;  %v1572_v4 = vpack.c.bf16 (!%p171_p3), %v485_v1, %v484_v0  ;;  %1619 = vmatprep.subr.bf16.mxu0 (!%p171_p3), %v1845_v3  ;;  %v517_v5 = vld [vmem:[%s2529_s1 + $0x108] sm:$0xff] (!%p171_p3)  ;;  %v487_v7 = vld [vmem:[%s2529_s1 + $0x18] sm:$0xff] (!%p171_p3)  ;;  %p206_p4 = scmp.lt.s32.totalorder (!%p171_p3), %s1562_s9, 511 }
   0x8   : > { %v1620_v8 = vpack.c.bf16 (!%p171_p3), %v517_v5, %v516_v2  ;;  %v518_v9 = vld [vmem:[%s2529_s1 + $0x110] sm:$0xff] (!%p171_p3)  ;;  %v519_v10 = vld [vmem:[%s2529_s1 + $0x118] sm:$0xff] (!%p171_p3)  ;;  %v1575_v11 = vpack.c.bf16 (!%p171_p3), %v487_v7, %v486_v6  ;;  %v488_v13 = vld [vmem:[%s2529_s1 + $0x20] sm:$0xff] (!%p171_p3) }
   0x9   : > { %1573 = vmatpush1.bf16.msra.mxu1 (!%p171_p3), %v1572_v4  ;;  %v1623_v12 = vpack.c.bf16 (!%p171_p3), %v519_v10, %v518_v9  ;;  %v489_v14 = vld [vmem:[%s2529_s1 + $0x28] sm:$0xff] (!%p171_p3)  ;;  %v520_v15 = vld [vmem:[%s2529_s1 + $0x120] sm:$0xff] (!%p171_p3)  ;;  %v490_v19 = vld [vmem:[%s2529_s1 + $0x30] sm:$0xff] (!%p171_p3) }
   0xa   : > { %1621 = vmatpush1.bf16.msra.mxu0 (!%p171_p3), %v1620_v8  ;;  %1574 = vmatprep.subr.bf16.mxu1 (!%p171_p3), %v1845_v3  ;;  %v521_v16 = vld [vmem:[%s2529_s1 + $0x128] sm:$0xff] (!%p171_p3)  ;;  %v1578_v17 = vpack.c.bf16 (!%p171_p3), %v489_v14, %v488_v13  ;;  %v491_v20 = vld [vmem:[%s2529_s1 + $0x38] sm:$0xff] (!%p171_p3)  ;;  %v522_v21 = vld [vmem:[%s2529_s1 + $0x130] sm:$0xff] (!%p171_p3) }
   0xb   : > { %1622 = vmatprep.subr.bf16.mxu0 (!%p171_p3), %v1845_v3  ;;  %v1626_v18 = vpack.c.bf16 (!%p171_p3), %v521_v16, %v520_v15  ;;  %v523_v22 = vld [vmem:[%s2529_s1 + $0x138] sm:$0xff] (!%p171_p3)  ;;  %v1581_v23 = vpack.c.bf16 (!%p171_p3), %v491_v20, %v490_v19  ;;  %v492_v25 = vld [vmem:[%s2529_s1 + $0x40] sm:$0xff] (!%p171_p3)  ;;  %v493_v26 = vld [vmem:[%s2529_s1 + $0x48] sm:$0xff] (!%p171_p3) }
   0xc   : > { %v1629_v24 = vpack.c.bf16 (!%p171_p3), %v523_v22, %v522_v21  ;;  %v524_v27 = vld [vmem:[%s2529_s1 + $0x140] sm:$0xff] (!%p171_p3)  ;;  %v525_v28 = vld [vmem:[%s2529_s1 + $0x148] sm:$0xff] (!%p171_p3)  ;;  %v1584_v29 = vpack.c.bf16 (!%p171_p3), %v493_v26, %v492_v25  ;;  %v494_v31 = vld [vmem:[%s2529_s1 + $0x50] sm:$0xff] (!%p171_p3) }
   0xd   : > { %1576 = vmatpush1.bf16.msra.mxu1 (!%p171_p3), %v1575_v11  ;;  %v1632_v30 = vpack.c.bf16 (!%p171_p3), %v525_v28, %v524_v27  ;;  %v495_v32 = vld [vmem:[%s2529_s1 + $0x58] sm:$0xff] (!%p171_p3)  ;;  %v526_v33 = vld [vmem:[%s2529_s1 + $0x150] sm:$0xff] (!%p171_p3)  ;;  %v496_v37 = vld [vmem:[%s2529_s1 + $0x60] sm:$0xff] (!%p171_p3) }
   0xe   : > { %1624 = vmatpush1.bf16.msra.mxu0 %v1623_v12  ;;  %1577 = vmatprep.subr.bf16.mxu1 %v1845_v3  ;;  %s2537_s9 = smov (!%p206_p4, %s1562_s9), 511  ;;  %v527_v34 = vld [vmem:[%s2529_s1 + $0x158] sm:$0xff]  ;;  %v1587_v35 = vpack.c.bf16 %v495_v32, %v494_v31  ;;  %v497_v38 = vld [vmem:[%s2529_s1 + $0x68] sm:$0xff]  ;;  %v528_v39 = vld [vmem:[%s2529_s1 + $0x160] sm:$0xff] }
   0xf   : > { %1625 = vmatprep.subr.bf16.mxu0 %v1845_v3  ;;  %s1570_s6 = sshll.u32 %s2537_s9, 5  ;;  %v1635_v36 = vpack.c.bf16 %v527_v34, %v526_v33  ;;  %v529_v40 = vld [vmem:[%s2529_s1 + $0x168] sm:$0xff]  ;;  %v1590_v43 = vpack.c.bf16 %v497_v38, %v496_v37  ;;  %v498_v45 = vld [vmem:[%s2529_s1 + $0x70] sm:$0xff]  ;;  %v499_v46 = vld [vmem:[%s2529_s1 + $0x78] sm:$0xff]  ;;  %s1566_s16 = sshll.u32 %s2537_s9, 3 }
  0x10   : > { %s1975_s21 = scalar_lea.vmem %s2528_s0, %s1570_s6  ;;  %v1638_v44 = vpack.c.bf16 %v529_v40, %v528_v39  ;;  %v530_v47 = vld [vmem:[%s2529_s1 + $0x170] sm:$0xff]  ;;  %v531_v48 = vld [vmem:[%s2529_s1 + $0x178] sm:$0xff]  ;;  %v1593_v49 = vpack.c.bf16 %v499_v46, %v498_v45  ;;  %v500_v51 = vld [vmem:[%s2529_s1 + $0x80] sm:$0xff]  ;;  %s2350_s19 = scalar_lea.vmem %s2531_s3, %s1566_s16 }
  0x11   : > { %1579 = vmatpush1.bf16.msra.mxu1 %v1578_v17  ;;  %v229_v41 = vld [vmem:[%s1975_s21 + $0x8] sm:$0xff]  ;;  %v231_v42 = vld [vmem:[%s1975_s21 + $0x18] sm:$0xff]  ;;  %v1641_v50 = vpack.c.bf16 %v531_v48, %v530_v47  ;;  %v532_v53 = vld [vmem:[%s2529_s1 + $0x180] sm:$0xff] }
  0x12   : > { %1627 = vmatpush1.bf16.msra.mxu0 %v1626_v18  ;;  %1580 = vmatprep.subr.bf16.mxu1 %v1845_v3  ;;  %v501_v52 = vld [vmem:[%s2529_s1 + $0x88] sm:$0xff]  ;;  %v502_v57 = vld [vmem:[%s2529_s1 + $0x90] sm:$0xff]  ;;  %v503_v58 = vld [vmem:[%s2529_s1 + $0x98] sm:$0xff] }
  0x13   : > { %1628 = vmatprep.subr.bf16.mxu0 %v1845_v3  ;;  %619 = vmatprep.mubr.f32.mxu1 %v229_v41  ;;  %v533_v54 = vld [vmem:[%s2529_s1 + $0x188] sm:$0xff]  ;;  %v1596_v55 = vpack.c.bf16 %v501_v52, %v500_v51  ;;  %v534_v59 = vld [vmem:[%s2529_s1 + $0x190] sm:$0xff]  ;;  %v535_v60 = vld [vmem:[%s2529_s1 + $0x198] sm:$0xff]  ;;  %v1599_v61 = vpack.c.bf16 %v503_v58, %v502_v57 }
  0x14   : > { %1004 = vmatprep.mubr.f32.mxu0 %v231_v42  ;;  %v1644_v56 = vpack.c.bf16 %v533_v54, %v532_v53  ;;  %v1647_v62 = vpack.c.bf16 %v535_v60, %v534_v59  ;;  %v504_v63 = vld [vmem:[%s2529_s1 + $0xa0] sm:$0xff]  ;;  %v505_v0 = vld [vmem:[%s2529_s1 + $0xa8] sm:$0xff]  ;;  %v506_v6 = vld [vmem:[%s2529_s1 + $0xb0] sm:$0xff] }
  0x15   : > { %1582 = vmatpush1.bf16.msra.mxu1 %v1581_v23  ;;  %v536_v1 = vld [vmem:[%s2529_s1 + $0x1a0] sm:$0xff]  ;;  %v537_v2 = vld [vmem:[%s2529_s1 + $0x1a8] sm:$0xff]  ;;  %v1602_v4 = vpack.c.bf16 %v505_v0, %v504_v63  ;;  %v507_v7 = vld [vmem:[%s2529_s1 + $0xb8] sm:$0xff] }
  0x16   : > { %1630 = vmatpush1.bf16.msra.mxu0 %v1629_v24  ;;  %1583 = vmatprep.subr.bf16.mxu1 %v1845_v3  ;;  %v1650_v5 = vpack.c.bf16 %v537_v2, %v536_v1  ;;  %v538_v8 = vld [vmem:[%s2529_s1 + $0x1b0] sm:$0xff]  ;;  %v539_v9 = vld [vmem:[%s2529_s1 + $0x1b8] sm:$0xff]  ;;  %v1605_v10 = vpack.c.bf16 %v507_v7, %v506_v6  ;;  %v508_v12 = vld [vmem:[%s2529_s1 + $0xc0] sm:$0xff] }
  0x17   : > { %1631 = vmatprep.subr.bf16.mxu0 %v1845_v3  ;;  %v1653_v11 = vpack.c.bf16 %v539_v9, %v538_v8  ;;  %v509_v13 = vld [vmem:[%s2529_s1 + $0xc8] sm:$0xff]  ;;  %v540_v14 = vld [vmem:[%s2529_s1 + $0x1c0] sm:$0xff]  ;;  %v510_v18 = vld [vmem:[%s2529_s1 + $0xd0] sm:$0xff] }
  0x18   : > { %v541_v15 = vld [vmem:[%s2529_s1 + $0x1c8] sm:$0xff]  ;;  %v1608_v16 = vpack.c.bf16 %v509_v13, %v508_v12  ;;  %v511_v19 = vld [vmem:[%s2529_s1 + $0xd8] sm:$0xff]  ;;  %v542_v20 = vld [vmem:[%s2529_s1 + $0x1d0] sm:$0xff] }
  0x19   : > { %1585 = vmatpush1.bf16.msra.mxu1 %v1584_v29  ;;  %v1656_v17 = vpack.c.bf16 %v541_v15, %v540_v14  ;;  %v543_v21 = vld [vmem:[%s2529_s1 + $0x1d8] sm:$0xff]  ;;  %v1611_v22 = vpack.c.bf16 %v511_v19, %v510_v18  ;;  %v512_v24 = vld [vmem:[%s2529_s1 + $0xe0] sm:$0xff]  ;;  %v513_v25 = vld [vmem:[%s2529_s1 + $0xe8] sm:$0xff] }
  0x1a   : > { %1633 = vmatpush1.bf16.msra.mxu0 %v1632_v30  ;;  %1586 = vmatprep.subr.bf16.mxu1 %v1845_v3  ;;  %v1659_v23 = vpack.c.bf16 %v543_v21, %v542_v20  ;;  %v544_v26 = vld [vmem:[%s2529_s1 + $0x1e0] sm:$0xff]  ;;  %v545_v27 = vld [vmem:[%s2529_s1 + $0x1e8] sm:$0xff]  ;;  %v1614_v28 = vpack.c.bf16 %v513_v25, %v512_v24  ;;  %v514_v30 = vld [vmem:[%s2529_s1 + $0xf0] sm:$0xff] }
  0x1b   : > { %1634 = vmatprep.subr.bf16.mxu0 %v1845_v3  ;;  %v1662_v29 = vpack.c.bf16 %v545_v27, %v544_v26  ;;  %v515_v31 = vld [vmem:[%s2529_s1 + $0xf8] sm:$0xff]  ;;  %v546_v32 = vld [vmem:[%s2529_s1 + $0x1f0] sm:$0xff]  ;;  %v233_v38 = vld [vmem:[%s1975_s21 + $0x28] sm:$0xff] }
  0x1c   : > { %v547_v33 = vld [vmem:[%s2529_s1 + $0x1f8] sm:$0xff]  ;;  %v1617_v34 = vpack.c.bf16 %v515_v31, %v514_v30  ;;  %v230_v37 = vld [vmem:[%s1975_s21 + $0x10] sm:$0xff]  ;;  %v232_v40 = vld [vmem:[%s1975_s21 + $0x20] sm:$0xff] }
  0x1d   : > { %1588 = vmatpush1.bf16.msra.mxu1 %v1587_v35  ;;  %v1665_v35 = vpack.c.bf16 %v547_v33, %v546_v32  ;;  %v235_v39 = vld [vmem:[%s1975_s21 + $0x38] sm:$0xff]  ;;  %v234_v41 = vld [vmem:[%s1975_s21 + $0x30] sm:$0xff]  ;;  %v237_v42 = vld [vmem:[%s1975_s21 + $0x48] sm:$0xff] }
  0x1e   : > { %1636 = vmatpush1.bf16.msra.mxu0 %v1635_v36  ;;  %1589 = vmatprep.subr.bf16.mxu1 %v1845_v3  ;;  %v228_v36 = vld [vmem:[%s1975_s21] sm:$0xff]  ;;  %v241_v45 = vld [vmem:[%s1975_s21 + $0x68] sm:$0xff]  ;;  %v243_v46 = vld [vmem:[%s1975_s21 + $0x78] sm:$0xff] }
  0x1f   : > { %1637 = vmatprep.subr.bf16.mxu0 %v1845_v3  ;;  %v240_v47 = vld [vmem:[%s1975_s21 + $0x60] sm:$0xff]  ;;  %v242_v48 = vld [vmem:[%s1975_s21 + $0x70] sm:$0xff]  ;;  %v249_v53 = vld [vmem:[%s1975_s21 + $0xa8] sm:$0xff] }
  0x20   : > { %v244_v51 = vld [vmem:[%s1975_s21 + $0x80] sm:$0xff]  ;;  %v246_v52 = vld [vmem:[%s1975_s21 + $0x90] sm:$0xff]  ;;  %v251_v54 = vld [vmem:[%s1975_s21 + $0xb8] sm:$0xff] }
  0x21   : > { %1591 = vmatpush1.bf16.msra.mxu1 %v1590_v43  ;;  %v236_v43 = vld [vmem:[%s1975_s21 + $0x40] sm:$0xff]  ;;  %v253_v57 = vld [vmem:[%s1975_s21 + $0xc8] sm:$0xff]  ;;  %v255_v58 = vld [vmem:[%s1975_s21 + $0xd8] sm:$0xff] }
  0x22   : > { %1639 = vmatpush1.bf16.msra.mxu0 %v1638_v44  ;;  %1592 = vmatprep.subr.bf16.mxu1 %v1845_v3  ;;  %v238_v44 = vld [vmem:[%s1975_s21 + $0x50] sm:$0xff]  ;;  %v252_v59 = vld [vmem:[%s1975_s21 + $0xc0] sm:$0xff]  ;;  %v261_v1 = vld [vmem:[%s1975_s21 + $0x108] sm:$0xff] }
  0x23   : > { %1640 = vmatprep.subr.bf16.mxu0 %v1845_v3  ;;  %v254_v60 = vld [vmem:[%s1975_s21 + $0xd0] sm:$0xff]  ;;  %v256_v63 = vld [vmem:[%s1975_s21 + $0xe0] sm:$0xff]  ;;  %v263_v2 = vld [vmem:[%s1975_s21 + $0x118] sm:$0xff] }
  0x24   : > { %v258_v0 = vld [vmem:[%s1975_s21 + $0xf0] sm:$0xff]  ;;  %v265_v6 = vld [vmem:[%s1975_s21 + $0x128] sm:$0xff]  ;;  %v267_v7 = vld [vmem:[%s1975_s21 + $0x138] sm:$0xff] }
  0x25   : > { %1594 = vmatpush1.bf16.msra.mxu1 %v1593_v49  ;;  %v245_v49 = vld [vmem:[%s1975_s21 + $0x88] sm:$0xff]  ;;  %v264_v8 = vld [vmem:[%s1975_s21 + $0x120] sm:$0xff]  ;;  %v266_v9 = vld [vmem:[%s1975_s21 + $0x130] sm:$0xff] }
  0x26   : > { %1642 = vmatpush1.bf16.msra.mxu0 %v1641_v50  ;;  %1595 = vmatprep.subr.bf16.mxu1 %v1845_v3  ;;  %v247_v50 = vld [vmem:[%s1975_s21 + $0x98] sm:$0xff]  ;;  %v268_v12 = vld [vmem:[%s1975_s21 + $0x140] sm:$0xff]  ;;  %v270_v13 = vld [vmem:[%s1975_s21 + $0x150] sm:$0xff] }
  0x27   : > { %1643 = vmatprep.subr.bf16.mxu0 %v1845_v3  ;;  %v273_v14 = vld [vmem:[%s1975_s21 + $0x168] sm:$0xff]  ;;  %v275_v15 = vld [vmem:[%s1975_s21 + $0x178] sm:$0xff]  ;;  %v276_v20 = vld [vmem:[%s1975_s21 + $0x180] sm:$0xff] }
  0x28   : > { %v277_v18 = vld [vmem:[%s1975_s21 + $0x188] sm:$0xff]  ;;  %v279_v19 = vld [vmem:[%s1975_s21 + $0x198] sm:$0xff]  ;;  %v278_v21 = vld [vmem:[%s1975_s21 + $0x190] sm:$0xff] }
  0x29   : > { %1597 = vmatpush1.bf16.msra.mxu1 %v1596_v55  ;;  %v248_v55 = vld [vmem:[%s1975_s21 + $0xa0] sm:$0xff]  ;;  %v282_v25 = vld [vmem:[%s1975_s21 + $0x1b0] sm:$0xff]  ;;  %v285_v26 = vld [vmem:[%s1975_s21 + $0x1c8] sm:$0xff] }
  0x2a   : > { %1645 = vmatpush1.bf16.msra.mxu0 %v1644_v56  ;;  %1598 = vmatprep.subr.bf16.mxu1 %v1845_v3  ;;  %v250_v56 = vld [vmem:[%s1975_s21 + $0xb0] sm:$0xff]  ;;  %v280_v24 = vld [vmem:[%s1975_s21 + $0x1a0] sm:$0xff]  ;;  %v287_v27 = vld [vmem:[%s1975_s21 + $0x1d8] sm:$0xff] }
  0x2b   : > { %1646 = vmatprep.subr.bf16.mxu0 %v1845_v3  ;;  %v289_v30 = vld [vmem:[%s1975_s21 + $0x1e8] sm:$0xff]  ;;  %v291_v31 = vld [vmem:[%s1975_s21 + $0x1f8] sm:$0xff]  ;;  %v288_v32 = vld [vmem:[%s1975_s21 + $0x1e0] sm:$0xff] }
  0x2c   : > { %v290_v33 = vld [vmem:[%s1975_s21 + $0x1f0] sm:$0xff] }
  0x2d   : > { %1600 = vmatpush1.bf16.msra.mxu1 %v1599_v61  ;;  %v257_v61 = vld [vmem:[%s1975_s21 + $0xe8] sm:$0xff] }
  0x2e   : > { %1648 = vmatpush1.bf16.msra.mxu0 %v1647_v62  ;;  %1601 = vmatprep.subr.bf16.mxu1 %v1845_v3  ;;  %v259_v62 = vld [vmem:[%s1975_s21 + $0xf8] sm:$0xff] }
  0x2f   : > { %1649 = vmatprep.subr.bf16.mxu0 %v1845_v3 }
  0x31   : > { %1603 = vmatpush1.bf16.msra.mxu1 %v1602_v4  ;;  %v260_v4 = vld [vmem:[%s1975_s21 + $0x100] sm:$0xff] }
  0x32   : > { %1651 = vmatpush1.bf16.msra.mxu0 %v1650_v5  ;;  %1604 = vmatprep.subr.bf16.mxu1 %v1845_v3  ;;  %v262_v5 = vld [vmem:[%s1975_s21 + $0x110] sm:$0xff] }
  0x33   : > { %1652 = vmatprep.subr.bf16.mxu0 %v1845_v3 }
  0x35   : > { %1606 = vmatpush1.bf16.msra.mxu1 %v1605_v10  ;;  %v269_v10 = vld [vmem:[%s1975_s21 + $0x148] sm:$0xff] }
  0x36   : > { %1654 = vmatpush1.bf16.msra.mxu0 %v1653_v11  ;;  %1607 = vmatprep.subr.bf16.mxu1 %v1845_v3  ;;  %v271_v11 = vld [vmem:[%s1975_s21 + $0x158] sm:$0xff] }
  0x37   : > { %1655 = vmatprep.subr.bf16.mxu0 %v1845_v3 }
  0x39   : > { %1609 = vmatpush1.bf16.msra.mxu1 %v1608_v16  ;;  %v272_v16 = vld [vmem:[%s1975_s21 + $0x160] sm:$0xff] }
  0x3a   : > { %1657 = vmatpush1.bf16.msra.mxu0 %v1656_v17  ;;  %1610 = vmatprep.subr.bf16.mxu1 %v1845_v3  ;;  %v274_v17 = vld [vmem:[%s1975_s21 + $0x170] sm:$0xff] }
  0x3b   : > { %1658 = vmatprep.subr.bf16.mxu0 %v1845_v3 }
  0x3d   : > { %1612 = vmatpush1.bf16.msra.mxu1 %v1611_v22  ;;  %v281_v22 = vld [vmem:[%s1975_s21 + $0x1a8] sm:$0xff] }
  0x3e   : > { %1660 = vmatpush1.bf16.msra.mxu0 %v1659_v23  ;;  %1613 = vmatprep.subr.bf16.mxu1 %v1845_v3  ;;  %v283_v23 = vld [vmem:[%s1975_s21 + $0x1b8] sm:$0xff] }
  0x3f   : > { %1661 = vmatprep.subr.bf16.mxu0 %v1845_v3 }
  0x41   : > { %1615 = vmatpush1.bf16.msra.mxu1 %v1614_v28  ;;  %v284_v28 = vld [vmem:[%s1975_s21 + $0x1c0] sm:$0xff] }
  0x42   : > { %1663 = vmatpush1.bf16.msra.mxu0 %v1662_v29  ;;  %1616 = vmatprep.subr.bf16.mxu1 %v1845_v3  ;;  %v286_v29 = vld [vmem:[%s1975_s21 + $0x1d0] sm:$0xff] }
  0x43   : > { %1664 = vmatprep.subr.bf16.mxu0 %v1845_v3  ;;  %v239_v3 = vld [vmem:[%s1975_s21 + $0x58] sm:$0xff] }
  0x45   : > { %1618 = vmatpush1.bf16.msra.mxu1 %v1617_v34  ;;  %v293_v34 = vld [vmem:[%s1975_s21 + $0x208] sm:$0xff] }
  0x46   : > { %1666 = vmatpush1.bf16.msra.mxu0 %v1665_v35  ;;  %v295_v35 = vld [vmem:[%s1975_s21 + $0x218] sm:$0xff] }
  0x48   : > { %620 = vmatmul.mubr.f32.vlgmr.msra.gmra.mrb[0].mxu1 %v228_v36  ;;  %v292_v36 = vld [vmem:[%s1975_s21 + $0x200] sm:$0xff] }
  0x49   : > { %1005 = vmatmul.mubr.f32.vlgmr.msra.gmra.mrb[0].mxu0 %v230_v37  ;;  %624 = vmatprep.mubr.f32.mxu1 %v233_v38  ;;  %v294_v37 = vld [vmem:[%s1975_s21 + $0x210] sm:$0xff]  ;;  %v297_v38 = vld [vmem:[%s1975_s21 + $0x228] sm:$0xff] }
  0x4a   : > { %1009 = vmatprep.mubr.f32.mxu0 %v235_v39  ;;  %v299_v39 = vld [vmem:[%s1975_s21 + $0x238] sm:$0xff] }
  0x4c   : > { %625 = vmatmul.mubr.f32.gmra.mrb[2].mxu1 %v232_v40  ;;  %v296_v40 = vld [vmem:[%s1975_s21 + $0x220] sm:$0xff] }
  0x4d   : > { %1010 = vmatmul.mubr.f32.gmra.mrb[2].mxu0 %v234_v41  ;;  %629 = vmatprep.mubr.f32.mxu1 %v237_v42  ;;  %v298_v41 = vld [vmem:[%s1975_s21 + $0x230] sm:$0xff]  ;;  %v301_v42 = vld [vmem:[%s1975_s21 + $0x248] sm:$0xff] }
  0x4e   : > { %1014 = vmatprep.mubr.f32.mxu0 %v239_v3  ;;  %v303_v3 = vld [vmem:[%s1975_s21 + $0x258] sm:$0xff] }
  0x50   : > { %630 = vmatmul.mubr.f32.gmra.mrb[4].mxu1 %v236_v43  ;;  %v300_v43 = vld [vmem:[%s1975_s21 + $0x240] sm:$0xff] }
  0x51   : > { %1015 = vmatmul.mubr.f32.gmra.mrb[4].mxu0 %v238_v44  ;;  %634 = vmatprep.mubr.f32.mxu1 %v241_v45  ;;  %v302_v44 = vld [vmem:[%s1975_s21 + $0x250] sm:$0xff]  ;;  %v305_v45 = vld [vmem:[%s1975_s21 + $0x268] sm:$0xff] }
  0x52   : > { %1019 = vmatprep.mubr.f32.mxu0 %v243_v46  ;;  %v307_v46 = vld [vmem:[%s1975_s21 + $0x278] sm:$0xff] }
  0x54   : > { %635 = vmatmul.mubr.f32.gmra.mrb[6].mxu1 %v240_v47  ;;  %v304_v47 = vld [vmem:[%s1975_s21 + $0x260] sm:$0xff] }
  0x55   : > { %1020 = vmatmul.mubr.f32.gmra.mrb[6].mxu0 %v242_v48  ;;  %639 = vmatprep.mubr.f32.mxu1 %v245_v49  ;;  %v306_v48 = vld [vmem:[%s1975_s21 + $0x270] sm:$0xff]  ;;  %v309_v49 = vld [vmem:[%s1975_s21 + $0x288] sm:$0xff] }
  0x56   : > { %1024 = vmatprep.mubr.f32.mxu0 %v247_v50  ;;  %v311_v50 = vld [vmem:[%s1975_s21 + $0x298] sm:$0xff] }
  0x58   : > { %640 = vmatmul.mubr.f32.gmra.mrb[8].mxu1 %v244_v51  ;;  %v308_v51 = vld [vmem:[%s1975_s21 + $0x280] sm:$0xff] }
  0x59   : > { %1025 = vmatmul.mubr.f32.gmra.mrb[8].mxu0 %v246_v52  ;;  %644 = vmatprep.mubr.f32.mxu1 %v249_v53  ;;  %v310_v52 = vld [vmem:[%s1975_s21 + $0x290] sm:$0xff]  ;;  %v313_v53 = vld [vmem:[%s1975_s21 + $0x2a8] sm:$0xff] }
  0x5a   : > { %1029 = vmatprep.mubr.f32.mxu0 %v251_v54  ;;  %v315_v54 = vld [vmem:[%s1975_s21 + $0x2b8] sm:$0xff] }
  0x5c   : > { %645 = vmatmul.mubr.f32.gmra.mrb[10].mxu1 %v248_v55  ;;  %v312_v55 = vld [vmem:[%s1975_s21 + $0x2a0] sm:$0xff] }
  0x5d   : > { %1030 = vmatmul.mubr.f32.gmra.mrb[10].mxu0 %v250_v56  ;;  %649 = vmatprep.mubr.f32.mxu1 %v253_v57  ;;  %v314_v56 = vld [vmem:[%s1975_s21 + $0x2b0] sm:$0xff]  ;;  %v317_v57 = vld [vmem:[%s1975_s21 + $0x2c8] sm:$0xff] }
  0x5e   : > { %1034 = vmatprep.mubr.f32.mxu0 %v255_v58  ;;  %v319_v58 = vld [vmem:[%s1975_s21 + $0x2d8] sm:$0xff] }
  0x60   : > { %650 = vmatmul.mubr.f32.gmra.mrb[12].mxu1 %v252_v59  ;;  %v316_v59 = vld [vmem:[%s1975_s21 + $0x2c0] sm:$0xff] }
  0x61   : > { %1035 = vmatmul.mubr.f32.gmra.mrb[12].mxu0 %v254_v60  ;;  %654 = vmatprep.mubr.f32.mxu1 %v257_v61  ;;  %v318_v60 = vld [vmem:[%s1975_s21 + $0x2d0] sm:$0xff]  ;;  %v321_v61 = vld [vmem:[%s1975_s21 + $0x2e8] sm:$0xff] }
  0x62   : > { %1039 = vmatprep.mubr.f32.mxu0 %v259_v62  ;;  %v323_v62 = vld [vmem:[%s1975_s21 + $0x2f8] sm:$0xff] }
  0x64   : > { %655 = vmatmul.mubr.f32.gmra.mrb[14].mxu1 %v256_v63  ;;  %v320_v63 = vld [vmem:[%s1975_s21 + $0x2e0] sm:$0xff] }
  0x65   : > { %1040 = vmatmul.mubr.f32.gmra.mrb[14].mxu0 %v258_v0  ;;  %659 = vmatprep.mubr.f32.mxu1 %v261_v1  ;;  %v322_v0 = vld [vmem:[%s1975_s21 + $0x2f0] sm:$0xff]  ;;  %v325_v1 = vld [vmem:[%s1975_s21 + $0x308] sm:$0xff] }
  0x66   : > { %1044 = vmatprep.mubr.f32.mxu0 %v263_v2  ;;  %v327_v2 = vld [vmem:[%s1975_s21 + $0x318] sm:$0xff] }
  0x68   : > { %660 = vmatmul.mubr.f32.gmra.mrb[16].mxu1 %v260_v4  ;;  %v324_v4 = vld [vmem:[%s1975_s21 + $0x300] sm:$0xff] }
  0x69   : > { %1045 = vmatmul.mubr.f32.gmra.mrb[16].mxu0 %v262_v5  ;;  %664 = vmatprep.mubr.f32.mxu1 %v265_v6  ;;  %v326_v5 = vld [vmem:[%s1975_s21 + $0x310] sm:$0xff]  ;;  %v329_v6 = vld [vmem:[%s1975_s21 + $0x328] sm:$0xff] }
  0x6a   : > { %1049 = vmatprep.mubr.f32.mxu0 %v267_v7  ;;  %v331_v7 = vld [vmem:[%s1975_s21 + $0x338] sm:$0xff] }
  0x6c   : > { %665 = vmatmul.mubr.f32.gmra.mrb[18].mxu1 %v264_v8  ;;  %v328_v8 = vld [vmem:[%s1975_s21 + $0x320] sm:$0xff] }
  0x6d   : > { %1050 = vmatmul.mubr.f32.gmra.mrb[18].mxu0 %v266_v9  ;;  %669 = vmatprep.mubr.f32.mxu1 %v269_v10  ;;  %v330_v9 = vld [vmem:[%s1975_s21 + $0x330] sm:$0xff]  ;;  %v333_v10 = vld [vmem:[%s1975_s21 + $0x348] sm:$0xff] }
  0x6e   : > { %1054 = vmatprep.mubr.f32.mxu0 %v271_v11  ;;  %v335_v11 = vld [vmem:[%s1975_s21 + $0x358] sm:$0xff] }
  0x70   : > { %670 = vmatmul.mubr.f32.gmra.mrb[20].mxu1 %v268_v12  ;;  %v332_v12 = vld [vmem:[%s1975_s21 + $0x340] sm:$0xff] }
  0x71   : > { %1055 = vmatmul.mubr.f32.gmra.mrb[20].mxu0 %v270_v13  ;;  %674 = vmatprep.mubr.f32.mxu1 %v273_v14  ;;  %v334_v13 = vld [vmem:[%s1975_s21 + $0x350] sm:$0xff]  ;;  %v337_v14 = vld [vmem:[%s1975_s21 + $0x368] sm:$0xff] }
  0x72   : > { %1059 = vmatprep.mubr.f32.mxu0 %v275_v15  ;;  %v339_v15 = vld [vmem:[%s1975_s21 + $0x378] sm:$0xff] }
  0x74   : > { %675 = vmatmul.mubr.f32.gmra.mrb[22].mxu1 %v272_v16  ;;  %v336_v16 = vld [vmem:[%s1975_s21 + $0x360] sm:$0xff] }
  0x75   : > { %1060 = vmatmul.mubr.f32.gmra.mrb[22].mxu0 %v274_v17  ;;  %679 = vmatprep.mubr.f32.mxu1 %v277_v18  ;;  %v338_v17 = vld [vmem:[%s1975_s21 + $0x370] sm:$0xff]  ;;  %v341_v18 = vld [vmem:[%s1975_s21 + $0x388] sm:$0xff] }
  0x76   : > { %1064 = vmatprep.mubr.f32.mxu0 %v279_v19  ;;  %v343_v19 = vld [vmem:[%s1975_s21 + $0x398] sm:$0xff] }
  0x78   : > { %680 = vmatmul.mubr.f32.gmra.mrb[24].mxu1 %v276_v20  ;;  %v340_v20 = vld [vmem:[%s1975_s21 + $0x380] sm:$0xff] }
  0x79   : > { %1065 = vmatmul.mubr.f32.gmra.mrb[24].mxu0 %v278_v21  ;;  %684 = vmatprep.mubr.f32.mxu1 %v281_v22  ;;  %v342_v21 = vld [vmem:[%s1975_s21 + $0x390] sm:$0xff]  ;;  %v345_v22 = vld [vmem:[%s1975_s21 + $0x3a8] sm:$0xff] }
  0x7a   : > { %1069 = vmatprep.mubr.f32.mxu0 %v283_v23  ;;  %v347_v23 = vld [vmem:[%s1975_s21 + $0x3b8] sm:$0xff] }
  0x7c   : > { %685 = vmatmul.mubr.f32.gmra.mrb[26].mxu1 %v280_v24  ;;  %v344_v24 = vld [vmem:[%s1975_s21 + $0x3a0] sm:$0xff] }
  0x7d   : > { %1070 = vmatmul.mubr.f32.gmra.mrb[26].mxu0 %v282_v25  ;;  %689 = vmatprep.mubr.f32.mxu1 %v285_v26  ;;  %v346_v25 = vld [vmem:[%s1975_s21 + $0x3b0] sm:$0xff]  ;;  %v349_v26 = vld [vmem:[%s1975_s21 + $0x3c8] sm:$0xff] }
  0x7e   : > { %1074 = vmatprep.mubr.f32.mxu0 %v287_v27  ;;  %v351_v27 = vld [vmem:[%s1975_s21 + $0x3d8] sm:$0xff] }
  0x80   : > { %690 = vmatmul.mubr.f32.gmra.mrb[28].mxu1 %v284_v28  ;;  %v348_v28 = vld [vmem:[%s1975_s21 + $0x3c0] sm:$0xff] }
  0x81   : > { %1075 = vmatmul.mubr.f32.gmra.mrb[28].mxu0 %v286_v29  ;;  %694 = vmatprep.mubr.f32.mxu1 %v289_v30  ;;  %v350_v29 = vld [vmem:[%s1975_s21 + $0x3d0] sm:$0xff]  ;;  %v353_v30 = vld [vmem:[%s1975_s21 + $0x3e8] sm:$0xff] }
  0x82   : > { %1079 = vmatprep.mubr.f32.mxu0 %v291_v31  ;;  %v355_v31 = vld [vmem:[%s1975_s21 + $0x3f8] sm:$0xff] }
  0x84   : > { %695 = vmatmul.mubr.f32.gmra.mrb[30].mxu1 %v288_v32  ;;  %v352_v32 = vld [vmem:[%s1975_s21 + $0x3e0] sm:$0xff] }
  0x85   : > { %1080 = vmatmul.mubr.f32.gmra.mrb[30].mxu0 %v290_v33  ;;  %699 = vmatprep.mubr.f32.mxu1 %v293_v34  ;;  %v354_v33 = vld [vmem:[%s1975_s21 + $0x3f0] sm:$0xff]  ;;  %v357_v34 = vld [vmem:[%s1975_s21 + $0x408] sm:$0xff] }
  0x86   : > { %1084 = vmatprep.mubr.f32.mxu0 %v295_v35  ;;  %v359_v35 = vld [vmem:[%s1975_s21 + $0x418] sm:$0xff] }
  0x88   : > { %700 = vmatmul.mubr.f32.gmra.mrb[32].mxu1 %v292_v36  ;;  %v356_v36 = vld [vmem:[%s1975_s21 + $0x400] sm:$0xff] }
  0x89   : > { %1085 = vmatmul.mubr.f32.gmra.mrb[32].mxu0 %v294_v37  ;;  %704 = vmatprep.mubr.f32.mxu1 %v297_v38  ;;  %v358_v37 = vld [vmem:[%s1975_s21 + $0x410] sm:$0xff]  ;;  %v361_v38 = vld [vmem:[%s1975_s21 + $0x428] sm:$0xff] }
  0x8a   : > { %1089 = vmatprep.mubr.f32.mxu0 %v299_v39  ;;  %v363_v39 = vld [vmem:[%s1975_s21 + $0x438] sm:$0xff] }
  0x8c   : > { %705 = vmatmul.mubr.f32.gmra.mrb[34].mxu1 %v296_v40  ;;  %v360_v40 = vld [vmem:[%s1975_s21 + $0x420] sm:$0xff] }
  0x8d   : > { %1090 = vmatmul.mubr.f32.gmra.mrb[34].mxu0 %v298_v41  ;;  %709 = vmatprep.mubr.f32.mxu1 %v301_v42  ;;  %v362_v41 = vld [vmem:[%s1975_s21 + $0x430] sm:$0xff]  ;;  %v365_v42 = vld [vmem:[%s1975_s21 + $0x448] sm:$0xff] }
  0x8e   : > { %1094 = vmatprep.mubr.f32.mxu0 %v303_v3  ;;  %v367_v3 = vld [vmem:[%s1975_s21 + $0x458] sm:$0xff] }
  0x90   : > { %710 = vmatmul.mubr.f32.gmra.mrb[36].mxu1 %v300_v43  ;;  %v364_v43 = vld [vmem:[%s1975_s21 + $0x440] sm:$0xff] }
  0x91   : > { %1095 = vmatmul.mubr.f32.gmra.mrb[36].mxu0 %v302_v44  ;;  %714 = vmatprep.mubr.f32.mxu1 %v305_v45  ;;  %v366_v44 = vld [vmem:[%s1975_s21 + $0x450] sm:$0xff]  ;;  %v369_v45 = vld [vmem:[%s1975_s21 + $0x468] sm:$0xff] }
  0x92   : > { %1099 = vmatprep.mubr.f32.mxu0 %v307_v46  ;;  %v371_v46 = vld [vmem:[%s1975_s21 + $0x478] sm:$0xff] }
  0x94   : > { %715 = vmatmul.mubr.f32.gmra.mrb[38].mxu1 %v304_v47  ;;  %v368_v47 = vld [vmem:[%s1975_s21 + $0x460] sm:$0xff] }
  0x95   : > { %1100 = vmatmul.mubr.f32.gmra.mrb[38].mxu0 %v306_v48  ;;  %719 = vmatprep.mubr.f32.mxu1 %v309_v49  ;;  %v370_v48 = vld [vmem:[%s1975_s21 + $0x470] sm:$0xff]  ;;  %v373_v49 = vld [vmem:[%s1975_s21 + $0x488] sm:$0xff] }
  0x96   : > { %1104 = vmatprep.mubr.f32.mxu0 %v311_v50  ;;  %v375_v50 = vld [vmem:[%s1975_s21 + $0x498] sm:$0xff] }
  0x98   : > { %720 = vmatmul.mubr.f32.gmra.mrb[40].mxu1 %v308_v51  ;;  %v372_v51 = vld [vmem:[%s1975_s21 + $0x480] sm:$0xff] }
  0x99   : > { %1105 = vmatmul.mubr.f32.gmra.mrb[40].mxu0 %v310_v52  ;;  %724 = vmatprep.mubr.f32.mxu1 %v313_v53  ;;  %v374_v52 = vld [vmem:[%s1975_s21 + $0x490] sm:$0xff]  ;;  %v377_v53 = vld [vmem:[%s1975_s21 + $0x4a8] sm:$0xff] }
  0x9a   : > { %1109 = vmatprep.mubr.f32.mxu0 %v315_v54  ;;  %v379_v54 = vld [vmem:[%s1975_s21 + $0x4b8] sm:$0xff] }
  0x9c   : > { %725 = vmatmul.mubr.f32.gmra.mrb[42].mxu1 %v312_v55  ;;  %v376_v55 = vld [vmem:[%s1975_s21 + $0x4a0] sm:$0xff] }
  0x9d   : > { %1110 = vmatmul.mubr.f32.gmra.mrb[42].mxu0 %v314_v56  ;;  %729 = vmatprep.mubr.f32.mxu1 %v317_v57  ;;  %v378_v56 = vld [vmem:[%s1975_s21 + $0x4b0] sm:$0xff]  ;;  %v381_v57 = vld [vmem:[%s1975_s21 + $0x4c8] sm:$0xff] }
  0x9e   : > { %1114 = vmatprep.mubr.f32.mxu0 %v319_v58  ;;  %v383_v58 = vld [vmem:[%s1975_s21 + $0x4d8] sm:$0xff] }
  0xa0   : > { %730 = vmatmul.mubr.f32.gmra.mrb[44].mxu1 %v316_v59  ;;  %v380_v59 = vld [vmem:[%s1975_s21 + $0x4c0] sm:$0xff] }
  0xa1   : > { %1115 = vmatmul.mubr.f32.gmra.mrb[44].mxu0 %v318_v60  ;;  %734 = vmatprep.mubr.f32.mxu1 %v321_v61  ;;  %v382_v60 = vld [vmem:[%s1975_s21 + $0x4d0] sm:$0xff]  ;;  %v385_v61 = vld [vmem:[%s1975_s21 + $0x4e8] sm:$0xff] }
  0xa2   : > { %1119 = vmatprep.mubr.f32.mxu0 %v323_v62  ;;  %v387_v62 = vld [vmem:[%s1975_s21 + $0x4f8] sm:$0xff] }
  0xa4   : > { %735 = vmatmul.mubr.f32.gmra.mrb[46].mxu1 %v320_v63  ;;  %v384_v63 = vld [vmem:[%s1975_s21 + $0x4e0] sm:$0xff] }
  0xa5   : > { %1120 = vmatmul.mubr.f32.gmra.mrb[46].mxu0 %v322_v0  ;;  %739 = vmatprep.mubr.f32.mxu1 %v325_v1  ;;  %v386_v0 = vld [vmem:[%s1975_s21 + $0x4f0] sm:$0xff]  ;;  %v389_v1 = vld [vmem:[%s1975_s21 + $0x508] sm:$0xff] }
  0xa6   : > { %1124 = vmatprep.mubr.f32.mxu0 %v327_v2  ;;  %v391_v2 = vld [vmem:[%s1975_s21 + $0x518] sm:$0xff] }
  0xa8   : > { %740 = vmatmul.mubr.f32.gmra.mrb[48].mxu1 %v324_v4  ;;  %v388_v4 = vld [vmem:[%s1975_s21 + $0x500] sm:$0xff] }
  0xa9   : > { %1125 = vmatmul.mubr.f32.gmra.mrb[48].mxu0 %v326_v5  ;;  %744 = vmatprep.mubr.f32.mxu1 %v329_v6  ;;  %v390_v5 = vld [vmem:[%s1975_s21 + $0x510] sm:$0xff]  ;;  %v393_v6 = vld [vmem:[%s1975_s21 + $0x528] sm:$0xff] }
  0xaa   : > { %1129 = vmatprep.mubr.f32.mxu0 %v331_v7  ;;  %v395_v7 = vld [vmem:[%s1975_s21 + $0x538] sm:$0xff] }
  0xac   : > { %745 = vmatmul.mubr.f32.gmra.mrb[50].mxu1 %v328_v8  ;;  %v392_v8 = vld [vmem:[%s1975_s21 + $0x520] sm:$0xff] }
  0xad   : > { %1130 = vmatmul.mubr.f32.gmra.mrb[50].mxu0 %v330_v9  ;;  %749 = vmatprep.mubr.f32.mxu1 %v333_v10  ;;  %v394_v9 = vld [vmem:[%s1975_s21 + $0x530] sm:$0xff]  ;;  %v397_v10 = vld [vmem:[%s1975_s21 + $0x548] sm:$0xff] }
  0xae   : > { %1134 = vmatprep.mubr.f32.mxu0 %v335_v11  ;;  %v399_v11 = vld [vmem:[%s1975_s21 + $0x558] sm:$0xff] }
  0xb0   : > { %750 = vmatmul.mubr.f32.gmra.mrb[52].mxu1 %v332_v12  ;;  %v396_v12 = vld [vmem:[%s1975_s21 + $0x540] sm:$0xff] }
  0xb1   : > { %1135 = vmatmul.mubr.f32.gmra.mrb[52].mxu0 %v334_v13  ;;  %754 = vmatprep.mubr.f32.mxu1 %v337_v14  ;;  %v398_v13 = vld [vmem:[%s1975_s21 + $0x550] sm:$0xff]  ;;  %v401_v14 = vld [vmem:[%s1975_s21 + $0x568] sm:$0xff] }
  0xb2   : > { %1139 = vmatprep.mubr.f32.mxu0 %v339_v15  ;;  %v403_v15 = vld [vmem:[%s1975_s21 + $0x578] sm:$0xff] }
  0xb4   : > { %755 = vmatmul.mubr.f32.gmra.mrb[54].mxu1 %v336_v16  ;;  %v400_v16 = vld [vmem:[%s1975_s21 + $0x560] sm:$0xff] }
  0xb5   : > { %1140 = vmatmul.mubr.f32.gmra.mrb[54].mxu0 %v338_v17  ;;  %759 = vmatprep.mubr.f32.mxu1 %v341_v18  ;;  %v402_v17 = vld [vmem:[%s1975_s21 + $0x570] sm:$0xff]  ;;  %v405_v18 = vld [vmem:[%s1975_s21 + $0x588] sm:$0xff] }
  0xb6   : > { %1144 = vmatprep.mubr.f32.mxu0 %v343_v19  ;;  %v407_v19 = vld [vmem:[%s1975_s21 + $0x598] sm:$0xff] }
  0xb8   : > { %760 = vmatmul.mubr.f32.gmra.mrb[56].mxu1 %v340_v20  ;;  %v404_v20 = vld [vmem:[%s1975_s21 + $0x580] sm:$0xff] }
  0xb9   : > { %1145 = vmatmul.mubr.f32.gmra.mrb[56].mxu0 %v342_v21  ;;  %764 = vmatprep.mubr.f32.mxu1 %v345_v22  ;;  %v406_v21 = vld [vmem:[%s1975_s21 + $0x590] sm:$0xff]  ;;  %v409_v22 = vld [vmem:[%s1975_s21 + $0x5a8] sm:$0xff] }
  0xba   : > { %1149 = vmatprep.mubr.f32.mxu0 %v347_v23  ;;  %v411_v23 = vld [vmem:[%s1975_s21 + $0x5b8] sm:$0xff] }
  0xbc   : > { %765 = vmatmul.mubr.f32.gmra.mrb[58].mxu1 %v344_v24  ;;  %v408_v24 = vld [vmem:[%s1975_s21 + $0x5a0] sm:$0xff] }
  0xbd   : > { %1150 = vmatmul.mubr.f32.gmra.mrb[58].mxu0 %v346_v25  ;;  %769 = vmatprep.mubr.f32.mxu1 %v349_v26  ;;  %v410_v25 = vld [vmem:[%s1975_s21 + $0x5b0] sm:$0xff]  ;;  %v413_v26 = vld [vmem:[%s1975_s21 + $0x5c8] sm:$0xff] }
  0xbe   : > { %1154 = vmatprep.mubr.f32.mxu0 %v351_v27  ;;  %v415_v27 = vld [vmem:[%s1975_s21 + $0x5d8] sm:$0xff] }
  0xc0   : > { %770 = vmatmul.mubr.f32.gmra.mrb[60].mxu1 %v348_v28  ;;  %v412_v28 = vld [vmem:[%s1975_s21 + $0x5c0] sm:$0xff] }
  0xc1   : > { %1155 = vmatmul.mubr.f32.gmra.mrb[60].mxu0 %v350_v29  ;;  %774 = vmatprep.mubr.f32.mxu1 %v353_v30  ;;  %v414_v29 = vld [vmem:[%s1975_s21 + $0x5d0] sm:$0xff]  ;;  %v417_v30 = vld [vmem:[%s1975_s21 + $0x5e8] sm:$0xff] }
  0xc2   : > { %1159 = vmatprep.mubr.f32.mxu0 %v355_v31  ;;  %v419_v31 = vld [vmem:[%s1975_s21 + $0x5f8] sm:$0xff] }
  0xc4   : > { %775 = vmatmul.mubr.f32.gmra.mrb[62].mxu1 %v352_v32  ;;  %v416_v32 = vld [vmem:[%s1975_s21 + $0x5e0] sm:$0xff] }
  0xc5   : > { %1160 = vmatmul.mubr.f32.gmra.mrb[62].mxu0 %v354_v33  ;;  %779 = vmatprep.mubr.f32.mxu1 %v357_v34  ;;  %v418_v33 = vld [vmem:[%s1975_s21 + $0x5f0] sm:$0xff]  ;;  %v421_v34 = vld [vmem:[%s1975_s21 + $0x608] sm:$0xff] }
  0xc6   : > { %1164 = vmatprep.mubr.f32.mxu0 %v359_v35  ;;  %v423_v35 = vld [vmem:[%s1975_s21 + $0x618] sm:$0xff] }
  0xc8   : > { %780 = vmatmul.mubr.f32.gmra.mrb[64].mxu1 %v356_v36  ;;  %v420_v36 = vld [vmem:[%s1975_s21 + $0x600] sm:$0xff] }
  0xc9   : > { %1165 = vmatmul.mubr.f32.gmra.mrb[64].mxu0 %v358_v37  ;;  %784 = vmatprep.mubr.f32.mxu1 %v361_v38  ;;  %v422_v37 = vld [vmem:[%s1975_s21 + $0x610] sm:$0xff]  ;;  %v425_v38 = vld [vmem:[%s1975_s21 + $0x628] sm:$0xff] }
  0xca   : > { %1169 = vmatprep.mubr.f32.mxu0 %v363_v39  ;;  %v427_v39 = vld [vmem:[%s1975_s21 + $0x638] sm:$0xff] }
  0xcc   : > { %785 = vmatmul.mubr.f32.gmra.mrb[66].mxu1 %v360_v40  ;;  %v424_v40 = vld [vmem:[%s1975_s21 + $0x620] sm:$0xff] }
  0xcd   : > { %1170 = vmatmul.mubr.f32.gmra.mrb[66].mxu0 %v362_v41  ;;  %789 = vmatprep.mubr.f32.mxu1 %v365_v42  ;;  %v426_v41 = vld [vmem:[%s1975_s21 + $0x630] sm:$0xff]  ;;  %v429_v42 = vld [vmem:[%s1975_s21 + $0x648] sm:$0xff] }
  0xce   : > { %1174 = vmatprep.mubr.f32.mxu0 %v367_v3  ;;  %v431_v3 = vld [vmem:[%s1975_s21 + $0x658] sm:$0xff] }
  0xd0   : > { %790 = vmatmul.mubr.f32.gmra.mrb[68].mxu1 %v364_v43  ;;  %v428_v43 = vld [vmem:[%s1975_s21 + $0x640] sm:$0xff] }
  0xd1   : > { %1175 = vmatmul.mubr.f32.gmra.mrb[68].mxu0 %v366_v44  ;;  %794 = vmatprep.mubr.f32.mxu1 %v369_v45  ;;  %v430_v44 = vld [vmem:[%s1975_s21 + $0x650] sm:$0xff]  ;;  %v433_v45 = vld [vmem:[%s1975_s21 + $0x668] sm:$0xff] }
  0xd2   : > { %1179 = vmatprep.mubr.f32.mxu0 %v371_v46  ;;  %v435_v46 = vld [vmem:[%s1975_s21 + $0x678] sm:$0xff] }
  0xd4   : > { %795 = vmatmul.mubr.f32.gmra.mrb[70].mxu1 %v368_v47  ;;  %v432_v47 = vld [vmem:[%s1975_s21 + $0x660] sm:$0xff] }
  0xd5   : > { %1180 = vmatmul.mubr.f32.gmra.mrb[70].mxu0 %v370_v48  ;;  %799 = vmatprep.mubr.f32.mxu1 %v373_v49  ;;  %v434_v48 = vld [vmem:[%s1975_s21 + $0x670] sm:$0xff]  ;;  %v437_v49 = vld [vmem:[%s1975_s21 + $0x688] sm:$0xff] }
  0xd6   : > { %1184 = vmatprep.mubr.f32.mxu0 %v375_v50  ;;  %v439_v50 = vld [vmem:[%s1975_s21 + $0x698] sm:$0xff] }
  0xd8   : > { %800 = vmatmul.mubr.f32.gmra.mrb[72].mxu1 %v372_v51  ;;  %v436_v51 = vld [vmem:[%s1975_s21 + $0x680] sm:$0xff] }
  0xd9   : > { %1185 = vmatmul.mubr.f32.gmra.mrb[72].mxu0 %v374_v52  ;;  %804 = vmatprep.mubr.f32.mxu1 %v377_v53  ;;  %v438_v52 = vld [vmem:[%s1975_s21 + $0x690] sm:$0xff]  ;;  %v441_v53 = vld [vmem:[%s1975_s21 + $0x6a8] sm:$0xff] }
  0xda   : > { %1189 = vmatprep.mubr.f32.mxu0 %v379_v54  ;;  %v443_v54 = vld [vmem:[%s1975_s21 + $0x6b8] sm:$0xff] }
  0xdc   : > { %805 = vmatmul.mubr.f32.gmra.mrb[74].mxu1 %v376_v55  ;;  %v2336_v55 = vld [vmem:[%s2530_s2] ss:$0 sm:$0xff] }
  0xdd   : > { %1190 = vmatmul.mubr.f32.gmra.mrb[74].mxu0 %v378_v56  ;;  %809 = vmatprep.mubr.f32.mxu1 %v381_v57  ;;  %v440_v56 = vld [vmem:[%s1975_s21 + $0x6a0] sm:$0xff]  ;;  %v442_v57 = vld [vmem:[%s1975_s21 + $0x6b0] sm:$0xff] }
  0xde   : > { %1194 = vmatprep.mubr.f32.mxu0 %v383_v58  ;;  %v445_v58 = vld [vmem:[%s1975_s21 + $0x6c8] sm:$0xff] }
  0xe0   : > { %810 = vmatmul.mubr.f32.gmra.mrb[76].mxu1 %v380_v59 }
  0xe1   : > { %1195 = vmatmul.mubr.f32.gmra.mrb[76].mxu0 %v382_v60  ;;  %814 = vmatprep.mubr.f32.mxu1 %v385_v61  ;;  %v447_v60 = vld [vmem:[%s1975_s21 + $0x6d8] sm:$0xff] }
  0xe2   : > { %1199 = vmatprep.mubr.f32.mxu0 %v387_v62 }
  0xe4   : > { %815 = vmatmul.mubr.f32.gmra.mrb[78].mxu1 %v384_v63 }
  0xe5   : > { %1200 = vmatmul.mubr.f32.gmra.mrb[78].mxu0 %v386_v0  ;;  %819 = vmatprep.mubr.f32.mxu1 %v389_v1  ;;  %v444_v1 = vld [vmem:[%s1975_s21 + $0x6c0] sm:$0xff] }
  0xe6   : > { %1204 = vmatprep.mubr.f32.mxu0 %v391_v2 }
  0xe8   : > { %820 = vmatmul.mubr.f32.gmra.mrb[80].mxu1 %v388_v4  ;;  %v446_v4 = vld [vmem:[%s1975_s21 + $0x6d0] sm:$0xff] }
  0xe9   : > { %1205 = vmatmul.mubr.f32.gmra.mrb[80].mxu0 %v390_v5  ;;  %824 = vmatprep.mubr.f32.mxu1 %v393_v6  ;;  %v449_v5 = vld [vmem:[%s1975_s21 + $0x6e8] sm:$0xff] }
  0xea   : > { %1209 = vmatprep.mubr.f32.mxu0 %v395_v7  ;;  %v451_v7 = vld [vmem:[%s1975_s21 + $0x6f8] sm:$0xff] }
  0xec   : > { %825 = vmatmul.mubr.f32.gmra.mrb[82].mxu1 %v392_v8 }
  0xed   : > { %1210 = vmatmul.mubr.f32.gmra.mrb[82].mxu0 %v394_v9  ;;  %829 = vmatprep.mubr.f32.mxu1 %v397_v10 }
  0xee   : > { %1214 = vmatprep.mubr.f32.mxu0 %v399_v11 }
  0xf0   : > { %830 = vmatmul.mubr.f32.gmra.mrb[84].mxu1 %v396_v12 }
  0xf1   : > { %1215 = vmatmul.mubr.f32.gmra.mrb[84].mxu0 %v398_v13  ;;  %834 = vmatprep.mubr.f32.mxu1 %v401_v14  ;;  %v448_v13 = vld [vmem:[%s1975_s21 + $0x6e0] sm:$0xff] }
  0xf2   : > { %1219 = vmatprep.mubr.f32.mxu0 %v403_v15  ;;  %v450_v15 = vld [vmem:[%s1975_s21 + $0x6f0] sm:$0xff] }
  0xf4   : > { %835 = vmatmul.mubr.f32.gmra.mrb[86].mxu1 %v400_v16  ;;  %v453_v16 = vld [vmem:[%s1975_s21 + $0x708] sm:$0xff] }
  0xf5   : > { %1220 = vmatmul.mubr.f32.gmra.mrb[86].mxu0 %v402_v17  ;;  %839 = vmatprep.mubr.f32.mxu1 %v405_v18  ;;  %v455_v18 = vld [vmem:[%s1975_s21 + $0x718] sm:$0xff] }
  0xf6   : > { %1224 = vmatprep.mubr.f32.mxu0 %v407_v19 }
  0xf8   : > { %840 = vmatmul.mubr.f32.gmra.mrb[88].mxu1 %v404_v20 }
  0xf9   : > { %1225 = vmatmul.mubr.f32.gmra.mrb[88].mxu0 %v406_v21  ;;  %844 = vmatprep.mubr.f32.mxu1 %v409_v22 }
  0xfa   : > { %1229 = vmatprep.mubr.f32.mxu0 %v411_v23 }
  0xfc   : > { %845 = vmatmul.mubr.f32.gmra.mrb[90].mxu1 %v408_v24  ;;  %v452_v24 = vld [vmem:[%s1975_s21 + $0x700] sm:$0xff] }
  0xfd   : > { %1230 = vmatmul.mubr.f32.gmra.mrb[90].mxu0 %v410_v25  ;;  %849 = vmatprep.mubr.f32.mxu1 %v413_v26  ;;  %v454_v26 = vld [vmem:[%s1975_s21 + $0x710] sm:$0xff] }
  0xfe   : > { %1234 = vmatprep.mubr.f32.mxu0 %v415_v27  ;;  %v457_v27 = vld [vmem:[%s1975_s21 + $0x728] sm:$0xff] }
 0x100   : > { %850 = vmatmul.mubr.f32.gmra.mrb[92].mxu1 %v412_v28 }
 0x101   : > { %1235 = vmatmul.mubr.f32.gmra.mrb[92].mxu0 %v414_v29  ;;  %854 = vmatprep.mubr.f32.mxu1 %v417_v30  ;;  %v459_v29 = vld [vmem:[%s1975_s21 + $0x738] sm:$0xff] }
 0x102   : > { %1239 = vmatprep.mubr.f32.mxu0 %v419_v31 }
 0x104   : > { %855 = vmatmul.mubr.f32.gmra.mrb[94].mxu1 %v416_v32 }
 0x105   : > { %1240 = vmatmul.mubr.f32.gmra.mrb[94].mxu0 %v418_v33  ;;  %859 = vmatprep.mubr.f32.mxu1 %v421_v34 }
 0x106   : > { %1244 = vmatprep.mubr.f32.mxu0 %v423_v35  ;;  %v456_v35 = vld [vmem:[%s1975_s21 + $0x720] sm:$0xff] }
 0x108   : > { %860 = vmatmul.mubr.f32.gmra.mrb[96].mxu1 %v420_v36 }
 0x109   : > { %1245 = vmatmul.mubr.f32.gmra.mrb[96].mxu0 %v422_v37  ;;  %864 = vmatprep.mubr.f32.mxu1 %v425_v38  ;;  %v458_v37 = vld [vmem:[%s1975_s21 + $0x730] sm:$0xff]  ;;  %v461_v38 = vld [vmem:[%s1975_s21 + $0x748] sm:$0xff] }
 0x10a   : > { %1249 = vmatprep.mubr.f32.mxu0 %v427_v39 }
 0x10c   : > { %865 = vmatmul.mubr.f32.gmra.mrb[98].mxu1 %v424_v40  ;;  %v463_v40 = vld [vmem:[%s1975_s21 + $0x758] sm:$0xff] }
 0x10d   : > { %1250 = vmatmul.mubr.f32.gmra.mrb[98].mxu0 %v426_v41  ;;  %869 = vmatprep.mubr.f32.mxu1 %v429_v42 }
 0x10e   : > { %1254 = vmatprep.mubr.f32.mxu0 %v431_v3 }
 0x110   : > { %870 = vmatmul.mubr.f32.gmra.mrb[100].mxu1 %v428_v43 }
 0x111   : > { %1255 = vmatmul.mubr.f32.gmra.mrb[100].mxu0 %v430_v44  ;;  %874 = vmatprep.mubr.f32.mxu1 %v433_v45  ;;  %v460_v45 = vld [vmem:[%s1975_s21 + $0x740] sm:$0xff] }
 0x112   : > { %1259 = vmatprep.mubr.f32.mxu0 %v435_v46 }
 0x114   : > { %875 = vmatmul.mubr.f32.gmra.mrb[102].mxu1 %v432_v47  ;;  %v462_v47 = vld [vmem:[%s1975_s21 + $0x750] sm:$0xff] }
 0x115   : > { %1260 = vmatmul.mubr.f32.gmra.mrb[102].mxu0 %v434_v48  ;;  %879 = vmatprep.mubr.f32.mxu1 %v437_v49  ;;  %v465_v48 = vld [vmem:[%s1975_s21 + $0x768] sm:$0xff] }
 0x116   : > { %1264 = vmatprep.mubr.f32.mxu0 %v439_v50  ;;  %v467_v50 = vld [vmem:[%s1975_s21 + $0x778] sm:$0xff] }
 0x118   : > { %880 = vmatmul.mubr.f32.gmra.mrb[104].mxu1 %v436_v51 }
 0x119   : > { %1265 = vmatmul.mubr.f32.gmra.mrb[104].mxu0 %v438_v52  ;;  %884 = vmatprep.mubr.f32.mxu1 %v441_v53 }
 0x11a   : > { %1269 = vmatprep.mubr.f32.mxu0 %v443_v54 }
 0x11b   : > { %v621_v59 = vpop.f32.mrb[0].mxu1 }
 0x11c   : > { %v622_v61 = vadd.f32 %v2336_v55, %v621_v59  ;;  %v623_v62 = vpop.f32.mrb[1].mxu1  ;;  %885 = vmatmul.mubr.f32.gmra.mrb[106].mxu1 %v440_v56  ;;  %v1006_v63 = vpop.f32.mrb[0].mxu0  ;;  %v466_v59 = vld [vmem:[%s1975_s21 + $0x770] sm:$0xff] }
 0x11d   : > { %v1008_v0 = vpop.f32.mrb[1].mxu0  ;;  %1270 = vmatmul.mubr.f32.gmra.mrb[106].mxu0 %v442_v57  ;;  %889 = vmatprep.mubr.f32.mxu1 %v445_v58  ;;  %v464_v57 = vld [vmem:[%s1975_s21 + $0x760] sm:$0xff]  ;;  %v471_v62 = vld [vmem:[%s1975_s21 + $0x798] sm:$0xff] }
 0x11e   : > { %v1007_v2 = vadd.f32 %v1006_v63, %v622_v61  ;;  %1274 = vmatprep.mubr.f32.mxu0 %v447_v60  ;;  %v469_v60 = vld [vmem:[%s1975_s21 + $0x788] sm:$0xff] }
 0x11f   : > { %v626_v6 = vpop.f32.mrb[2].mxu1 }
 0x120   : > { %v1325_v8 = vmax.f32 %v1007_v2, 0.0  ;;  %v627_v9 = vadd.f32 %v2336_v55, %v626_v6  ;;  %v628_v10 = vpop.f32.mrb[3].mxu1  ;;  %890 = vmatmul.mubr.f32.gmra.mrb[108].mxu1 %v444_v1  ;;  %v1011_v11 = vpop.f32.mrb[2].mxu0 }
 0x121   : > { %v1013_v12 = vpop.f32.mrb[3].mxu0  ;;  %1275 = vmatmul.mubr.f32.gmra.mrb[108].mxu0 %v446_v4  ;;  %894 = vmatprep.mubr.f32.mxu1 %v449_v5  ;;  %v468_v5 = vld [vmem:[%s1975_s21 + $0x780] sm:$0xff]  ;;  %v475_v10 = vld [vmem:[%s1975_s21 + $0x7b8] sm:$0xff] }
 0x122   : > { %1389 = vst [vmem:[%s2350_s19] sm:$0xff] %v1325_v8  ;;  %v1012_v14 = vadd.f32 %v1011_v11, %v627_v9  ;;  %1279 = vmatprep.mubr.f32.mxu0 %v451_v7  ;;  %v470_v7 = vld [vmem:[%s1975_s21 + $0x790] sm:$0xff]  ;;  %v473_v8 = vld [vmem:[%s1975_s21 + $0x7a8] sm:$0xff] }
 0x123   : > { %v631_v17 = vpop.f32.mrb[4].mxu1 }
 0x124   : > { %v1326_v19 = vmax.f32 %v1012_v14, 0.0  ;;  %v632_v20 = vadd.f32 %v2336_v55, %v631_v17  ;;  %v633_v21 = vpop.f32.mrb[5].mxu1  ;;  %895 = vmatmul.mubr.f32.gmra.mrb[110].mxu1 %v448_v13  ;;  %v1016_v22 = vpop.f32.mrb[4].mxu0 }
 0x125   : > { %v1018_v23 = vpop.f32.mrb[5].mxu0  ;;  %1280 = vmatmul.mubr.f32.gmra.mrb[110].mxu0 %v450_v15  ;;  %899 = vmatprep.mubr.f32.mxu1 %v453_v16  ;;  %v472_v16 = vld [vmem:[%s1975_s21 + $0x7a0] sm:$0xff]  ;;  %v479_v21 = vld [vmem:[%s1975_s21 + $0x7d8] sm:$0xff] }
 0x126   : > { %1390 = vst [vmem:[%s2350_s19 + $0x8] sm:$0xff] %v1326_v19  ;;  %v1017_v25 = vadd.f32 %v1016_v22, %v632_v20  ;;  %1284 = vmatprep.mubr.f32.mxu0 %v455_v18  ;;  %v474_v18 = vld [vmem:[%s1975_s21 + $0x7b0] sm:$0xff]  ;;  %v477_v19 = vld [vmem:[%s1975_s21 + $0x7c8] sm:$0xff] }
 0x127   : > { %v636_v28 = vpop.f32.mrb[6].mxu1 }
 0x128   : > { %v1327_v30 = vmax.f32 %v1017_v25, 0.0  ;;  %v637_v31 = vadd.f32 %v2336_v55, %v636_v28  ;;  %v638_v32 = vpop.f32.mrb[7].mxu1  ;;  %900 = vmatmul.mubr.f32.gmra.mrb[112].mxu1 %v452_v24  ;;  %v1021_v33 = vpop.f32.mrb[6].mxu0 }
 0x129   : > { %v1023_v34 = vpop.f32.mrb[7].mxu0  ;;  %1285 = vmatmul.mubr.f32.gmra.mrb[112].mxu0 %v454_v26  ;;  %904 = vmatprep.mubr.f32.mxu1 %v457_v27  ;;  %v476_v27 = vld [vmem:[%s1975_s21 + $0x7c0] sm:$0xff]  ;;  %v483_v32 = vld [vmem:[%s1975_s21 + $0x7f8] sm:$0xff] }
 0x12a   : > { %1391 = vst [vmem:[%s2350_s19 + $0x10] sm:$0xff] %v1327_v30  ;;  %v1022_v36 = vadd.f32 %v1021_v33, %v637_v31  ;;  %1289 = vmatprep.mubr.f32.mxu0 %v459_v29  ;;  %v478_v29 = vld [vmem:[%s1975_s21 + $0x7d0] sm:$0xff]  ;;  %v481_v30 = vld [vmem:[%s1975_s21 + $0x7e8] sm:$0xff] }
 0x12b   : > { %v641_v39 = vpop.f32.mrb[8].mxu1 }
 0x12c   : > { %v1328_v41 = vmax.f32 %v1022_v36, 0.0  ;;  %v642_v42 = vadd.f32 %v2336_v55, %v641_v39  ;;  %v643_v3 = vpop.f32.mrb[9].mxu1  ;;  %905 = vmatmul.mubr.f32.gmra.mrb[114].mxu1 %v456_v35  ;;  %v1026_v43 = vpop.f32.mrb[8].mxu0 }
 0x12d   : > { %v1028_v44 = vpop.f32.mrb[9].mxu0  ;;  %1290 = vmatmul.mubr.f32.gmra.mrb[114].mxu0 %v458_v37  ;;  %909 = vmatprep.mubr.f32.mxu1 %v461_v38  ;;  %v480_v38 = vld [vmem:[%s1975_s21 + $0x7e0] sm:$0xff] }
 0x12e   : > { %1392 = vst [vmem:[%s2350_s19 + $0x18] sm:$0xff] %v1328_v41  ;;  %v1027_v46 = vadd.f32 %v1026_v43, %v642_v42  ;;  %1294 = vmatprep.mubr.f32.mxu0 %v463_v40  ;;  %v482_v40 = vld [vmem:[%s1975_s21 + $0x7f0] sm:$0xff] }
 0x12f   : > { %v646_v49 = vpop.f32.mrb[10].mxu1 }
 0x130   : > { %v1329_v51 = vmax.f32 %v1027_v46, 0.0  ;;  %v647_v52 = vadd.f32 %v2336_v55, %v646_v49  ;;  %v648_v53 = vpop.f32.mrb[11].mxu1  ;;  %910 = vmatmul.mubr.f32.gmra.mrb[116].mxu1 %v460_v45  ;;  %v1031_v54 = vpop.f32.mrb[10].mxu0 }
 0x131   : > { %v1033_v56 = vpop.f32.mrb[11].mxu0  ;;  %1295 = vmatmul.mubr.f32.gmra.mrb[116].mxu0 %v462_v47  ;;  %914 = vmatprep.mubr.f32.mxu1 %v465_v48 }
 0x132   : > { %1393 = vst [vmem:[%s2350_s19 + $0x20] sm:$0xff] %v1329_v51  ;;  %v1032_v58 = vadd.f32 %v1031_v54, %v647_v52  ;;  %1299 = vmatprep.mubr.f32.mxu0 %v467_v50 }
 0x133   : > { %v651_v61 = vpop.f32.mrb[12].mxu1 }
 0x134   : > { %v1330_v63 = vmax.f32 %v1032_v58, 0.0  ;;  %v652_v0 = vadd.f32 %v2336_v55, %v651_v61  ;;  %v653_v1 = vpop.f32.mrb[13].mxu1  ;;  %915 = vmatmul.mubr.f32.gmra.mrb[118].mxu1 %v464_v57  ;;  %v1036_v2 = vpop.f32.mrb[12].mxu0 }
 0x135   : > { %v1038_v4 = vpop.f32.mrb[13].mxu0  ;;  %1300 = vmatmul.mubr.f32.gmra.mrb[118].mxu0 %v466_v59  ;;  %919 = vmatprep.mubr.f32.mxu1 %v469_v60 }
 0x136   : > { %1394 = vst [vmem:[%s2350_s19 + $0x28] sm:$0xff] %v1330_v63  ;;  %v1037_v6 = vadd.f32 %v1036_v2, %v652_v0  ;;  %1304 = vmatprep.mubr.f32.mxu0 %v471_v62 }
 0x137   : > { %v656_v9 = vpop.f32.mrb[14].mxu1 }
 0x138   : > { %v1331_v11 = vmax.f32 %v1037_v6, 0.0  ;;  %v657_v12 = vadd.f32 %v2336_v55, %v656_v9  ;;  %v658_v13 = vpop.f32.mrb[15].mxu1  ;;  %920 = vmatmul.mubr.f32.gmra.mrb[120].mxu1 %v468_v5  ;;  %v1041_v14 = vpop.f32.mrb[14].mxu0 }
 0x139   : > { %v1043_v15 = vpop.f32.mrb[15].mxu0  ;;  %1305 = vmatmul.mubr.f32.gmra.mrb[120].mxu0 %v470_v7  ;;  %924 = vmatprep.mubr.f32.mxu1 %v473_v8 }
 0x13a   : > { %1395 = vst [vmem:[%s2350_s19 + $0x30] sm:$0xff] %v1331_v11  ;;  %v1042_v17 = vadd.f32 %v1041_v14, %v657_v12  ;;  %1309 = vmatprep.mubr.f32.mxu0 %v475_v10 }
 0x13b   : > { %v661_v20 = vpop.f32.mrb[16].mxu1 }
 0x13c   : > { %v1332_v22 = vmax.f32 %v1042_v17, 0.0  ;;  %v662_v23 = vadd.f32 %v2336_v55, %v661_v20  ;;  %v663_v24 = vpop.f32.mrb[17].mxu1  ;;  %925 = vmatmul.mubr.f32.gmra.mrb[122].mxu1 %v472_v16  ;;  %v1046_v25 = vpop.f32.mrb[16].mxu0 }
 0x13d   : > { %v1048_v26 = vpop.f32.mrb[17].mxu0  ;;  %1310 = vmatmul.mubr.f32.gmra.mrb[122].mxu0 %v474_v18  ;;  %929 = vmatprep.mubr.f32.mxu1 %v477_v19 }
 0x13e   : > { %1396 = vst [vmem:[%s2350_s19 + $0x38] sm:$0xff] %v1332_v22  ;;  %v1047_v28 = vadd.f32 %v1046_v25, %v662_v23  ;;  %1314 = vmatprep.mubr.f32.mxu0 %v479_v21 }
 0x13f   : > { %v666_v31 = vpop.f32.mrb[18].mxu1 }
 0x140   : > { %v1333_v33 = vmax.f32 %v1047_v28, 0.0  ;;  %v667_v34 = vadd.f32 %v2336_v55, %v666_v31  ;;  %v668_v35 = vpop.f32.mrb[19].mxu1  ;;  %930 = vmatmul.mubr.f32.gmra.mrb[124].mxu1 %v476_v27  ;;  %v1051_v36 = vpop.f32.mrb[18].mxu0 }
 0x141   : > { %v1053_v37 = vpop.f32.mrb[19].mxu0  ;;  %1315 = vmatmul.mubr.f32.gmra.mrb[124].mxu0 %v478_v29  ;;  %934 = vmatprep.mubr.f32.mxu1 %v481_v30 }
 0x142   : > { %1397 = vst [vmem:[%s2350_s19 + $0x40] sm:$0xff] %v1333_v33  ;;  %v1052_v39 = vadd.f32 %v1051_v36, %v667_v34  ;;  %1319 = vmatprep.mubr.f32.mxu0 %v483_v32 }
 0x143   : > { %v671_v41 = vpop.f32.mrb[20].mxu1 }
 0x144   : > { %v1334_v42 = vmax.f32 %v1052_v39, 0.0  ;;  %v672_v3 = vadd.f32 %v2336_v55, %v671_v41  ;;  %v673_v43 = vpop.f32.mrb[21].mxu1  ;;  %935 = vmatmul.mubr.f32.gmra.mrb[126].mxu1 %v480_v38  ;;  %v1056_v44 = vpop.f32.mrb[20].mxu0 }
 0x145   : > { %v1058_v45 = vpop.f32.mrb[21].mxu0  ;;  %1320 = vmatmul.mubr.f32.gmra.mrb[126].mxu0 %v482_v40 }
 0x146   : > { %1398 = vst [vmem:[%s2350_s19 + $0x48] sm:$0xff] %v1334_v42  ;;  %v1057_v46 = vadd.f32 %v1056_v44, %v672_v3 }
 0x147   : > { %v676_v47 = vpop.f32.mrb[22].mxu1 }
 0x148   : > { %v1335_v48 = vmax.f32 %v1057_v46, 0.0  ;;  %v677_v49 = vadd.f32 %v2336_v55, %v676_v47  ;;  %v678_v50 = vpop.f32.mrb[23].mxu1  ;;  %v1061_v51 = vpop.f32.mrb[22].mxu0 }
 0x149   : > { %v1063_v52 = vpop.f32.mrb[23].mxu0 }
 0x14a   : > { %1399 = vst [vmem:[%s2350_s19 + $0x50] sm:$0xff] %v1335_v48  ;;  %v1062_v53 = vadd.f32 %v1061_v51, %v677_v49 }
 0x14b   : > { %v681_v54 = vpop.f32.mrb[24].mxu1 }
 0x14c   : > { %v1336_v56 = vmax.f32 %v1062_v53, 0.0  ;;  %v682_v57 = vadd.f32 %v2336_v55, %v681_v54  ;;  %v683_v58 = vpop.f32.mrb[25].mxu1  ;;  %v1066_v59 = vpop.f32.mrb[24].mxu0 }
 0x14d   : > { %v1068_v60 = vpop.f32.mrb[25].mxu0 }
 0x14e   : > { %1400 = vst [vmem:[%s2350_s19 + $0x58] sm:$0xff] %v1336_v56  ;;  %v1067_v61 = vadd.f32 %v1066_v59, %v682_v57 }
 0x14f   : > { %v686_v62 = vpop.f32.mrb[26].mxu1 }
 0x150   : > { %v1337_v63 = vmax.f32 %v1067_v61, 0.0  ;;  %v687_v0 = vadd.f32 %v2336_v55, %v686_v62  ;;  %v688_v1 = vpop.f32.mrb[27].mxu1  ;;  %v1071_v2 = vpop.f32.mrb[26].mxu0 }
 0x151   : > { %v1073_v4 = vpop.f32.mrb[27].mxu0 }
 0x152   : > { %1401 = vst [vmem:[%s2350_s19 + $0x60] sm:$0xff] %v1337_v63  ;;  %v1072_v5 = vadd.f32 %v1071_v2, %v687_v0 }
 0x153   : > { %v691_v6 = vpop.f32.mrb[28].mxu1 }
 0x154   : > { %v1338_v7 = vmax.f32 %v1072_v5, 0.0  ;;  %v692_v8 = vadd.f32 %v2336_v55, %v691_v6  ;;  %v693_v9 = vpop.f32.mrb[29].mxu1  ;;  %v1076_v10 = vpop.f32.mrb[28].mxu0 }
 0x155   : > { %v1078_v11 = vpop.f32.mrb[29].mxu0 }
 0x156   : > { %1402 = vst [vmem:[%s2350_s19 + $0x68] sm:$0xff] %v1338_v7  ;;  %v1077_v12 = vadd.f32 %v1076_v10, %v692_v8 }
 0x157   : > { %v696_v13 = vpop.f32.mrb[30].mxu1 }
 0x158   : > { %v1339_v14 = vmax.f32 %v1077_v12, 0.0  ;;  %v697_v15 = vadd.f32 %v2336_v55, %v696_v13  ;;  %v698_v16 = vpop.f32.mrb[31].mxu1  ;;  %v1081_v17 = vpop.f32.mrb[30].mxu0 }
 0x159   : > { %v1083_v18 = vpop.f32.mrb[31].mxu0 }
 0x15a   : > { %1403 = vst [vmem:[%s2350_s19 + $0x70] sm:$0xff] %v1339_v14  ;;  %v1082_v19 = vadd.f32 %v1081_v17, %v697_v15 }
 0x15b   : > { %v701_v20 = vpop.f32.mrb[32].mxu1 }
 0x15c   : > { %v1340_v21 = vmax.f32 %v1082_v19, 0.0  ;;  %v702_v22 = vadd.f32 %v2336_v55, %v701_v20  ;;  %v703_v23 = vpop.f32.mrb[33].mxu1  ;;  %v1086_v24 = vpop.f32.mrb[32].mxu0 }
 0x15d   : > { %v1088_v25 = vpop.f32.mrb[33].mxu0 }
 0x15e   : > { %1404 = vst [vmem:[%s2350_s19 + $0x78] sm:$0xff] %v1340_v21  ;;  %v1087_v26 = vadd.f32 %v1086_v24, %v702_v22 }
 0x15f   : > { %v706_v27 = vpop.f32.mrb[34].mxu1 }
 0x160   : > { %v1341_v28 = vmax.f32 %v1087_v26, 0.0  ;;  %v707_v29 = vadd.f32 %v2336_v55, %v706_v27  ;;  %v708_v30 = vpop.f32.mrb[35].mxu1  ;;  %v1091_v31 = vpop.f32.mrb[34].mxu0 }
 0x161   : > { %v1093_v32 = vpop.f32.mrb[35].mxu0 }
 0x162   : > { %1405 = vst [vmem:[%s2350_s19 + $0x80] sm:$0xff] %v1341_v28  ;;  %v1092_v33 = vadd.f32 %v1091_v31, %v707_v29 }
 0x163   : > { %v711_v34 = vpop.f32.mrb[36].mxu1 }
 0x164   : > { %v1342_v35 = vmax.f32 %v1092_v33, 0.0  ;;  %v712_v36 = vadd.f32 %v2336_v55, %v711_v34  ;;  %v713_v37 = vpop.f32.mrb[37].mxu1  ;;  %v1096_v38 = vpop.f32.mrb[36].mxu0 }
 0x165   : > { %v1098_v39 = vpop.f32.mrb[37].mxu0 }
 0x166   : > { %1406 = vst [vmem:[%s2350_s19 + $0x88] sm:$0xff] %v1342_v35  ;;  %v1097_v40 = vadd.f32 %v1096_v38, %v712_v36 }
 0x167   : > { %v716_v41 = vpop.f32.mrb[38].mxu1 }
 0x168   : > { %v1343_v42 = vmax.f32 %v1097_v40, 0.0  ;;  %v717_v3 = vadd.f32 %v2336_v55, %v716_v41  ;;  %v718_v43 = vpop.f32.mrb[39].mxu1  ;;  %v1101_v44 = vpop.f32.mrb[38].mxu0 }
 0x169   : > { %v1103_v45 = vpop.f32.mrb[39].mxu0 }
 0x16a   : > { %1407 = vst [vmem:[%s2350_s19 + $0x90] sm:$0xff] %v1343_v42  ;;  %v1102_v46 = vadd.f32 %v1101_v44, %v717_v3 }
 0x16b   : > { %v721_v47 = vpop.f32.mrb[40].mxu1 }
 0x16c   : > { %v1344_v48 = vmax.f32 %v1102_v46, 0.0  ;;  %v722_v49 = vadd.f32 %v2336_v55, %v721_v47  ;;  %v723_v50 = vpop.f32.mrb[41].mxu1  ;;  %v1106_v51 = vpop.f32.mrb[40].mxu0 }
 0x16d   : > { %v1108_v52 = vpop.f32.mrb[41].mxu0 }
 0x16e   : > { %1408 = vst [vmem:[%s2350_s19 + $0x98] sm:$0xff] %v1344_v48  ;;  %v1107_v53 = vadd.f32 %v1106_v51, %v722_v49 }
 0x16f   : > { %v726_v54 = vpop.f32.mrb[42].mxu1 }
 0x170   : > { %v1345_v56 = vmax.f32 %v1107_v53, 0.0  ;;  %v727_v57 = vadd.f32 %v2336_v55, %v726_v54  ;;  %v728_v58 = vpop.f32.mrb[43].mxu1  ;;  %v1111_v59 = vpop.f32.mrb[42].mxu0 }
 0x171   : > { %v1113_v60 = vpop.f32.mrb[43].mxu0 }
 0x172   : > { %1409 = vst [vmem:[%s2350_s19 + $0xa0] sm:$0xff] %v1345_v56  ;;  %v1112_v61 = vadd.f32 %v1111_v59, %v727_v57 }
 0x173   : > { %v731_v62 = vpop.f32.mrb[44].mxu1 }
 0x174   : > { %v1346_v63 = vmax.f32 %v1112_v61, 0.0  ;;  %v732_v0 = vadd.f32 %v2336_v55, %v731_v62  ;;  %v733_v1 = vpop.f32.mrb[45].mxu1  ;;  %v1116_v2 = vpop.f32.mrb[44].mxu0 }
 0x175   : > { %v1118_v4 = vpop.f32.mrb[45].mxu0 }
 0x176   : > { %1410 = vst [vmem:[%s2350_s19 + $0xa8] sm:$0xff] %v1346_v63  ;;  %v1117_v5 = vadd.f32 %v1116_v2, %v732_v0 }
 0x177   : > { %v736_v6 = vpop.f32.mrb[46].mxu1 }
 0x178   : > { %v1347_v7 = vmax.f32 %v1117_v5, 0.0  ;;  %v737_v8 = vadd.f32 %v2336_v55, %v736_v6  ;;  %v738_v9 = vpop.f32.mrb[47].mxu1  ;;  %v1121_v10 = vpop.f32.mrb[46].mxu0 }
 0x179   : > { %v1123_v11 = vpop.f32.mrb[47].mxu0 }
 0x17a   : > { %1411 = vst [vmem:[%s2350_s19 + $0xb0] sm:$0xff] %v1347_v7  ;;  %v1122_v12 = vadd.f32 %v1121_v10, %v737_v8 }
 0x17b   : > { %v741_v13 = vpop.f32.mrb[48].mxu1 }
 0x17c   : > { %v1348_v14 = vmax.f32 %v1122_v12, 0.0  ;;  %v742_v15 = vadd.f32 %v2336_v55, %v741_v13  ;;  %v743_v16 = vpop.f32.mrb[49].mxu1  ;;  %v1126_v17 = vpop.f32.mrb[48].mxu0 }
 0x17d   : > { %v1128_v18 = vpop.f32.mrb[49].mxu0 }
 0x17e   : > { %1412 = vst [vmem:[%s2350_s19 + $0xb8] sm:$0xff] %v1348_v14  ;;  %v1127_v19 = vadd.f32 %v1126_v17, %v742_v15 }
 0x17f   : > { %v746_v20 = vpop.f32.mrb[50].mxu1 }
 0x180   : > { %v1349_v21 = vmax.f32 %v1127_v19, 0.0  ;;  %v747_v22 = vadd.f32 %v2336_v55, %v746_v20  ;;  %v748_v23 = vpop.f32.mrb[51].mxu1  ;;  %v1131_v24 = vpop.f32.mrb[50].mxu0 }
 0x181   : > { %v1133_v25 = vpop.f32.mrb[51].mxu0 }
 0x182   : > { %1413 = vst [vmem:[%s2350_s19 + $0xc0] sm:$0xff] %v1349_v21  ;;  %v1132_v26 = vadd.f32 %v1131_v24, %v747_v22 }
 0x183   : > { %v751_v27 = vpop.f32.mrb[52].mxu1 }
 0x184   : > { %v1350_v28 = vmax.f32 %v1132_v26, 0.0  ;;  %v752_v29 = vadd.f32 %v2336_v55, %v751_v27  ;;  %v753_v30 = vpop.f32.mrb[53].mxu1  ;;  %v1136_v31 = vpop.f32.mrb[52].mxu0 }
 0x185   : > { %v1138_v32 = vpop.f32.mrb[53].mxu0 }
 0x186   : > { %1414 = vst [vmem:[%s2350_s19 + $0xc8] sm:$0xff] %v1350_v28  ;;  %v1137_v33 = vadd.f32 %v1136_v31, %v752_v29 }
 0x187   : > { %v756_v34 = vpop.f32.mrb[54].mxu1 }
 0x188   : > { %v1351_v35 = vmax.f32 %v1137_v33, 0.0  ;;  %v757_v36 = vadd.f32 %v2336_v55, %v756_v34  ;;  %v758_v37 = vpop.f32.mrb[55].mxu1  ;;  %v1141_v38 = vpop.f32.mrb[54].mxu0 }
 0x189   : > { %v1143_v39 = vpop.f32.mrb[55].mxu0 }
 0x18a   : > { %1415 = vst [vmem:[%s2350_s19 + $0xd0] sm:$0xff] %v1351_v35  ;;  %v1142_v40 = vadd.f32 %v1141_v38, %v757_v36 }
 0x18b   : > { %v761_v41 = vpop.f32.mrb[56].mxu1 }
 0x18c   : > { %v1352_v42 = vmax.f32 %v1142_v40, 0.0  ;;  %v762_v3 = vadd.f32 %v2336_v55, %v761_v41  ;;  %v763_v43 = vpop.f32.mrb[57].mxu1  ;;  %v1146_v44 = vpop.f32.mrb[56].mxu0 }
 0x18d   : > { %v1148_v45 = vpop.f32.mrb[57].mxu0 }
 0x18e   : > { %1416 = vst [vmem:[%s2350_s19 + $0xd8] sm:$0xff] %v1352_v42  ;;  %v1147_v46 = vadd.f32 %v1146_v44, %v762_v3 }
 0x18f   : > { %v766_v47 = vpop.f32.mrb[58].mxu1 }
 0x190   : > { %v1353_v48 = vmax.f32 %v1147_v46, 0.0  ;;  %v767_v49 = vadd.f32 %v2336_v55, %v766_v47  ;;  %v768_v50 = vpop.f32.mrb[59].mxu1  ;;  %v1151_v51 = vpop.f32.mrb[58].mxu0 }
 0x191   : > { %v1153_v52 = vpop.f32.mrb[59].mxu0 }
 0x192   : > { %1417 = vst [vmem:[%s2350_s19 + $0xe0] sm:$0xff] %v1353_v48  ;;  %v1152_v53 = vadd.f32 %v1151_v51, %v767_v49 }
 0x193   : > { %v771_v54 = vpop.f32.mrb[60].mxu1 }
 0x194   : > { %v1354_v56 = vmax.f32 %v1152_v53, 0.0  ;;  %v772_v57 = vadd.f32 %v2336_v55, %v771_v54  ;;  %v773_v58 = vpop.f32.mrb[61].mxu1  ;;  %v1156_v59 = vpop.f32.mrb[60].mxu0 }
 0x195   : > { %v1158_v60 = vpop.f32.mrb[61].mxu0 }
 0x196   : > { %1418 = vst [vmem:[%s2350_s19 + $0xe8] sm:$0xff] %v1354_v56  ;;  %v1157_v61 = vadd.f32 %v1156_v59, %v772_v57 }
 0x197   : > { %v776_v62 = vpop.f32.mrb[62].mxu1 }
 0x198   : > { %v1355_v63 = vmax.f32 %v1157_v61, 0.0  ;;  %v777_v0 = vadd.f32 %v2336_v55, %v776_v62  ;;  %v778_v1 = vpop.f32.mrb[63].mxu1  ;;  %v1161_v2 = vpop.f32.mrb[62].mxu0 }
 0x199   : > { %v1163_v4 = vpop.f32.mrb[63].mxu0 }
 0x19a   : > { %1419 = vst [vmem:[%s2350_s19 + $0xf0] sm:$0xff] %v1355_v63  ;;  %v1162_v5 = vadd.f32 %v1161_v2, %v777_v0 }
 0x19b   : > { %v781_v6 = vpop.f32.mrb[64].mxu1 }
 0x19c   : > { %v1356_v7 = vmax.f32 %v1162_v5, 0.0  ;;  %v782_v8 = vadd.f32 %v2336_v55, %v781_v6  ;;  %v783_v9 = vpop.f32.mrb[65].mxu1  ;;  %v1166_v10 = vpop.f32.mrb[64].mxu0 }
 0x19d   : > { %v1168_v11 = vpop.f32.mrb[65].mxu0 }
 0x19e   : > { %1420 = vst [vmem:[%s2350_s19 + $0xf8] sm:$0xff] %v1356_v7  ;;  %v1167_v12 = vadd.f32 %v1166_v10, %v782_v8 }
 0x19f   : > { %v786_v13 = vpop.f32.mrb[66].mxu1 }
 0x1a0   : > { %v1357_v14 = vmax.f32 %v1167_v12, 0.0  ;;  %v787_v15 = vadd.f32 %v2336_v55, %v786_v13  ;;  %v788_v16 = vpop.f32.mrb[67].mxu1  ;;  %v1171_v17 = vpop.f32.mrb[66].mxu0 }
 0x1a1   : > { %v1173_v18 = vpop.f32.mrb[67].mxu0 }
 0x1a2   : > { %1421 = vst [vmem:[%s2350_s19 + $0x100] sm:$0xff] %v1357_v14  ;;  %v1172_v19 = vadd.f32 %v1171_v17, %v787_v15 }
 0x1a3   : > { %v791_v20 = vpop.f32.mrb[68].mxu1 }
 0x1a4   : > { %v1358_v21 = vmax.f32 %v1172_v19, 0.0  ;;  %v792_v22 = vadd.f32 %v2336_v55, %v791_v20  ;;  %v793_v23 = vpop.f32.mrb[69].mxu1  ;;  %v1176_v24 = vpop.f32.mrb[68].mxu0 }
 0x1a5   : > { %v1178_v25 = vpop.f32.mrb[69].mxu0 }
 0x1a6   : > { %1422 = vst [vmem:[%s2350_s19 + $0x108] sm:$0xff] %v1358_v21  ;;  %v1177_v26 = vadd.f32 %v1176_v24, %v792_v22 }
 0x1a7   : > { %v796_v27 = vpop.f32.mrb[70].mxu1 }
 0x1a8   : > { %v1359_v28 = vmax.f32 %v1177_v26, 0.0  ;;  %v797_v29 = vadd.f32 %v2336_v55, %v796_v27  ;;  %v798_v30 = vpop.f32.mrb[71].mxu1  ;;  %v1181_v31 = vpop.f32.mrb[70].mxu0 }
 0x1a9   : > { %v1183_v32 = vpop.f32.mrb[71].mxu0 }
 0x1aa   : > { %1423 = vst [vmem:[%s2350_s19 + $0x110] sm:$0xff] %v1359_v28  ;;  %v1182_v33 = vadd.f32 %v1181_v31, %v797_v29 }
 0x1ab   : > { %v801_v34 = vpop.f32.mrb[72].mxu1 }
 0x1ac   : > { %v1360_v35 = vmax.f32 %v1182_v33, 0.0  ;;  %v802_v36 = vadd.f32 %v2336_v55, %v801_v34  ;;  %v803_v37 = vpop.f32.mrb[73].mxu1  ;;  %v1186_v38 = vpop.f32.mrb[72].mxu0 }
 0x1ad   : > { %v1188_v39 = vpop.f32.mrb[73].mxu0 }
 0x1ae   : > { %1424 = vst [vmem:[%s2350_s19 + $0x118] sm:$0xff] %v1360_v35  ;;  %v1187_v40 = vadd.f32 %v1186_v38, %v802_v36 }
 0x1af   : > { %v806_v41 = vpop.f32.mrb[74].mxu1 }
 0x1b0   : > { %v1361_v42 = vmax.f32 %v1187_v40, 0.0  ;;  %v807_v3 = vadd.f32 %v2336_v55, %v806_v41  ;;  %v808_v43 = vpop.f32.mrb[75].mxu1  ;;  %v1191_v44 = vpop.f32.mrb[74].mxu0 }
 0x1b1   : > { %v1193_v45 = vpop.f32.mrb[75].mxu0 }
 0x1b2   : > { %1425 = vst [vmem:[%s2350_s19 + $0x120] sm:$0xff] %v1361_v42  ;;  %v1192_v46 = vadd.f32 %v1191_v44, %v807_v3 }
 0x1b3   : > { %v811_v47 = vpop.f32.mrb[76].mxu1 }
 0x1b4   : > { %v1362_v48 = vmax.f32 %v1192_v46, 0.0  ;;  %v812_v49 = vadd.f32 %v2336_v55, %v811_v47  ;;  %v813_v50 = vpop.f32.mrb[77].mxu1  ;;  %v1196_v51 = vpop.f32.mrb[76].mxu0 }
 0x1b5   : > { %v1198_v52 = vpop.f32.mrb[77].mxu0 }
 0x1b6   : > { %1426 = vst [vmem:[%s2350_s19 + $0x128] sm:$0xff] %v1362_v48  ;;  %v1197_v53 = vadd.f32 %v1196_v51, %v812_v49 }
 0x1b7   : > { %v816_v54 = vpop.f32.mrb[78].mxu1 }
 0x1b8   : > { %v1363_v56 = vmax.f32 %v1197_v53, 0.0  ;;  %v817_v57 = vadd.f32 %v2336_v55, %v816_v54  ;;  %v818_v58 = vpop.f32.mrb[79].mxu1  ;;  %v1201_v59 = vpop.f32.mrb[78].mxu0 }
 0x1b9   : > { %v1203_v60 = vpop.f32.mrb[79].mxu0 }
 0x1ba   : > { %1427 = vst [vmem:[%s2350_s19 + $0x130] sm:$0xff] %v1363_v56  ;;  %v1202_v61 = vadd.f32 %v1201_v59, %v817_v57 }
 0x1bb   : > { %v821_v62 = vpop.f32.mrb[80].mxu1 }
 0x1bc   : > { %v1364_v63 = vmax.f32 %v1202_v61, 0.0  ;;  %v822_v0 = vadd.f32 %v2336_v55, %v821_v62  ;;  %v823_v1 = vpop.f32.mrb[81].mxu1  ;;  %v1206_v2 = vpop.f32.mrb[80].mxu0 }
 0x1bd   : > { %v1208_v4 = vpop.f32.mrb[81].mxu0 }
 0x1be   : > { %1428 = vst [vmem:[%s2350_s19 + $0x138] sm:$0xff] %v1364_v63  ;;  %v1207_v5 = vadd.f32 %v1206_v2, %v822_v0 }
 0x1bf   : > { %v826_v6 = vpop.f32.mrb[82].mxu1 }
 0x1c0   : > { %v1365_v7 = vmax.f32 %v1207_v5, 0.0  ;;  %v827_v8 = vadd.f32 %v2336_v55, %v826_v6  ;;  %v828_v9 = vpop.f32.mrb[83].mxu1  ;;  %v1211_v10 = vpop.f32.mrb[82].mxu0 }
 0x1c1   : > { %v1213_v11 = vpop.f32.mrb[83].mxu0 }
 0x1c2   : > { %1429 = vst [vmem:[%s2350_s19 + $0x140] sm:$0xff] %v1365_v7  ;;  %v1212_v12 = vadd.f32 %v1211_v10, %v827_v8 }
 0x1c3   : > { %v831_v13 = vpop.f32.mrb[84].mxu1 }
 0x1c4   : > { %v1366_v14 = vmax.f32 %v1212_v12, 0.0  ;;  %v832_v15 = vadd.f32 %v2336_v55, %v831_v13  ;;  %v833_v16 = vpop.f32.mrb[85].mxu1  ;;  %v1216_v17 = vpop.f32.mrb[84].mxu0 }
 0x1c5   : > { %v1218_v18 = vpop.f32.mrb[85].mxu0 }
 0x1c6   : > { %1430 = vst [vmem:[%s2350_s19 + $0x148] sm:$0xff] %v1366_v14  ;;  %v1217_v19 = vadd.f32 %v1216_v17, %v832_v15 }
 0x1c7   : > { %v836_v20 = vpop.f32.mrb[86].mxu1 }
 0x1c8   : > { %v1367_v21 = vmax.f32 %v1217_v19, 0.0  ;;  %v837_v22 = vadd.f32 %v2336_v55, %v836_v20  ;;  %v838_v23 = vpop.f32.mrb[87].mxu1  ;;  %v1221_v24 = vpop.f32.mrb[86].mxu0 }
 0x1c9   : > { %v1223_v25 = vpop.f32.mrb[87].mxu0 }
 0x1ca   : > { %1431 = vst [vmem:[%s2350_s19 + $0x150] sm:$0xff] %v1367_v21  ;;  %v1222_v26 = vadd.f32 %v1221_v24, %v837_v22 }
 0x1cb   : > { %v841_v27 = vpop.f32.mrb[88].mxu1 }
 0x1cc   : > { %v1368_v28 = vmax.f32 %v1222_v26, 0.0  ;;  %v842_v29 = vadd.f32 %v2336_v55, %v841_v27  ;;  %v843_v30 = vpop.f32.mrb[89].mxu1  ;;  %v1226_v31 = vpop.f32.mrb[88].mxu0 }
 0x1cd   : > { %v1228_v32 = vpop.f32.mrb[89].mxu0 }
 0x1ce   : > { %1432 = vst [vmem:[%s2350_s19 + $0x158] sm:$0xff] %v1368_v28  ;;  %v1227_v33 = vadd.f32 %v1226_v31, %v842_v29  ;;  %v2494_v29 = vld [vmem:[%s2530_s2] ss:$0 sm:$0xff] }
 0x1cf   : > { %v846_v34 = vpop.f32.mrb[90].mxu1 }
 0x1d0   : > { %v1369_v35 = vmax.f32 %v1227_v33, 0.0  ;;  %v847_v36 = vadd.f32 %v2336_v55, %v846_v34  ;;  %v848_v37 = vpop.f32.mrb[91].mxu1  ;;  %v1231_v38 = vpop.f32.mrb[90].mxu0 }
 0x1d1   : > { %v1233_v39 = vpop.f32.mrb[91].mxu0 }
 0x1d2   : > { %1433 = vst [vmem:[%s2350_s19 + $0x160] sm:$0xff] %v1369_v35  ;;  %v1232_v40 = vadd.f32 %v1231_v38, %v847_v36 }
 0x1d3   : > { %v851_v41 = vpop.f32.mrb[92].mxu1 }
 0x1d4   : > { %v1370_v42 = vmax.f32 %v1232_v40, 0.0  ;;  %v852_v3 = vadd.f32 %v2336_v55, %v851_v41  ;;  %v853_v43 = vpop.f32.mrb[93].mxu1  ;;  %v1236_v44 = vpop.f32.mrb[92].mxu0 }
 0x1d5   : > { %v1238_v45 = vpop.f32.mrb[93].mxu0 }
 0x1d6   : > { %1434 = vst [vmem:[%s2350_s19 + $0x168] sm:$0xff] %v1370_v42  ;;  %v1237_v46 = vadd.f32 %v1236_v44, %v852_v3 }
 0x1d7   : > { %v856_v47 = vpop.f32.mrb[94].mxu1 }
 0x1d8   : > { %v1371_v48 = vmax.f32 %v1237_v46, 0.0  ;;  %v857_v49 = vadd.f32 %v2336_v55, %v856_v47  ;;  %v858_v50 = vpop.f32.mrb[95].mxu1  ;;  %v1241_v51 = vpop.f32.mrb[94].mxu0 }
 0x1d9   : > { %v1243_v52 = vpop.f32.mrb[95].mxu0 }
 0x1da   : > { %1435 = vst [vmem:[%s2350_s19 + $0x170] sm:$0xff] %v1371_v48  ;;  %v1242_v53 = vadd.f32 %v1241_v51, %v857_v49 }
 0x1db   : > { %v861_v54 = vpop.f32.mrb[96].mxu1 }
 0x1dc   : > { %v1372_v56 = vmax.f32 %v1242_v53, 0.0  ;;  %v862_v57 = vadd.f32 %v2336_v55, %v861_v54  ;;  %v863_v58 = vpop.f32.mrb[97].mxu1  ;;  %v1246_v59 = vpop.f32.mrb[96].mxu0 }
 0x1dd   : > { %v1248_v60 = vpop.f32.mrb[97].mxu0 }
 0x1de   : > { %1436 = vst [vmem:[%s2350_s19 + $0x178] sm:$0xff] %v1372_v56  ;;  %v1247_v61 = vadd.f32 %v1246_v59, %v862_v57 }
 0x1df   : > { %v866_v62 = vpop.f32.mrb[98].mxu1 }
 0x1e0   : > { %v1373_v63 = vmax.f32 %v1247_v61, 0.0  ;;  %v867_v0 = vadd.f32 %v2336_v55, %v866_v62  ;;  %v868_v1 = vpop.f32.mrb[99].mxu1  ;;  %v1251_v2 = vpop.f32.mrb[98].mxu0 }
 0x1e1   : > { %v1253_v4 = vpop.f32.mrb[99].mxu0 }
 0x1e2   : > { %1437 = vst [vmem:[%s2350_s19 + $0x180] sm:$0xff] %v1373_v63  ;;  %v1252_v5 = vadd.f32 %v1251_v2, %v867_v0 }
 0x1e3   : > { %v871_v6 = vpop.f32.mrb[100].mxu1 }
 0x1e4   : > { %v1374_v7 = vmax.f32 %v1252_v5, 0.0  ;;  %v872_v8 = vadd.f32 %v2336_v55, %v871_v6  ;;  %v873_v9 = vpop.f32.mrb[101].mxu1  ;;  %v1256_v10 = vpop.f32.mrb[100].mxu0 }
 0x1e5   : > { %v1258_v11 = vpop.f32.mrb[101].mxu0 }
 0x1e6   : > { %1438 = vst [vmem:[%s2350_s19 + $0x188] sm:$0xff] %v1374_v7  ;;  %v1257_v12 = vadd.f32 %v1256_v10, %v872_v8 }
 0x1e7   : > { %v876_v13 = vpop.f32.mrb[102].mxu1 }
 0x1e8   : > { %v1375_v14 = vmax.f32 %v1257_v12, 0.0  ;;  %v877_v15 = vadd.f32 %v2336_v55, %v876_v13  ;;  %v878_v16 = vpop.f32.mrb[103].mxu1  ;;  %v1261_v17 = vpop.f32.mrb[102].mxu0 }
 0x1e9   : > { %v1263_v18 = vpop.f32.mrb[103].mxu0 }
 0x1ea   : > { %1439 = vst [vmem:[%s2350_s19 + $0x190] sm:$0xff] %v1375_v14  ;;  %v1262_v19 = vadd.f32 %v1261_v17, %v877_v15 }
 0x1eb   : > { %v881_v20 = vpop.f32.mrb[104].mxu1 }
 0x1ec   : > { %v1376_v21 = vmax.f32 %v1262_v19, 0.0  ;;  %v882_v22 = vadd.f32 %v2336_v55, %v881_v20  ;;  %v883_v23 = vpop.f32.mrb[105].mxu1  ;;  %v1266_v24 = vpop.f32.mrb[104].mxu0 }
 0x1ed   : > { %v1268_v25 = vpop.f32.mrb[105].mxu0 }
 0x1ee   : > { %1440 = vst [vmem:[%s2350_s19 + $0x198] sm:$0xff] %v1376_v21  ;;  %v1267_v26 = vadd.f32 %v1266_v24, %v882_v22 }
 0x1ef   : > { %v886_v27 = vpop.f32.mrb[106].mxu1 }
 0x1f0   : > { %v1377_v28 = vmax.f32 %v1267_v26, 0.0  ;;  %v887_v30 = vadd.f32 %v2494_v29, %v886_v27  ;;  %v888_v31 = vpop.f32.mrb[107].mxu1  ;;  %v1271_v32 = vpop.f32.mrb[106].mxu0 }
 0x1f1   : > { %v1273_v33 = vpop.f32.mrb[107].mxu0 }
 0x1f2   : > { %1441 = vst [vmem:[%s2350_s19 + $0x1a0] sm:$0xff] %v1377_v28  ;;  %v1272_v55 = vadd.f32 %v1271_v32, %v887_v30 }
 0x1f3   : > { %v891_v34 = vpop.f32.mrb[108].mxu1 }
 0x1f4   : > { %v1378_v35 = vmax.f32 %v1272_v55, 0.0  ;;  %v892_v36 = vadd.f32 %v2494_v29, %v891_v34  ;;  %v893_v37 = vpop.f32.mrb[109].mxu1  ;;  %v1276_v38 = vpop.f32.mrb[108].mxu0 }
 0x1f5   : > { %v1278_v39 = vpop.f32.mrb[109].mxu0 }
 0x1f6   : > { %1442 = vst [vmem:[%s2350_s19 + $0x1a8] sm:$0xff] %v1378_v35  ;;  %v1277_v40 = vadd.f32 %v1276_v38, %v892_v36 }
 0x1f7   : > { %v896_v41 = vpop.f32.mrb[110].mxu1 }
 0x1f8   : > { %v1379_v42 = vmax.f32 %v1277_v40, 0.0  ;;  %v897_v3 = vadd.f32 %v2494_v29, %v896_v41  ;;  %v898_v43 = vpop.f32.mrb[111].mxu1  ;;  %v1281_v44 = vpop.f32.mrb[110].mxu0 }
 0x1f9   : > { %v1283_v45 = vpop.f32.mrb[111].mxu0 }
 0x1fa   : > { %1443 = vst [vmem:[%s2350_s19 + $0x1b0] sm:$0xff] %v1379_v42  ;;  %v1282_v46 = vadd.f32 %v1281_v44, %v897_v3 }
 0x1fb   : > { %v901_v47 = vpop.f32.mrb[112].mxu1 }
 0x1fc   : > { %v1380_v48 = vmax.f32 %v1282_v46, 0.0  ;;  %v902_v49 = vadd.f32 %v2494_v29, %v901_v47  ;;  %v903_v50 = vpop.f32.mrb[113].mxu1  ;;  %v1286_v51 = vpop.f32.mrb[112].mxu0 }
 0x1fd   : > { %v1288_v52 = vpop.f32.mrb[113].mxu0 }
 0x1fe   : > { %1444 = vst [vmem:[%s2350_s19 + $0x1b8] sm:$0xff] %v1380_v48  ;;  %v1287_v53 = vadd.f32 %v1286_v51, %v902_v49 }
 0x1ff   : > { %v906_v54 = vpop.f32.mrb[114].mxu1 }
 0x200   : > { %v1381_v56 = vmax.f32 %v1287_v53, 0.0  ;;  %v907_v57 = vadd.f32 %v2494_v29, %v906_v54  ;;  %v908_v58 = vpop.f32.mrb[115].mxu1  ;;  %v1291_v59 = vpop.f32.mrb[114].mxu0 }
 0x201   : > { %v1293_v60 = vpop.f32.mrb[115].mxu0 }
 0x202   : > { %1445 = vst [vmem:[%s2350_s19 + $0x1c0] sm:$0xff] %v1381_v56  ;;  %v1292_v61 = vadd.f32 %v1291_v59, %v907_v57 }
 0x203   : > { %v911_v62 = vpop.f32.mrb[116].mxu1 }
 0x204   : > { %v1382_v63 = vmax.f32 %v1292_v61, 0.0  ;;  %v912_v0 = vadd.f32 %v2494_v29, %v911_v62  ;;  %v913_v1 = vpop.f32.mrb[117].mxu1  ;;  %v1296_v2 = vpop.f32.mrb[116].mxu0 }
 0x205   : > { %v1298_v4 = vpop.f32.mrb[117].mxu0 }
 0x206   : > { %1446 = vst [vmem:[%s2350_s19 + $0x1c8] sm:$0xff] %v1382_v63  ;;  %v1297_v5 = vadd.f32 %v1296_v2, %v912_v0 }
 0x207   : > { %v916_v6 = vpop.f32.mrb[118].mxu1 }
 0x208   : > { %v1383_v7 = vmax.f32 %v1297_v5, 0.0  ;;  %v917_v8 = vadd.f32 %v2494_v29, %v916_v6  ;;  %v918_v9 = vpop.f32.mrb[119].mxu1  ;;  %v1301_v10 = vpop.f32.mrb[118].mxu0 }
 0x209   : > { %v1303_v11 = vpop.f32.mrb[119].mxu0 }
 0x20a   : > { %1447 = vst [vmem:[%s2350_s19 + $0x1d0] sm:$0xff] %v1383_v7  ;;  %v1302_v12 = vadd.f32 %v1301_v10, %v917_v8 }
 0x20b   : > { %v921_v13 = vpop.f32.mrb[120].mxu1 }
 0x20c   : > { %v1384_v14 = vmax.f32 %v1302_v12, 0.0  ;;  %v922_v15 = vadd.f32 %v2494_v29, %v921_v13  ;;  %v923_v16 = vpop.f32.mrb[121].mxu1  ;;  %v1306_v17 = vpop.f32.mrb[120].mxu0 }
 0x20d   : > { %v1308_v18 = vpop.f32.mrb[121].mxu0 }
 0x20e   : > { %1448 = vst [vmem:[%s2350_s19 + $0x1d8] sm:$0xff] %v1384_v14  ;;  %v1307_v19 = vadd.f32 %v1306_v17, %v922_v15 }
 0x20f   : > { %v926_v20 = vpop.f32.mrb[122].mxu1 }
 0x210   : > { %v1385_v21 = vmax.f32 %v1307_v19, 0.0  ;;  %v927_v22 = vadd.f32 %v2494_v29, %v926_v20  ;;  %v928_v23 = vpop.f32.mrb[123].mxu1  ;;  %v1311_v24 = vpop.f32.mrb[122].mxu0 }
 0x211   : > { %v1313_v25 = vpop.f32.mrb[123].mxu0 }
 0x212   : > { %1449 = vst [vmem:[%s2350_s19 + $0x1e0] sm:$0xff] %v1385_v21  ;;  %v1312_v26 = vadd.f32 %v1311_v24, %v927_v22 }
 0x213   : > { %v931_v27 = vpop.f32.mrb[124].mxu1 }
 0x214   : > { %v1386_v28 = vmax.f32 %v1312_v26, 0.0  ;;  %v932_v30 = vadd.f32 %v2494_v29, %v931_v27  ;;  %v933_v31 = vpop.f32.mrb[125].mxu1  ;;  %v1316_v32 = vpop.f32.mrb[124].mxu0 }
 0x215   : > { %v1318_v33 = vpop.f32.mrb[125].mxu0 }
 0x216   : > { %1450 = vst [vmem:[%s2350_s19 + $0x1e8] sm:$0xff] %v1386_v28  ;;  %v1317_v55 = vadd.f32 %v1316_v32, %v932_v30 }
 0x217   : > { %v936_v34 = vpop.f32.mrb[126].mxu1 }
 0x218   : > { %v1387_v35 = vmax.f32 %v1317_v55, 0.0  ;;  %v937_v36 = vadd.f32 %v2494_v29, %v936_v34  ;;  %v938_v37 = vpop.f32.mrb[127].mxu1  ;;  %v1321_v38 = vpop.f32.mrb[126].mxu0 }
 0x219   : > { %v1323_v39 = vpop.f32.mrb[127].mxu0 }
 0x21a   : > { %1451 = vst [vmem:[%s2350_s19 + $0x1f0] sm:$0xff] %v1387_v35  ;;  %v1322_v40 = vadd.f32 %v1321_v38, %v937_v36 }
 0x21c   : > { %v1388_v41 = vmax.f32 %v1322_v40, 0.0 }
 0x21e   : > { %1452 = vst [vmem:[%s2350_s19 + $0x1f8] sm:$0xff] %v1388_v41 }
 0x21f PF: > { %s13_s14 = sadd.s32 1, %s1843_s14   ;;  %s2532_s12 = smov %s1839_s13 }
 0x220   : > { %p10_p5 = scmp.ge.s32.totalorder %s13_s14, 10   ;;  %s2533_s13 = smov %s2535_s15 }
 0x222   :  { %12 = sbr.rel (!%p10_p5) target bundleno = 2 (0x2), region = 68 }

// kernel: mixed_resolution_cnn_forward.5
= control target key start
LH: loop header
LB: loop body
LE: loop exit
PB: predicated region body
PF: predicated region fallthrough
CT: control target
= control target key end

     0   :  { %8 = vsyncpa [#allocation4], 0  ;;  %s5136_s0 = inlined_call_operand.vmem [shape: f32[8,67584], index: 0, kind: input, shape index: {}]   ;;  %s5137_s1 = inlined_call_operand.hbm [shape: f32[67584,1024], index: 1, kind: input, shape index: {}]   ;;  %s5138_s2 = inlined_call_operand.vmem [shape: f32[1,1024], index: 2, kind: input, shape index: {}]   ;;  %s5139_s3 = inlined_call_operand.vmem [shape: f32[8,1024], index: 3, kind: output, shape index: {}]  }
   0x1   :  { %10 = vsyncpa [#allocation4 + $0x1], 0  ;;  %s3920_s12 = smov 0   ;;  %s3922_s13 = smov 0  }
   0x2   :  { %s3924_s14 = smov 0   ;;  %s3926_s15 = smov 0  }
   0x3   :  { %s3928_s16 = smov 0   ;;  %s3930_s17 = smov 0  }
   0x4   :  { %s3932_s18 = smov 0   ;;  %s3934_s19 = smov 0  }
   0x5 LB: > { %s2649_s20 = sadd.s32 4294967295, %s3893_s19   ;;  %s28_s21 = sadd.s32 1, %s3885_s17  ;;  %s3893_s19 = sphi %s3934_s19, %s16_s19   ;;  %s3889_s18 = sphi %s3932_s18, %s5149_s18   ;;  %s3885_s17 = sphi %s3930_s17, %s5148_s17   ;;  %s3881_s16 = sphi %s3928_s16, %s5147_s16   ;;  %s3877_s15 = sphi %s3926_s15, %s5146_s15   ;;  %s3873_s14 = sphi %s3924_s14, %s5145_s14   ;;  %s3869_s13 = sphi %s3922_s13, %s5144_s13   ;;  %s3865_s12 = sphi %s3920_s12, %s5143_s12  }
   0x6   : > { %p29_p0 = scmp.ge.s32.totalorder %s28_s21, 33  ;;  %s31_s22 = sadd.s32 1, %s3889_s18 }
   0x7   : > { %s72_s23 = sadd.s32 1, %s3873_s14  ;;  %p79_p1 = scmp.ne.s32.totalorder %s3873_s14, %s3869_s13 }
   0x8   : > { %s5151_s21 = smov (%p29_p0, %s28_s21), 0  ;;  %s5153_s22 = smov (!%p29_p0, %s31_s22), %s3889_s18 }
   0x9   : > { %s67_s24 = ssub.s32 %s3885_s17, %s5151_s21  ;;  %p80_p2 = scmp.eq.s32.totalorder %s3893_s19, 0 }
   0xa   : > { %p33_p3 = scmp.ge.s32.totalorder %s5153_s22, 2  ;;  %p85_p4 = scmp.ne.s32.totalorder %s3869_s13, %s3865_s12 }
   0xb   : > { %p3971_p5 = por %p80_p2, %p79_p1  ;;  %p86_p6 = scmp.eq.s32.totalorder %s2649_s20, 0 }
   0xc   : > { %s5155_s22 = smov (%p33_p3, %s5153_s22), 0  ;;  %p3728_p8 = scmp.lt.s32.totalorder %s3893_s19, 66 }
   0xd   : > { %p3977_p7 = por %p86_p6, %p85_p4  ;;  %s68_s27 = ssub.s32 %s3889_s18, %s5155_s22 }
   0xe   : > { %s69_s28 = sor.u32 %s68_s27, %s67_s24  ;;  %s176_s29 = sand.u32 1, %s3873_s14  }
   0xf   : > { %p70_p9 = scmp.eq.s32.totalorder %s69_s28, 0  ;;  %s2653_s30 = sshll.u32 %s176_s29, 13 }
  0x10   : > { %s2655_s4 = sshll.u32 %s3889_s18, 2  ;;  %s2669_s6 = sshll.u32 %s3885_s17, 11 }
  0x11   : > { %s3987_s5 = scalar_select %p70_p9, %s3873_s14, %s72_s23  }
  0x12   : > { %s187_s7 = sadd.s32 %s2669_s6, %s2655_s4  ;;  %s180_s8 = scalar_lea.vmem [#allocation3], %s2653_s30 }
  0x13   : > { %s190_s9 = sshll.u32 %s180_s8, 4  ;;  %s2657_s10 = sshll.u32 %s187_s7, 7  ;;  %s3990_s9 = int_to_ptr.vmem [resolvable:$true] %s190_s9 }
  0x14   : > { %s3995_s20 = scalar_lea.hbm %s5137_s1, %s2657_s10  ;;  %p4001_p10 = pnand %p3728_p8, %p3971_p5 }
  0x15   : > { %s4005_s24 = scalar_lea.sflag [#allocation4], %s176_s29  ;;  %s3797_s27 = scalar_lea.hbm %s3995_s20, 131072 }
  0x16   : > { %p3798_p11 = scmp.ne.s32.totalorder %s3995_s20, %s3797_s27  ;;  %p3799_p12 = pneg %p4001_p10 }
  0x17   : > { %s3802_s30 = scalar_lea.hbm %s5137_s1, 8650752  ;;  %p3803_p1 = scmp.lt.u32.totalorder %s3995_s20, %s5137_s1 }
  0x18   : > { %p3800_p13 = pnand %p3799_p12, %p3798_p11  ;;  %p3804_p2 = scmp.lt.u32.totalorder %s3802_s30, %s3797_s27 }
  0x19   : > { %p3806_p4 = scmp.lt.u32.totalorder %s3797_s27, %s3995_s20 }
  0x1a   : > { %p3801_p0 = pneg %p3800_p13  ;;  %p3805_p3 = por %p3804_p2, %p3803_p1 }
  0x1c   : > { %p3807_p5 = por %p3806_p4, %p3805_p3 }
  0x1e   : > { %p3808_p6 = pnand %p3807_p5, %p3801_p0 }
  0x20   : > { %3811 = shalt.err (!%p3808_p6)
}
  0x21   : > { %s3812_s29 = scalar_lea.vmem %s3990_s9, 131072  ;;  %s3895_s7 = smov [#allocation3]  }
  0x22   : > { %p3813_p8 = scmp.ne.s32.totalorder %s3990_s9, %s3812_s29  ;;  %s3817_s8 = sshll.u32 %s3895_s7, 4  ;;  %s3818_s8 = int_to_ptr.vmem [resolvable:$false] %s3817_s8 }
  0x23   : > { %s3819_s10 = scalar_lea.vmem %s3818_s8, 262144  ;;  %p3820_p13 = scmp.lt.s32.totalorder %s3990_s9, %s3818_s8 }
  0x24   : > { %p3815_p9 = pnand %p3813_p8, %p3799_p12  ;;  %p3821_p1 = scmp.lt.s32.totalorder %s3819_s10, %s3812_s29 }
  0x26   : > { %p3816_p11 = pneg %p3815_p9  ;;  %p3822_p2 = por %p3821_p1, %p3820_p13 }
  0x28   : > { %p3823_p3 = pnand %p3822_p2, %p3816_p11 }
  0x2a   : > { %3826 = shalt.err (!%p3823_p3)
}
  0x2b   : > { %s3896_s11 = smov 1024   ;;  %s3897_s12 = smov 512  }
  0x2c   : > { %s3898_s27 = smov 32   ;;  %p2658_p12 = scmp.ge.s32.totalorder %s3893_s19, 1 }
  0x2d   : > { %3727 = dma.hbm_to_vmem [thread:$0]  (!%p4001_p10), %s3995_s20, 131072, %s3990_s9, %s4005_s24, %s3896_s11, %s3897_s12, %s3898_s27  }
  0x2e   : > { %p206_p0 = scmp.lt.s32.totalorder %s3893_s19, 67 }
  0x30   : > { %p207_p4 = pnand %p2658_p12, %p206_p0 }
  0x31   : > { %s212_s25 = sand.u32 (!%p207_p4), 1, %s3869_s13  }
  0x32   : > { %210 = sbr.rel (%p207_p4) target bundleno = 816 (0x330), region = 32  ;;  %s2659_s28 = sshll.u32 (!%p207_p4), %s212_s25, 13 }
  0x33   : > { %s213_s30 = scalar_lea.sflag (!%p207_p4), [#allocation4], %s212_s25  ;;  %s4036_s4 = scalar_lea.vmem (!%p207_p4), [#allocation3], %s2659_s28 }
  0x39   : > { %3860 = dma.done.wait (%p3977_p7), %s213_s30, 131072  }
  0x3a   : > { %3862 = vsyncadd (%p3977_p7), %s213_s30, 4294836224  ;;  %s2660_s23 = sshll.u32 %s3877_s15, 4  ;;  %s2662_s9 = sshll.u32 %s3881_s16, 2 }
  0x3b   : > { %p259_p10 = scmp.lt.s32.totalorder %s2660_s23, 527  ;;  %p269_p5 = scmp.lt.s32.totalorder %s2662_s9, 7 }
  0x3c   : > { %p2665_p7 = scmp.ne.s32.totalorder %s3877_s15, 0 }
  0x3d   : > { %s5157_s23 = smov (!%p259_p10, %s2660_s23), 527  ;;  %s5159_s9 = smov (!%p269_p5, %s2662_s9), 7 }
  0x3e   : > { %s2661_s20 = sshll.u32 %s5157_s23, 3  ;;  %s271_s8 = scalar_lea.vmem %s5138_s2, %s5159_s9  ;;  %v3899_v0 = vmov (!%p2665_p7), 0.0  }
  0x3f   : > { %s4049_s29 = scalar_lea.vmem %s5136_s0, %s2661_s20  ;;  %s2664_s10 = sshll.u32 %s5159_s9, 3  ;;  %287 = vst [vmem:[#allocation2] sm:$0xff] (!%p2665_p7), %v3899_v0  ;;  %288 = vst [vmem:[#allocation2 + $0x8] sm:$0xff] (!%p2665_p7), %v3899_v0 }
  0x40   : > { %s4059_s12 = scalar_lea.vmem %s5139_s3, %s2664_s10  ;;  %286 = sbr.rel (%p2665_p7) target bundleno = 71 (0x47), region = 40  ;;  %289 = vst [vmem:[#allocation2 + $0x10] sm:$0xff] (!%p2665_p7), %v3899_v0  ;;  %290 = vst [vmem:[#allocation2 + $0x18] sm:$0xff] (!%p2665_p7), %v3899_v0 }
  0x47 PF: > { %v312_v1 = vld [vmem:[%s4036_s4 + $0x8] sm:$0xff]  ;;  %v314_v3 = vld [vmem:[%s4036_s4 + $0x18] sm:$0xff]  ;;  %v311_v6 = vld [vmem:[%s4036_s4] sm:$0xff]  ;;  %p2666_p6 = scmp.ne.s32.totalorder %s3877_s15, 32 }
  0x48   : > { %v316_v2 = vld [vmem:[%s4036_s4 + $0x28] sm:$0xff]  ;;  %v318_v5 = vld [vmem:[%s4036_s4 + $0x38] sm:$0xff]  ;;  %v315_v7 = vld [vmem:[%s4036_s4 + $0x20] sm:$0xff] }
  0x49   : > { %v2670_v4 = vpack.c.bf16 %v316_v2, %v312_v1  ;;  %v3182_v8 = vpack.c.bf16 %v318_v5, %v314_v3  ;;  %v2672_v9 = vpack.c.bf16 %v315_v7, %v311_v6  ;;  %v313_v10 = vld [vmem:[%s4036_s4 + $0x10] sm:$0xff]  ;;  %v320_v12 = vld [vmem:[%s4036_s4 + $0x48] sm:$0xff]  ;;  %v322_v15 = vld [vmem:[%s4036_s4 + $0x58] sm:$0xff] }
  0x4a   : > { %v317_v11 = vld [vmem:[%s4036_s4 + $0x30] sm:$0xff]  ;;  %v324_v14 = vld [vmem:[%s4036_s4 + $0x68] sm:$0xff]  ;;  %v326_v16 = vld [vmem:[%s4036_s4 + $0x78] sm:$0xff] }
  0x4b   : > { %2671 = vmatprep.subr.bf16.mxu0 %v2670_v4  ;;  %v3184_v13 = vpack.c.bf16 %v317_v11, %v313_v10  ;;  %3183 = vmatprep.subr.bf16.mxu1 %v3182_v8  ;;  %v2674_v17 = vpack.c.bf16 %v324_v14, %v320_v12  ;;  %v3186_v18 = vpack.c.bf16 %v326_v16, %v322_v15  ;;  %v319_v19 = vld [vmem:[%s4036_s4 + $0x40] sm:$0xff]  ;;  %v321_v21 = vld [vmem:[%s4036_s4 + $0x50] sm:$0xff]  ;;  %v328_v24 = vld [vmem:[%s4036_s4 + $0x88] sm:$0xff] }
  0x4c   : > { %2673 = vmatpush1.bf16.msra.mxu0 %v2672_v9  ;;  %v323_v20 = vld [vmem:[%s4036_s4 + $0x60] sm:$0xff]  ;;  %v325_v23 = vld [vmem:[%s4036_s4 + $0x70] sm:$0xff]  ;;  %v332_v25 = vld [vmem:[%s4036_s4 + $0xa8] sm:$0xff] }
  0x4d   : > { %3185 = vmatpush1.bf16.msra.mxu1 %v3184_v13  ;;  %v2676_v22 = vpack.c.bf16 %v323_v20, %v319_v19  ;;  %2675 = vmatprep.subr.bf16.mxu0 %v2674_v17  ;;  %v3188_v26 = vpack.c.bf16 %v325_v23, %v321_v21  ;;  %v2678_v27 = vpack.c.bf16 %v332_v25, %v328_v24  ;;  %v330_v28 = vld [vmem:[%s4036_s4 + $0x98] sm:$0xff]  ;;  %v327_v30 = vld [vmem:[%s4036_s4 + $0x80] sm:$0xff]  ;;  %v329_v33 = vld [vmem:[%s4036_s4 + $0x90] sm:$0xff] }
  0x4e   : > { %3187 = vmatprep.subr.bf16.mxu1 %v3186_v18  ;;  %v334_v29 = vld [vmem:[%s4036_s4 + $0xb8] sm:$0xff]  ;;  %v331_v32 = vld [vmem:[%s4036_s4 + $0xa0] sm:$0xff]  ;;  %v333_v34 = vld [vmem:[%s4036_s4 + $0xb0] sm:$0xff] }
  0x4f   : > { %v3190_v31 = vpack.c.bf16 %v334_v29, %v330_v28  ;;  %v2680_v35 = vpack.c.bf16 %v331_v32, %v327_v30  ;;  %v336_v36 = vld [vmem:[%s4036_s4 + $0xc8] sm:$0xff]  ;;  %v338_v38 = vld [vmem:[%s4036_s4 + $0xd8] sm:$0xff]  ;;  %v3192_v39 = vpack.c.bf16 %v333_v34, %v329_v33  ;;  %v335_v42 = vld [vmem:[%s4036_s4 + $0xc0] sm:$0xff] }
  0x50   : > { %2677 = vmatpush1.bf16.msra.mxu0 %v2676_v22  ;;  %v340_v37 = vld [vmem:[%s4036_s4 + $0xe8] sm:$0xff]  ;;  %v342_v41 = vld [vmem:[%s4036_s4 + $0xf8] sm:$0xff]  ;;  %v339_v43 = vld [vmem:[%s4036_s4 + $0xe0] sm:$0xff] }
  0x51   : > { %3189 = vmatpush1.bf16.msra.mxu1 %v3188_v26  ;;  %2679 = vmatprep.subr.bf16.mxu0 %v2678_v27  ;;  %v2682_v40 = vpack.c.bf16 %v340_v37, %v336_v36  ;;  %v3194_v44 = vpack.c.bf16 %v342_v41, %v338_v38  ;;  %v337_v45 = vld [vmem:[%s4036_s4 + $0xd0] sm:$0xff]  ;;  %v344_v47 = vld [vmem:[%s4036_s4 + $0x108] sm:$0xff]  ;;  %v346_v49 = vld [vmem:[%s4036_s4 + $0x118] sm:$0xff]  ;;  %v2684_v51 = vpack.c.bf16 %v339_v43, %v335_v42 }
  0x52   : > { %3191 = vmatprep.subr.bf16.mxu1 %v3190_v31  ;;  %v341_v46 = vld [vmem:[%s4036_s4 + $0xf0] sm:$0xff]  ;;  %v348_v48 = vld [vmem:[%s4036_s4 + $0x128] sm:$0xff]  ;;  %v350_v50 = vld [vmem:[%s4036_s4 + $0x138] sm:$0xff] }
  0x53   : > { %v3196_v52 = vpack.c.bf16 %v341_v46, %v337_v45  ;;  %v2686_v53 = vpack.c.bf16 %v348_v48, %v344_v47  ;;  %v343_v54 = vld [vmem:[%s4036_s4 + $0x100] sm:$0xff]  ;;  %v345_v56 = vld [vmem:[%s4036_s4 + $0x110] sm:$0xff]  ;;  %v3198_v57 = vpack.c.bf16 %v350_v50, %v346_v49  ;;  %v352_v59 = vld [vmem:[%s4036_s4 + $0x148] sm:$0xff] }
  0x54   : > { %2681 = vmatpush1.bf16.msra.mxu0 %v2680_v35  ;;  %v347_v55 = vld [vmem:[%s4036_s4 + $0x120] sm:$0xff]  ;;  %v349_v58 = vld [vmem:[%s4036_s4 + $0x130] sm:$0xff]  ;;  %v356_v60 = vld [vmem:[%s4036_s4 + $0x168] sm:$0xff] }
  0x55   : > { %3193 = vmatpush1.bf16.msra.mxu1 %v3192_v39  ;;  %2683 = vmatprep.subr.bf16.mxu0 %v2682_v40  ;;  %v354_v61 = vld [vmem:[%s4036_s4 + $0x158] sm:$0xff]  ;;  %v2688_v63 = vpack.c.bf16 %v347_v55, %v343_v54  ;;  %v3200_v0 = vpack.c.bf16 %v349_v58, %v345_v56  ;;  %v2690_v1 = vpack.c.bf16 %v356_v60, %v352_v59  ;;  %v351_v2 = vld [vmem:[%s4036_s4 + $0x140] sm:$0xff]  ;;  %v353_v4 = vld [vmem:[%s4036_s4 + $0x150] sm:$0xff] }
  0x56   : > { %3195 = vmatprep.subr.bf16.mxu1 %v3194_v44  ;;  %v358_v62 = vld [vmem:[%s4036_s4 + $0x178] sm:$0xff]  ;;  %v355_v3 = vld [vmem:[%s4036_s4 + $0x160] sm:$0xff]  ;;  %v357_v6 = vld [vmem:[%s4036_s4 + $0x170] sm:$0xff] }
  0x57   : > { %v3202_v5 = vpack.c.bf16 %v358_v62, %v354_v61  ;;  %v360_v7 = vld [vmem:[%s4036_s4 + $0x188] sm:$0xff]  ;;  %v362_v9 = vld [vmem:[%s4036_s4 + $0x198] sm:$0xff]  ;;  %v2692_v11 = vpack.c.bf16 %v355_v3, %v351_v2  ;;  %v3204_v12 = vpack.c.bf16 %v357_v6, %v353_v4  ;;  %v359_v14 = vld [vmem:[%s4036_s4 + $0x180] sm:$0xff] }
  0x58   : > { %2685 = vmatpush1.bf16.msra.mxu0 %v2684_v51  ;;  %v364_v8 = vld [vmem:[%s4036_s4 + $0x1a8] sm:$0xff]  ;;  %v366_v10 = vld [vmem:[%s4036_s4 + $0x1b8] sm:$0xff]  ;;  %v363_v15 = vld [vmem:[%s4036_s4 + $0x1a0] sm:$0xff] }
  0x59   : > { %3197 = vmatpush1.bf16.msra.mxu1 %v3196_v52  ;;  %2687 = vmatprep.subr.bf16.mxu0 %v2686_v53  ;;  %v2694_v13 = vpack.c.bf16 %v364_v8, %v360_v7  ;;  %v361_v16 = vld [vmem:[%s4036_s4 + $0x190] sm:$0xff]  ;;  %v3206_v17 = vpack.c.bf16 %v366_v10, %v362_v9  ;;  %v368_v19 = vld [vmem:[%s4036_s4 + $0x1c8] sm:$0xff]  ;;  %v370_v21 = vld [vmem:[%s4036_s4 + $0x1d8] sm:$0xff]  ;;  %v2696_v23 = vpack.c.bf16 %v363_v15, %v359_v14 }
  0x5a   : > { %3199 = vmatprep.subr.bf16.mxu1 %v3198_v57  ;;  %v365_v18 = vld [vmem:[%s4036_s4 + $0x1b0] sm:$0xff]  ;;  %v372_v20 = vld [vmem:[%s4036_s4 + $0x1e8] sm:$0xff]  ;;  %v374_v22 = vld [vmem:[%s4036_s4 + $0x1f8] sm:$0xff] }
  0x5b   : > { %v3208_v24 = vpack.c.bf16 %v365_v18, %v361_v16  ;;  %v2698_v25 = vpack.c.bf16 %v372_v20, %v368_v19  ;;  %v367_v26 = vld [vmem:[%s4036_s4 + $0x1c0] sm:$0xff]  ;;  %v369_v28 = vld [vmem:[%s4036_s4 + $0x1d0] sm:$0xff]  ;;  %v3210_v29 = vpack.c.bf16 %v374_v22, %v370_v21  ;;  %v376_v31 = vld [vmem:[%s4036_s4 + $0x208] sm:$0xff] }
  0x5c   : > { %2689 = vmatpush1.bf16.msra.mxu0 %v2688_v63  ;;  %v371_v27 = vld [vmem:[%s4036_s4 + $0x1e0] sm:$0xff]  ;;  %v373_v30 = vld [vmem:[%s4036_s4 + $0x1f0] sm:$0xff]  ;;  %v380_v32 = vld [vmem:[%s4036_s4 + $0x228] sm:$0xff] }
  0x5d   : > { %3201 = vmatpush1.bf16.msra.mxu1 %v3200_v0  ;;  %2691 = vmatprep.subr.bf16.mxu0 %v2690_v1  ;;  %v378_v33 = vld [vmem:[%s4036_s4 + $0x218] sm:$0xff]  ;;  %v2700_v35 = vpack.c.bf16 %v371_v27, %v367_v26  ;;  %v3212_v36 = vpack.c.bf16 %v373_v30, %v369_v28  ;;  %v2702_v37 = vpack.c.bf16 %v380_v32, %v376_v31  ;;  %v375_v38 = vld [vmem:[%s4036_s4 + $0x200] sm:$0xff]  ;;  %v377_v40 = vld [vmem:[%s4036_s4 + $0x210] sm:$0xff] }
  0x5e   : > { %3203 = vmatprep.subr.bf16.mxu1 %v3202_v5  ;;  %v382_v34 = vld [vmem:[%s4036_s4 + $0x238] sm:$0xff]  ;;  %v379_v39 = vld [vmem:[%s4036_s4 + $0x220] sm:$0xff]  ;;  %v381_v42 = vld [vmem:[%s4036_s4 + $0x230] sm:$0xff] }
  0x5f   : > { %v3214_v41 = vpack.c.bf16 %v382_v34, %v378_v33  ;;  %v384_v43 = vld [vmem:[%s4036_s4 + $0x248] sm:$0xff]  ;;  %v386_v45 = vld [vmem:[%s4036_s4 + $0x258] sm:$0xff]  ;;  %v2704_v47 = vpack.c.bf16 %v379_v39, %v375_v38  ;;  %v3216_v48 = vpack.c.bf16 %v381_v42, %v377_v40  ;;  %v383_v50 = vld [vmem:[%s4036_s4 + $0x240] sm:$0xff] }
  0x60   : > { %2693 = vmatpush1.bf16.msra.mxu0 %v2692_v11  ;;  %v388_v44 = vld [vmem:[%s4036_s4 + $0x268] sm:$0xff]  ;;  %v390_v46 = vld [vmem:[%s4036_s4 + $0x278] sm:$0xff]  ;;  %v387_v51 = vld [vmem:[%s4036_s4 + $0x260] sm:$0xff] }
  0x61   : > { %3205 = vmatpush1.bf16.msra.mxu1 %v3204_v12  ;;  %2695 = vmatprep.subr.bf16.mxu0 %v2694_v13  ;;  %v2706_v49 = vpack.c.bf16 %v388_v44, %v384_v43  ;;  %v385_v52 = vld [vmem:[%s4036_s4 + $0x250] sm:$0xff]  ;;  %v3218_v53 = vpack.c.bf16 %v390_v46, %v386_v45  ;;  %v392_v55 = vld [vmem:[%s4036_s4 + $0x288] sm:$0xff]  ;;  %v394_v57 = vld [vmem:[%s4036_s4 + $0x298] sm:$0xff]  ;;  %v2708_v59 = vpack.c.bf16 %v387_v51, %v383_v50 }
  0x62   : > { %3207 = vmatprep.subr.bf16.mxu1 %v3206_v17  ;;  %v389_v54 = vld [vmem:[%s4036_s4 + $0x270] sm:$0xff]  ;;  %v396_v56 = vld [vmem:[%s4036_s4 + $0x2a8] sm:$0xff]  ;;  %v398_v58 = vld [vmem:[%s4036_s4 + $0x2b8] sm:$0xff] }
  0x63   : > { %v3220_v60 = vpack.c.bf16 %v389_v54, %v385_v52  ;;  %v2710_v61 = vpack.c.bf16 %v396_v56, %v392_v55  ;;  %v391_v62 = vld [vmem:[%s4036_s4 + $0x280] sm:$0xff]  ;;  %v393_v0 = vld [vmem:[%s4036_s4 + $0x290] sm:$0xff]  ;;  %v3222_v1 = vpack.c.bf16 %v398_v58, %v394_v57  ;;  %v400_v3 = vld [vmem:[%s4036_s4 + $0x2c8] sm:$0xff] }
  0x64   : > { %2697 = vmatpush1.bf16.msra.mxu0 %v2696_v23  ;;  %v395_v63 = vld [vmem:[%s4036_s4 + $0x2a0] sm:$0xff]  ;;  %v397_v2 = vld [vmem:[%s4036_s4 + $0x2b0] sm:$0xff]  ;;  %v404_v4 = vld [vmem:[%s4036_s4 + $0x2e8] sm:$0xff] }
  0x65   : > { %3209 = vmatpush1.bf16.msra.mxu1 %v3208_v24  ;;  %2699 = vmatprep.subr.bf16.mxu0 %v2698_v25  ;;  %v402_v5 = vld [vmem:[%s4036_s4 + $0x2d8] sm:$0xff]  ;;  %v2712_v7 = vpack.c.bf16 %v395_v63, %v391_v62  ;;  %v399_v8 = vld [vmem:[%s4036_s4 + $0x2c0] sm:$0xff]  ;;  %v3224_v9 = vpack.c.bf16 %v397_v2, %v393_v0  ;;  %v2714_v10 = vpack.c.bf16 %v404_v4, %v400_v3  ;;  %v401_v12 = vld [vmem:[%s4036_s4 + $0x2d0] sm:$0xff] }
  0x66   : > { %3211 = vmatprep.subr.bf16.mxu1 %v3210_v29  ;;  %v406_v6 = vld [vmem:[%s4036_s4 + $0x2f8] sm:$0xff]  ;;  %v403_v11 = vld [vmem:[%s4036_s4 + $0x2e0] sm:$0xff]  ;;  %v405_v13 = vld [vmem:[%s4036_s4 + $0x2f0] sm:$0xff] }
  0x67   : > { %v3226_v14 = vpack.c.bf16 %v406_v6, %v402_v5  ;;  %v408_v15 = vld [vmem:[%s4036_s4 + $0x308] sm:$0xff]  ;;  %v410_v18 = vld [vmem:[%s4036_s4 + $0x318] sm:$0xff]  ;;  %v2716_v20 = vpack.c.bf16 %v403_v11, %v399_v8  ;;  %v3228_v21 = vpack.c.bf16 %v405_v13, %v401_v12  ;;  %v407_v23 = vld [vmem:[%s4036_s4 + $0x300] sm:$0xff] }
  0x68   : > { %2701 = vmatpush1.bf16.msra.mxu0 %v2700_v35  ;;  %v412_v16 = vld [vmem:[%s4036_s4 + $0x328] sm:$0xff]  ;;  %v414_v19 = vld [vmem:[%s4036_s4 + $0x338] sm:$0xff]  ;;  %v411_v24 = vld [vmem:[%s4036_s4 + $0x320] sm:$0xff] }
  0x69   : > { %3213 = vmatpush1.bf16.msra.mxu1 %v3212_v36  ;;  %2703 = vmatprep.subr.bf16.mxu0 %v2702_v37  ;;  %v296_v17 = vld [vmem:[%s4049_s29 + $0x8] sm:$0xff]  ;;  %v2718_v22 = vpack.c.bf16 %v412_v16, %v408_v15  ;;  %v409_v25 = vld [vmem:[%s4036_s4 + $0x310] sm:$0xff]  ;;  %v3230_v26 = vpack.c.bf16 %v414_v19, %v410_v18  ;;  %v418_v30 = vld [vmem:[%s4036_s4 + $0x358] sm:$0xff]  ;;  %v2720_v32 = vpack.c.bf16 %v411_v24, %v407_v23 }
  0x6a   : > { %3215 = vmatprep.subr.bf16.mxu1 %v3214_v41  ;;  %1399 = vmatprep.mubr.f32.mxu0 %v296_v17  ;;  %v413_v27 = vld [vmem:[%s4036_s4 + $0x330] sm:$0xff]  ;;  %v416_v28 = vld [vmem:[%s4036_s4 + $0x348] sm:$0xff]  ;;  %v422_v31 = vld [vmem:[%s4036_s4 + $0x378] sm:$0xff] }
  0x6b   : > { %1967 = vmatprep.mubr.f32.mxu1 %v296_v17  ;;  %v420_v29 = vld [vmem:[%s4036_s4 + $0x368] sm:$0xff]  ;;  %v3232_v33 = vpack.c.bf16 %v413_v27, %v409_v25  ;;  %v415_v35 = vld [vmem:[%s4036_s4 + $0x340] sm:$0xff]  ;;  %v417_v37 = vld [vmem:[%s4036_s4 + $0x350] sm:$0xff]  ;;  %v3234_v38 = vpack.c.bf16 %v422_v31, %v418_v30 }
  0x6c   : > { %2705 = vmatpush1.bf16.msra.mxu0 %v2704_v47  ;;  %v2722_v34 = vpack.c.bf16 %v420_v29, %v416_v28  ;;  %v419_v36 = vld [vmem:[%s4036_s4 + $0x360] sm:$0xff]  ;;  %v421_v39 = vld [vmem:[%s4036_s4 + $0x370] sm:$0xff]  ;;  %v424_v40 = vld [vmem:[%s4036_s4 + $0x388] sm:$0xff] }
  0x6d   : > { %3217 = vmatpush1.bf16.msra.mxu1 %v3216_v48  ;;  %2707 = vmatprep.subr.bf16.mxu0 %v2706_v49  ;;  %v428_v41 = vld [vmem:[%s4036_s4 + $0x3a8] sm:$0xff]  ;;  %v426_v42 = vld [vmem:[%s4036_s4 + $0x398] sm:$0xff]  ;;  %v2724_v44 = vpack.c.bf16 %v419_v36, %v415_v35  ;;  %v3236_v45 = vpack.c.bf16 %v421_v39, %v417_v37  ;;  %v423_v47 = vld [vmem:[%s4036_s4 + $0x380] sm:$0xff] }
  0x6e   : > { %3219 = vmatprep.subr.bf16.mxu1 %v3218_v53  ;;  %v430_v43 = vld [vmem:[%s4036_s4 + $0x3b8] sm:$0xff]  ;;  %v2726_v46 = vpack.c.bf16 %v428_v41, %v424_v40  ;;  %v427_v48 = vld [vmem:[%s4036_s4 + $0x3a0] sm:$0xff]  ;;  %v425_v49 = vld [vmem:[%s4036_s4 + $0x390] sm:$0xff] }
  0x6f   : > { %v3238_v50 = vpack.c.bf16 %v430_v43, %v426_v42  ;;  %v429_v51 = vld [vmem:[%s4036_s4 + $0x3b0] sm:$0xff]  ;;  %v432_v52 = vld [vmem:[%s4036_s4 + $0x3c8] sm:$0xff]  ;;  %v434_v54 = vld [vmem:[%s4036_s4 + $0x3d8] sm:$0xff]  ;;  %v2728_v56 = vpack.c.bf16 %v427_v48, %v423_v47 }
  0x70   : > { %2709 = vmatpush1.bf16.msra.mxu0 %v2708_v59  ;;  %v436_v53 = vld [vmem:[%s4036_s4 + $0x3e8] sm:$0xff]  ;;  %v438_v55 = vld [vmem:[%s4036_s4 + $0x3f8] sm:$0xff]  ;;  %v3240_v57 = vpack.c.bf16 %v429_v51, %v425_v49  ;;  %v431_v59 = vld [vmem:[%s4036_s4 + $0x3c0] sm:$0xff] }
  0x71   : > { %3221 = vmatpush1.bf16.msra.mxu1 %v3220_v60  ;;  %2711 = vmatprep.subr.bf16.mxu0 %v2710_v61  ;;  %v2730_v58 = vpack.c.bf16 %v436_v53, %v432_v52  ;;  %v435_v60 = vld [vmem:[%s4036_s4 + $0x3e0] sm:$0xff]  ;;  %v433_v61 = vld [vmem:[%s4036_s4 + $0x3d0] sm:$0xff]  ;;  %v3242_v62 = vpack.c.bf16 %v438_v55, %v434_v54  ;;  %v440_v0 = vld [vmem:[%s4036_s4 + $0x408] sm:$0xff] }
  0x72   : > { %3223 = vmatprep.subr.bf16.mxu1 %v3222_v1  ;;  %v437_v63 = vld [vmem:[%s4036_s4 + $0x3f0] sm:$0xff]  ;;  %v444_v1 = vld [vmem:[%s4036_s4 + $0x428] sm:$0xff]  ;;  %v442_v2 = vld [vmem:[%s4036_s4 + $0x418] sm:$0xff]  ;;  %v2732_v4 = vpack.c.bf16 %v435_v60, %v431_v59 }
  0x73   : > { %v446_v3 = vld [vmem:[%s4036_s4 + $0x438] sm:$0xff]  ;;  %v3244_v5 = vpack.c.bf16 %v437_v63, %v433_v61  ;;  %v2734_v6 = vpack.c.bf16 %v444_v1, %v440_v0  ;;  %v443_v8 = vld [vmem:[%s4036_s4 + $0x420] sm:$0xff]  ;;  %v445_v11 = vld [vmem:[%s4036_s4 + $0x430] sm:$0xff] }
  0x74   : > { %2713 = vmatpush1.bf16.msra.mxu0 %v2712_v7  ;;  %v439_v7 = vld [vmem:[%s4036_s4 + $0x400] sm:$0xff]  ;;  %v448_v12 = vld [vmem:[%s4036_s4 + $0x448] sm:$0xff]  ;;  %v454_v15 = vld [vmem:[%s4036_s4 + $0x478] sm:$0xff] }
  0x75   : > { %3225 = vmatpush1.bf16.msra.mxu1 %v3224_v9  ;;  %2715 = vmatprep.subr.bf16.mxu0 %v2714_v10  ;;  %v441_v9 = vld [vmem:[%s4036_s4 + $0x410] sm:$0xff]  ;;  %v3246_v10 = vpack.c.bf16 %v446_v3, %v442_v2  ;;  %v452_v13 = vld [vmem:[%s4036_s4 + $0x468] sm:$0xff]  ;;  %v295_v16 = vld [vmem:[%s4049_s29] sm:$0xff]  ;;  %v2736_v17 = vpack.c.bf16 %v443_v8, %v439_v7 }
  0x76   : > { %3227 = vmatprep.subr.bf16.mxu1 %v3226_v14  ;;  %v450_v14 = vld [vmem:[%s4036_s4 + $0x458] sm:$0xff]  ;;  %v3248_v18 = vpack.c.bf16 %v445_v11, %v441_v9  ;;  %v2738_v19 = vpack.c.bf16 %v452_v13, %v448_v12  ;;  %v453_v24 = vld [vmem:[%s4036_s4 + $0x470] sm:$0xff]  ;;  %v456_v25 = vld [vmem:[%s4036_s4 + $0x488] sm:$0xff] }
  0x77   : > { %v3250_v23 = vpack.c.bf16 %v454_v15, %v450_v14  ;;  %v458_v27 = vld [vmem:[%s4036_s4 + $0x498] sm:$0xff]  ;;  %v461_v36 = vld [vmem:[%s4036_s4 + $0x4b0] sm:$0xff]  ;;  %v464_v37 = vld [vmem:[%s4036_s4 + $0x4c8] sm:$0xff] }
  0x78   : > { %2717 = vmatpush1.bf16.msra.mxu0 %v2716_v20  ;;  %v447_v20 = vld [vmem:[%s4036_s4 + $0x440] sm:$0xff]  ;;  %v462_v28 = vld [vmem:[%s4036_s4 + $0x4b8] sm:$0xff]  ;;  %v469_v48 = vld [vmem:[%s4036_s4 + $0x4f0] sm:$0xff] }
  0x79   : > { %3229 = vmatpush1.bf16.msra.mxu1 %v3228_v21  ;;  %2719 = vmatprep.subr.bf16.mxu0 %v2718_v22  ;;  %v451_v21 = vld [vmem:[%s4036_s4 + $0x460] sm:$0xff]  ;;  %v449_v22 = vld [vmem:[%s4036_s4 + $0x450] sm:$0xff]  ;;  %v3254_v35 = vpack.c.bf16 %v462_v28, %v458_v27  ;;  %v466_v39 = vld [vmem:[%s4036_s4 + $0x4d8] sm:$0xff] }
  0x7a   : > { %3231 = vmatprep.subr.bf16.mxu1 %v3230_v26  ;;  %v460_v26 = vld [vmem:[%s4036_s4 + $0x4a8] sm:$0xff]  ;;  %v2740_v29 = vpack.c.bf16 %v451_v21, %v447_v20  ;;  %v3252_v30 = vpack.c.bf16 %v453_v24, %v449_v22  ;;  %v470_v40 = vld [vmem:[%s4036_s4 + $0x4f8] sm:$0xff]  ;;  %v477_v60 = vld [vmem:[%s4036_s4 + $0x530] sm:$0xff] }
  0x7b   : > { %v2742_v31 = vpack.c.bf16 %v460_v26, %v456_v25  ;;  %v3258_v47 = vpack.c.bf16 %v470_v40, %v466_v39  ;;  %v472_v49 = vld [vmem:[%s4036_s4 + $0x508] sm:$0xff]  ;;  %v474_v51 = vld [vmem:[%s4036_s4 + $0x518] sm:$0xff]  ;;  %v485_v8 = vld [vmem:[%s4036_s4 + $0x570] sm:$0xff] }
  0x7c   : > { %2721 = vmatpush1.bf16.msra.mxu0 %v2720_v32  ;;  %v455_v32 = vld [vmem:[%s4036_s4 + $0x480] sm:$0xff]  ;;  %v478_v52 = vld [vmem:[%s4036_s4 + $0x538] sm:$0xff]  ;;  %v480_v61 = vld [vmem:[%s4036_s4 + $0x548] sm:$0xff] }
  0x7d   : > { %3233 = vmatpush1.bf16.msra.mxu1 %v3232_v33  ;;  %2723 = vmatprep.subr.bf16.mxu0 %v2722_v34  ;;  %v459_v33 = vld [vmem:[%s4036_s4 + $0x4a0] sm:$0xff]  ;;  %v457_v34 = vld [vmem:[%s4036_s4 + $0x490] sm:$0xff]  ;;  %v3262_v59 = vpack.c.bf16 %v478_v52, %v474_v51  ;;  %v482_v63 = vld [vmem:[%s4036_s4 + $0x558] sm:$0xff] }
  0x7e   : > { %3235 = vmatprep.subr.bf16.mxu1 %v3234_v38  ;;  %v468_v38 = vld [vmem:[%s4036_s4 + $0x4e8] sm:$0xff]  ;;  %v2744_v41 = vpack.c.bf16 %v459_v33, %v455_v32  ;;  %v3256_v42 = vpack.c.bf16 %v461_v36, %v457_v34  ;;  %v486_v0 = vld [vmem:[%s4036_s4 + $0x578] sm:$0xff]  ;;  %v487_v14 = vld [vmem:[%s4036_s4 + $0x580] sm:$0xff] }
  0x7f   : > { %v2746_v43 = vpack.c.bf16 %v468_v38, %v464_v37  ;;  %v3266_v7 = vpack.c.bf16 %v486_v0, %v482_v63  ;;  %v488_v9 = vld [vmem:[%s4036_s4 + $0x588] sm:$0xff]  ;;  %v490_v11 = vld [vmem:[%s4036_s4 + $0x598] sm:$0xff]  ;;  %v501_v33 = vld [vmem:[%s4036_s4 + $0x5f0] sm:$0xff] }
  0x80   : > { %2725 = vmatpush1.bf16.msra.mxu0 %v2724_v44  ;;  %v463_v44 = vld [vmem:[%s4036_s4 + $0x4c0] sm:$0xff]  ;;  %v494_v12 = vld [vmem:[%s4036_s4 + $0x5b8] sm:$0xff]  ;;  %v496_v21 = vld [vmem:[%s4036_s4 + $0x5c8] sm:$0xff] }
  0x81   : > { %3237 = vmatpush1.bf16.msra.mxu1 %v3236_v45  ;;  %2727 = vmatprep.subr.bf16.mxu0 %v2726_v46  ;;  %v467_v45 = vld [vmem:[%s4036_s4 + $0x4e0] sm:$0xff]  ;;  %v465_v46 = vld [vmem:[%s4036_s4 + $0x4d0] sm:$0xff]  ;;  %v3270_v20 = vpack.c.bf16 %v494_v12, %v490_v11  ;;  %v500_v22 = vld [vmem:[%s4036_s4 + $0x5e8] sm:$0xff] }
  0x82   : > { %3239 = vmatprep.subr.bf16.mxu1 %v3238_v50  ;;  %v476_v50 = vld [vmem:[%s4036_s4 + $0x528] sm:$0xff]  ;;  %v2748_v53 = vpack.c.bf16 %v467_v45, %v463_v44  ;;  %v3260_v54 = vpack.c.bf16 %v469_v48, %v465_v46  ;;  %v498_v24 = vld [vmem:[%s4036_s4 + $0x5d8] sm:$0xff]  ;;  %v2762_v28 = vpack.c.bf16 %v500_v22, %v496_v21  ;;  %v509_v45 = vld [vmem:[%s4036_s4 + $0x630] sm:$0xff] }
  0x83   : > { %v2750_v55 = vpack.c.bf16 %v476_v50, %v472_v49  ;;  %v502_v25 = vld [vmem:[%s4036_s4 + $0x5f8] sm:$0xff]  ;;  %v504_v34 = vld [vmem:[%s4036_s4 + $0x608] sm:$0xff] }
  0x84   : > { %2729 = vmatpush1.bf16.msra.mxu0 %v2728_v56  ;;  %v471_v56 = vld [vmem:[%s4036_s4 + $0x500] sm:$0xff]  ;;  %v3274_v32 = vpack.c.bf16 %v502_v25, %v498_v24  ;;  %v506_v36 = vld [vmem:[%s4036_s4 + $0x618] sm:$0xff]  ;;  %v512_v46 = vld [vmem:[%s4036_s4 + $0x648] sm:$0xff] }
  0x85   : > { %3241 = vmatpush1.bf16.msra.mxu1 %v3240_v57  ;;  %2731 = vmatprep.subr.bf16.mxu0 %v2730_v58  ;;  %v475_v57 = vld [vmem:[%s4036_s4 + $0x520] sm:$0xff]  ;;  %v473_v58 = vld [vmem:[%s4036_s4 + $0x510] sm:$0xff]  ;;  %v510_v37 = vld [vmem:[%s4036_s4 + $0x638] sm:$0xff] }
  0x86   : > { %3243 = vmatprep.subr.bf16.mxu1 %v3242_v62  ;;  %v484_v62 = vld [vmem:[%s4036_s4 + $0x568] sm:$0xff]  ;;  %v2752_v1 = vpack.c.bf16 %v475_v57, %v471_v56  ;;  %v3264_v2 = vpack.c.bf16 %v477_v60, %v473_v58  ;;  %v3278_v44 = vpack.c.bf16 %v510_v37, %v506_v36  ;;  %v514_v48 = vld [vmem:[%s4036_s4 + $0x658] sm:$0xff]  ;;  %v517_v57 = vld [vmem:[%s4036_s4 + $0x670] sm:$0xff] }
  0x87   : > { %v2754_v3 = vpack.c.bf16 %v484_v62, %v480_v61  ;;  %v518_v49 = vld [vmem:[%s4036_s4 + $0x678] sm:$0xff]  ;;  %v520_v58 = vld [vmem:[%s4036_s4 + $0x688] sm:$0xff]  ;;  %v535_v25 = vld [vmem:[%s4036_s4 + $0x700] sm:$0xff] }
  0x88   : > { %2733 = vmatpush1.bf16.msra.mxu0 %v2732_v4  ;;  %v479_v4 = vld [vmem:[%s4036_s4 + $0x540] sm:$0xff]  ;;  %v3282_v56 = vpack.c.bf16 %v518_v49, %v514_v48  ;;  %v522_v60 = vld [vmem:[%s4036_s4 + $0x698] sm:$0xff] }
  0x89   : > { %3245 = vmatpush1.bf16.msra.mxu1 %v3244_v5  ;;  %2735 = vmatprep.subr.bf16.mxu0 %v2734_v6  ;;  %v483_v5 = vld [vmem:[%s4036_s4 + $0x560] sm:$0xff]  ;;  %v481_v6 = vld [vmem:[%s4036_s4 + $0x550] sm:$0xff]  ;;  %v526_v61 = vld [vmem:[%s4036_s4 + $0x6b8] sm:$0xff] }
  0x8a   : > { %3247 = vmatprep.subr.bf16.mxu1 %v3246_v10  ;;  %v492_v10 = vld [vmem:[%s4036_s4 + $0x5a8] sm:$0xff]  ;;  %v2756_v13 = vpack.c.bf16 %v483_v5, %v479_v4  ;;  %v3268_v15 = vpack.c.bf16 %v485_v8, %v481_v6  ;;  %v3286_v4 = vpack.c.bf16 %v526_v61, %v522_v60  ;;  %v525_v5 = vld [vmem:[%s4036_s4 + $0x6b0] sm:$0xff]  ;;  %v530_v8 = vld [vmem:[%s4036_s4 + $0x6d8] sm:$0xff] }
  0x8b   : > { %1400 = vmatmul.mubr.f32.vlgmr.msra.gmra.mrb[0].mxu0 %v295_v16  ;;  %v528_v6 = vld [vmem:[%s4036_s4 + $0x6c8] sm:$0xff]  ;;  %v542_v21 = vld [vmem:[%s4036_s4 + $0x738] sm:$0xff]  ;;  %v543_v37 = vld [vmem:[%s4036_s4 + $0x740] sm:$0xff] }
  0x8c   : > { %2737 = vmatpush1.bf16.msra.mxu0 %v2736_v17  ;;  %1968 = vmatmul.mubr.f32.vlgmr.msra.gmra.mrb[0].mxu1 %v295_v16  ;;  %v2758_v16 = vpack.c.bf16 %v492_v10, %v488_v9  ;;  %v491_v17 = vld [vmem:[%s4036_s4 + $0x5a0] sm:$0xff]  ;;  %v534_v9 = vld [vmem:[%s4036_s4 + $0x6f8] sm:$0xff] }
  0x8d   : > { %3249 = vmatpush1.bf16.msra.mxu1 %v3248_v18  ;;  %2739 = vmatprep.subr.bf16.mxu0 %v2738_v19  ;;  %v489_v18 = vld [vmem:[%s4036_s4 + $0x590] sm:$0xff]  ;;  %v2760_v26 = vpack.c.bf16 %v491_v17, %v487_v14  ;;  %v531_v14 = vld [vmem:[%s4036_s4 + $0x6e0] sm:$0xff] }
  0x8e   : > { %3251 = vmatprep.subr.bf16.mxu1 %v3250_v23  ;;  %v493_v19 = vld [vmem:[%s4036_s4 + $0x5b0] sm:$0xff]  ;;  %v298_v23 = vld [vmem:[%s4049_s29 + $0x18] sm:$0xff]  ;;  %v551_v49 = vld [vmem:[%s4036_s4 + $0x780] sm:$0xff] }
  0x8f   : > { %1470 = vmatprep.mubr.f32.mxu0 %v298_v23  ;;  %2038 = vmatprep.mubr.f32.mxu1 %v298_v23  ;;  %v3272_v27 = vpack.c.bf16 %v493_v19, %v489_v18  ;;  %v533_v17 = vld [vmem:[%s4036_s4 + $0x6f0] sm:$0xff]  ;;  %v536_v18 = vld [vmem:[%s4036_s4 + $0x708] sm:$0xff]  ;;  %v559_v61 = vld [vmem:[%s4036_s4 + $0x7c0] sm:$0xff] }
  0x90   : > { %2741 = vmatpush1.bf16.msra.mxu0 %v2740_v29  ;;  %v495_v29 = vld [vmem:[%s4036_s4 + $0x5c0] sm:$0xff]  ;;  %v540_v19 = vld [vmem:[%s4036_s4 + $0x728] sm:$0xff] }
  0x91   : > { %3253 = vmatpush1.bf16.msra.mxu1 %v3252_v30  ;;  %2743 = vmatprep.subr.bf16.mxu0 %v2742_v31  ;;  %v499_v30 = vld [vmem:[%s4036_s4 + $0x5e0] sm:$0xff]  ;;  %v497_v31 = vld [vmem:[%s4036_s4 + $0x5d0] sm:$0xff]  ;;  %v2782_v24 = vpack.c.bf16 %v540_v19, %v536_v18 }
  0x92   : > { %3255 = vmatprep.subr.bf16.mxu1 %v3254_v35  ;;  %v508_v35 = vld [vmem:[%s4036_s4 + $0x628] sm:$0xff]  ;;  %v2764_v38 = vpack.c.bf16 %v499_v30, %v495_v29  ;;  %v3276_v39 = vpack.c.bf16 %v501_v33, %v497_v31  ;;  %v541_v29 = vld [vmem:[%s4036_s4 + $0x730] sm:$0xff]  ;;  %v550_v33 = vld [vmem:[%s4036_s4 + $0x778] sm:$0xff] }
  0x93   : > { %v2766_v40 = vpack.c.bf16 %v508_v35, %v504_v34  ;;  %v544_v30 = vld [vmem:[%s4036_s4 + $0x748] sm:$0xff]  ;;  %v297_v18 = vld [vmem:[%s4049_s29 + $0x10] sm:$0xff] }
  0x94   : > { %2745 = vmatpush1.bf16.msra.mxu0 %v2744_v41  ;;  %v503_v41 = vld [vmem:[%s4036_s4 + $0x600] sm:$0xff]  ;;  %v548_v31 = vld [vmem:[%s4036_s4 + $0x768] sm:$0xff] }
  0x95   : > { %3257 = vmatpush1.bf16.msra.mxu1 %v3256_v42  ;;  %2747 = vmatprep.subr.bf16.mxu0 %v2746_v43  ;;  %v507_v42 = vld [vmem:[%s4036_s4 + $0x620] sm:$0xff]  ;;  %v505_v43 = vld [vmem:[%s4036_s4 + $0x610] sm:$0xff]  ;;  %v2786_v36 = vpack.c.bf16 %v548_v31, %v544_v30  ;;  %v590_v30 = vld [vmem:[%s4036_s4 + $0x8b8] sm:$0xff] }
  0x96   : > { %3259 = vmatprep.subr.bf16.mxu1 %v3258_v47  ;;  %v516_v47 = vld [vmem:[%s4036_s4 + $0x668] sm:$0xff]  ;;  %v2768_v50 = vpack.c.bf16 %v507_v42, %v503_v41  ;;  %v3280_v51 = vpack.c.bf16 %v509_v45, %v505_v43  ;;  %v549_v41 = vld [vmem:[%s4036_s4 + $0x770] sm:$0xff]  ;;  %v558_v45 = vld [vmem:[%s4036_s4 + $0x7b8] sm:$0xff] }
  0x97   : > { %v2770_v52 = vpack.c.bf16 %v516_v47, %v512_v46  ;;  %v552_v42 = vld [vmem:[%s4036_s4 + $0x788] sm:$0xff] }
  0x98   : > { %2749 = vmatpush1.bf16.msra.mxu0 %v2748_v53  ;;  %v511_v53 = vld [vmem:[%s4036_s4 + $0x640] sm:$0xff]  ;;  %v556_v43 = vld [vmem:[%s4036_s4 + $0x7a8] sm:$0xff] }
  0x99   : > { %3261 = vmatpush1.bf16.msra.mxu1 %v3260_v54  ;;  %2751 = vmatprep.subr.bf16.mxu0 %v2750_v55  ;;  %v515_v54 = vld [vmem:[%s4036_s4 + $0x660] sm:$0xff]  ;;  %v513_v55 = vld [vmem:[%s4036_s4 + $0x650] sm:$0xff]  ;;  %v2790_v48 = vpack.c.bf16 %v556_v43, %v552_v42  ;;  %v300_v31 = vld [vmem:[%s4049_s29 + $0x28] sm:$0xff] }
  0x9a   : > { %3263 = vmatprep.subr.bf16.mxu1 %v3262_v59  ;;  %v524_v59 = vld [vmem:[%s4036_s4 + $0x6a8] sm:$0xff]  ;;  %v2772_v62 = vpack.c.bf16 %v515_v54, %v511_v53  ;;  %v3284_v63 = vpack.c.bf16 %v517_v57, %v513_v55  ;;  %v557_v53 = vld [vmem:[%s4036_s4 + $0x7b0] sm:$0xff]  ;;  %v566_v57 = vld [vmem:[%s4036_s4 + $0x7f8] sm:$0xff] }
  0x9b   : > { %v2774_v0 = vpack.c.bf16 %v524_v59, %v520_v58  ;;  %v560_v54 = vld [vmem:[%s4036_s4 + $0x7c8] sm:$0xff]  ;;  %v594_v42 = vld [vmem:[%s4036_s4 + $0x8d8] sm:$0xff] }
  0x9c   : > { %2753 = vmatpush1.bf16.msra.mxu0 %v2752_v1  ;;  %v519_v1 = vld [vmem:[%s4036_s4 + $0x680] sm:$0xff]  ;;  %v564_v55 = vld [vmem:[%s4036_s4 + $0x7e8] sm:$0xff]  ;;  %v598_v43 = vld [vmem:[%s4036_s4 + $0x8f8] sm:$0xff] }
  0x9d   : > { %3265 = vmatpush1.bf16.msra.mxu1 %v3264_v2  ;;  %2755 = vmatprep.subr.bf16.mxu0 %v2754_v3  ;;  %v523_v2 = vld [vmem:[%s4036_s4 + $0x6a0] sm:$0xff]  ;;  %v521_v3 = vld [vmem:[%s4036_s4 + $0x690] sm:$0xff]  ;;  %v2794_v60 = vpack.c.bf16 %v564_v55, %v560_v54  ;;  %v602_v54 = vld [vmem:[%s4036_s4 + $0x918] sm:$0xff] }
  0x9e   : > { %3267 = vmatprep.subr.bf16.mxu1 %v3266_v7  ;;  %v532_v7 = vld [vmem:[%s4036_s4 + $0x6e8] sm:$0xff]  ;;  %v2776_v10 = vpack.c.bf16 %v523_v2, %v519_v1  ;;  %v3288_v11 = vpack.c.bf16 %v525_v5, %v521_v3  ;;  %v565_v1 = vld [vmem:[%s4036_s4 + $0x7f0] sm:$0xff]  ;;  %v574_v5 = vld [vmem:[%s4036_s4 + $0x838] sm:$0xff] }
  0x9f   : > { %v2778_v12 = vpack.c.bf16 %v532_v7, %v528_v6  ;;  %v568_v2 = vld [vmem:[%s4036_s4 + $0x808] sm:$0xff]  ;;  %v606_v55 = vld [vmem:[%s4036_s4 + $0x938] sm:$0xff] }
  0xa0   : > { %2757 = vmatpush1.bf16.msra.mxu0 %v2756_v13  ;;  %v527_v13 = vld [vmem:[%s4036_s4 + $0x6c0] sm:$0xff]  ;;  %v572_v3 = vld [vmem:[%s4036_s4 + $0x828] sm:$0xff] }
  0xa1   : > { %3269 = vmatpush1.bf16.msra.mxu1 %v3268_v15  ;;  %2759 = vmatprep.subr.bf16.mxu0 %v2758_v16  ;;  %v529_v15 = vld [vmem:[%s4036_s4 + $0x6d0] sm:$0xff]  ;;  %v3290_v16 = vpack.c.bf16 %v534_v9, %v530_v8  ;;  %v2780_v22 = vpack.c.bf16 %v531_v14, %v527_v13  ;;  %v2798_v8 = vpack.c.bf16 %v572_v3, %v568_v2  ;;  %v567_v9 = vld [vmem:[%s4036_s4 + $0x800] sm:$0xff]  ;;  %v576_v14 = vld [vmem:[%s4036_s4 + $0x848] sm:$0xff] }
  0xa2   : > { %3271 = vmatprep.subr.bf16.mxu1 %v3270_v20  ;;  %v538_v20 = vld [vmem:[%s4036_s4 + $0x718] sm:$0xff]  ;;  %v3292_v23 = vpack.c.bf16 %v533_v17, %v529_v15  ;;  %v573_v13 = vld [vmem:[%s4036_s4 + $0x830] sm:$0xff]  ;;  %v580_v15 = vld [vmem:[%s4036_s4 + $0x868] sm:$0xff] }
  0xa3   : > { %v582_v17 = vld [vmem:[%s4036_s4 + $0x878] sm:$0xff] }
  0xa4   : > { %2761 = vmatpush1.bf16.msra.mxu0 %v2760_v26  ;;  %v539_v26 = vld [vmem:[%s4036_s4 + $0x720] sm:$0xff]  ;;  %v610_v2 = vld [vmem:[%s4036_s4 + $0x958] sm:$0xff] }
  0xa5   : > { %3273 = vmatpush1.bf16.msra.mxu1 %v3272_v27  ;;  %2763 = vmatprep.subr.bf16.mxu0 %v2762_v28  ;;  %v537_v27 = vld [vmem:[%s4036_s4 + $0x710] sm:$0xff]  ;;  %v3294_v28 = vpack.c.bf16 %v542_v21, %v538_v20  ;;  %v2784_v34 = vpack.c.bf16 %v539_v26, %v535_v25  ;;  %v2802_v21 = vpack.c.bf16 %v580_v15, %v576_v14  ;;  %v614_v3 = vld [vmem:[%s4036_s4 + $0x978] sm:$0xff] }
  0xa6   : > { %3275 = vmatprep.subr.bf16.mxu1 %v3274_v32  ;;  %v546_v32 = vld [vmem:[%s4036_s4 + $0x758] sm:$0xff]  ;;  %v3296_v35 = vpack.c.bf16 %v541_v29, %v537_v27  ;;  %v581_v26 = vld [vmem:[%s4036_s4 + $0x870] sm:$0xff]  ;;  %v584_v27 = vld [vmem:[%s4036_s4 + $0x888] sm:$0xff] }
  0xa7   : > { %v586_v29 = vld [vmem:[%s4036_s4 + $0x898] sm:$0xff] }
  0xa8   : > { %2765 = vmatpush1.bf16.msra.mxu0 %v2764_v38  ;;  %v547_v38 = vld [vmem:[%s4036_s4 + $0x760] sm:$0xff]  ;;  %v618_v14 = vld [vmem:[%s4036_s4 + $0x998] sm:$0xff] }
  0xa9   : > { %3277 = vmatpush1.bf16.msra.mxu1 %v3276_v39  ;;  %2767 = vmatprep.subr.bf16.mxu0 %v2766_v40  ;;  %v545_v39 = vld [vmem:[%s4036_s4 + $0x750] sm:$0xff]  ;;  %v3298_v40 = vpack.c.bf16 %v550_v33, %v546_v32  ;;  %v2788_v46 = vpack.c.bf16 %v547_v38, %v543_v37  ;;  %v3318_v38 = vpack.c.bf16 %v590_v30, %v586_v29  ;;  %v622_v15 = vld [vmem:[%s4036_s4 + $0x9b8] sm:$0xff] }
  0xaa   : > { %3279 = vmatprep.subr.bf16.mxu1 %v3278_v44  ;;  %v554_v44 = vld [vmem:[%s4036_s4 + $0x798] sm:$0xff]  ;;  %v3300_v47 = vpack.c.bf16 %v549_v41, %v545_v39  ;;  %v585_v37 = vld [vmem:[%s4036_s4 + $0x890] sm:$0xff]  ;;  %v596_v41 = vld [vmem:[%s4036_s4 + $0x8e8] sm:$0xff] }
  0xab   : > { %v589_v39 = vld [vmem:[%s4036_s4 + $0x8b0] sm:$0xff] }
  0xac   : > { %2769 = vmatpush1.bf16.msra.mxu0 %v2768_v50  ;;  %v555_v50 = vld [vmem:[%s4036_s4 + $0x7a0] sm:$0xff] }
  0xad   : > { %3281 = vmatpush1.bf16.msra.mxu1 %v3280_v51  ;;  %2771 = vmatprep.subr.bf16.mxu0 %v2770_v52  ;;  %v553_v51 = vld [vmem:[%s4036_s4 + $0x790] sm:$0xff]  ;;  %v3302_v52 = vpack.c.bf16 %v558_v45, %v554_v44  ;;  %v2792_v58 = vpack.c.bf16 %v555_v50, %v551_v49  ;;  %v3320_v45 = vpack.c.bf16 %v589_v39, %v585_v37  ;;  %v636_v37 = vld [vmem:[%s4036_s4 + $0xa28] sm:$0xff]  ;;  %v638_v39 = vld [vmem:[%s4036_s4 + $0xa38] sm:$0xff] }
  0xae   : > { %3283 = vmatprep.subr.bf16.mxu1 %v3282_v56  ;;  %v562_v56 = vld [vmem:[%s4036_s4 + $0x7d8] sm:$0xff]  ;;  %v3304_v59 = vpack.c.bf16 %v557_v53, %v553_v51  ;;  %v593_v49 = vld [vmem:[%s4036_s4 + $0x8d0] sm:$0xff]  ;;  %v3322_v50 = vpack.c.bf16 %v598_v43, %v594_v42  ;;  %v604_v53 = vld [vmem:[%s4036_s4 + $0x928] sm:$0xff] }
  0xaf   : > { %v597_v51 = vld [vmem:[%s4036_s4 + $0x8f0] sm:$0xff]  ;;  %v631_v43 = vld [vmem:[%s4036_s4 + $0xa00] sm:$0xff] }
  0xb0   : > { %2773 = vmatpush1.bf16.msra.mxu0 %v2772_v62  ;;  %v563_v62 = vld [vmem:[%s4036_s4 + $0x7e0] sm:$0xff] }
  0xb1   : > { %3285 = vmatpush1.bf16.msra.mxu1 %v3284_v63  ;;  %2775 = vmatprep.subr.bf16.mxu0 %v2774_v0  ;;  %v561_v63 = vld [vmem:[%s4036_s4 + $0x7d0] sm:$0xff]  ;;  %v3306_v0 = vpack.c.bf16 %v566_v57, %v562_v56  ;;  %v2796_v6 = vpack.c.bf16 %v563_v62, %v559_v61  ;;  %v3324_v57 = vpack.c.bf16 %v597_v51, %v593_v49  ;;  %v644_v49 = vld [vmem:[%s4036_s4 + $0xa68] sm:$0xff]  ;;  %v646_v51 = vld [vmem:[%s4036_s4 + $0xa78] sm:$0xff] }
  0xb2   : > { %3287 = vmatprep.subr.bf16.mxu1 %v3286_v4  ;;  %v570_v4 = vld [vmem:[%s4036_s4 + $0x818] sm:$0xff]  ;;  %v3308_v7 = vpack.c.bf16 %v565_v1, %v561_v63  ;;  %v601_v61 = vld [vmem:[%s4036_s4 + $0x910] sm:$0xff]  ;;  %v3326_v62 = vpack.c.bf16 %v606_v55, %v602_v54  ;;  %v612_v1 = vld [vmem:[%s4036_s4 + $0x968] sm:$0xff] }
  0xb3   : > { %v605_v63 = vld [vmem:[%s4036_s4 + $0x930] sm:$0xff]  ;;  %v639_v55 = vld [vmem:[%s4036_s4 + $0xa40] sm:$0xff] }
  0xb4   : > { %2777 = vmatpush1.bf16.msra.mxu0 %v2776_v10  ;;  %v571_v10 = vld [vmem:[%s4036_s4 + $0x820] sm:$0xff] }
  0xb5   : > { %3289 = vmatpush1.bf16.msra.mxu1 %v3288_v11  ;;  %2779 = vmatprep.subr.bf16.mxu0 %v2778_v12  ;;  %v569_v11 = vld [vmem:[%s4036_s4 + $0x810] sm:$0xff]  ;;  %v3310_v12 = vpack.c.bf16 %v574_v5, %v570_v4  ;;  %v2800_v19 = vpack.c.bf16 %v571_v10, %v567_v9  ;;  %v3328_v5 = vpack.c.bf16 %v605_v63, %v601_v61  ;;  %v652_v61 = vld [vmem:[%s4036_s4 + $0xaa8] sm:$0xff]  ;;  %v654_v63 = vld [vmem:[%s4036_s4 + $0xab8] sm:$0xff] }
  0xb6   : > { %3291 = vmatprep.subr.bf16.mxu1 %v3290_v16  ;;  %v578_v16 = vld [vmem:[%s4036_s4 + $0x858] sm:$0xff]  ;;  %v3312_v20 = vpack.c.bf16 %v573_v13, %v569_v11  ;;  %v609_v9 = vld [vmem:[%s4036_s4 + $0x950] sm:$0xff]  ;;  %v3330_v10 = vpack.c.bf16 %v614_v3, %v610_v2  ;;  %v620_v13 = vld [vmem:[%s4036_s4 + $0x9a8] sm:$0xff] }
  0xb7   : > { %v3314_v25 = vpack.c.bf16 %v582_v17, %v578_v16  ;;  %v613_v11 = vld [vmem:[%s4036_s4 + $0x970] sm:$0xff]  ;;  %v647_v3 = vld [vmem:[%s4036_s4 + $0xa80] sm:$0xff] }
  0xb8   : > { %2781 = vmatpush1.bf16.msra.mxu0 %v2780_v22  ;;  %v575_v22 = vld [vmem:[%s4036_s4 + $0x840] sm:$0xff]  ;;  %v3332_v17 = vpack.c.bf16 %v613_v11, %v609_v9  ;;  %v660_v9 = vld [vmem:[%s4036_s4 + $0xae8] sm:$0xff]  ;;  %v662_v11 = vld [vmem:[%s4036_s4 + $0xaf8] sm:$0xff] }
  0xb9   : > { %3293 = vmatpush1.bf16.msra.mxu1 %v3292_v23  ;;  %2783 = vmatprep.subr.bf16.mxu0 %v2782_v24  ;;  %v579_v23 = vld [vmem:[%s4036_s4 + $0x860] sm:$0xff]  ;;  %v577_v24 = vld [vmem:[%s4036_s4 + $0x850] sm:$0xff] }
  0xba   : > { %3295 = vmatprep.subr.bf16.mxu1 %v3294_v28  ;;  %v588_v28 = vld [vmem:[%s4036_s4 + $0x8a8] sm:$0xff]  ;;  %v2804_v32 = vpack.c.bf16 %v579_v23, %v575_v22  ;;  %v3316_v33 = vpack.c.bf16 %v581_v26, %v577_v24  ;;  %v3334_v22 = vpack.c.bf16 %v622_v15, %v618_v14  ;;  %v621_v23 = vld [vmem:[%s4036_s4 + $0x9b0] sm:$0xff]  ;;  %v626_v26 = vld [vmem:[%s4036_s4 + $0x9d8] sm:$0xff] }
  0xbb   : > { %v624_v24 = vld [vmem:[%s4036_s4 + $0x9c8] sm:$0xff]  ;;  %v655_v15 = vld [vmem:[%s4036_s4 + $0xac0] sm:$0xff] }
  0xbc   : > { %2785 = vmatpush1.bf16.msra.mxu0 %v2784_v34  ;;  %v2806_v34 = vpack.c.bf16 %v588_v28, %v584_v27  ;;  %v630_v27 = vld [vmem:[%s4036_s4 + $0x9f8] sm:$0xff] }
  0xbd   : > { %3297 = vmatpush1.bf16.msra.mxu1 %v3296_v35  ;;  %2787 = vmatprep.subr.bf16.mxu0 %v2786_v36  ;;  %v583_v35 = vld [vmem:[%s4036_s4 + $0x880] sm:$0xff] }
  0xbe   : > { %3299 = vmatprep.subr.bf16.mxu1 %v3298_v40  ;;  %v587_v36 = vld [vmem:[%s4036_s4 + $0x8a0] sm:$0xff]  ;;  %v592_v40 = vld [vmem:[%s4036_s4 + $0x8c8] sm:$0xff] }
  0xbf   : > { %v2808_v44 = vpack.c.bf16 %v587_v36, %v583_v35  ;;  %v629_v35 = vld [vmem:[%s4036_s4 + $0x9f0] sm:$0xff]  ;;  %v632_v36 = vld [vmem:[%s4036_s4 + $0xa08] sm:$0xff] }
  0xc0   : > { %2789 = vmatpush1.bf16.msra.mxu0 %v2788_v46  ;;  %v2810_v46 = vpack.c.bf16 %v596_v41, %v592_v40  ;;  %v2830_v42 = vpack.c.bf16 %v636_v37, %v632_v36 }
  0xc1   : > { %3301 = vmatpush1.bf16.msra.mxu1 %v3300_v47  ;;  %2791 = vmatprep.subr.bf16.mxu0 %v2790_v48  ;;  %v591_v47 = vld [vmem:[%s4036_s4 + $0x8c0] sm:$0xff] }
  0xc2   : > { %3303 = vmatprep.subr.bf16.mxu1 %v3302_v52  ;;  %v595_v48 = vld [vmem:[%s4036_s4 + $0x8e0] sm:$0xff]  ;;  %v600_v52 = vld [vmem:[%s4036_s4 + $0x908] sm:$0xff] }
  0xc3   : > { %v2812_v56 = vpack.c.bf16 %v595_v48, %v591_v47  ;;  %v637_v47 = vld [vmem:[%s4036_s4 + $0xa30] sm:$0xff]  ;;  %v640_v48 = vld [vmem:[%s4036_s4 + $0xa48] sm:$0xff] }
  0xc4   : > { %2793 = vmatpush1.bf16.msra.mxu0 %v2792_v58  ;;  %v2814_v58 = vpack.c.bf16 %v604_v53, %v600_v52  ;;  %v2834_v54 = vpack.c.bf16 %v644_v49, %v640_v48 }
  0xc5   : > { %3305 = vmatpush1.bf16.msra.mxu1 %v3304_v59  ;;  %2795 = vmatprep.subr.bf16.mxu0 %v2794_v60  ;;  %v599_v59 = vld [vmem:[%s4036_s4 + $0x900] sm:$0xff] }
  0xc6   : > { %3307 = vmatprep.subr.bf16.mxu1 %v3306_v0  ;;  %v603_v60 = vld [vmem:[%s4036_s4 + $0x920] sm:$0xff]  ;;  %v608_v0 = vld [vmem:[%s4036_s4 + $0x948] sm:$0xff] }
  0xc7   : > { %v2816_v4 = vpack.c.bf16 %v603_v60, %v599_v59  ;;  %v645_v59 = vld [vmem:[%s4036_s4 + $0xa70] sm:$0xff]  ;;  %v648_v60 = vld [vmem:[%s4036_s4 + $0xa88] sm:$0xff] }
  0xc8   : > { %2797 = vmatpush1.bf16.msra.mxu0 %v2796_v6  ;;  %v2818_v6 = vpack.c.bf16 %v612_v1, %v608_v0  ;;  %v2838_v2 = vpack.c.bf16 %v652_v61, %v648_v60 }
  0xc9   : > { %3309 = vmatpush1.bf16.msra.mxu1 %v3308_v7  ;;  %2799 = vmatprep.subr.bf16.mxu0 %v2798_v8  ;;  %v607_v7 = vld [vmem:[%s4036_s4 + $0x940] sm:$0xff] }
  0xca   : > { %3311 = vmatprep.subr.bf16.mxu1 %v3310_v12  ;;  %v611_v8 = vld [vmem:[%s4036_s4 + $0x960] sm:$0xff]  ;;  %v616_v12 = vld [vmem:[%s4036_s4 + $0x988] sm:$0xff] }
  0xcb   : > { %1471 = vmatmul.mubr.f32.vlgmr.msra.gmra.mrb[0].mxu0 %v297_v18  ;;  %v2820_v16 = vpack.c.bf16 %v611_v8, %v607_v7  ;;  %v653_v7 = vld [vmem:[%s4036_s4 + $0xab0] sm:$0xff]  ;;  %v656_v8 = vld [vmem:[%s4036_s4 + $0xac8] sm:$0xff] }
  0xcc   : > { %2801 = vmatpush1.bf16.msra.mxu0 %v2800_v19  ;;  %2039 = vmatmul.mubr.f32.vlgmr.msra.gmra.mrb[0].mxu1 %v297_v18  ;;  %v2822_v18 = vpack.c.bf16 %v620_v13, %v616_v12  ;;  %v615_v19 = vld [vmem:[%s4036_s4 + $0x980] sm:$0xff]  ;;  %v2842_v14 = vpack.c.bf16 %v660_v9, %v656_v8 }
  0xcd   : > { %3313 = vmatpush1.bf16.msra.mxu1 %v3312_v20  ;;  %2803 = vmatprep.subr.bf16.mxu0 %v2802_v21  ;;  %v619_v20 = vld [vmem:[%s4036_s4 + $0x9a0] sm:$0xff]  ;;  %v617_v21 = vld [vmem:[%s4036_s4 + $0x990] sm:$0xff] }
  0xce   : > { %3315 = vmatprep.subr.bf16.mxu1 %v3314_v25  ;;  %1541 = vmatprep.mubr.f32.mxu0 %v300_v31  ;;  %v628_v25 = vld [vmem:[%s4036_s4 + $0x9e8] sm:$0xff]  ;;  %v2824_v28 = vpack.c.bf16 %v619_v20, %v615_v19  ;;  %v3336_v29 = vpack.c.bf16 %v621_v23, %v617_v21  ;;  %v661_v19 = vld [vmem:[%s4036_s4 + $0xaf0] sm:$0xff]  ;;  %v670_v23 = vld [vmem:[%s4036_s4 + $0xb38] sm:$0xff] }
  0xcf   : > { %2109 = vmatprep.mubr.f32.mxu1 %v300_v31  ;;  %v2826_v30 = vpack.c.bf16 %v628_v25, %v624_v24  ;;  %v623_v31 = vld [vmem:[%s4036_s4 + $0x9c0] sm:$0xff]  ;;  %v664_v20 = vld [vmem:[%s4036_s4 + $0xb08] sm:$0xff] }
  0xd0   : > { %2805 = vmatpush1.bf16.msra.mxu0 %v2804_v32  ;;  %v627_v32 = vld [vmem:[%s4036_s4 + $0x9e0] sm:$0xff]  ;;  %v668_v21 = vld [vmem:[%s4036_s4 + $0xb28] sm:$0xff] }
  0xd1   : > { %3317 = vmatpush1.bf16.msra.mxu1 %v3316_v33  ;;  %2807 = vmatprep.subr.bf16.mxu0 %v2806_v34  ;;  %v625_v33 = vld [vmem:[%s4036_s4 + $0x9d0] sm:$0xff]  ;;  %v3338_v34 = vpack.c.bf16 %v630_v27, %v626_v26  ;;  %v2828_v40 = vpack.c.bf16 %v627_v32, %v623_v31  ;;  %v2846_v26 = vpack.c.bf16 %v668_v21, %v664_v20  ;;  %v663_v27 = vld [vmem:[%s4036_s4 + $0xb00] sm:$0xff]  ;;  %v672_v32 = vld [vmem:[%s4036_s4 + $0xb48] sm:$0xff] }
  0xd2   : > { %3319 = vmatprep.subr.bf16.mxu1 %v3318_v38  ;;  %v634_v38 = vld [vmem:[%s4036_s4 + $0xa18] sm:$0xff]  ;;  %v3340_v41 = vpack.c.bf16 %v629_v35, %v625_v33  ;;  %v669_v31 = vld [vmem:[%s4036_s4 + $0xb30] sm:$0xff]  ;;  %v676_v33 = vld [vmem:[%s4036_s4 + $0xb68] sm:$0xff] }
  0xd3   : > { %v678_v35 = vld [vmem:[%s4036_s4 + $0xb78] sm:$0xff]  ;;  %v299_v20 = vld [vmem:[%s4049_s29 + $0x20] sm:$0xff] }
  0xd4   : > { %2809 = vmatpush1.bf16.msra.mxu0 %v2808_v44  ;;  %v635_v44 = vld [vmem:[%s4036_s4 + $0xa20] sm:$0xff] }
  0xd5   : > { %3321 = vmatpush1.bf16.msra.mxu1 %v3320_v45  ;;  %2811 = vmatprep.subr.bf16.mxu0 %v2810_v46  ;;  %v633_v45 = vld [vmem:[%s4036_s4 + $0xa10] sm:$0xff]  ;;  %v3342_v46 = vpack.c.bf16 %v638_v39, %v634_v38  ;;  %v2832_v52 = vpack.c.bf16 %v635_v44, %v631_v43  ;;  %v2850_v38 = vpack.c.bf16 %v676_v33, %v672_v32  ;;  %v671_v39 = vld [vmem:[%s4036_s4 + $0xb40] sm:$0xff]  ;;  %v680_v44 = vld [vmem:[%s4036_s4 + $0xb88] sm:$0xff] }
  0xd6   : > { %3323 = vmatprep.subr.bf16.mxu1 %v3322_v50  ;;  %v642_v50 = vld [vmem:[%s4036_s4 + $0xa58] sm:$0xff]  ;;  %v3344_v53 = vpack.c.bf16 %v637_v47, %v633_v45  ;;  %v677_v43 = vld [vmem:[%s4036_s4 + $0xb70] sm:$0xff]  ;;  %v684_v45 = vld [vmem:[%s4036_s4 + $0xba8] sm:$0xff] }
  0xd7   : > { %v686_v47 = vld [vmem:[%s4036_s4 + $0xbb8] sm:$0xff] }
  0xd8   : > { %2813 = vmatpush1.bf16.msra.mxu0 %v2812_v56  ;;  %v643_v56 = vld [vmem:[%s4036_s4 + $0xa60] sm:$0xff]  ;;  %v718_v32 = vld [vmem:[%s4036_s4 + $0xcb8] sm:$0xff] }
  0xd9   : > { %3325 = vmatpush1.bf16.msra.mxu1 %v3324_v57  ;;  %2815 = vmatprep.subr.bf16.mxu0 %v2814_v58  ;;  %v641_v57 = vld [vmem:[%s4036_s4 + $0xa50] sm:$0xff]  ;;  %v3346_v58 = vpack.c.bf16 %v646_v51, %v642_v50  ;;  %v2836_v0 = vpack.c.bf16 %v643_v56, %v639_v55  ;;  %v2854_v50 = vpack.c.bf16 %v684_v45, %v680_v44  ;;  %v679_v51 = vld [vmem:[%s4036_s4 + $0xb80] sm:$0xff]  ;;  %v688_v56 = vld [vmem:[%s4036_s4 + $0xbc8] sm:$0xff] }
  0xda   : > { %3327 = vmatprep.subr.bf16.mxu1 %v3326_v62  ;;  %v650_v62 = vld [vmem:[%s4036_s4 + $0xa98] sm:$0xff]  ;;  %v3348_v1 = vpack.c.bf16 %v645_v59, %v641_v57  ;;  %v685_v55 = vld [vmem:[%s4036_s4 + $0xbb0] sm:$0xff]  ;;  %v692_v57 = vld [vmem:[%s4036_s4 + $0xbe8] sm:$0xff] }
  0xdb   : > { %v694_v59 = vld [vmem:[%s4036_s4 + $0xbf8] sm:$0xff] }
  0xdc   : > { %2817 = vmatpush1.bf16.msra.mxu0 %v2816_v4  ;;  %v651_v4 = vld [vmem:[%s4036_s4 + $0xaa0] sm:$0xff]  ;;  %v302_v33 = vld [vmem:[%s4049_s29 + $0x38] sm:$0xff] }
  0xdd   : > { %3329 = vmatpush1.bf16.msra.mxu1 %v3328_v5  ;;  %2819 = vmatprep.subr.bf16.mxu0 %v2818_v6  ;;  %v649_v5 = vld [vmem:[%s4036_s4 + $0xa90] sm:$0xff]  ;;  %v3350_v6 = vpack.c.bf16 %v654_v63, %v650_v62  ;;  %v2840_v12 = vpack.c.bf16 %v651_v4, %v647_v3  ;;  %v2858_v62 = vpack.c.bf16 %v692_v57, %v688_v56  ;;  %v687_v63 = vld [vmem:[%s4036_s4 + $0xbc0] sm:$0xff]  ;;  %v696_v4 = vld [vmem:[%s4036_s4 + $0xc08] sm:$0xff] }
  0xde   : > { %3331 = vmatprep.subr.bf16.mxu1 %v3330_v10  ;;  %v658_v10 = vld [vmem:[%s4036_s4 + $0xad8] sm:$0xff]  ;;  %v3352_v13 = vpack.c.bf16 %v653_v7, %v649_v5  ;;  %v693_v3 = vld [vmem:[%s4036_s4 + $0xbf0] sm:$0xff]  ;;  %v700_v5 = vld [vmem:[%s4036_s4 + $0xc28] sm:$0xff] }
  0xdf   : > { %v702_v7 = vld [vmem:[%s4036_s4 + $0xc38] sm:$0xff] }
  0xe0   : > { %2821 = vmatpush1.bf16.msra.mxu0 %v2820_v16  ;;  %v659_v16 = vld [vmem:[%s4036_s4 + $0xae0] sm:$0xff]  ;;  %v722_v44 = vld [vmem:[%s4036_s4 + $0xcd8] sm:$0xff] }
  0xe1   : > { %3333 = vmatpush1.bf16.msra.mxu1 %v3332_v17  ;;  %2823 = vmatprep.subr.bf16.mxu0 %v2822_v18  ;;  %v657_v17 = vld [vmem:[%s4036_s4 + $0xad0] sm:$0xff]  ;;  %v3354_v18 = vpack.c.bf16 %v662_v11, %v658_v10  ;;  %v2844_v24 = vpack.c.bf16 %v659_v16, %v655_v15  ;;  %v2862_v10 = vpack.c.bf16 %v700_v5, %v696_v4  ;;  %v695_v11 = vld [vmem:[%s4036_s4 + $0xc00] sm:$0xff]  ;;  %v704_v16 = vld [vmem:[%s4036_s4 + $0xc48] sm:$0xff] }
  0xe2   : > { %3335 = vmatprep.subr.bf16.mxu1 %v3334_v22  ;;  %v666_v22 = vld [vmem:[%s4036_s4 + $0xb18] sm:$0xff]  ;;  %v3356_v25 = vpack.c.bf16 %v661_v19, %v657_v17  ;;  %v701_v15 = vld [vmem:[%s4036_s4 + $0xc30] sm:$0xff]  ;;  %v708_v17 = vld [vmem:[%s4036_s4 + $0xc68] sm:$0xff] }
  0xe3   : > { %v710_v19 = vld [vmem:[%s4036_s4 + $0xc78] sm:$0xff] }
  0xe4   : > { %2825 = vmatpush1.bf16.msra.mxu0 %v2824_v28  ;;  %v667_v28 = vld [vmem:[%s4036_s4 + $0xb20] sm:$0xff]  ;;  %v726_v45 = vld [vmem:[%s4036_s4 + $0xcf8] sm:$0xff] }
  0xe5   : > { %3337 = vmatpush1.bf16.msra.mxu1 %v3336_v29  ;;  %2827 = vmatprep.subr.bf16.mxu0 %v2826_v30  ;;  %v665_v29 = vld [vmem:[%s4036_s4 + $0xb10] sm:$0xff]  ;;  %v3358_v30 = vpack.c.bf16 %v670_v23, %v666_v22  ;;  %v2848_v36 = vpack.c.bf16 %v667_v28, %v663_v27  ;;  %v2866_v23 = vpack.c.bf16 %v708_v17, %v704_v16  ;;  %v730_v56 = vld [vmem:[%s4036_s4 + $0xd18] sm:$0xff] }
  0xe6   : > { %3339 = vmatprep.subr.bf16.mxu1 %v3338_v34  ;;  %v674_v34 = vld [vmem:[%s4036_s4 + $0xb58] sm:$0xff]  ;;  %v3360_v37 = vpack.c.bf16 %v669_v31, %v665_v29  ;;  %v709_v28 = vld [vmem:[%s4036_s4 + $0xc70] sm:$0xff]  ;;  %v712_v29 = vld [vmem:[%s4036_s4 + $0xc88] sm:$0xff] }
  0xe7   : > { %v714_v31 = vld [vmem:[%s4036_s4 + $0xc98] sm:$0xff] }
  0xe8   : > { %2829 = vmatpush1.bf16.msra.mxu0 %v2828_v40  ;;  %v675_v40 = vld [vmem:[%s4036_s4 + $0xb60] sm:$0xff]  ;;  %v734_v57 = vld [vmem:[%s4036_s4 + $0xd38] sm:$0xff] }
  0xe9   : > { %3341 = vmatpush1.bf16.msra.mxu1 %v3340_v41  ;;  %2831 = vmatprep.subr.bf16.mxu0 %v2830_v42  ;;  %v673_v41 = vld [vmem:[%s4036_s4 + $0xb50] sm:$0xff]  ;;  %v3362_v42 = vpack.c.bf16 %v678_v35, %v674_v34  ;;  %v2852_v48 = vpack.c.bf16 %v675_v40, %v671_v39  ;;  %v3382_v40 = vpack.c.bf16 %v718_v32, %v714_v31  ;;  %v738_v4 = vld [vmem:[%s4036_s4 + $0xd58] sm:$0xff] }
  0xea   : > { %3343 = vmatprep.subr.bf16.mxu1 %v3342_v46  ;;  %v682_v46 = vld [vmem:[%s4036_s4 + $0xb98] sm:$0xff]  ;;  %v3364_v49 = vpack.c.bf16 %v677_v43, %v673_v41  ;;  %v713_v39 = vld [vmem:[%s4036_s4 + $0xc90] sm:$0xff]  ;;  %v724_v43 = vld [vmem:[%s4036_s4 + $0xce8] sm:$0xff] }
  0xeb   : > { %v717_v41 = vld [vmem:[%s4036_s4 + $0xcb0] sm:$0xff]  ;;  %v742_v5 = vld [vmem:[%s4036_s4 + $0xd78] sm:$0xff] }
  0xec   : > { %2833 = vmatpush1.bf16.msra.mxu0 %v2832_v52  ;;  %v683_v52 = vld [vmem:[%s4036_s4 + $0xba0] sm:$0xff]  ;;  %v746_v16 = vld [vmem:[%s4036_s4 + $0xd98] sm:$0xff] }
  0xed   : > { %3345 = vmatpush1.bf16.msra.mxu1 %v3344_v53  ;;  %2835 = vmatprep.subr.bf16.mxu0 %v2834_v54  ;;  %v681_v53 = vld [vmem:[%s4036_s4 + $0xb90] sm:$0xff]  ;;  %v3366_v54 = vpack.c.bf16 %v686_v47, %v682_v46  ;;  %v2856_v60 = vpack.c.bf16 %v683_v52, %v679_v51  ;;  %v3384_v47 = vpack.c.bf16 %v717_v41, %v713_v39  ;;  %v750_v17 = vld [vmem:[%s4036_s4 + $0xdb8] sm:$0xff]  ;;  %v764_v39 = vld [vmem:[%s4036_s4 + $0xe28] sm:$0xff] }
  0xee   : > { %3347 = vmatprep.subr.bf16.mxu1 %v3346_v58  ;;  %v690_v58 = vld [vmem:[%s4036_s4 + $0xbd8] sm:$0xff]  ;;  %v3368_v61 = vpack.c.bf16 %v685_v55, %v681_v53  ;;  %v721_v51 = vld [vmem:[%s4036_s4 + $0xcd0] sm:$0xff]  ;;  %v3386_v52 = vpack.c.bf16 %v726_v45, %v722_v44  ;;  %v732_v55 = vld [vmem:[%s4036_s4 + $0xd28] sm:$0xff] }
  0xef   : > { %v725_v53 = vld [vmem:[%s4036_s4 + $0xcf0] sm:$0xff]  ;;  %v766_v41 = vld [vmem:[%s4036_s4 + $0xe38] sm:$0xff]  ;;  %v759_v45 = vld [vmem:[%s4036_s4 + $0xe00] sm:$0xff] }
  0xf0   : > { %2837 = vmatpush1.bf16.msra.mxu0 %v2836_v0  ;;  %v691_v0 = vld [vmem:[%s4036_s4 + $0xbe0] sm:$0xff] }
  0xf1   : > { %3349 = vmatpush1.bf16.msra.mxu1 %v3348_v1  ;;  %2839 = vmatprep.subr.bf16.mxu0 %v2838_v2  ;;  %v689_v1 = vld [vmem:[%s4036_s4 + $0xbd0] sm:$0xff]  ;;  %v3370_v2 = vpack.c.bf16 %v694_v59, %v690_v58  ;;  %v2860_v8 = vpack.c.bf16 %v691_v0, %v687_v63  ;;  %v3388_v59 = vpack.c.bf16 %v725_v53, %v721_v51  ;;  %v772_v51 = vld [vmem:[%s4036_s4 + $0xe68] sm:$0xff]  ;;  %v774_v53 = vld [vmem:[%s4036_s4 + $0xe78] sm:$0xff] }
  0xf2   : > { %3351 = vmatprep.subr.bf16.mxu1 %v3350_v6  ;;  %v698_v6 = vld [vmem:[%s4036_s4 + $0xc18] sm:$0xff]  ;;  %v3372_v9 = vpack.c.bf16 %v693_v3, %v689_v1  ;;  %v729_v63 = vld [vmem:[%s4036_s4 + $0xd10] sm:$0xff]  ;;  %v3390_v0 = vpack.c.bf16 %v734_v57, %v730_v56  ;;  %v740_v3 = vld [vmem:[%s4036_s4 + $0xd68] sm:$0xff] }
  0xf3   : > { %v733_v1 = vld [vmem:[%s4036_s4 + $0xd30] sm:$0xff]  ;;  %v767_v57 = vld [vmem:[%s4036_s4 + $0xe40] sm:$0xff] }
  0xf4   : > { %2841 = vmatpush1.bf16.msra.mxu0 %v2840_v12  ;;  %v699_v12 = vld [vmem:[%s4036_s4 + $0xc20] sm:$0xff] }
  0xf5   : > { %3353 = vmatpush1.bf16.msra.mxu1 %v3352_v13  ;;  %2843 = vmatprep.subr.bf16.mxu0 %v2842_v14  ;;  %v697_v13 = vld [vmem:[%s4036_s4 + $0xc10] sm:$0xff]  ;;  %v3374_v14 = vpack.c.bf16 %v702_v7, %v698_v6  ;;  %v2864_v21 = vpack.c.bf16 %v699_v12, %v695_v11  ;;  %v3392_v7 = vpack.c.bf16 %v733_v1, %v729_v63  ;;  %v780_v63 = vld [vmem:[%s4036_s4 + $0xea8] sm:$0xff]  ;;  %v782_v1 = vld [vmem:[%s4036_s4 + $0xeb8] sm:$0xff] }
  0xf6   : > { %3355 = vmatprep.subr.bf16.mxu1 %v3354_v18  ;;  %v706_v18 = vld [vmem:[%s4036_s4 + $0xc58] sm:$0xff]  ;;  %v3376_v22 = vpack.c.bf16 %v701_v15, %v697_v13  ;;  %v737_v11 = vld [vmem:[%s4036_s4 + $0xd50] sm:$0xff]  ;;  %v3394_v12 = vpack.c.bf16 %v742_v5, %v738_v4  ;;  %v748_v15 = vld [vmem:[%s4036_s4 + $0xda8] sm:$0xff] }
  0xf7   : > { %v3378_v27 = vpack.c.bf16 %v710_v19, %v706_v18  ;;  %v741_v13 = vld [vmem:[%s4036_s4 + $0xd70] sm:$0xff]  ;;  %v775_v5 = vld [vmem:[%s4036_s4 + $0xe80] sm:$0xff] }
  0xf8   : > { %2845 = vmatpush1.bf16.msra.mxu0 %v2844_v24  ;;  %v703_v24 = vld [vmem:[%s4036_s4 + $0xc40] sm:$0xff]  ;;  %v3396_v19 = vpack.c.bf16 %v741_v13, %v737_v11  ;;  %v788_v11 = vld [vmem:[%s4036_s4 + $0xee8] sm:$0xff]  ;;  %v790_v13 = vld [vmem:[%s4036_s4 + $0xef8] sm:$0xff] }
  0xf9   : > { %3357 = vmatpush1.bf16.msra.mxu1 %v3356_v25  ;;  %2847 = vmatprep.subr.bf16.mxu0 %v2846_v26  ;;  %v707_v25 = vld [vmem:[%s4036_s4 + $0xc60] sm:$0xff]  ;;  %v705_v26 = vld [vmem:[%s4036_s4 + $0xc50] sm:$0xff] }
  0xfa   : > { %3359 = vmatprep.subr.bf16.mxu1 %v3358_v30  ;;  %v716_v30 = vld [vmem:[%s4036_s4 + $0xca8] sm:$0xff]  ;;  %v2868_v34 = vpack.c.bf16 %v707_v25, %v703_v24  ;;  %v3380_v35 = vpack.c.bf16 %v709_v28, %v705_v26  ;;  %v3398_v24 = vpack.c.bf16 %v750_v17, %v746_v16  ;;  %v749_v25 = vld [vmem:[%s4036_s4 + $0xdb0] sm:$0xff]  ;;  %v754_v28 = vld [vmem:[%s4036_s4 + $0xdd8] sm:$0xff] }
  0xfb   : > { %v752_v26 = vld [vmem:[%s4036_s4 + $0xdc8] sm:$0xff]  ;;  %v783_v17 = vld [vmem:[%s4036_s4 + $0xec0] sm:$0xff] }
  0xfc   : > { %2849 = vmatpush1.bf16.msra.mxu0 %v2848_v36  ;;  %v2870_v36 = vpack.c.bf16 %v716_v30, %v712_v29  ;;  %v758_v29 = vld [vmem:[%s4036_s4 + $0xdf8] sm:$0xff] }
  0xfd   : > { %3361 = vmatpush1.bf16.msra.mxu1 %v3360_v37  ;;  %2851 = vmatprep.subr.bf16.mxu0 %v2850_v38  ;;  %v711_v37 = vld [vmem:[%s4036_s4 + $0xc80] sm:$0xff] }
  0xfe   : > { %3363 = vmatprep.subr.bf16.mxu1 %v3362_v42  ;;  %v715_v38 = vld [vmem:[%s4036_s4 + $0xca0] sm:$0xff]  ;;  %v720_v42 = vld [vmem:[%s4036_s4 + $0xcc8] sm:$0xff] }
  0xff   : > { %v2872_v46 = vpack.c.bf16 %v715_v38, %v711_v37  ;;  %v757_v37 = vld [vmem:[%s4036_s4 + $0xdf0] sm:$0xff]  ;;  %v760_v38 = vld [vmem:[%s4036_s4 + $0xe08] sm:$0xff] }
 0x100   : > { %2853 = vmatpush1.bf16.msra.mxu0 %v2852_v48  ;;  %v2874_v48 = vpack.c.bf16 %v724_v43, %v720_v42  ;;  %v2894_v44 = vpack.c.bf16 %v764_v39, %v760_v38 }
 0x101   : > { %3365 = vmatpush1.bf16.msra.mxu1 %v3364_v49  ;;  %2855 = vmatprep.subr.bf16.mxu0 %v2854_v50  ;;  %v719_v49 = vld [vmem:[%s4036_s4 + $0xcc0] sm:$0xff] }
 0x102   : > { %3367 = vmatprep.subr.bf16.mxu1 %v3366_v54  ;;  %v723_v50 = vld [vmem:[%s4036_s4 + $0xce0] sm:$0xff]  ;;  %v728_v54 = vld [vmem:[%s4036_s4 + $0xd08] sm:$0xff] }
 0x103   : > { %v2876_v58 = vpack.c.bf16 %v723_v50, %v719_v49  ;;  %v765_v49 = vld [vmem:[%s4036_s4 + $0xe30] sm:$0xff]  ;;  %v768_v50 = vld [vmem:[%s4036_s4 + $0xe48] sm:$0xff] }
 0x104   : > { %2857 = vmatpush1.bf16.msra.mxu0 %v2856_v60  ;;  %v2878_v60 = vpack.c.bf16 %v732_v55, %v728_v54  ;;  %v2898_v56 = vpack.c.bf16 %v772_v51, %v768_v50 }
 0x105   : > { %3369 = vmatpush1.bf16.msra.mxu1 %v3368_v61  ;;  %2859 = vmatprep.subr.bf16.mxu0 %v2858_v62  ;;  %v727_v61 = vld [vmem:[%s4036_s4 + $0xd00] sm:$0xff] }
 0x106   : > { %3371 = vmatprep.subr.bf16.mxu1 %v3370_v2  ;;  %v731_v62 = vld [vmem:[%s4036_s4 + $0xd20] sm:$0xff]  ;;  %v736_v2 = vld [vmem:[%s4036_s4 + $0xd48] sm:$0xff] }
 0x107   : > { %v2880_v6 = vpack.c.bf16 %v731_v62, %v727_v61  ;;  %v773_v61 = vld [vmem:[%s4036_s4 + $0xe70] sm:$0xff]  ;;  %v776_v62 = vld [vmem:[%s4036_s4 + $0xe88] sm:$0xff] }
 0x108   : > { %2861 = vmatpush1.bf16.msra.mxu0 %v2860_v8  ;;  %v2882_v8 = vpack.c.bf16 %v740_v3, %v736_v2  ;;  %v2902_v4 = vpack.c.bf16 %v780_v63, %v776_v62 }
 0x109   : > { %3373 = vmatpush1.bf16.msra.mxu1 %v3372_v9  ;;  %2863 = vmatprep.subr.bf16.mxu0 %v2862_v10  ;;  %v735_v9 = vld [vmem:[%s4036_s4 + $0xd40] sm:$0xff] }
 0x10a   : > { %3375 = vmatprep.subr.bf16.mxu1 %v3374_v14  ;;  %v739_v10 = vld [vmem:[%s4036_s4 + $0xd60] sm:$0xff]  ;;  %v744_v14 = vld [vmem:[%s4036_s4 + $0xd88] sm:$0xff] }
 0x10b   : > { %1542 = vmatmul.mubr.f32.vlgmr.msra.gmra.mrb[0].mxu0 %v299_v20  ;;  %v2884_v18 = vpack.c.bf16 %v739_v10, %v735_v9  ;;  %v781_v9 = vld [vmem:[%s4036_s4 + $0xeb0] sm:$0xff]  ;;  %v784_v10 = vld [vmem:[%s4036_s4 + $0xec8] sm:$0xff] }
 0x10c   : > { %2865 = vmatpush1.bf16.msra.mxu0 %v2864_v21  ;;  %2110 = vmatmul.mubr.f32.vlgmr.msra.gmra.mrb[0].mxu1 %v299_v20  ;;  %v2886_v20 = vpack.c.bf16 %v748_v15, %v744_v14  ;;  %v743_v21 = vld [vmem:[%s4036_s4 + $0xd80] sm:$0xff]  ;;  %v2906_v16 = vpack.c.bf16 %v788_v11, %v784_v10 }
 0x10d   : > { %3377 = vmatpush1.bf16.msra.mxu1 %v3376_v22  ;;  %2867 = vmatprep.subr.bf16.mxu0 %v2866_v23  ;;  %v747_v22 = vld [vmem:[%s4036_s4 + $0xda0] sm:$0xff]  ;;  %v745_v23 = vld [vmem:[%s4036_s4 + $0xd90] sm:$0xff] }
 0x10e   : > { %3379 = vmatprep.subr.bf16.mxu1 %v3378_v27  ;;  %1612 = vmatprep.mubr.f32.mxu0 %v302_v33  ;;  %v756_v27 = vld [vmem:[%s4036_s4 + $0xde8] sm:$0xff]  ;;  %v2888_v30 = vpack.c.bf16 %v747_v22, %v743_v21  ;;  %v3400_v31 = vpack.c.bf16 %v749_v25, %v745_v23  ;;  %v789_v21 = vld [vmem:[%s4036_s4 + $0xef0] sm:$0xff]  ;;  %v798_v25 = vld [vmem:[%s4036_s4 + $0xf38] sm:$0xff] }
 0x10f   : > { %2180 = vmatprep.mubr.f32.mxu1 %v302_v33  ;;  %v2890_v32 = vpack.c.bf16 %v756_v27, %v752_v26  ;;  %v751_v33 = vld [vmem:[%s4036_s4 + $0xdc0] sm:$0xff]  ;;  %v792_v22 = vld [vmem:[%s4036_s4 + $0xf08] sm:$0xff] }
 0x110   : > { %2869 = vmatpush1.bf16.msra.mxu0 %v2868_v34  ;;  %v755_v34 = vld [vmem:[%s4036_s4 + $0xde0] sm:$0xff]  ;;  %v796_v23 = vld [vmem:[%s4036_s4 + $0xf28] sm:$0xff] }
 0x111   : > { %3381 = vmatpush1.bf16.msra.mxu1 %v3380_v35  ;;  %2871 = vmatprep.subr.bf16.mxu0 %v2870_v36  ;;  %v753_v35 = vld [vmem:[%s4036_s4 + $0xdd0] sm:$0xff]  ;;  %v3402_v36 = vpack.c.bf16 %v758_v29, %v754_v28  ;;  %v2892_v42 = vpack.c.bf16 %v755_v34, %v751_v33  ;;  %v2910_v28 = vpack.c.bf16 %v796_v23, %v792_v22  ;;  %v791_v29 = vld [vmem:[%s4036_s4 + $0xf00] sm:$0xff]  ;;  %v800_v34 = vld [vmem:[%s4036_s4 + $0xf48] sm:$0xff] }
 0x112   : > { %3383 = vmatprep.subr.bf16.mxu1 %v3382_v40  ;;  %v762_v40 = vld [vmem:[%s4036_s4 + $0xe18] sm:$0xff]  ;;  %v3404_v43 = vpack.c.bf16 %v757_v37, %v753_v35  ;;  %v797_v33 = vld [vmem:[%s4036_s4 + $0xf30] sm:$0xff]  ;;  %v804_v35 = vld [vmem:[%s4036_s4 + $0xf68] sm:$0xff] }
 0x113   : > { %v806_v37 = vld [vmem:[%s4036_s4 + $0xf78] sm:$0xff]  ;;  %v301_v22 = vld [vmem:[%s4049_s29 + $0x30] sm:$0xff] }
 0x114   : > { %2873 = vmatpush1.bf16.msra.mxu0 %v2872_v46  ;;  %v763_v46 = vld [vmem:[%s4036_s4 + $0xe20] sm:$0xff] }
 0x115   : > { %3385 = vmatpush1.bf16.msra.mxu1 %v3384_v47  ;;  %2875 = vmatprep.subr.bf16.mxu0 %v2874_v48  ;;  %v761_v47 = vld [vmem:[%s4036_s4 + $0xe10] sm:$0xff]  ;;  %v3406_v48 = vpack.c.bf16 %v766_v41, %v762_v40  ;;  %v2896_v54 = vpack.c.bf16 %v763_v46, %v759_v45  ;;  %v2914_v40 = vpack.c.bf16 %v804_v35, %v800_v34  ;;  %v799_v41 = vld [vmem:[%s4036_s4 + $0xf40] sm:$0xff]  ;;  %v808_v46 = vld [vmem:[%s4036_s4 + $0xf88] sm:$0xff] }
 0x116   : > { %3387 = vmatprep.subr.bf16.mxu1 %v3386_v52  ;;  %v770_v52 = vld [vmem:[%s4036_s4 + $0xe58] sm:$0xff]  ;;  %v3408_v55 = vpack.c.bf16 %v765_v49, %v761_v47  ;;  %v805_v45 = vld [vmem:[%s4036_s4 + $0xf70] sm:$0xff]  ;;  %v812_v47 = vld [vmem:[%s4036_s4 + $0xfa8] sm:$0xff] }
 0x117   : > { %v814_v49 = vld [vmem:[%s4036_s4 + $0xfb8] sm:$0xff]  ;;  %v304_v35 = vld [vmem:[%s4049_s29 + $0x48] sm:$0xff] }
 0x118   : > { %2877 = vmatpush1.bf16.msra.mxu0 %v2876_v58  ;;  %v771_v58 = vld [vmem:[%s4036_s4 + $0xe60] sm:$0xff]  ;;  %v846_v34 = vld [vmem:[%s4036_s4 + $0x10b8] sm:$0xff] }
 0x119   : > { %3389 = vmatpush1.bf16.msra.mxu1 %v3388_v59  ;;  %2879 = vmatprep.subr.bf16.mxu0 %v2878_v60  ;;  %v769_v59 = vld [vmem:[%s4036_s4 + $0xe50] sm:$0xff]  ;;  %v3410_v60 = vpack.c.bf16 %v774_v53, %v770_v52  ;;  %v2900_v2 = vpack.c.bf16 %v771_v58, %v767_v57  ;;  %v2918_v52 = vpack.c.bf16 %v812_v47, %v808_v46  ;;  %v807_v53 = vld [vmem:[%s4036_s4 + $0xf80] sm:$0xff]  ;;  %v816_v58 = vld [vmem:[%s4036_s4 + $0xfc8] sm:$0xff] }
 0x11a   : > { %3391 = vmatprep.subr.bf16.mxu1 %v3390_v0  ;;  %v778_v0 = vld [vmem:[%s4036_s4 + $0xe98] sm:$0xff]  ;;  %v3412_v3 = vpack.c.bf16 %v773_v61, %v769_v59  ;;  %v813_v57 = vld [vmem:[%s4036_s4 + $0xfb0] sm:$0xff]  ;;  %v820_v59 = vld [vmem:[%s4036_s4 + $0xfe8] sm:$0xff] }
 0x11b   : > { %v822_v61 = vld [vmem:[%s4036_s4 + $0xff8] sm:$0xff] }
 0x11c   : > { %2881 = vmatpush1.bf16.msra.mxu0 %v2880_v6  ;;  %v779_v6 = vld [vmem:[%s4036_s4 + $0xea0] sm:$0xff]  ;;  %v850_v46 = vld [vmem:[%s4036_s4 + $0x10d8] sm:$0xff] }
 0x11d   : > { %3393 = vmatpush1.bf16.msra.mxu1 %v3392_v7  ;;  %2883 = vmatprep.subr.bf16.mxu0 %v2882_v8  ;;  %v777_v7 = vld [vmem:[%s4036_s4 + $0xe90] sm:$0xff]  ;;  %v3414_v8 = vpack.c.bf16 %v782_v1, %v778_v0  ;;  %v2904_v14 = vpack.c.bf16 %v779_v6, %v775_v5  ;;  %v2922_v0 = vpack.c.bf16 %v820_v59, %v816_v58  ;;  %v815_v1 = vld [vmem:[%s4036_s4 + $0xfc0] sm:$0xff]  ;;  %v824_v6 = vld [vmem:[%s4036_s4 + $0x1008] sm:$0xff] }
 0x11e   : > { %3395 = vmatprep.subr.bf16.mxu1 %v3394_v12  ;;  %v786_v12 = vld [vmem:[%s4036_s4 + $0xed8] sm:$0xff]  ;;  %v3416_v15 = vpack.c.bf16 %v781_v9, %v777_v7  ;;  %v821_v5 = vld [vmem:[%s4036_s4 + $0xff0] sm:$0xff]  ;;  %v828_v7 = vld [vmem:[%s4036_s4 + $0x1028] sm:$0xff] }
 0x11f   : > { %v830_v9 = vld [vmem:[%s4036_s4 + $0x1038] sm:$0xff] }
 0x120   : > { %2885 = vmatpush1.bf16.msra.mxu0 %v2884_v18  ;;  %v787_v18 = vld [vmem:[%s4036_s4 + $0xee0] sm:$0xff]  ;;  %v854_v47 = vld [vmem:[%s4036_s4 + $0x10f8] sm:$0xff] }
 0x121   : > { %3397 = vmatpush1.bf16.msra.mxu1 %v3396_v19  ;;  %2887 = vmatprep.subr.bf16.mxu0 %v2886_v20  ;;  %v785_v19 = vld [vmem:[%s4036_s4 + $0xed0] sm:$0xff]  ;;  %v3418_v20 = vpack.c.bf16 %v790_v13, %v786_v12  ;;  %v2908_v26 = vpack.c.bf16 %v787_v18, %v783_v17  ;;  %v2926_v12 = vpack.c.bf16 %v828_v7, %v824_v6  ;;  %v823_v13 = vld [vmem:[%s4036_s4 + $0x1000] sm:$0xff]  ;;  %v832_v18 = vld [vmem:[%s4036_s4 + $0x1048] sm:$0xff] }
 0x122   : > { %3399 = vmatprep.subr.bf16.mxu1 %v3398_v24  ;;  %v794_v24 = vld [vmem:[%s4036_s4 + $0xf18] sm:$0xff]  ;;  %v3420_v27 = vpack.c.bf16 %v789_v21, %v785_v19  ;;  %v829_v17 = vld [vmem:[%s4036_s4 + $0x1030] sm:$0xff]  ;;  %v836_v19 = vld [vmem:[%s4036_s4 + $0x1068] sm:$0xff] }
 0x123   : > { %v838_v21 = vld [vmem:[%s4036_s4 + $0x1078] sm:$0xff] }
 0x124   : > { %2889 = vmatpush1.bf16.msra.mxu0 %v2888_v30  ;;  %v795_v30 = vld [vmem:[%s4036_s4 + $0xf20] sm:$0xff]  ;;  %v858_v58 = vld [vmem:[%s4036_s4 + $0x1118] sm:$0xff] }
 0x125   : > { %3401 = vmatpush1.bf16.msra.mxu1 %v3400_v31  ;;  %2891 = vmatprep.subr.bf16.mxu0 %v2890_v32  ;;  %v793_v31 = vld [vmem:[%s4036_s4 + $0xf10] sm:$0xff]  ;;  %v3422_v32 = vpack.c.bf16 %v798_v25, %v794_v24  ;;  %v2912_v38 = vpack.c.bf16 %v795_v30, %v791_v29  ;;  %v2930_v25 = vpack.c.bf16 %v836_v19, %v832_v18  ;;  %v862_v59 = vld [vmem:[%s4036_s4 + $0x1138] sm:$0xff] }
 0x126   : > { %3403 = vmatprep.subr.bf16.mxu1 %v3402_v36  ;;  %v802_v36 = vld [vmem:[%s4036_s4 + $0xf58] sm:$0xff]  ;;  %v3424_v39 = vpack.c.bf16 %v797_v33, %v793_v31  ;;  %v837_v30 = vld [vmem:[%s4036_s4 + $0x1070] sm:$0xff]  ;;  %v840_v31 = vld [vmem:[%s4036_s4 + $0x1088] sm:$0xff] }
 0x127   : > { %v842_v33 = vld [vmem:[%s4036_s4 + $0x1098] sm:$0xff] }
 0x128   : > { %2893 = vmatpush1.bf16.msra.mxu0 %v2892_v42  ;;  %v803_v42 = vld [vmem:[%s4036_s4 + $0xf60] sm:$0xff]  ;;  %v866_v6 = vld [vmem:[%s4036_s4 + $0x1158] sm:$0xff] }
 0x129   : > { %3405 = vmatpush1.bf16.msra.mxu1 %v3404_v43  ;;  %2895 = vmatprep.subr.bf16.mxu0 %v2894_v44  ;;  %v801_v43 = vld [vmem:[%s4036_s4 + $0xf50] sm:$0xff]  ;;  %v3426_v44 = vpack.c.bf16 %v806_v37, %v802_v36  ;;  %v2916_v50 = vpack.c.bf16 %v803_v42, %v799_v41  ;;  %v3446_v42 = vpack.c.bf16 %v846_v34, %v842_v33  ;;  %v870_v7 = vld [vmem:[%s4036_s4 + $0x1178] sm:$0xff] }
 0x12a   : > { %3407 = vmatprep.subr.bf16.mxu1 %v3406_v48  ;;  %v810_v48 = vld [vmem:[%s4036_s4 + $0xf98] sm:$0xff]  ;;  %v3428_v51 = vpack.c.bf16 %v805_v45, %v801_v43  ;;  %v841_v41 = vld [vmem:[%s4036_s4 + $0x1090] sm:$0xff]  ;;  %v852_v45 = vld [vmem:[%s4036_s4 + $0x10e8] sm:$0xff] }
 0x12b   : > { %v845_v43 = vld [vmem:[%s4036_s4 + $0x10b0] sm:$0xff]  ;;  %v874_v18 = vld [vmem:[%s4036_s4 + $0x1198] sm:$0xff] }
 0x12c   : > { %2897 = vmatpush1.bf16.msra.mxu0 %v2896_v54  ;;  %v811_v54 = vld [vmem:[%s4036_s4 + $0xfa0] sm:$0xff]  ;;  %v878_v19 = vld [vmem:[%s4036_s4 + $0x11b8] sm:$0xff] }
 0x12d   : > { %3409 = vmatpush1.bf16.msra.mxu1 %v3408_v55  ;;  %2899 = vmatprep.subr.bf16.mxu0 %v2898_v56  ;;  %v809_v55 = vld [vmem:[%s4036_s4 + $0xf90] sm:$0xff]  ;;  %v3430_v56 = vpack.c.bf16 %v814_v49, %v810_v48  ;;  %v2920_v62 = vpack.c.bf16 %v811_v54, %v807_v53  ;;  %v3448_v49 = vpack.c.bf16 %v845_v43, %v841_v41  ;;  %v892_v41 = vld [vmem:[%s4036_s4 + $0x1228] sm:$0xff]  ;;  %v894_v43 = vld [vmem:[%s4036_s4 + $0x1238] sm:$0xff] }
 0x12e   : > { %3411 = vmatprep.subr.bf16.mxu1 %v3410_v60  ;;  %v818_v60 = vld [vmem:[%s4036_s4 + $0xfd8] sm:$0xff]  ;;  %v3432_v63 = vpack.c.bf16 %v813_v57, %v809_v55  ;;  %v849_v53 = vld [vmem:[%s4036_s4 + $0x10d0] sm:$0xff]  ;;  %v3450_v54 = vpack.c.bf16 %v854_v47, %v850_v46  ;;  %v860_v57 = vld [vmem:[%s4036_s4 + $0x1128] sm:$0xff] }
 0x12f   : > { %v853_v55 = vld [vmem:[%s4036_s4 + $0x10f0] sm:$0xff]  ;;  %v887_v47 = vld [vmem:[%s4036_s4 + $0x1200] sm:$0xff] }
 0x130   : > { %2901 = vmatpush1.bf16.msra.mxu0 %v2900_v2  ;;  %v819_v2 = vld [vmem:[%s4036_s4 + $0xfe0] sm:$0xff] }
 0x131   : > { %3413 = vmatpush1.bf16.msra.mxu1 %v3412_v3  ;;  %2903 = vmatprep.subr.bf16.mxu0 %v2902_v4  ;;  %v817_v3 = vld [vmem:[%s4036_s4 + $0xfd0] sm:$0xff]  ;;  %v3434_v4 = vpack.c.bf16 %v822_v61, %v818_v60  ;;  %v2924_v10 = vpack.c.bf16 %v819_v2, %v815_v1  ;;  %v3452_v61 = vpack.c.bf16 %v853_v55, %v849_v53  ;;  %v900_v53 = vld [vmem:[%s4036_s4 + $0x1268] sm:$0xff]  ;;  %v902_v55 = vld [vmem:[%s4036_s4 + $0x1278] sm:$0xff] }
 0x132   : > { %3415 = vmatprep.subr.bf16.mxu1 %v3414_v8  ;;  %v826_v8 = vld [vmem:[%s4036_s4 + $0x1018] sm:$0xff]  ;;  %v3436_v11 = vpack.c.bf16 %v821_v5, %v817_v3  ;;  %v857_v1 = vld [vmem:[%s4036_s4 + $0x1110] sm:$0xff]  ;;  %v3454_v2 = vpack.c.bf16 %v862_v59, %v858_v58  ;;  %v868_v5 = vld [vmem:[%s4036_s4 + $0x1168] sm:$0xff] }
 0x133   : > { %v861_v3 = vld [vmem:[%s4036_s4 + $0x1130] sm:$0xff]  ;;  %v895_v59 = vld [vmem:[%s4036_s4 + $0x1240] sm:$0xff] }
 0x134   : > { %2905 = vmatpush1.bf16.msra.mxu0 %v2904_v14  ;;  %v827_v14 = vld [vmem:[%s4036_s4 + $0x1020] sm:$0xff] }
 0x135   : > { %3417 = vmatpush1.bf16.msra.mxu1 %v3416_v15  ;;  %2907 = vmatprep.subr.bf16.mxu0 %v2906_v16  ;;  %v825_v15 = vld [vmem:[%s4036_s4 + $0x1010] sm:$0xff]  ;;  %v3438_v16 = vpack.c.bf16 %v830_v9, %v826_v8  ;;  %v2928_v23 = vpack.c.bf16 %v827_v14, %v823_v13  ;;  %v3456_v9 = vpack.c.bf16 %v861_v3, %v857_v1  ;;  %v908_v1 = vld [vmem:[%s4036_s4 + $0x12a8] sm:$0xff]  ;;  %v910_v3 = vld [vmem:[%s4036_s4 + $0x12b8] sm:$0xff] }
 0x136   : > { %3419 = vmatprep.subr.bf16.mxu1 %v3418_v20  ;;  %v834_v20 = vld [vmem:[%s4036_s4 + $0x1058] sm:$0xff]  ;;  %v3440_v24 = vpack.c.bf16 %v829_v17, %v825_v15  ;;  %v865_v13 = vld [vmem:[%s4036_s4 + $0x1150] sm:$0xff]  ;;  %v3458_v14 = vpack.c.bf16 %v870_v7, %v866_v6  ;;  %v876_v17 = vld [vmem:[%s4036_s4 + $0x11a8] sm:$0xff] }
 0x137   : > { %v3442_v29 = vpack.c.bf16 %v838_v21, %v834_v20  ;;  %v869_v15 = vld [vmem:[%s4036_s4 + $0x1170] sm:$0xff]  ;;  %v903_v7 = vld [vmem:[%s4036_s4 + $0x1280] sm:$0xff] }
 0x138   : > { %2909 = vmatpush1.bf16.msra.mxu0 %v2908_v26  ;;  %v831_v26 = vld [vmem:[%s4036_s4 + $0x1040] sm:$0xff]  ;;  %v3460_v21 = vpack.c.bf16 %v869_v15, %v865_v13  ;;  %v916_v13 = vld [vmem:[%s4036_s4 + $0x12e8] sm:$0xff]  ;;  %v918_v15 = vld [vmem:[%s4036_s4 + $0x12f8] sm:$0xff] }
 0x139   : > { %3421 = vmatpush1.bf16.msra.mxu1 %v3420_v27  ;;  %2911 = vmatprep.subr.bf16.mxu0 %v2910_v28  ;;  %v835_v27 = vld [vmem:[%s4036_s4 + $0x1060] sm:$0xff]  ;;  %v833_v28 = vld [vmem:[%s4036_s4 + $0x1050] sm:$0xff] }
 0x13a   : > { %3423 = vmatprep.subr.bf16.mxu1 %v3422_v32  ;;  %v844_v32 = vld [vmem:[%s4036_s4 + $0x10a8] sm:$0xff]  ;;  %v2932_v36 = vpack.c.bf16 %v835_v27, %v831_v26  ;;  %v3444_v37 = vpack.c.bf16 %v837_v30, %v833_v28  ;;  %v3462_v26 = vpack.c.bf16 %v878_v19, %v874_v18  ;;  %v877_v27 = vld [vmem:[%s4036_s4 + $0x11b0] sm:$0xff]  ;;  %v882_v30 = vld [vmem:[%s4036_s4 + $0x11d8] sm:$0xff] }
 0x13b   : > { %v880_v28 = vld [vmem:[%s4036_s4 + $0x11c8] sm:$0xff]  ;;  %v911_v19 = vld [vmem:[%s4036_s4 + $0x12c0] sm:$0xff] }
 0x13c   : > { %2913 = vmatpush1.bf16.msra.mxu0 %v2912_v38  ;;  %v2934_v38 = vpack.c.bf16 %v844_v32, %v840_v31  ;;  %v886_v31 = vld [vmem:[%s4036_s4 + $0x11f8] sm:$0xff] }
 0x13d   : > { %3425 = vmatpush1.bf16.msra.mxu1 %v3424_v39  ;;  %2915 = vmatprep.subr.bf16.mxu0 %v2914_v40  ;;  %v839_v39 = vld [vmem:[%s4036_s4 + $0x1080] sm:$0xff] }
 0x13e   : > { %3427 = vmatprep.subr.bf16.mxu1 %v3426_v44  ;;  %v843_v40 = vld [vmem:[%s4036_s4 + $0x10a0] sm:$0xff]  ;;  %v848_v44 = vld [vmem:[%s4036_s4 + $0x10c8] sm:$0xff] }
 0x13f   : > { %v2936_v48 = vpack.c.bf16 %v843_v40, %v839_v39  ;;  %v885_v39 = vld [vmem:[%s4036_s4 + $0x11f0] sm:$0xff]  ;;  %v888_v40 = vld [vmem:[%s4036_s4 + $0x1208] sm:$0xff] }
 0x140   : > { %2917 = vmatpush1.bf16.msra.mxu0 %v2916_v50  ;;  %v2938_v50 = vpack.c.bf16 %v852_v45, %v848_v44  ;;  %v2958_v46 = vpack.c.bf16 %v892_v41, %v888_v40 }
 0x141   : > { %3429 = vmatpush1.bf16.msra.mxu1 %v3428_v51  ;;  %2919 = vmatprep.subr.bf16.mxu0 %v2918_v52  ;;  %v847_v51 = vld [vmem:[%s4036_s4 + $0x10c0] sm:$0xff] }
 0x142   : > { %3431 = vmatprep.subr.bf16.mxu1 %v3430_v56  ;;  %v851_v52 = vld [vmem:[%s4036_s4 + $0x10e0] sm:$0xff]  ;;  %v856_v56 = vld [vmem:[%s4036_s4 + $0x1108] sm:$0xff] }
 0x143   : > { %v2940_v60 = vpack.c.bf16 %v851_v52, %v847_v51  ;;  %v893_v51 = vld [vmem:[%s4036_s4 + $0x1230] sm:$0xff]  ;;  %v896_v52 = vld [vmem:[%s4036_s4 + $0x1248] sm:$0xff] }
 0x144   : > { %2921 = vmatpush1.bf16.msra.mxu0 %v2920_v62  ;;  %v2942_v62 = vpack.c.bf16 %v860_v57, %v856_v56  ;;  %v2962_v58 = vpack.c.bf16 %v900_v53, %v896_v52 }
 0x145   : > { %3433 = vmatpush1.bf16.msra.mxu1 %v3432_v63  ;;  %2923 = vmatprep.subr.bf16.mxu0 %v2922_v0  ;;  %v855_v63 = vld [vmem:[%s4036_s4 + $0x1100] sm:$0xff] }
 0x146   : > { %3435 = vmatprep.subr.bf16.mxu1 %v3434_v4  ;;  %v859_v0 = vld [vmem:[%s4036_s4 + $0x1120] sm:$0xff]  ;;  %v864_v4 = vld [vmem:[%s4036_s4 + $0x1148] sm:$0xff] }
 0x147   : > { %v2944_v8 = vpack.c.bf16 %v859_v0, %v855_v63  ;;  %v901_v63 = vld [vmem:[%s4036_s4 + $0x1270] sm:$0xff]  ;;  %v904_v0 = vld [vmem:[%s4036_s4 + $0x1288] sm:$0xff] }
 0x148   : > { %2925 = vmatpush1.bf16.msra.mxu0 %v2924_v10  ;;  %v2946_v10 = vpack.c.bf16 %v868_v5, %v864_v4  ;;  %v2966_v6 = vpack.c.bf16 %v908_v1, %v904_v0 }
 0x149   : > { %3437 = vmatpush1.bf16.msra.mxu1 %v3436_v11  ;;  %2927 = vmatprep.subr.bf16.mxu0 %v2926_v12  ;;  %v863_v11 = vld [vmem:[%s4036_s4 + $0x1140] sm:$0xff] }
 0x14a   : > { %3439 = vmatprep.subr.bf16.mxu1 %v3438_v16  ;;  %v867_v12 = vld [vmem:[%s4036_s4 + $0x1160] sm:$0xff]  ;;  %v872_v16 = vld [vmem:[%s4036_s4 + $0x1188] sm:$0xff] }
 0x14b   : > { %1613 = vmatmul.mubr.f32.vlgmr.msra.gmra.mrb[0].mxu0 %v301_v22  ;;  %v2948_v20 = vpack.c.bf16 %v867_v12, %v863_v11  ;;  %v909_v11 = vld [vmem:[%s4036_s4 + $0x12b0] sm:$0xff]  ;;  %v912_v12 = vld [vmem:[%s4036_s4 + $0x12c8] sm:$0xff] }
 0x14c   : > { %2929 = vmatpush1.bf16.msra.mxu0 %v2928_v23  ;;  %2181 = vmatmul.mubr.f32.vlgmr.msra.gmra.mrb[0].mxu1 %v301_v22  ;;  %v2950_v22 = vpack.c.bf16 %v876_v17, %v872_v16  ;;  %v871_v23 = vld [vmem:[%s4036_s4 + $0x1180] sm:$0xff]  ;;  %v2970_v18 = vpack.c.bf16 %v916_v13, %v912_v12 }
 0x14d   : > { %3441 = vmatpush1.bf16.msra.mxu1 %v3440_v24  ;;  %2931 = vmatprep.subr.bf16.mxu0 %v2930_v25  ;;  %v875_v24 = vld [vmem:[%s4036_s4 + $0x11a0] sm:$0xff]  ;;  %v873_v25 = vld [vmem:[%s4036_s4 + $0x1190] sm:$0xff] }
 0x14e   : > { %3443 = vmatprep.subr.bf16.mxu1 %v3442_v29  ;;  %1683 = vmatprep.mubr.f32.mxu0 %v304_v35  ;;  %v884_v29 = vld [vmem:[%s4036_s4 + $0x11e8] sm:$0xff]  ;;  %v2952_v32 = vpack.c.bf16 %v875_v24, %v871_v23  ;;  %v3464_v33 = vpack.c.bf16 %v877_v27, %v873_v25  ;;  %v917_v23 = vld [vmem:[%s4036_s4 + $0x12f0] sm:$0xff]  ;;  %v926_v27 = vld [vmem:[%s4036_s4 + $0x1338] sm:$0xff] }
 0x14f   : > { %2251 = vmatprep.mubr.f32.mxu1 %v304_v35  ;;  %v2954_v34 = vpack.c.bf16 %v884_v29, %v880_v28  ;;  %v879_v35 = vld [vmem:[%s4036_s4 + $0x11c0] sm:$0xff]  ;;  %v920_v24 = vld [vmem:[%s4036_s4 + $0x1308] sm:$0xff] }
 0x150   : > { %2933 = vmatpush1.bf16.msra.mxu0 %v2932_v36  ;;  %v883_v36 = vld [vmem:[%s4036_s4 + $0x11e0] sm:$0xff]  ;;  %v924_v25 = vld [vmem:[%s4036_s4 + $0x1328] sm:$0xff] }
 0x151   : > { %3445 = vmatpush1.bf16.msra.mxu1 %v3444_v37  ;;  %2935 = vmatprep.subr.bf16.mxu0 %v2934_v38  ;;  %v881_v37 = vld [vmem:[%s4036_s4 + $0x11d0] sm:$0xff]  ;;  %v3466_v38 = vpack.c.bf16 %v886_v31, %v882_v30  ;;  %v2956_v44 = vpack.c.bf16 %v883_v36, %v879_v35  ;;  %v2974_v30 = vpack.c.bf16 %v924_v25, %v920_v24  ;;  %v919_v31 = vld [vmem:[%s4036_s4 + $0x1300] sm:$0xff]  ;;  %v928_v36 = vld [vmem:[%s4036_s4 + $0x1348] sm:$0xff] }
 0x152   : > { %3447 = vmatprep.subr.bf16.mxu1 %v3446_v42  ;;  %v890_v42 = vld [vmem:[%s4036_s4 + $0x1218] sm:$0xff]  ;;  %v3468_v45 = vpack.c.bf16 %v885_v39, %v881_v37  ;;  %v925_v35 = vld [vmem:[%s4036_s4 + $0x1330] sm:$0xff]  ;;  %v932_v37 = vld [vmem:[%s4036_s4 + $0x1368] sm:$0xff] }
 0x153   : > { %v934_v39 = vld [vmem:[%s4036_s4 + $0x1378] sm:$0xff]  ;;  %v303_v24 = vld [vmem:[%s4049_s29 + $0x40] sm:$0xff] }
 0x154   : > { %2937 = vmatpush1.bf16.msra.mxu0 %v2936_v48  ;;  %v891_v48 = vld [vmem:[%s4036_s4 + $0x1220] sm:$0xff] }
 0x155   : > { %3449 = vmatpush1.bf16.msra.mxu1 %v3448_v49  ;;  %2939 = vmatprep.subr.bf16.mxu0 %v2938_v50  ;;  %v889_v49 = vld [vmem:[%s4036_s4 + $0x1210] sm:$0xff]  ;;  %v3470_v50 = vpack.c.bf16 %v894_v43, %v890_v42  ;;  %v2960_v56 = vpack.c.bf16 %v891_v48, %v887_v47  ;;  %v2978_v42 = vpack.c.bf16 %v932_v37, %v928_v36  ;;  %v927_v43 = vld [vmem:[%s4036_s4 + $0x1340] sm:$0xff]  ;;  %v936_v48 = vld [vmem:[%s4036_s4 + $0x1388] sm:$0xff] }
 0x156   : > { %3451 = vmatprep.subr.bf16.mxu1 %v3450_v54  ;;  %v898_v54 = vld [vmem:[%s4036_s4 + $0x1258] sm:$0xff]  ;;  %v3472_v57 = vpack.c.bf16 %v893_v51, %v889_v49  ;;  %v933_v47 = vld [vmem:[%s4036_s4 + $0x1370] sm:$0xff]  ;;  %v940_v49 = vld [vmem:[%s4036_s4 + $0x13a8] sm:$0xff] }
 0x157   : > { %v942_v51 = vld [vmem:[%s4036_s4 + $0x13b8] sm:$0xff] }
 0x158   : > { %2941 = vmatpush1.bf16.msra.mxu0 %v2940_v60  ;;  %v899_v60 = vld [vmem:[%s4036_s4 + $0x1260] sm:$0xff]  ;;  %v974_v36 = vld [vmem:[%s4036_s4 + $0x14b8] sm:$0xff] }
 0x159   : > { %3453 = vmatpush1.bf16.msra.mxu1 %v3452_v61  ;;  %2943 = vmatprep.subr.bf16.mxu0 %v2942_v62  ;;  %v897_v61 = vld [vmem:[%s4036_s4 + $0x1250] sm:$0xff]  ;;  %v3474_v62 = vpack.c.bf16 %v902_v55, %v898_v54  ;;  %v2964_v4 = vpack.c.bf16 %v899_v60, %v895_v59  ;;  %v2982_v54 = vpack.c.bf16 %v940_v49, %v936_v48  ;;  %v935_v55 = vld [vmem:[%s4036_s4 + $0x1380] sm:$0xff]  ;;  %v944_v60 = vld [vmem:[%s4036_s4 + $0x13c8] sm:$0xff] }
 0x15a   : > { %3455 = vmatprep.subr.bf16.mxu1 %v3454_v2  ;;  %v906_v2 = vld [vmem:[%s4036_s4 + $0x1298] sm:$0xff]  ;;  %v3476_v5 = vpack.c.bf16 %v901_v63, %v897_v61  ;;  %v941_v59 = vld [vmem:[%s4036_s4 + $0x13b0] sm:$0xff]  ;;  %v948_v61 = vld [vmem:[%s4036_s4 + $0x13e8] sm:$0xff] }
 0x15b   : > { %v950_v63 = vld [vmem:[%s4036_s4 + $0x13f8] sm:$0xff] }
 0x15c   : > { %2945 = vmatpush1.bf16.msra.mxu0 %v2944_v8  ;;  %v907_v8 = vld [vmem:[%s4036_s4 + $0x12a0] sm:$0xff]  ;;  %v306_v37 = vld [vmem:[%s4049_s29 + $0x58] sm:$0xff] }
 0x15d   : > { %3457 = vmatpush1.bf16.msra.mxu1 %v3456_v9  ;;  %2947 = vmatprep.subr.bf16.mxu0 %v2946_v10  ;;  %v905_v9 = vld [vmem:[%s4036_s4 + $0x1290] sm:$0xff]  ;;  %v3478_v10 = vpack.c.bf16 %v910_v3, %v906_v2  ;;  %v2968_v16 = vpack.c.bf16 %v907_v8, %v903_v7  ;;  %v2986_v2 = vpack.c.bf16 %v948_v61, %v944_v60  ;;  %v943_v3 = vld [vmem:[%s4036_s4 + $0x13c0] sm:$0xff]  ;;  %v952_v8 = vld [vmem:[%s4036_s4 + $0x1408] sm:$0xff] }
 0x15e   : > { %3459 = vmatprep.subr.bf16.mxu1 %v3458_v14  ;;  %v914_v14 = vld [vmem:[%s4036_s4 + $0x12d8] sm:$0xff]  ;;  %v3480_v17 = vpack.c.bf16 %v909_v11, %v905_v9  ;;  %v949_v7 = vld [vmem:[%s4036_s4 + $0x13f0] sm:$0xff]  ;;  %v956_v9 = vld [vmem:[%s4036_s4 + $0x1428] sm:$0xff] }
 0x15f   : > { %v958_v11 = vld [vmem:[%s4036_s4 + $0x1438] sm:$0xff] }
 0x160   : > { %2949 = vmatpush1.bf16.msra.mxu0 %v2948_v20  ;;  %v915_v20 = vld [vmem:[%s4036_s4 + $0x12e0] sm:$0xff]  ;;  %v978_v48 = vld [vmem:[%s4036_s4 + $0x14d8] sm:$0xff] }
 0x161   : > { %3461 = vmatpush1.bf16.msra.mxu1 %v3460_v21  ;;  %2951 = vmatprep.subr.bf16.mxu0 %v2950_v22  ;;  %v913_v21 = vld [vmem:[%s4036_s4 + $0x12d0] sm:$0xff]  ;;  %v3482_v22 = vpack.c.bf16 %v918_v15, %v914_v14  ;;  %v2972_v28 = vpack.c.bf16 %v915_v20, %v911_v19  ;;  %v2990_v14 = vpack.c.bf16 %v956_v9, %v952_v8  ;;  %v951_v15 = vld [vmem:[%s4036_s4 + $0x1400] sm:$0xff]  ;;  %v960_v20 = vld [vmem:[%s4036_s4 + $0x1448] sm:$0xff] }
 0x162   : > { %3463 = vmatprep.subr.bf16.mxu1 %v3462_v26  ;;  %v922_v26 = vld [vmem:[%s4036_s4 + $0x1318] sm:$0xff]  ;;  %v3484_v29 = vpack.c.bf16 %v917_v23, %v913_v21  ;;  %v957_v19 = vld [vmem:[%s4036_s4 + $0x1430] sm:$0xff]  ;;  %v964_v21 = vld [vmem:[%s4036_s4 + $0x1468] sm:$0xff] }
 0x163   : > { %v966_v23 = vld [vmem:[%s4036_s4 + $0x1478] sm:$0xff] }
 0x164   : > { %2953 = vmatpush1.bf16.msra.mxu0 %v2952_v32  ;;  %v923_v32 = vld [vmem:[%s4036_s4 + $0x1320] sm:$0xff]  ;;  %v982_v49 = vld [vmem:[%s4036_s4 + $0x14f8] sm:$0xff] }
 0x165   : > { %3465 = vmatpush1.bf16.msra.mxu1 %v3464_v33  ;;  %2955 = vmatprep.subr.bf16.mxu0 %v2954_v34  ;;  %v921_v33 = vld [vmem:[%s4036_s4 + $0x1310] sm:$0xff]  ;;  %v3486_v34 = vpack.c.bf16 %v926_v27, %v922_v26  ;;  %v2976_v40 = vpack.c.bf16 %v923_v32, %v919_v31  ;;  %v2994_v27 = vpack.c.bf16 %v964_v21, %v960_v20  ;;  %v986_v60 = vld [vmem:[%s4036_s4 + $0x1518] sm:$0xff] }
 0x166   : > { %3467 = vmatprep.subr.bf16.mxu1 %v3466_v38  ;;  %v930_v38 = vld [vmem:[%s4036_s4 + $0x1358] sm:$0xff]  ;;  %v3488_v41 = vpack.c.bf16 %v925_v35, %v921_v33  ;;  %v965_v32 = vld [vmem:[%s4036_s4 + $0x1470] sm:$0xff]  ;;  %v968_v33 = vld [vmem:[%s4036_s4 + $0x1488] sm:$0xff] }
 0x167   : > { %v970_v35 = vld [vmem:[%s4036_s4 + $0x1498] sm:$0xff] }
 0x168   : > { %2957 = vmatpush1.bf16.msra.mxu0 %v2956_v44  ;;  %v931_v44 = vld [vmem:[%s4036_s4 + $0x1360] sm:$0xff]  ;;  %v990_v61 = vld [vmem:[%s4036_s4 + $0x1538] sm:$0xff] }
 0x169   : > { %3469 = vmatpush1.bf16.msra.mxu1 %v3468_v45  ;;  %2959 = vmatprep.subr.bf16.mxu0 %v2958_v46  ;;  %v929_v45 = vld [vmem:[%s4036_s4 + $0x1350] sm:$0xff]  ;;  %v3490_v46 = vpack.c.bf16 %v934_v39, %v930_v38  ;;  %v2980_v52 = vpack.c.bf16 %v931_v44, %v927_v43  ;;  %v3510_v44 = vpack.c.bf16 %v974_v36, %v970_v35  ;;  %v994_v8 = vld [vmem:[%s4036_s4 + $0x1558] sm:$0xff] }
 0x16a   : > { %3471 = vmatprep.subr.bf16.mxu1 %v3470_v50  ;;  %v938_v50 = vld [vmem:[%s4036_s4 + $0x1398] sm:$0xff]  ;;  %v3492_v53 = vpack.c.bf16 %v933_v47, %v929_v45  ;;  %v969_v43 = vld [vmem:[%s4036_s4 + $0x1490] sm:$0xff]  ;;  %v980_v47 = vld [vmem:[%s4036_s4 + $0x14e8] sm:$0xff] }
 0x16b   : > { %v973_v45 = vld [vmem:[%s4036_s4 + $0x14b0] sm:$0xff]  ;;  %v998_v9 = vld [vmem:[%s4036_s4 + $0x1578] sm:$0xff] }
 0x16c   : > { %2961 = vmatpush1.bf16.msra.mxu0 %v2960_v56  ;;  %v939_v56 = vld [vmem:[%s4036_s4 + $0x13a0] sm:$0xff]  ;;  %v1002_v20 = vld [vmem:[%s4036_s4 + $0x1598] sm:$0xff] }
 0x16d   : > { %3473 = vmatpush1.bf16.msra.mxu1 %v3472_v57  ;;  %2963 = vmatprep.subr.bf16.mxu0 %v2962_v58  ;;  %v937_v57 = vld [vmem:[%s4036_s4 + $0x1390] sm:$0xff]  ;;  %v3494_v58 = vpack.c.bf16 %v942_v51, %v938_v50  ;;  %v2984_v0 = vpack.c.bf16 %v939_v56, %v935_v55  ;;  %v3512_v51 = vpack.c.bf16 %v973_v45, %v969_v43  ;;  %v1006_v21 = vld [vmem:[%s4036_s4 + $0x15b8] sm:$0xff]  ;;  %v1020_v43 = vld [vmem:[%s4036_s4 + $0x1628] sm:$0xff] }
 0x16e   : > { %3475 = vmatprep.subr.bf16.mxu1 %v3474_v62  ;;  %v946_v62 = vld [vmem:[%s4036_s4 + $0x13d8] sm:$0xff]  ;;  %v3496_v1 = vpack.c.bf16 %v941_v59, %v937_v57  ;;  %v977_v55 = vld [vmem:[%s4036_s4 + $0x14d0] sm:$0xff]  ;;  %v3514_v56 = vpack.c.bf16 %v982_v49, %v978_v48  ;;  %v988_v59 = vld [vmem:[%s4036_s4 + $0x1528] sm:$0xff] }
 0x16f   : > { %v981_v57 = vld [vmem:[%s4036_s4 + $0x14f0] sm:$0xff]  ;;  %v1022_v45 = vld [vmem:[%s4036_s4 + $0x1638] sm:$0xff]  ;;  %v1015_v49 = vld [vmem:[%s4036_s4 + $0x1600] sm:$0xff] }
 0x170   : > { %2965 = vmatpush1.bf16.msra.mxu0 %v2964_v4  ;;  %v947_v4 = vld [vmem:[%s4036_s4 + $0x13e0] sm:$0xff] }
 0x171   : > { %3477 = vmatpush1.bf16.msra.mxu1 %v3476_v5  ;;  %2967 = vmatprep.subr.bf16.mxu0 %v2966_v6  ;;  %v945_v5 = vld [vmem:[%s4036_s4 + $0x13d0] sm:$0xff]  ;;  %v3498_v6 = vpack.c.bf16 %v950_v63, %v946_v62  ;;  %v2988_v12 = vpack.c.bf16 %v947_v4, %v943_v3  ;;  %v3516_v63 = vpack.c.bf16 %v981_v57, %v977_v55  ;;  %v1028_v55 = vld [vmem:[%s4036_s4 + $0x1668] sm:$0xff]  ;;  %v1030_v57 = vld [vmem:[%s4036_s4 + $0x1678] sm:$0xff] }
 0x172   : > { %3479 = vmatprep.subr.bf16.mxu1 %v3478_v10  ;;  %v954_v10 = vld [vmem:[%s4036_s4 + $0x1418] sm:$0xff]  ;;  %v3500_v13 = vpack.c.bf16 %v949_v7, %v945_v5  ;;  %v985_v3 = vld [vmem:[%s4036_s4 + $0x1510] sm:$0xff]  ;;  %v3518_v4 = vpack.c.bf16 %v990_v61, %v986_v60  ;;  %v996_v7 = vld [vmem:[%s4036_s4 + $0x1568] sm:$0xff] }
 0x173   : > { %v989_v5 = vld [vmem:[%s4036_s4 + $0x1530] sm:$0xff]  ;;  %v1023_v61 = vld [vmem:[%s4036_s4 + $0x1640] sm:$0xff] }
 0x174   : > { %2969 = vmatpush1.bf16.msra.mxu0 %v2968_v16  ;;  %v955_v16 = vld [vmem:[%s4036_s4 + $0x1420] sm:$0xff] }
 0x175   : > { %3481 = vmatpush1.bf16.msra.mxu1 %v3480_v17  ;;  %2971 = vmatprep.subr.bf16.mxu0 %v2970_v18  ;;  %v953_v17 = vld [vmem:[%s4036_s4 + $0x1410] sm:$0xff]  ;;  %v3502_v18 = vpack.c.bf16 %v958_v11, %v954_v10  ;;  %v2992_v25 = vpack.c.bf16 %v955_v16, %v951_v15  ;;  %v3520_v11 = vpack.c.bf16 %v989_v5, %v985_v3  ;;  %v1036_v3 = vld [vmem:[%s4036_s4 + $0x16a8] sm:$0xff]  ;;  %v1038_v5 = vld [vmem:[%s4036_s4 + $0x16b8] sm:$0xff] }
 0x176   : > { %3483 = vmatprep.subr.bf16.mxu1 %v3482_v22  ;;  %v962_v22 = vld [vmem:[%s4036_s4 + $0x1458] sm:$0xff]  ;;  %v3504_v26 = vpack.c.bf16 %v957_v19, %v953_v17  ;;  %v993_v15 = vld [vmem:[%s4036_s4 + $0x1550] sm:$0xff]  ;;  %v3522_v16 = vpack.c.bf16 %v998_v9, %v994_v8  ;;  %v1004_v19 = vld [vmem:[%s4036_s4 + $0x15a8] sm:$0xff] }
 0x177   : > { %v3506_v31 = vpack.c.bf16 %v966_v23, %v962_v22  ;;  %v997_v17 = vld [vmem:[%s4036_s4 + $0x1570] sm:$0xff]  ;;  %v1031_v9 = vld [vmem:[%s4036_s4 + $0x1680] sm:$0xff] }
 0x178   : > { %2973 = vmatpush1.bf16.msra.mxu0 %v2972_v28  ;;  %v959_v28 = vld [vmem:[%s4036_s4 + $0x1440] sm:$0xff]  ;;  %v3524_v23 = vpack.c.bf16 %v997_v17, %v993_v15  ;;  %v1044_v15 = vld [vmem:[%s4036_s4 + $0x16e8] sm:$0xff]  ;;  %v1046_v17 = vld [vmem:[%s4036_s4 + $0x16f8] sm:$0xff] }
 0x179   : > { %3485 = vmatpush1.bf16.msra.mxu1 %v3484_v29  ;;  %2975 = vmatprep.subr.bf16.mxu0 %v2974_v30  ;;  %v963_v29 = vld [vmem:[%s4036_s4 + $0x1460] sm:$0xff]  ;;  %v961_v30 = vld [vmem:[%s4036_s4 + $0x1450] sm:$0xff] }
 0x17a   : > { %3487 = vmatprep.subr.bf16.mxu1 %v3486_v34  ;;  %v972_v34 = vld [vmem:[%s4036_s4 + $0x14a8] sm:$0xff]  ;;  %v2996_v38 = vpack.c.bf16 %v963_v29, %v959_v28  ;;  %v3508_v39 = vpack.c.bf16 %v965_v32, %v961_v30  ;;  %v3526_v28 = vpack.c.bf16 %v1006_v21, %v1002_v20  ;;  %v1005_v29 = vld [vmem:[%s4036_s4 + $0x15b0] sm:$0xff]  ;;  %v1010_v32 = vld [vmem:[%s4036_s4 + $0x15d8] sm:$0xff] }
 0x17b   : > { %v1008_v30 = vld [vmem:[%s4036_s4 + $0x15c8] sm:$0xff]  ;;  %v1039_v21 = vld [vmem:[%s4036_s4 + $0x16c0] sm:$0xff] }
 0x17c   : > { %2977 = vmatpush1.bf16.msra.mxu0 %v2976_v40  ;;  %v2998_v40 = vpack.c.bf16 %v972_v34, %v968_v33  ;;  %v1014_v33 = vld [vmem:[%s4036_s4 + $0x15f8] sm:$0xff] }
 0x17d   : > { %3489 = vmatpush1.bf16.msra.mxu1 %v3488_v41  ;;  %2979 = vmatprep.subr.bf16.mxu0 %v2978_v42  ;;  %v967_v41 = vld [vmem:[%s4036_s4 + $0x1480] sm:$0xff] }
 0x17e   : > { %3491 = vmatprep.subr.bf16.mxu1 %v3490_v46  ;;  %v971_v42 = vld [vmem:[%s4036_s4 + $0x14a0] sm:$0xff]  ;;  %v976_v46 = vld [vmem:[%s4036_s4 + $0x14c8] sm:$0xff] }
 0x17f   : > { %v3000_v50 = vpack.c.bf16 %v971_v42, %v967_v41  ;;  %v1013_v41 = vld [vmem:[%s4036_s4 + $0x15f0] sm:$0xff]  ;;  %v1016_v42 = vld [vmem:[%s4036_s4 + $0x1608] sm:$0xff] }
 0x180   : > { %2981 = vmatpush1.bf16.msra.mxu0 %v2980_v52  ;;  %v3002_v52 = vpack.c.bf16 %v980_v47, %v976_v46  ;;  %v3022_v48 = vpack.c.bf16 %v1020_v43, %v1016_v42 }
 0x181   : > { %3493 = vmatpush1.bf16.msra.mxu1 %v3492_v53  ;;  %2983 = vmatprep.subr.bf16.mxu0 %v2982_v54  ;;  %v975_v53 = vld [vmem:[%s4036_s4 + $0x14c0] sm:$0xff] }
 0x182   : > { %3495 = vmatprep.subr.bf16.mxu1 %v3494_v58  ;;  %v979_v54 = vld [vmem:[%s4036_s4 + $0x14e0] sm:$0xff]  ;;  %v984_v58 = vld [vmem:[%s4036_s4 + $0x1508] sm:$0xff] }
 0x183   : > { %v3004_v62 = vpack.c.bf16 %v979_v54, %v975_v53  ;;  %v1021_v53 = vld [vmem:[%s4036_s4 + $0x1630] sm:$0xff]  ;;  %v1024_v54 = vld [vmem:[%s4036_s4 + $0x1648] sm:$0xff] }
 0x184   : > { %2985 = vmatpush1.bf16.msra.mxu0 %v2984_v0  ;;  %v3006_v0 = vpack.c.bf16 %v988_v59, %v984_v58  ;;  %v3026_v60 = vpack.c.bf16 %v1028_v55, %v1024_v54 }
 0x185   : > { %3497 = vmatpush1.bf16.msra.mxu1 %v3496_v1  ;;  %2987 = vmatprep.subr.bf16.mxu0 %v2986_v2  ;;  %v983_v1 = vld [vmem:[%s4036_s4 + $0x1500] sm:$0xff] }
 0x186   : > { %3499 = vmatprep.subr.bf16.mxu1 %v3498_v6  ;;  %v987_v2 = vld [vmem:[%s4036_s4 + $0x1520] sm:$0xff]  ;;  %v992_v6 = vld [vmem:[%s4036_s4 + $0x1548] sm:$0xff] }
 0x187   : > { %v3008_v10 = vpack.c.bf16 %v987_v2, %v983_v1  ;;  %v1029_v1 = vld [vmem:[%s4036_s4 + $0x1670] sm:$0xff]  ;;  %v1032_v2 = vld [vmem:[%s4036_s4 + $0x1688] sm:$0xff] }
 0x188   : > { %2989 = vmatpush1.bf16.msra.mxu0 %v2988_v12  ;;  %v3010_v12 = vpack.c.bf16 %v996_v7, %v992_v6  ;;  %v3030_v8 = vpack.c.bf16 %v1036_v3, %v1032_v2 }
 0x189   : > { %3501 = vmatpush1.bf16.msra.mxu1 %v3500_v13  ;;  %2991 = vmatprep.subr.bf16.mxu0 %v2990_v14  ;;  %v991_v13 = vld [vmem:[%s4036_s4 + $0x1540] sm:$0xff] }
 0x18a   : > { %3503 = vmatprep.subr.bf16.mxu1 %v3502_v18  ;;  %v995_v14 = vld [vmem:[%s4036_s4 + $0x1560] sm:$0xff]  ;;  %v1000_v18 = vld [vmem:[%s4036_s4 + $0x1588] sm:$0xff] }
 0x18b   : > { %1684 = vmatmul.mubr.f32.vlgmr.msra.gmra.mrb[0].mxu0 %v303_v24  ;;  %v3012_v22 = vpack.c.bf16 %v995_v14, %v991_v13  ;;  %v1037_v13 = vld [vmem:[%s4036_s4 + $0x16b0] sm:$0xff]  ;;  %v1040_v14 = vld [vmem:[%s4036_s4 + $0x16c8] sm:$0xff] }
 0x18c   : > { %2993 = vmatpush1.bf16.msra.mxu0 %v2992_v25  ;;  %2252 = vmatmul.mubr.f32.vlgmr.msra.gmra.mrb[0].mxu1 %v303_v24  ;;  %v3014_v24 = vpack.c.bf16 %v1004_v19, %v1000_v18  ;;  %v999_v25 = vld [vmem:[%s4036_s4 + $0x1580] sm:$0xff]  ;;  %v3034_v20 = vpack.c.bf16 %v1044_v15, %v1040_v14 }
 0x18d   : > { %3505 = vmatpush1.bf16.msra.mxu1 %v3504_v26  ;;  %2995 = vmatprep.subr.bf16.mxu0 %v2994_v27  ;;  %v1003_v26 = vld [vmem:[%s4036_s4 + $0x15a0] sm:$0xff]  ;;  %v1001_v27 = vld [vmem:[%s4036_s4 + $0x1590] sm:$0xff] }
 0x18e   : > { %3507 = vmatprep.subr.bf16.mxu1 %v3506_v31  ;;  %1754 = vmatprep.mubr.f32.mxu0 %v306_v37  ;;  %v1012_v31 = vld [vmem:[%s4036_s4 + $0x15e8] sm:$0xff]  ;;  %v3016_v34 = vpack.c.bf16 %v1003_v26, %v999_v25  ;;  %v3528_v35 = vpack.c.bf16 %v1005_v29, %v1001_v27  ;;  %v1045_v25 = vld [vmem:[%s4036_s4 + $0x16f0] sm:$0xff]  ;;  %v1054_v29 = vld [vmem:[%s4036_s4 + $0x1738] sm:$0xff] }
 0x18f   : > { %2322 = vmatprep.mubr.f32.mxu1 %v306_v37  ;;  %v3018_v36 = vpack.c.bf16 %v1012_v31, %v1008_v30  ;;  %v1007_v37 = vld [vmem:[%s4036_s4 + $0x15c0] sm:$0xff]  ;;  %v1048_v26 = vld [vmem:[%s4036_s4 + $0x1708] sm:$0xff] }
 0x190   : > { %2997 = vmatpush1.bf16.msra.mxu0 %v2996_v38  ;;  %v1011_v38 = vld [vmem:[%s4036_s4 + $0x15e0] sm:$0xff]  ;;  %v1052_v27 = vld [vmem:[%s4036_s4 + $0x1728] sm:$0xff] }
 0x191   : > { %3509 = vmatpush1.bf16.msra.mxu1 %v3508_v39  ;;  %2999 = vmatprep.subr.bf16.mxu0 %v2998_v40  ;;  %v1009_v39 = vld [vmem:[%s4036_s4 + $0x15d0] sm:$0xff]  ;;  %v3530_v40 = vpack.c.bf16 %v1014_v33, %v1010_v32  ;;  %v3020_v46 = vpack.c.bf16 %v1011_v38, %v1007_v37  ;;  %v3038_v32 = vpack.c.bf16 %v1052_v27, %v1048_v26  ;;  %v1047_v33 = vld [vmem:[%s4036_s4 + $0x1700] sm:$0xff]  ;;  %v1056_v38 = vld [vmem:[%s4036_s4 + $0x1748] sm:$0xff] }
 0x192   : > { %3511 = vmatprep.subr.bf16.mxu1 %v3510_v44  ;;  %v1018_v44 = vld [vmem:[%s4036_s4 + $0x1618] sm:$0xff]  ;;  %v3532_v47 = vpack.c.bf16 %v1013_v41, %v1009_v39  ;;  %v1053_v37 = vld [vmem:[%s4036_s4 + $0x1730] sm:$0xff]  ;;  %v1060_v39 = vld [vmem:[%s4036_s4 + $0x1768] sm:$0xff] }
 0x193   : > { %v1062_v41 = vld [vmem:[%s4036_s4 + $0x1778] sm:$0xff]  ;;  %v305_v26 = vld [vmem:[%s4049_s29 + $0x50] sm:$0xff] }
 0x194   : > { %3001 = vmatpush1.bf16.msra.mxu0 %v3000_v50  ;;  %v1019_v50 = vld [vmem:[%s4036_s4 + $0x1620] sm:$0xff] }
 0x195   : > { %3513 = vmatpush1.bf16.msra.mxu1 %v3512_v51  ;;  %3003 = vmatprep.subr.bf16.mxu0 %v3002_v52  ;;  %v1017_v51 = vld [vmem:[%s4036_s4 + $0x1610] sm:$0xff]  ;;  %v3534_v52 = vpack.c.bf16 %v1022_v45, %v1018_v44  ;;  %v3024_v58 = vpack.c.bf16 %v1019_v50, %v1015_v49  ;;  %v3042_v44 = vpack.c.bf16 %v1060_v39, %v1056_v38  ;;  %v1055_v45 = vld [vmem:[%s4036_s4 + $0x1740] sm:$0xff]  ;;  %v1064_v50 = vld [vmem:[%s4036_s4 + $0x1788] sm:$0xff] }
 0x196   : > { %3515 = vmatprep.subr.bf16.mxu1 %v3514_v56  ;;  %v1026_v56 = vld [vmem:[%s4036_s4 + $0x1658] sm:$0xff]  ;;  %v3536_v59 = vpack.c.bf16 %v1021_v53, %v1017_v51  ;;  %v1061_v49 = vld [vmem:[%s4036_s4 + $0x1770] sm:$0xff]  ;;  %v1068_v51 = vld [vmem:[%s4036_s4 + $0x17a8] sm:$0xff] }
 0x197   : > { %v1070_v53 = vld [vmem:[%s4036_s4 + $0x17b8] sm:$0xff]  ;;  %v308_v39 = vld [vmem:[%s4049_s29 + $0x68] sm:$0xff] }
 0x198   : > { %3005 = vmatpush1.bf16.msra.mxu0 %v3004_v62  ;;  %v1027_v62 = vld [vmem:[%s4036_s4 + $0x1660] sm:$0xff]  ;;  %v1102_v38 = vld [vmem:[%s4036_s4 + $0x18b8] sm:$0xff] }
 0x199   : > { %3517 = vmatpush1.bf16.msra.mxu1 %v3516_v63  ;;  %3007 = vmatprep.subr.bf16.mxu0 %v3006_v0  ;;  %v1025_v63 = vld [vmem:[%s4036_s4 + $0x1650] sm:$0xff]  ;;  %v3538_v0 = vpack.c.bf16 %v1030_v57, %v1026_v56  ;;  %v3028_v6 = vpack.c.bf16 %v1027_v62, %v1023_v61  ;;  %v3046_v56 = vpack.c.bf16 %v1068_v51, %v1064_v50  ;;  %v1063_v57 = vld [vmem:[%s4036_s4 + $0x1780] sm:$0xff]  ;;  %v1072_v62 = vld [vmem:[%s4036_s4 + $0x17c8] sm:$0xff] }
 0x19a   : > { %3519 = vmatprep.subr.bf16.mxu1 %v3518_v4  ;;  %v1034_v4 = vld [vmem:[%s4036_s4 + $0x1698] sm:$0xff]  ;;  %v3540_v7 = vpack.c.bf16 %v1029_v1, %v1025_v63  ;;  %v1069_v61 = vld [vmem:[%s4036_s4 + $0x17b0] sm:$0xff]  ;;  %v1076_v63 = vld [vmem:[%s4036_s4 + $0x17e8] sm:$0xff] }
 0x19b   : > { %v1078_v1 = vld [vmem:[%s4036_s4 + $0x17f8] sm:$0xff] }
 0x19c   : > { %3009 = vmatpush1.bf16.msra.mxu0 %v3008_v10  ;;  %v1035_v10 = vld [vmem:[%s4036_s4 + $0x16a0] sm:$0xff]  ;;  %v1106_v50 = vld [vmem:[%s4036_s4 + $0x18d8] sm:$0xff] }
 0x19d   : > { %3521 = vmatpush1.bf16.msra.mxu1 %v3520_v11  ;;  %3011 = vmatprep.subr.bf16.mxu0 %v3010_v12  ;;  %v1033_v11 = vld [vmem:[%s4036_s4 + $0x1690] sm:$0xff]  ;;  %v3542_v12 = vpack.c.bf16 %v1038_v5, %v1034_v4  ;;  %v3032_v18 = vpack.c.bf16 %v1035_v10, %v1031_v9  ;;  %v3050_v4 = vpack.c.bf16 %v1076_v63, %v1072_v62  ;;  %v1071_v5 = vld [vmem:[%s4036_s4 + $0x17c0] sm:$0xff]  ;;  %v1080_v10 = vld [vmem:[%s4036_s4 + $0x1808] sm:$0xff] }
 0x19e   : > { %3523 = vmatprep.subr.bf16.mxu1 %v3522_v16  ;;  %v1042_v16 = vld [vmem:[%s4036_s4 + $0x16d8] sm:$0xff]  ;;  %v3544_v19 = vpack.c.bf16 %v1037_v13, %v1033_v11  ;;  %v1077_v9 = vld [vmem:[%s4036_s4 + $0x17f0] sm:$0xff]  ;;  %v1084_v11 = vld [vmem:[%s4036_s4 + $0x1828] sm:$0xff] }
 0x19f   : > { %v1086_v13 = vld [vmem:[%s4036_s4 + $0x1838] sm:$0xff] }
 0x1a0   : > { %3013 = vmatpush1.bf16.msra.mxu0 %v3012_v22  ;;  %v1043_v22 = vld [vmem:[%s4036_s4 + $0x16e0] sm:$0xff]  ;;  %v1110_v51 = vld [vmem:[%s4036_s4 + $0x18f8] sm:$0xff] }
 0x1a1   : > { %3525 = vmatpush1.bf16.msra.mxu1 %v3524_v23  ;;  %3015 = vmatprep.subr.bf16.mxu0 %v3014_v24  ;;  %v1041_v23 = vld [vmem:[%s4036_s4 + $0x16d0] sm:$0xff]  ;;  %v3546_v24 = vpack.c.bf16 %v1046_v17, %v1042_v16  ;;  %v3036_v30 = vpack.c.bf16 %v1043_v22, %v1039_v21  ;;  %v3054_v16 = vpack.c.bf16 %v1084_v11, %v1080_v10  ;;  %v1079_v17 = vld [vmem:[%s4036_s4 + $0x1800] sm:$0xff]  ;;  %v1088_v22 = vld [vmem:[%s4036_s4 + $0x1848] sm:$0xff] }
 0x1a2   : > { %3527 = vmatprep.subr.bf16.mxu1 %v3526_v28  ;;  %v1050_v28 = vld [vmem:[%s4036_s4 + $0x1718] sm:$0xff]  ;;  %v3548_v31 = vpack.c.bf16 %v1045_v25, %v1041_v23  ;;  %v1085_v21 = vld [vmem:[%s4036_s4 + $0x1830] sm:$0xff]  ;;  %v1092_v23 = vld [vmem:[%s4036_s4 + $0x1868] sm:$0xff] }
 0x1a3   : > { %v1094_v25 = vld [vmem:[%s4036_s4 + $0x1878] sm:$0xff] }
 0x1a4   : > { %3017 = vmatpush1.bf16.msra.mxu0 %v3016_v34  ;;  %v1051_v34 = vld [vmem:[%s4036_s4 + $0x1720] sm:$0xff]  ;;  %v1114_v62 = vld [vmem:[%s4036_s4 + $0x1918] sm:$0xff] }
 0x1a5   : > { %3529 = vmatpush1.bf16.msra.mxu1 %v3528_v35  ;;  %3019 = vmatprep.subr.bf16.mxu0 %v3018_v36  ;;  %v1049_v35 = vld [vmem:[%s4036_s4 + $0x1710] sm:$0xff]  ;;  %v3550_v36 = vpack.c.bf16 %v1054_v29, %v1050_v28  ;;  %v3040_v42 = vpack.c.bf16 %v1051_v34, %v1047_v33  ;;  %v3058_v29 = vpack.c.bf16 %v1092_v23, %v1088_v22  ;;  %v1118_v63 = vld [vmem:[%s4036_s4 + $0x1938] sm:$0xff] }
 0x1a6   : > { %3531 = vmatprep.subr.bf16.mxu1 %v3530_v40  ;;  %v1058_v40 = vld [vmem:[%s4036_s4 + $0x1758] sm:$0xff]  ;;  %v3552_v43 = vpack.c.bf16 %v1053_v37, %v1049_v35  ;;  %v1093_v34 = vld [vmem:[%s4036_s4 + $0x1870] sm:$0xff]  ;;  %v1096_v35 = vld [vmem:[%s4036_s4 + $0x1888] sm:$0xff] }
 0x1a7   : > { %v1098_v37 = vld [vmem:[%s4036_s4 + $0x1898] sm:$0xff] }
 0x1a8   : > { %3021 = vmatpush1.bf16.msra.mxu0 %v3020_v46  ;;  %v1059_v46 = vld [vmem:[%s4036_s4 + $0x1760] sm:$0xff]  ;;  %v1122_v10 = vld [vmem:[%s4036_s4 + $0x1958] sm:$0xff] }
 0x1a9   : > { %3533 = vmatpush1.bf16.msra.mxu1 %v3532_v47  ;;  %3023 = vmatprep.subr.bf16.mxu0 %v3022_v48  ;;  %v1057_v47 = vld [vmem:[%s4036_s4 + $0x1750] sm:$0xff]  ;;  %v3554_v48 = vpack.c.bf16 %v1062_v41, %v1058_v40  ;;  %v3044_v54 = vpack.c.bf16 %v1059_v46, %v1055_v45  ;;  %v3574_v46 = vpack.c.bf16 %v1102_v38, %v1098_v37  ;;  %v1126_v11 = vld [vmem:[%s4036_s4 + $0x1978] sm:$0xff] }
 0x1aa   : > { %3535 = vmatprep.subr.bf16.mxu1 %v3534_v52  ;;  %v1066_v52 = vld [vmem:[%s4036_s4 + $0x1798] sm:$0xff]  ;;  %v3556_v55 = vpack.c.bf16 %v1061_v49, %v1057_v47  ;;  %v1097_v45 = vld [vmem:[%s4036_s4 + $0x1890] sm:$0xff]  ;;  %v1108_v49 = vld [vmem:[%s4036_s4 + $0x18e8] sm:$0xff] }
 0x1ab   : > { %v1101_v47 = vld [vmem:[%s4036_s4 + $0x18b0] sm:$0xff]  ;;  %v1130_v22 = vld [vmem:[%s4036_s4 + $0x1998] sm:$0xff] }
 0x1ac   : > { %3025 = vmatpush1.bf16.msra.mxu0 %v3024_v58  ;;  %v1067_v58 = vld [vmem:[%s4036_s4 + $0x17a0] sm:$0xff]  ;;  %v1134_v23 = vld [vmem:[%s4036_s4 + $0x19b8] sm:$0xff] }
 0x1ad   : > { %3537 = vmatpush1.bf16.msra.mxu1 %v3536_v59  ;;  %3027 = vmatprep.subr.bf16.mxu0 %v3026_v60  ;;  %v1065_v59 = vld [vmem:[%s4036_s4 + $0x1790] sm:$0xff]  ;;  %v3558_v60 = vpack.c.bf16 %v1070_v53, %v1066_v52  ;;  %v3048_v2 = vpack.c.bf16 %v1067_v58, %v1063_v57  ;;  %v3576_v53 = vpack.c.bf16 %v1101_v47, %v1097_v45  ;;  %v1148_v45 = vld [vmem:[%s4036_s4 + $0x1a28] sm:$0xff]  ;;  %v1150_v47 = vld [vmem:[%s4036_s4 + $0x1a38] sm:$0xff] }
 0x1ae   : > { %3539 = vmatprep.subr.bf16.mxu1 %v3538_v0  ;;  %v1074_v0 = vld [vmem:[%s4036_s4 + $0x17d8] sm:$0xff]  ;;  %v3560_v3 = vpack.c.bf16 %v1069_v61, %v1065_v59  ;;  %v1105_v57 = vld [vmem:[%s4036_s4 + $0x18d0] sm:$0xff]  ;;  %v3578_v58 = vpack.c.bf16 %v1110_v51, %v1106_v50  ;;  %v1116_v61 = vld [vmem:[%s4036_s4 + $0x1928] sm:$0xff] }
 0x1af   : > { %v1109_v59 = vld [vmem:[%s4036_s4 + $0x18f0] sm:$0xff]  ;;  %v1143_v51 = vld [vmem:[%s4036_s4 + $0x1a00] sm:$0xff] }
 0x1b0   : > { %3029 = vmatpush1.bf16.msra.mxu0 %v3028_v6  ;;  %v1075_v6 = vld [vmem:[%s4036_s4 + $0x17e0] sm:$0xff] }
 0x1b1   : > { %3541 = vmatpush1.bf16.msra.mxu1 %v3540_v7  ;;  %3031 = vmatprep.subr.bf16.mxu0 %v3030_v8  ;;  %v1073_v7 = vld [vmem:[%s4036_s4 + $0x17d0] sm:$0xff]  ;;  %v3562_v8 = vpack.c.bf16 %v1078_v1, %v1074_v0  ;;  %v3052_v14 = vpack.c.bf16 %v1075_v6, %v1071_v5  ;;  %v3580_v1 = vpack.c.bf16 %v1109_v59, %v1105_v57  ;;  %v1156_v57 = vld [vmem:[%s4036_s4 + $0x1a68] sm:$0xff]  ;;  %v1158_v59 = vld [vmem:[%s4036_s4 + $0x1a78] sm:$0xff] }
 0x1b2   : > { %3543 = vmatprep.subr.bf16.mxu1 %v3542_v12  ;;  %v1082_v12 = vld [vmem:[%s4036_s4 + $0x1818] sm:$0xff]  ;;  %v3564_v15 = vpack.c.bf16 %v1077_v9, %v1073_v7  ;;  %v1113_v5 = vld [vmem:[%s4036_s4 + $0x1910] sm:$0xff]  ;;  %v3582_v6 = vpack.c.bf16 %v1118_v63, %v1114_v62  ;;  %v1124_v9 = vld [vmem:[%s4036_s4 + $0x1968] sm:$0xff] }
 0x1b3   : > { %v1117_v7 = vld [vmem:[%s4036_s4 + $0x1930] sm:$0xff]  ;;  %v1151_v63 = vld [vmem:[%s4036_s4 + $0x1a40] sm:$0xff] }
 0x1b4   : > { %3033 = vmatpush1.bf16.msra.mxu0 %v3032_v18  ;;  %v1083_v18 = vld [vmem:[%s4036_s4 + $0x1820] sm:$0xff] }
 0x1b5   : > { %3545 = vmatpush1.bf16.msra.mxu1 %v3544_v19  ;;  %3035 = vmatprep.subr.bf16.mxu0 %v3034_v20  ;;  %v1081_v19 = vld [vmem:[%s4036_s4 + $0x1810] sm:$0xff]  ;;  %v3566_v20 = vpack.c.bf16 %v1086_v13, %v1082_v12  ;;  %v3056_v27 = vpack.c.bf16 %v1083_v18, %v1079_v17  ;;  %v3584_v13 = vpack.c.bf16 %v1117_v7, %v1113_v5  ;;  %v1164_v5 = vld [vmem:[%s4036_s4 + $0x1aa8] sm:$0xff]  ;;  %v1166_v7 = vld [vmem:[%s4036_s4 + $0x1ab8] sm:$0xff] }
 0x1b6   : > { %3547 = vmatprep.subr.bf16.mxu1 %v3546_v24  ;;  %v1090_v24 = vld [vmem:[%s4036_s4 + $0x1858] sm:$0xff]  ;;  %v3568_v28 = vpack.c.bf16 %v1085_v21, %v1081_v19  ;;  %v1121_v17 = vld [vmem:[%s4036_s4 + $0x1950] sm:$0xff]  ;;  %v3586_v18 = vpack.c.bf16 %v1126_v11, %v1122_v10  ;;  %v1132_v21 = vld [vmem:[%s4036_s4 + $0x19a8] sm:$0xff] }
 0x1b7   : > { %v3570_v33 = vpack.c.bf16 %v1094_v25, %v1090_v24  ;;  %v1125_v19 = vld [vmem:[%s4036_s4 + $0x1970] sm:$0xff]  ;;  %v1159_v11 = vld [vmem:[%s4036_s4 + $0x1a80] sm:$0xff] }
 0x1b8   : > { %3037 = vmatpush1.bf16.msra.mxu0 %v3036_v30  ;;  %v1087_v30 = vld [vmem:[%s4036_s4 + $0x1840] sm:$0xff]  ;;  %v3588_v25 = vpack.c.bf16 %v1125_v19, %v1121_v17  ;;  %v1172_v17 = vld [vmem:[%s4036_s4 + $0x1ae8] sm:$0xff]  ;;  %v1174_v19 = vld [vmem:[%s4036_s4 + $0x1af8] sm:$0xff] }
 0x1b9   : > { %3549 = vmatpush1.bf16.msra.mxu1 %v3548_v31  ;;  %3039 = vmatprep.subr.bf16.mxu0 %v3038_v32  ;;  %v1091_v31 = vld [vmem:[%s4036_s4 + $0x1860] sm:$0xff]  ;;  %v1089_v32 = vld [vmem:[%s4036_s4 + $0x1850] sm:$0xff] }
 0x1ba   : > { %3551 = vmatprep.subr.bf16.mxu1 %v3550_v36  ;;  %v1100_v36 = vld [vmem:[%s4036_s4 + $0x18a8] sm:$0xff]  ;;  %v3060_v40 = vpack.c.bf16 %v1091_v31, %v1087_v30  ;;  %v3572_v41 = vpack.c.bf16 %v1093_v34, %v1089_v32  ;;  %v3590_v30 = vpack.c.bf16 %v1134_v23, %v1130_v22  ;;  %v1133_v31 = vld [vmem:[%s4036_s4 + $0x19b0] sm:$0xff]  ;;  %v1138_v34 = vld [vmem:[%s4036_s4 + $0x19d8] sm:$0xff] }
 0x1bb   : > { %v1136_v32 = vld [vmem:[%s4036_s4 + $0x19c8] sm:$0xff]  ;;  %v1167_v23 = vld [vmem:[%s4036_s4 + $0x1ac0] sm:$0xff] }
 0x1bc   : > { %3041 = vmatpush1.bf16.msra.mxu0 %v3040_v42  ;;  %v3062_v42 = vpack.c.bf16 %v1100_v36, %v1096_v35  ;;  %v1142_v35 = vld [vmem:[%s4036_s4 + $0x19f8] sm:$0xff] }
 0x1bd   : > { %3553 = vmatpush1.bf16.msra.mxu1 %v3552_v43  ;;  %3043 = vmatprep.subr.bf16.mxu0 %v3042_v44  ;;  %v1095_v43 = vld [vmem:[%s4036_s4 + $0x1880] sm:$0xff] }
 0x1be   : > { %3555 = vmatprep.subr.bf16.mxu1 %v3554_v48  ;;  %v1099_v44 = vld [vmem:[%s4036_s4 + $0x18a0] sm:$0xff]  ;;  %v1104_v48 = vld [vmem:[%s4036_s4 + $0x18c8] sm:$0xff] }
 0x1bf   : > { %v3064_v52 = vpack.c.bf16 %v1099_v44, %v1095_v43  ;;  %v1141_v43 = vld [vmem:[%s4036_s4 + $0x19f0] sm:$0xff]  ;;  %v1144_v44 = vld [vmem:[%s4036_s4 + $0x1a08] sm:$0xff] }
 0x1c0   : > { %3045 = vmatpush1.bf16.msra.mxu0 %v3044_v54  ;;  %v3066_v54 = vpack.c.bf16 %v1108_v49, %v1104_v48  ;;  %v3086_v50 = vpack.c.bf16 %v1148_v45, %v1144_v44 }
 0x1c1   : > { %3557 = vmatpush1.bf16.msra.mxu1 %v3556_v55  ;;  %3047 = vmatprep.subr.bf16.mxu0 %v3046_v56  ;;  %v1103_v55 = vld [vmem:[%s4036_s4 + $0x18c0] sm:$0xff] }
 0x1c2   : > { %3559 = vmatprep.subr.bf16.mxu1 %v3558_v60  ;;  %v1107_v56 = vld [vmem:[%s4036_s4 + $0x18e0] sm:$0xff]  ;;  %v1112_v60 = vld [vmem:[%s4036_s4 + $0x1908] sm:$0xff] }
 0x1c3   : > { %v3068_v0 = vpack.c.bf16 %v1107_v56, %v1103_v55  ;;  %v1149_v55 = vld [vmem:[%s4036_s4 + $0x1a30] sm:$0xff]  ;;  %v1152_v56 = vld [vmem:[%s4036_s4 + $0x1a48] sm:$0xff] }
 0x1c4   : > { %3049 = vmatpush1.bf16.msra.mxu0 %v3048_v2  ;;  %v3070_v2 = vpack.c.bf16 %v1116_v61, %v1112_v60  ;;  %v3090_v62 = vpack.c.bf16 %v1156_v57, %v1152_v56 }
 0x1c5   : > { %3561 = vmatpush1.bf16.msra.mxu1 %v3560_v3  ;;  %3051 = vmatprep.subr.bf16.mxu0 %v3050_v4  ;;  %v1111_v3 = vld [vmem:[%s4036_s4 + $0x1900] sm:$0xff] }
 0x1c6   : > { %3563 = vmatprep.subr.bf16.mxu1 %v3562_v8  ;;  %v1115_v4 = vld [vmem:[%s4036_s4 + $0x1920] sm:$0xff]  ;;  %v1120_v8 = vld [vmem:[%s4036_s4 + $0x1948] sm:$0xff] }
 0x1c7   : > { %v3072_v12 = vpack.c.bf16 %v1115_v4, %v1111_v3  ;;  %v1157_v3 = vld [vmem:[%s4036_s4 + $0x1a70] sm:$0xff]  ;;  %v1160_v4 = vld [vmem:[%s4036_s4 + $0x1a88] sm:$0xff] }
 0x1c8   : > { %3053 = vmatpush1.bf16.msra.mxu0 %v3052_v14  ;;  %v3074_v14 = vpack.c.bf16 %v1124_v9, %v1120_v8  ;;  %v3094_v10 = vpack.c.bf16 %v1164_v5, %v1160_v4 }
 0x1c9   : > { %3565 = vmatpush1.bf16.msra.mxu1 %v3564_v15  ;;  %3055 = vmatprep.subr.bf16.mxu0 %v3054_v16  ;;  %v1119_v15 = vld [vmem:[%s4036_s4 + $0x1940] sm:$0xff] }
 0x1ca   : > { %3567 = vmatprep.subr.bf16.mxu1 %v3566_v20  ;;  %v1123_v16 = vld [vmem:[%s4036_s4 + $0x1960] sm:$0xff]  ;;  %v1128_v20 = vld [vmem:[%s4036_s4 + $0x1988] sm:$0xff] }
 0x1cb   : > { %1755 = vmatmul.mubr.f32.vlgmr.msra.gmra.mrb[0].mxu0 %v305_v26  ;;  %v3076_v24 = vpack.c.bf16 %v1123_v16, %v1119_v15  ;;  %v1165_v15 = vld [vmem:[%s4036_s4 + $0x1ab0] sm:$0xff]  ;;  %v1168_v16 = vld [vmem:[%s4036_s4 + $0x1ac8] sm:$0xff] }
 0x1cc   : > { %3057 = vmatpush1.bf16.msra.mxu0 %v3056_v27  ;;  %2323 = vmatmul.mubr.f32.vlgmr.msra.gmra.mrb[0].mxu1 %v305_v26  ;;  %v3078_v26 = vpack.c.bf16 %v1132_v21, %v1128_v20  ;;  %v1127_v27 = vld [vmem:[%s4036_s4 + $0x1980] sm:$0xff]  ;;  %v3098_v22 = vpack.c.bf16 %v1172_v17, %v1168_v16 }
 0x1cd   : > { %3569 = vmatpush1.bf16.msra.mxu1 %v3568_v28  ;;  %3059 = vmatprep.subr.bf16.mxu0 %v3058_v29  ;;  %v1131_v28 = vld [vmem:[%s4036_s4 + $0x19a0] sm:$0xff]  ;;  %v1129_v29 = vld [vmem:[%s4036_s4 + $0x1990] sm:$0xff] }
 0x1ce   : > { %3571 = vmatprep.subr.bf16.mxu1 %v3570_v33  ;;  %1825 = vmatprep.mubr.f32.mxu0 %v308_v39  ;;  %v1140_v33 = vld [vmem:[%s4036_s4 + $0x19e8] sm:$0xff]  ;;  %v3080_v36 = vpack.c.bf16 %v1131_v28, %v1127_v27  ;;  %v3592_v37 = vpack.c.bf16 %v1133_v31, %v1129_v29  ;;  %v1173_v27 = vld [vmem:[%s4036_s4 + $0x1af0] sm:$0xff]  ;;  %v1182_v31 = vld [vmem:[%s4036_s4 + $0x1b38] sm:$0xff] }
 0x1cf   : > { %2393 = vmatprep.mubr.f32.mxu1 %v308_v39  ;;  %v3082_v38 = vpack.c.bf16 %v1140_v33, %v1136_v32  ;;  %v1135_v39 = vld [vmem:[%s4036_s4 + $0x19c0] sm:$0xff]  ;;  %v1176_v28 = vld [vmem:[%s4036_s4 + $0x1b08] sm:$0xff] }
 0x1d0   : > { %3061 = vmatpush1.bf16.msra.mxu0 %v3060_v40  ;;  %v1139_v40 = vld [vmem:[%s4036_s4 + $0x19e0] sm:$0xff]  ;;  %v1180_v29 = vld [vmem:[%s4036_s4 + $0x1b28] sm:$0xff] }
 0x1d1   : > { %3573 = vmatpush1.bf16.msra.mxu1 %v3572_v41  ;;  %3063 = vmatprep.subr.bf16.mxu0 %v3062_v42  ;;  %v1137_v41 = vld [vmem:[%s4036_s4 + $0x19d0] sm:$0xff]  ;;  %v3594_v42 = vpack.c.bf16 %v1142_v35, %v1138_v34  ;;  %v3084_v48 = vpack.c.bf16 %v1139_v40, %v1135_v39  ;;  %v3102_v34 = vpack.c.bf16 %v1180_v29, %v1176_v28  ;;  %v1175_v35 = vld [vmem:[%s4036_s4 + $0x1b00] sm:$0xff]  ;;  %v1184_v40 = vld [vmem:[%s4036_s4 + $0x1b48] sm:$0xff] }
 0x1d2   : > { %3575 = vmatprep.subr.bf16.mxu1 %v3574_v46  ;;  %v1146_v46 = vld [vmem:[%s4036_s4 + $0x1a18] sm:$0xff]  ;;  %v3596_v49 = vpack.c.bf16 %v1141_v43, %v1137_v41  ;;  %v1181_v39 = vld [vmem:[%s4036_s4 + $0x1b30] sm:$0xff]  ;;  %v1188_v41 = vld [vmem:[%s4036_s4 + $0x1b68] sm:$0xff] }
 0x1d3   : > { %v1190_v43 = vld [vmem:[%s4036_s4 + $0x1b78] sm:$0xff]  ;;  %v307_v28 = vld [vmem:[%s4049_s29 + $0x60] sm:$0xff] }
 0x1d4   : > { %3065 = vmatpush1.bf16.msra.mxu0 %v3064_v52  ;;  %v1147_v52 = vld [vmem:[%s4036_s4 + $0x1a20] sm:$0xff] }
 0x1d5   : > { %3577 = vmatpush1.bf16.msra.mxu1 %v3576_v53  ;;  %3067 = vmatprep.subr.bf16.mxu0 %v3066_v54  ;;  %v1145_v53 = vld [vmem:[%s4036_s4 + $0x1a10] sm:$0xff]  ;;  %v3598_v54 = vpack.c.bf16 %v1150_v47, %v1146_v46  ;;  %v3088_v60 = vpack.c.bf16 %v1147_v52, %v1143_v51  ;;  %v3106_v46 = vpack.c.bf16 %v1188_v41, %v1184_v40  ;;  %v1183_v47 = vld [vmem:[%s4036_s4 + $0x1b40] sm:$0xff]  ;;  %v1192_v52 = vld [vmem:[%s4036_s4 + $0x1b88] sm:$0xff] }
 0x1d6   : > { %3579 = vmatprep.subr.bf16.mxu1 %v3578_v58  ;;  %v1154_v58 = vld [vmem:[%s4036_s4 + $0x1a58] sm:$0xff]  ;;  %v3600_v61 = vpack.c.bf16 %v1149_v55, %v1145_v53  ;;  %v1189_v51 = vld [vmem:[%s4036_s4 + $0x1b70] sm:$0xff]  ;;  %v1196_v53 = vld [vmem:[%s4036_s4 + $0x1ba8] sm:$0xff] }
 0x1d7   : > { %v1198_v55 = vld [vmem:[%s4036_s4 + $0x1bb8] sm:$0xff] }
 0x1d8   : > { %3069 = vmatpush1.bf16.msra.mxu0 %v3068_v0  ;;  %v1155_v0 = vld [vmem:[%s4036_s4 + $0x1a60] sm:$0xff]  ;;  %v1230_v40 = vld [vmem:[%s4036_s4 + $0x1cb8] sm:$0xff] }
 0x1d9   : > { %3581 = vmatpush1.bf16.msra.mxu1 %v3580_v1  ;;  %3071 = vmatprep.subr.bf16.mxu0 %v3070_v2  ;;  %v1153_v1 = vld [vmem:[%s4036_s4 + $0x1a50] sm:$0xff]  ;;  %v3602_v2 = vpack.c.bf16 %v1158_v59, %v1154_v58  ;;  %v3092_v8 = vpack.c.bf16 %v1155_v0, %v1151_v63  ;;  %v3110_v58 = vpack.c.bf16 %v1196_v53, %v1192_v52  ;;  %v1191_v59 = vld [vmem:[%s4036_s4 + $0x1b80] sm:$0xff]  ;;  %v1200_v0 = vld [vmem:[%s4036_s4 + $0x1bc8] sm:$0xff] }
 0x1da   : > { %3583 = vmatprep.subr.bf16.mxu1 %v3582_v6  ;;  %v1162_v6 = vld [vmem:[%s4036_s4 + $0x1a98] sm:$0xff]  ;;  %v3604_v9 = vpack.c.bf16 %v1157_v3, %v1153_v1  ;;  %v1197_v63 = vld [vmem:[%s4036_s4 + $0x1bb0] sm:$0xff]  ;;  %v1204_v1 = vld [vmem:[%s4036_s4 + $0x1be8] sm:$0xff] }
 0x1db   : > { %v1206_v3 = vld [vmem:[%s4036_s4 + $0x1bf8] sm:$0xff] }
 0x1dc   : > { %3073 = vmatpush1.bf16.msra.mxu0 %v3072_v12  ;;  %v1163_v12 = vld [vmem:[%s4036_s4 + $0x1aa0] sm:$0xff]  ;;  %v310_v41 = vld [vmem:[%s4049_s29 + $0x78] sm:$0xff] }
 0x1dd   : > { %3585 = vmatpush1.bf16.msra.mxu1 %v3584_v13  ;;  %3075 = vmatprep.subr.bf16.mxu0 %v3074_v14  ;;  %v1161_v13 = vld [vmem:[%s4036_s4 + $0x1a90] sm:$0xff]  ;;  %v3606_v14 = vpack.c.bf16 %v1166_v7, %v1162_v6  ;;  %v3096_v20 = vpack.c.bf16 %v1163_v12, %v1159_v11  ;;  %v3114_v6 = vpack.c.bf16 %v1204_v1, %v1200_v0  ;;  %v1199_v7 = vld [vmem:[%s4036_s4 + $0x1bc0] sm:$0xff]  ;;  %v1208_v12 = vld [vmem:[%s4036_s4 + $0x1c08] sm:$0xff] }
 0x1de   : > { %3587 = vmatprep.subr.bf16.mxu1 %v3586_v18  ;;  %v1170_v18 = vld [vmem:[%s4036_s4 + $0x1ad8] sm:$0xff]  ;;  %v3608_v21 = vpack.c.bf16 %v1165_v15, %v1161_v13  ;;  %v1205_v11 = vld [vmem:[%s4036_s4 + $0x1bf0] sm:$0xff]  ;;  %v1212_v13 = vld [vmem:[%s4036_s4 + $0x1c28] sm:$0xff] }
 0x1df   : > { %v1214_v15 = vld [vmem:[%s4036_s4 + $0x1c38] sm:$0xff] }
 0x1e0   : > { %3077 = vmatpush1.bf16.msra.mxu0 %v3076_v24  ;;  %v1171_v24 = vld [vmem:[%s4036_s4 + $0x1ae0] sm:$0xff]  ;;  %v1234_v52 = vld [vmem:[%s4036_s4 + $0x1cd8] sm:$0xff] }
 0x1e1   : > { %3589 = vmatpush1.bf16.msra.mxu1 %v3588_v25  ;;  %3079 = vmatprep.subr.bf16.mxu0 %v3078_v26  ;;  %v1169_v25 = vld [vmem:[%s4036_s4 + $0x1ad0] sm:$0xff]  ;;  %v3610_v26 = vpack.c.bf16 %v1174_v19, %v1170_v18  ;;  %v3100_v32 = vpack.c.bf16 %v1171_v24, %v1167_v23  ;;  %v3118_v18 = vpack.c.bf16 %v1212_v13, %v1208_v12  ;;  %v1207_v19 = vld [vmem:[%s4036_s4 + $0x1c00] sm:$0xff]  ;;  %v1216_v24 = vld [vmem:[%s4036_s4 + $0x1c48] sm:$0xff] }
 0x1e2   : > { %3591 = vmatprep.subr.bf16.mxu1 %v3590_v30  ;;  %v1178_v30 = vld [vmem:[%s4036_s4 + $0x1b18] sm:$0xff]  ;;  %v3612_v33 = vpack.c.bf16 %v1173_v27, %v1169_v25  ;;  %v1213_v23 = vld [vmem:[%s4036_s4 + $0x1c30] sm:$0xff]  ;;  %v1220_v25 = vld [vmem:[%s4036_s4 + $0x1c68] sm:$0xff] }
 0x1e3   : > { %v1222_v27 = vld [vmem:[%s4036_s4 + $0x1c78] sm:$0xff] }
 0x1e4   : > { %3081 = vmatpush1.bf16.msra.mxu0 %v3080_v36  ;;  %v1179_v36 = vld [vmem:[%s4036_s4 + $0x1b20] sm:$0xff]  ;;  %v1238_v53 = vld [vmem:[%s4036_s4 + $0x1cf8] sm:$0xff] }
 0x1e5   : > { %3593 = vmatpush1.bf16.msra.mxu1 %v3592_v37  ;;  %3083 = vmatprep.subr.bf16.mxu0 %v3082_v38  ;;  %v1177_v37 = vld [vmem:[%s4036_s4 + $0x1b10] sm:$0xff]  ;;  %v3614_v38 = vpack.c.bf16 %v1182_v31, %v1178_v30  ;;  %v3104_v44 = vpack.c.bf16 %v1179_v36, %v1175_v35  ;;  %v3122_v31 = vpack.c.bf16 %v1220_v25, %v1216_v24  ;;  %v1242_v0 = vld [vmem:[%s4036_s4 + $0x1d18] sm:$0xff] }
 0x1e6   : > { %3595 = vmatprep.subr.bf16.mxu1 %v3594_v42  ;;  %v1186_v42 = vld [vmem:[%s4036_s4 + $0x1b58] sm:$0xff]  ;;  %v3616_v45 = vpack.c.bf16 %v1181_v39, %v1177_v37  ;;  %v1221_v36 = vld [vmem:[%s4036_s4 + $0x1c70] sm:$0xff]  ;;  %v1224_v37 = vld [vmem:[%s4036_s4 + $0x1c88] sm:$0xff] }
 0x1e7   : > { %v1226_v39 = vld [vmem:[%s4036_s4 + $0x1c98] sm:$0xff] }
 0x1e8   : > { %3085 = vmatpush1.bf16.msra.mxu0 %v3084_v48  ;;  %v1187_v48 = vld [vmem:[%s4036_s4 + $0x1b60] sm:$0xff]  ;;  %v1246_v1 = vld [vmem:[%s4036_s4 + $0x1d38] sm:$0xff] }
 0x1e9   : > { %3597 = vmatpush1.bf16.msra.mxu1 %v3596_v49  ;;  %3087 = vmatprep.subr.bf16.mxu0 %v3086_v50  ;;  %v1185_v49 = vld [vmem:[%s4036_s4 + $0x1b50] sm:$0xff]  ;;  %v3618_v50 = vpack.c.bf16 %v1190_v43, %v1186_v42  ;;  %v3108_v56 = vpack.c.bf16 %v1187_v48, %v1183_v47  ;;  %v3638_v48 = vpack.c.bf16 %v1230_v40, %v1226_v39  ;;  %v1250_v12 = vld [vmem:[%s4036_s4 + $0x1d58] sm:$0xff] }
 0x1ea   : > { %3599 = vmatprep.subr.bf16.mxu1 %v3598_v54  ;;  %v1194_v54 = vld [vmem:[%s4036_s4 + $0x1b98] sm:$0xff]  ;;  %v3620_v57 = vpack.c.bf16 %v1189_v51, %v1185_v49  ;;  %v1225_v47 = vld [vmem:[%s4036_s4 + $0x1c90] sm:$0xff]  ;;  %v1236_v51 = vld [vmem:[%s4036_s4 + $0x1ce8] sm:$0xff] }
 0x1eb   : > { %v1229_v49 = vld [vmem:[%s4036_s4 + $0x1cb0] sm:$0xff]  ;;  %v1254_v13 = vld [vmem:[%s4036_s4 + $0x1d78] sm:$0xff] }
 0x1ec   : > { %3089 = vmatpush1.bf16.msra.mxu0 %v3088_v60  ;;  %v1195_v60 = vld [vmem:[%s4036_s4 + $0x1ba0] sm:$0xff]  ;;  %v1258_v24 = vld [vmem:[%s4036_s4 + $0x1d98] sm:$0xff] }
 0x1ed   : > { %3601 = vmatpush1.bf16.msra.mxu1 %v3600_v61  ;;  %3091 = vmatprep.subr.bf16.mxu0 %v3090_v62  ;;  %v1193_v61 = vld [vmem:[%s4036_s4 + $0x1b90] sm:$0xff]  ;;  %v3622_v62 = vpack.c.bf16 %v1198_v55, %v1194_v54  ;;  %v3112_v4 = vpack.c.bf16 %v1195_v60, %v1191_v59  ;;  %v3640_v55 = vpack.c.bf16 %v1229_v49, %v1225_v47  ;;  %v1262_v25 = vld [vmem:[%s4036_s4 + $0x1db8] sm:$0xff]  ;;  %v1276_v47 = vld [vmem:[%s4036_s4 + $0x1e28] sm:$0xff] }
 0x1ee   : > { %3603 = vmatprep.subr.bf16.mxu1 %v3602_v2  ;;  %v1202_v2 = vld [vmem:[%s4036_s4 + $0x1bd8] sm:$0xff]  ;;  %v3624_v5 = vpack.c.bf16 %v1197_v63, %v1193_v61  ;;  %v1233_v59 = vld [vmem:[%s4036_s4 + $0x1cd0] sm:$0xff]  ;;  %v3642_v60 = vpack.c.bf16 %v1238_v53, %v1234_v52  ;;  %v1244_v63 = vld [vmem:[%s4036_s4 + $0x1d28] sm:$0xff] }
 0x1ef   : > { %v1237_v61 = vld [vmem:[%s4036_s4 + $0x1cf0] sm:$0xff]  ;;  %v1278_v49 = vld [vmem:[%s4036_s4 + $0x1e38] sm:$0xff]  ;;  %v1271_v53 = vld [vmem:[%s4036_s4 + $0x1e00] sm:$0xff] }
 0x1f0   : > { %3093 = vmatpush1.bf16.msra.mxu0 %v3092_v8  ;;  %v1203_v8 = vld [vmem:[%s4036_s4 + $0x1be0] sm:$0xff] }
 0x1f1   : > { %3605 = vmatpush1.bf16.msra.mxu1 %v3604_v9  ;;  %3095 = vmatprep.subr.bf16.mxu0 %v3094_v10  ;;  %v1201_v9 = vld [vmem:[%s4036_s4 + $0x1bd0] sm:$0xff]  ;;  %v3626_v10 = vpack.c.bf16 %v1206_v3, %v1202_v2  ;;  %v3116_v16 = vpack.c.bf16 %v1203_v8, %v1199_v7  ;;  %v3644_v3 = vpack.c.bf16 %v1237_v61, %v1233_v59  ;;  %v1284_v59 = vld [vmem:[%s4036_s4 + $0x1e68] sm:$0xff]  ;;  %v1286_v61 = vld [vmem:[%s4036_s4 + $0x1e78] sm:$0xff] }
 0x1f2   : > { %3607 = vmatprep.subr.bf16.mxu1 %v3606_v14  ;;  %v1210_v14 = vld [vmem:[%s4036_s4 + $0x1c18] sm:$0xff]  ;;  %v3628_v17 = vpack.c.bf16 %v1205_v11, %v1201_v9  ;;  %v1241_v7 = vld [vmem:[%s4036_s4 + $0x1d10] sm:$0xff]  ;;  %v3646_v8 = vpack.c.bf16 %v1246_v1, %v1242_v0  ;;  %v1252_v11 = vld [vmem:[%s4036_s4 + $0x1d68] sm:$0xff] }
 0x1f3   : > { %v1245_v9 = vld [vmem:[%s4036_s4 + $0x1d30] sm:$0xff]  ;;  %v1279_v1 = vld [vmem:[%s4036_s4 + $0x1e40] sm:$0xff] }
 0x1f4   : > { %3097 = vmatpush1.bf16.msra.mxu0 %v3096_v20  ;;  %v1211_v20 = vld [vmem:[%s4036_s4 + $0x1c20] sm:$0xff] }
 0x1f5   : > { %3609 = vmatpush1.bf16.msra.mxu1 %v3608_v21  ;;  %3099 = vmatprep.subr.bf16.mxu0 %v3098_v22  ;;  %v1209_v21 = vld [vmem:[%s4036_s4 + $0x1c10] sm:$0xff]  ;;  %v3630_v22 = vpack.c.bf16 %v1214_v15, %v1210_v14  ;;  %v3120_v29 = vpack.c.bf16 %v1211_v20, %v1207_v19  ;;  %v3648_v15 = vpack.c.bf16 %v1245_v9, %v1241_v7  ;;  %v1292_v7 = vld [vmem:[%s4036_s4 + $0x1ea8] sm:$0xff]  ;;  %v1294_v9 = vld [vmem:[%s4036_s4 + $0x1eb8] sm:$0xff] }
 0x1f6   : > { %3611 = vmatprep.subr.bf16.mxu1 %v3610_v26  ;;  %v1218_v26 = vld [vmem:[%s4036_s4 + $0x1c58] sm:$0xff]  ;;  %v3632_v30 = vpack.c.bf16 %v1213_v23, %v1209_v21  ;;  %v1249_v19 = vld [vmem:[%s4036_s4 + $0x1d50] sm:$0xff]  ;;  %v3650_v20 = vpack.c.bf16 %v1254_v13, %v1250_v12  ;;  %v1260_v23 = vld [vmem:[%s4036_s4 + $0x1da8] sm:$0xff] }
 0x1f7   : > { %v3634_v35 = vpack.c.bf16 %v1222_v27, %v1218_v26  ;;  %v1253_v21 = vld [vmem:[%s4036_s4 + $0x1d70] sm:$0xff]  ;;  %v1287_v13 = vld [vmem:[%s4036_s4 + $0x1e80] sm:$0xff] }
 0x1f8   : > { %3101 = vmatpush1.bf16.msra.mxu0 %v3100_v32  ;;  %v1215_v32 = vld [vmem:[%s4036_s4 + $0x1c40] sm:$0xff]  ;;  %v3652_v27 = vpack.c.bf16 %v1253_v21, %v1249_v19  ;;  %v1300_v19 = vld [vmem:[%s4036_s4 + $0x1ee8] sm:$0xff]  ;;  %v1302_v21 = vld [vmem:[%s4036_s4 + $0x1ef8] sm:$0xff] }
 0x1f9   : > { %3613 = vmatpush1.bf16.msra.mxu1 %v3612_v33  ;;  %3103 = vmatprep.subr.bf16.mxu0 %v3102_v34  ;;  %v1219_v33 = vld [vmem:[%s4036_s4 + $0x1c60] sm:$0xff]  ;;  %v1217_v34 = vld [vmem:[%s4036_s4 + $0x1c50] sm:$0xff] }
 0x1fa   : > { %3615 = vmatprep.subr.bf16.mxu1 %v3614_v38  ;;  %v1228_v38 = vld [vmem:[%s4036_s4 + $0x1ca8] sm:$0xff]  ;;  %v3124_v42 = vpack.c.bf16 %v1219_v33, %v1215_v32  ;;  %v3636_v43 = vpack.c.bf16 %v1221_v36, %v1217_v34  ;;  %v3654_v32 = vpack.c.bf16 %v1262_v25, %v1258_v24  ;;  %v1261_v33 = vld [vmem:[%s4036_s4 + $0x1db0] sm:$0xff]  ;;  %v1266_v36 = vld [vmem:[%s4036_s4 + $0x1dd8] sm:$0xff] }
 0x1fb   : > { %v1264_v34 = vld [vmem:[%s4036_s4 + $0x1dc8] sm:$0xff]  ;;  %v1295_v25 = vld [vmem:[%s4036_s4 + $0x1ec0] sm:$0xff] }
 0x1fc   : > { %3105 = vmatpush1.bf16.msra.mxu0 %v3104_v44  ;;  %v3126_v44 = vpack.c.bf16 %v1228_v38, %v1224_v37  ;;  %v1270_v37 = vld [vmem:[%s4036_s4 + $0x1df8] sm:$0xff] }
 0x1fd   : > { %3617 = vmatpush1.bf16.msra.mxu1 %v3616_v45  ;;  %3107 = vmatprep.subr.bf16.mxu0 %v3106_v46  ;;  %v1223_v45 = vld [vmem:[%s4036_s4 + $0x1c80] sm:$0xff] }
 0x1fe   : > { %3619 = vmatprep.subr.bf16.mxu1 %v3618_v50  ;;  %v1227_v46 = vld [vmem:[%s4036_s4 + $0x1ca0] sm:$0xff]  ;;  %v1232_v50 = vld [vmem:[%s4036_s4 + $0x1cc8] sm:$0xff] }
 0x1ff   : > { %v3128_v54 = vpack.c.bf16 %v1227_v46, %v1223_v45  ;;  %v1269_v45 = vld [vmem:[%s4036_s4 + $0x1df0] sm:$0xff]  ;;  %v1272_v46 = vld [vmem:[%s4036_s4 + $0x1e08] sm:$0xff] }
 0x200   : > { %3109 = vmatpush1.bf16.msra.mxu0 %v3108_v56  ;;  %v3130_v56 = vpack.c.bf16 %v1236_v51, %v1232_v50  ;;  %v3150_v52 = vpack.c.bf16 %v1276_v47, %v1272_v46 }
 0x201   : > { %3621 = vmatpush1.bf16.msra.mxu1 %v3620_v57  ;;  %3111 = vmatprep.subr.bf16.mxu0 %v3110_v58  ;;  %v1231_v57 = vld [vmem:[%s4036_s4 + $0x1cc0] sm:$0xff] }
 0x202   : > { %3623 = vmatprep.subr.bf16.mxu1 %v3622_v62  ;;  %v1235_v58 = vld [vmem:[%s4036_s4 + $0x1ce0] sm:$0xff]  ;;  %v1240_v62 = vld [vmem:[%s4036_s4 + $0x1d08] sm:$0xff] }
 0x203   : > { %v3132_v2 = vpack.c.bf16 %v1235_v58, %v1231_v57  ;;  %v1277_v57 = vld [vmem:[%s4036_s4 + $0x1e30] sm:$0xff]  ;;  %v1280_v58 = vld [vmem:[%s4036_s4 + $0x1e48] sm:$0xff] }
 0x204   : > { %3113 = vmatpush1.bf16.msra.mxu0 %v3112_v4  ;;  %v3134_v4 = vpack.c.bf16 %v1244_v63, %v1240_v62  ;;  %v3154_v0 = vpack.c.bf16 %v1284_v59, %v1280_v58 }
 0x205   : > { %3625 = vmatpush1.bf16.msra.mxu1 %v3624_v5  ;;  %3115 = vmatprep.subr.bf16.mxu0 %v3114_v6  ;;  %v1239_v5 = vld [vmem:[%s4036_s4 + $0x1d00] sm:$0xff] }
 0x206   : > { %3627 = vmatprep.subr.bf16.mxu1 %v3626_v10  ;;  %v1243_v6 = vld [vmem:[%s4036_s4 + $0x1d20] sm:$0xff]  ;;  %v1248_v10 = vld [vmem:[%s4036_s4 + $0x1d48] sm:$0xff] }
 0x207   : > { %v3136_v14 = vpack.c.bf16 %v1243_v6, %v1239_v5  ;;  %v1285_v5 = vld [vmem:[%s4036_s4 + $0x1e70] sm:$0xff]  ;;  %v1288_v6 = vld [vmem:[%s4036_s4 + $0x1e88] sm:$0xff] }
 0x208   : > { %3117 = vmatpush1.bf16.msra.mxu0 %v3116_v16  ;;  %v3138_v16 = vpack.c.bf16 %v1252_v11, %v1248_v10  ;;  %v3158_v12 = vpack.c.bf16 %v1292_v7, %v1288_v6 }
 0x209   : > { %3629 = vmatpush1.bf16.msra.mxu1 %v3628_v17  ;;  %3119 = vmatprep.subr.bf16.mxu0 %v3118_v18  ;;  %v1247_v17 = vld [vmem:[%s4036_s4 + $0x1d40] sm:$0xff] }
 0x20a   : > { %3631 = vmatprep.subr.bf16.mxu1 %v3630_v22  ;;  %v1251_v18 = vld [vmem:[%s4036_s4 + $0x1d60] sm:$0xff]  ;;  %v1256_v22 = vld [vmem:[%s4036_s4 + $0x1d88] sm:$0xff] }
 0x20b   : > { %1826 = vmatmul.mubr.f32.vlgmr.msra.gmra.mrb[0].mxu0 %v307_v28  ;;  %v3140_v26 = vpack.c.bf16 %v1251_v18, %v1247_v17  ;;  %v1293_v17 = vld [vmem:[%s4036_s4 + $0x1eb0] sm:$0xff]  ;;  %v1296_v18 = vld [vmem:[%s4036_s4 + $0x1ec8] sm:$0xff] }
 0x20c   : > { %3121 = vmatpush1.bf16.msra.mxu0 %v3120_v29  ;;  %2394 = vmatmul.mubr.f32.vlgmr.msra.gmra.mrb[0].mxu1 %v307_v28  ;;  %v3142_v28 = vpack.c.bf16 %v1260_v23, %v1256_v22  ;;  %v1255_v29 = vld [vmem:[%s4036_s4 + $0x1d80] sm:$0xff]  ;;  %v3162_v24 = vpack.c.bf16 %v1300_v19, %v1296_v18  ;;  %v293_v18 = vld [vmem:[#allocation2 + $0x10] sm:$0xff]  ;;  %v292_v19 = vld [vmem:[#allocation2 + $0x8] sm:$0xff] }
 0x20d   : > { %3633 = vmatpush1.bf16.msra.mxu1 %v3632_v30  ;;  %3123 = vmatprep.subr.bf16.mxu0 %v3122_v31  ;;  %v1259_v30 = vld [vmem:[%s4036_s4 + $0x1da0] sm:$0xff]  ;;  %v1257_v31 = vld [vmem:[%s4036_s4 + $0x1d90] sm:$0xff] }
 0x20e   : > { %3635 = vmatprep.subr.bf16.mxu1 %v3634_v35  ;;  %1896 = vmatprep.mubr.f32.mxu0 %v310_v41  ;;  %v1268_v35 = vld [vmem:[%s4036_s4 + $0x1de8] sm:$0xff]  ;;  %v3144_v38 = vpack.c.bf16 %v1259_v30, %v1255_v29  ;;  %v3656_v39 = vpack.c.bf16 %v1261_v33, %v1257_v31  ;;  %v1301_v29 = vld [vmem:[%s4036_s4 + $0x1ef0] sm:$0xff]  ;;  %v1310_v33 = vld [vmem:[%s4036_s4 + $0x1f38] sm:$0xff] }
 0x20f   : > { %2464 = vmatprep.mubr.f32.mxu1 %v310_v41  ;;  %v3146_v40 = vpack.c.bf16 %v1268_v35, %v1264_v34  ;;  %v1263_v41 = vld [vmem:[%s4036_s4 + $0x1dc0] sm:$0xff]  ;;  %v1304_v30 = vld [vmem:[%s4036_s4 + $0x1f08] sm:$0xff] }
 0x210   : > { %3125 = vmatpush1.bf16.msra.mxu0 %v3124_v42  ;;  %v1267_v42 = vld [vmem:[%s4036_s4 + $0x1de0] sm:$0xff]  ;;  %v1308_v31 = vld [vmem:[%s4036_s4 + $0x1f28] sm:$0xff] }
 0x211   : > { %3637 = vmatpush1.bf16.msra.mxu1 %v3636_v43  ;;  %3127 = vmatprep.subr.bf16.mxu0 %v3126_v44  ;;  %v1265_v43 = vld [vmem:[%s4036_s4 + $0x1dd0] sm:$0xff]  ;;  %v3658_v44 = vpack.c.bf16 %v1270_v37, %v1266_v36  ;;  %v3148_v50 = vpack.c.bf16 %v1267_v42, %v1263_v41  ;;  %v3166_v36 = vpack.c.bf16 %v1308_v31, %v1304_v30  ;;  %v1303_v37 = vld [vmem:[%s4036_s4 + $0x1f00] sm:$0xff]  ;;  %v1312_v42 = vld [vmem:[%s4036_s4 + $0x1f48] sm:$0xff] }
 0x212   : > { %3639 = vmatprep.subr.bf16.mxu1 %v3638_v48  ;;  %v1274_v48 = vld [vmem:[%s4036_s4 + $0x1e18] sm:$0xff]  ;;  %v3660_v51 = vpack.c.bf16 %v1269_v45, %v1265_v43  ;;  %v1309_v41 = vld [vmem:[%s4036_s4 + $0x1f30] sm:$0xff]  ;;  %v1316_v43 = vld [vmem:[%s4036_s4 + $0x1f68] sm:$0xff] }
 0x213   : > { %v1318_v45 = vld [vmem:[%s4036_s4 + $0x1f78] sm:$0xff]  ;;  %v2487_v31 = vld [vmem:[%s271_s8] sm:$0xf] (!%p2666_p6) }
 0x214   : > { %3129 = vmatpush1.bf16.msra.mxu0 %v3128_v54  ;;  %v1275_v54 = vld [vmem:[%s4036_s4 + $0x1e20] sm:$0xff] }
 0x215   : > { %3641 = vmatpush1.bf16.msra.mxu1 %v3640_v55  ;;  %3131 = vmatprep.subr.bf16.mxu0 %v3130_v56  ;;  %v1273_v55 = vld [vmem:[%s4036_s4 + $0x1e10] sm:$0xff]  ;;  %v3662_v56 = vpack.c.bf16 %v1278_v49, %v1274_v48  ;;  %v3152_v62 = vpack.c.bf16 %v1275_v54, %v1271_v53  ;;  %v3170_v48 = vpack.c.bf16 %v1316_v43, %v1312_v42  ;;  %v1311_v49 = vld [vmem:[%s4036_s4 + $0x1f40] sm:$0xff]  ;;  %v1320_v54 = vld [vmem:[%s4036_s4 + $0x1f88] sm:$0xff] }
 0x216   : > { %3643 = vmatprep.subr.bf16.mxu1 %v3642_v60  ;;  %v1282_v60 = vld [vmem:[%s4036_s4 + $0x1e58] sm:$0xff]  ;;  %v3664_v63 = vpack.c.bf16 %v1277_v57, %v1273_v55  ;;  %v1317_v53 = vld [vmem:[%s4036_s4 + $0x1f70] sm:$0xff]  ;;  %v1324_v55 = vld [vmem:[%s4036_s4 + $0x1fa8] sm:$0xff] }
 0x217   : > { %v1326_v57 = vld [vmem:[%s4036_s4 + $0x1fb8] sm:$0xff] }
 0x218   : > { %3133 = vmatpush1.bf16.msra.mxu0 %v3132_v2  ;;  %v1283_v2 = vld [vmem:[%s4036_s4 + $0x1e60] sm:$0xff] }
 0x219   : > { %3645 = vmatpush1.bf16.msra.mxu1 %v3644_v3  ;;  %3135 = vmatprep.subr.bf16.mxu0 %v3134_v4  ;;  %v1281_v3 = vld [vmem:[%s4036_s4 + $0x1e50] sm:$0xff]  ;;  %v3666_v4 = vpack.c.bf16 %v1286_v61, %v1282_v60  ;;  %v3156_v10 = vpack.c.bf16 %v1283_v2, %v1279_v1  ;;  %v3174_v60 = vpack.c.bf16 %v1324_v55, %v1320_v54  ;;  %v1319_v61 = vld [vmem:[%s4036_s4 + $0x1f80] sm:$0xff]  ;;  %v1328_v2 = vld [vmem:[%s4036_s4 + $0x1fc8] sm:$0xff] }
 0x21a   : > { %3647 = vmatprep.subr.bf16.mxu1 %v3646_v8  ;;  %v1290_v8 = vld [vmem:[%s4036_s4 + $0x1e98] sm:$0xff]  ;;  %v3668_v11 = vpack.c.bf16 %v1285_v5, %v1281_v3  ;;  %v1325_v1 = vld [vmem:[%s4036_s4 + $0x1fb0] sm:$0xff]  ;;  %v1332_v3 = vld [vmem:[%s4036_s4 + $0x1fe8] sm:$0xff] }
 0x21b   : > { %v1334_v5 = vld [vmem:[%s4036_s4 + $0x1ff8] sm:$0xff] }
 0x21c   : > { %3137 = vmatpush1.bf16.msra.mxu0 %v3136_v14  ;;  %v1291_v14 = vld [vmem:[%s4036_s4 + $0x1ea0] sm:$0xff] }
 0x21d   : > { %3649 = vmatpush1.bf16.msra.mxu1 %v3648_v15  ;;  %3139 = vmatprep.subr.bf16.mxu0 %v3138_v16  ;;  %v1289_v15 = vld [vmem:[%s4036_s4 + $0x1e90] sm:$0xff]  ;;  %v3670_v16 = vpack.c.bf16 %v1294_v9, %v1290_v8  ;;  %v3160_v22 = vpack.c.bf16 %v1291_v14, %v1287_v13  ;;  %v3178_v8 = vpack.c.bf16 %v1332_v3, %v1328_v2  ;;  %v1327_v9 = vld [vmem:[%s4036_s4 + $0x1fc0] sm:$0xff] }
 0x21e   : > { %3651 = vmatprep.subr.bf16.mxu1 %v3650_v20  ;;  %v1298_v20 = vld [vmem:[%s4036_s4 + $0x1ed8] sm:$0xff]  ;;  %v3672_v23 = vpack.c.bf16 %v1293_v17, %v1289_v15  ;;  %v1333_v13 = vld [vmem:[%s4036_s4 + $0x1ff0] sm:$0xff]  ;;  %v291_v17 = vld [vmem:[#allocation2] sm:$0xff] }
 0x220   : > { %3141 = vmatpush1.bf16.msra.mxu0 %v3140_v26  ;;  %v1299_v26 = vld [vmem:[%s4036_s4 + $0x1ee0] sm:$0xff] }
 0x221   : > { %3653 = vmatpush1.bf16.msra.mxu1 %v3652_v27  ;;  %3143 = vmatprep.subr.bf16.mxu0 %v3142_v28  ;;  %v1297_v27 = vld [vmem:[%s4036_s4 + $0x1ed0] sm:$0xff]  ;;  %v3674_v28 = vpack.c.bf16 %v1302_v21, %v1298_v20  ;;  %v3164_v34 = vpack.c.bf16 %v1299_v26, %v1295_v25  ;;  %v294_v21 = vld [vmem:[#allocation2 + $0x18] sm:$0xff] }
 0x222   : > { %3655 = vmatprep.subr.bf16.mxu1 %v3654_v32  ;;  %v1306_v32 = vld [vmem:[%s4036_s4 + $0x1f18] sm:$0xff]  ;;  %v3676_v35 = vpack.c.bf16 %v1301_v29, %v1297_v27  ;;  %v2489_v29 = vlaneseq (!%p2666_p6) }
 0x224   : > { %3145 = vmatpush1.bf16.msra.mxu0 %v3144_v38  ;;  %v1307_v38 = vld [vmem:[%s4036_s4 + $0x1f20] sm:$0xff]  ;;  %v2490_v30 = vshrl.u32 (!%p2666_p6), %v2489_v29, 7 }
 0x225   : > { %3657 = vmatpush1.bf16.msra.mxu1 %v3656_v39  ;;  %3147 = vmatprep.subr.bf16.mxu0 %v3146_v40  ;;  %v1305_v39 = vld [vmem:[%s4036_s4 + $0x1f10] sm:$0xff]  ;;  %v3678_v40 = vpack.c.bf16 %v1310_v33, %v1306_v32  ;;  %v3168_v46 = vpack.c.bf16 %v1307_v38, %v1303_v37 }
 0x226   : > { %3659 = vmatprep.subr.bf16.mxu1 %v3658_v44  ;;  %v1314_v44 = vld [vmem:[%s4036_s4 + $0x1f58] sm:$0xff]  ;;  %v3680_v47 = vpack.c.bf16 %v1309_v41, %v1305_v39  ;;  %v2491_v33 = vsub.s32 (!%p2666_p6), 0, %v2490_v30 }
 0x228   : > { %3149 = vmatpush1.bf16.msra.mxu0 %v3148_v50  ;;  %v1315_v50 = vld [vmem:[%s4036_s4 + $0x1f60] sm:$0xff] }
 0x229   : > { %3661 = vmatpush1.bf16.msra.mxu1 %v3660_v51  ;;  %3151 = vmatprep.subr.bf16.mxu0 %v3150_v52  ;;  %v1313_v51 = vld [vmem:[%s4036_s4 + $0x1f50] sm:$0xff]  ;;  %v3682_v52 = vpack.c.bf16 %v1318_v45, %v1314_v44  ;;  %v3172_v58 = vpack.c.bf16 %v1315_v50, %v1311_v49 }
 0x22a   : > { %3663 = vmatprep.subr.bf16.mxu1 %v3662_v56  ;;  %v1322_v56 = vld [vmem:[%s4036_s4 + $0x1f98] sm:$0xff]  ;;  %v3684_v59 = vpack.c.bf16 %v1317_v53, %v1313_v51 }
 0x22c   : > { %3153 = vmatpush1.bf16.msra.mxu0 %v3152_v62  ;;  %v1323_v62 = vld [vmem:[%s4036_s4 + $0x1fa0] sm:$0xff] }
 0x22d   : > { %3665 = vmatpush1.bf16.msra.mxu1 %v3664_v63  ;;  %3155 = vmatprep.subr.bf16.mxu0 %v3154_v0  ;;  %v1321_v63 = vld [vmem:[%s4036_s4 + $0x1f90] sm:$0xff]  ;;  %v3686_v0 = vpack.c.bf16 %v1326_v57, %v1322_v56  ;;  %v3176_v6 = vpack.c.bf16 %v1323_v62, %v1319_v61 }
 0x22e   : > { %3667 = vmatprep.subr.bf16.mxu1 %v3666_v4  ;;  %v1330_v4 = vld [vmem:[%s4036_s4 + $0x1fd8] sm:$0xff]  ;;  %v3688_v7 = vpack.c.bf16 %v1325_v1, %v1321_v63 }
 0x230   : > { %3157 = vmatpush1.bf16.msra.mxu0 %v3156_v10  ;;  %v1331_v10 = vld [vmem:[%s4036_s4 + $0x1fe0] sm:$0xff] }
 0x231   : > { %3669 = vmatpush1.bf16.msra.mxu1 %v3668_v11  ;;  %3159 = vmatprep.subr.bf16.mxu0 %v3158_v12  ;;  %v3690_v11 = vpack.c.bf16 %v1334_v5, %v1330_v4  ;;  %v1329_v12 = vld [vmem:[%s4036_s4 + $0x1fd0] sm:$0xff]  ;;  %v3180_v14 = vpack.c.bf16 %v1331_v10, %v1327_v9 }
 0x232   : > { %3671 = vmatprep.subr.bf16.mxu1 %v3670_v16  ;;  %v3692_v15 = vpack.c.bf16 %v1333_v13, %v1329_v12  ;;  %v309_v16 = vld [vmem:[%s4049_s29 + $0x70] sm:$0xff] }
 0x234   : > { %3161 = vmatpush1.bf16.msra.mxu0 %v3160_v22 }
 0x235   : > { %3673 = vmatpush1.bf16.msra.mxu1 %v3672_v23  ;;  %3163 = vmatprep.subr.bf16.mxu0 %v3162_v24 }
 0x236   : > { %3675 = vmatprep.subr.bf16.mxu1 %v3674_v28 }
 0x238   : > { %3165 = vmatpush1.bf16.msra.mxu0 %v3164_v34  ;;  %v2495_v34 = vsub.s32 (!%p2666_p6), 1, %v2490_v30 }
 0x239   : > { %3677 = vmatpush1.bf16.msra.mxu1 %v3676_v35  ;;  %3167 = vmatprep.subr.bf16.mxu0 %v3166_v36  ;;  %v2499_v35 = vsub.s32 (!%p2666_p6), 2, %v2490_v30  ;;  %v2503_v36 = vsub.s32 (!%p2666_p6), 3, %v2490_v30 }
 0x23a   : > { %3679 = vmatprep.subr.bf16.mxu1 %v3678_v40  ;;  %v2492_v40 = vrot.slane (!%p2666_p6), %v2487_v31, %v2491_v33  ;;  %v2496_v41 = vrot.slane (!%p2666_p6), %v2487_v31, %v2495_v34 }
 0x23b   : > { %v2500_v42 = vrot.slane (!%p2666_p6), %v2487_v31, %v2499_v35  ;;  %v2504_v43 = vrot.slane (!%p2666_p6), %v2487_v31, %v2503_v36 }
 0x23c   : > { %3169 = vmatpush1.bf16.msra.mxu0 %v3168_v46 }
 0x23d   : > { %3681 = vmatpush1.bf16.msra.mxu1 %v3680_v47  ;;  %3171 = vmatprep.subr.bf16.mxu0 %v3170_v48 }
 0x23e   : > { %3683 = vmatprep.subr.bf16.mxu1 %v3682_v52 }
 0x240   : > { %3173 = vmatpush1.bf16.msra.mxu0 %v3172_v58 }
 0x241   : > { %3685 = vmatpush1.bf16.msra.mxu1 %v3684_v59  ;;  %3175 = vmatprep.subr.bf16.mxu0 %v3174_v60 }
 0x242   : > { %3687 = vmatprep.subr.bf16.mxu1 %v3686_v0 }
 0x244   : > { %3177 = vmatpush1.bf16.msra.mxu0 %v3176_v6 }
 0x245   : > { %3689 = vmatpush1.bf16.msra.mxu1 %v3688_v7  ;;  %3179 = vmatprep.subr.bf16.mxu0 %v3178_v8 }
 0x246   : > { %3691 = vmatprep.subr.bf16.mxu1 %v3690_v11 }
 0x248   : > { %3181 = vmatpush1.bf16.msra.mxu0 %v3180_v14 }
 0x249   : > { %3693 = vmatpush1.bf16.msra.mxu1 %v3692_v15 }
 0x24b   : > { %1897 = vmatmul.mubr.f32.vlgmr.msra.gmra.mrb[0].mxu0 %v309_v16 }
 0x24c   : > { %2465 = vmatmul.mubr.f32.vlgmr.msra.gmra.mrb[0].mxu1 %v309_v16 }
 0x31d   : > { %2482 = sbr.rel (%p2666_p6) target bundleno = 816 (0x330), region = 44 }
 0x31e   : > { %v1898_v20 = vpop.f32.mrb[0].mxu0 }
 0x31f   : > { %v2471_v22 = vadd.f32 %v1898_v20, %v291_v17  ;;  %v2466_v23 = vpop.f32.mrb[0].mxu1  ;;  %v1900_v24 = vpop.f32.mrb[1].mxu0 }
 0x320   : > { %v2473_v25 = vadd.f32 %v2466_v23, %v293_v18  ;;  %v2472_v26 = vadd.f32 %v1900_v24, %v292_v19  ;;  %v2468_v27 = vpop.f32.mrb[1].mxu1 }
 0x321   : > { %2475 = vst [vmem:[#allocation2] sm:$0xff] %v2471_v22  ;;  %v2474_v28 = vadd.f32 %v2468_v27, %v294_v21 }
 0x322   : > { %2477 = vst [vmem:[#allocation2 + $0x10] sm:$0xff] %v2473_v25  ;;  %2476 = vst [vmem:[#allocation2 + $0x8] sm:$0xff] %v2472_v26 }
 0x323   : > { %2478 = vst [vmem:[#allocation2 + $0x18] sm:$0xff] %v2474_v28 }
 0x328   : > { %v2483_v32 = vld [vmem:[#allocation2] sm:$0xff] }
 0x329   : > { %v2484_v37 = vld [vmem:[#allocation2 + $0x8] sm:$0xff]  ;;  %v2485_v38 = vld [vmem:[#allocation2 + $0x10] sm:$0xff]  ;;  %v2509_v44 = vadd.f32 %v2492_v40, %v2483_v32 }
 0x32a   : > { %v2486_v39 = vld [vmem:[#allocation2 + $0x18] sm:$0xff]  ;;  %v2510_v45 = vadd.f32 %v2496_v41, %v2484_v37  ;;  %v2511_v46 = vadd.f32 %v2500_v42, %v2485_v38 }
 0x32b   : > { %v2512_v47 = vadd.f32 %v2504_v43, %v2486_v39  ;;  %v2513_v48 = vmax.f32 %v2509_v44, 0.0 }
 0x32c   : > { %v2514_v49 = vmax.f32 %v2510_v45, 0.0  ;;  %v2515_v50 = vmax.f32 %v2511_v46, 0.0 }
 0x32d   : > { %v2516_v51 = vmax.f32 %v2512_v47, 0.0  ;;  %2517 = vst [vmem:[%s4059_s12] sm:$0xff] %v2513_v48 }
 0x32e   : > { %2518 = vst [vmem:[%s4059_s12 + $0x8] sm:$0xff] %v2514_v49  ;;  %2519 = vst [vmem:[%s4059_s12 + $0x10] sm:$0xff] %v2515_v50 }
 0x32f   : > { %2520 = vst [vmem:[%s4059_s12 + $0x18] sm:$0xff] %v2516_v51 }
 0x330 PF: > { %s16_s19 = sadd.s32 1, %s3893_s19   ;;  %s5143_s12 = smov %s3869_s13 }
 0x331   : > { %p13_p8 = scmp.ge.s32.totalorder %s16_s19, 68   ;;  %s5144_s13 = smov %s3873_s14 }
 0x332   : > { %s5145_s14 = smov %s3987_s5  ;;  %s5146_s15 = smov %s3885_s17 }
 0x333   : > { %s5147_s16 = smov %s3889_s18  ;;  %s5148_s17 = smov %s5151_s21 }
 0x334   : > { %s5149_s18 = smov %s5155_s22  ;;  %15 = sbr.rel (!%p13_p8) target bundleno = 5 (0x5), region = 86 }
 0x33b   :  { %2551 = vsyncpa [#allocation4], 1 }
 0x33c   :  { %2553 = vsyncpa [#allocation4 + $0x1], 1 }

// kernel: mixed_resolution_cnn_forward.6
= control target key start
LH: loop header
LB: loop body
LE: loop exit
PB: predicated region body
PF: predicated region fallthrough
CT: control target
= control target key end

     0   :  { %s1667_s1 = inlined_call_operand.vmem [shape: f32[1024,256], index: 1, kind: input, shape index: {}]   ;;  %s1668_s0 = inlined_call_operand.vmem [shape: f32[8,1024], index: 0, kind: input, shape index: {}]   ;;  %s1669_s2 = inlined_call_operand.vmem [shape: f32[1,256], index: 2, kind: input, shape index: {}]   ;;  %s1670_s3 = inlined_call_operand.vmem [shape: f32[8,256], index: 3, kind: output, shape index: {}]  }
   0x1   :  { %v23_v0 = vld [vmem:[%s1667_s1 + $0x8] sm:$0xff]  ;;  %v25_v1 = vld [vmem:[%s1667_s1 + $0x18] sm:$0xff]  ;;  %v22_v5 = vld [vmem:[%s1667_s1] sm:$0xff] }
   0x2   :  { %v151_v2 = vld [vmem:[%s1667_s1 + $0x408] sm:$0xff]  ;;  %v582_v3 = vpack.c.bf16 %v25_v1, %v23_v0  ;;  %v153_v4 = vld [vmem:[%s1667_s1 + $0x418] sm:$0xff]  ;;  %v24_v6 = vld [vmem:[%s1667_s1 + $0x10] sm:$0xff] }
   0x3   :  { %v710_v7 = vpack.c.bf16 %v153_v4, %v151_v2  ;;  %v584_v8 = vpack.c.bf16 %v24_v6, %v22_v5  ;;  %v150_v9 = vld [vmem:[%s1667_s1 + $0x400] sm:$0xff]  ;;  %v152_v10 = vld [vmem:[%s1667_s1 + $0x410] sm:$0xff]  ;;  %v27_v11 = vld [vmem:[%s1667_s1 + $0x28] sm:$0xff] }
   0x4   :  { %583 = vmatprep.subr.bf16.mxu1 %v582_v3  ;;  %v712_v12 = vpack.c.bf16 %v152_v10, %v150_v9  ;;  %v29_v13 = vld [vmem:[%s1667_s1 + $0x38] sm:$0xff]  ;;  %v155_v14 = vld [vmem:[%s1667_s1 + $0x428] sm:$0xff]  ;;  %v26_v18 = vld [vmem:[%s1667_s1 + $0x20] sm:$0xff] }
   0x5   :  { %v157_v15 = vld [vmem:[%s1667_s1 + $0x438] sm:$0xff]  ;;  %711 = vmatprep.subr.bf16.mxu0 %v710_v7  ;;  %585 = vmatpush1.bf16.msra.mxu1 %v584_v8  ;;  %v586_v16 = vpack.c.bf16 %v29_v13, %v27_v11  ;;  %v28_v19 = vld [vmem:[%s1667_s1 + $0x30] sm:$0xff]  ;;  %v154_v20 = vld [vmem:[%s1667_s1 + $0x420] sm:$0xff] }
   0x6   :  { %v714_v17 = vpack.c.bf16 %v157_v15, %v155_v14  ;;  %713 = vmatpush1.bf16.msra.mxu0 %v712_v12  ;;  %v588_v21 = vpack.c.bf16 %v28_v19, %v26_v18  ;;  %v156_v22 = vld [vmem:[%s1667_s1 + $0x430] sm:$0xff]  ;;  %v31_v23 = vld [vmem:[%s1667_s1 + $0x48] sm:$0xff]  ;;  %v33_v24 = vld [vmem:[%s1667_s1 + $0x58] sm:$0xff] }
   0x7   :  { %587 = vmatprep.subr.bf16.mxu1 %v586_v16  ;;  %v716_v25 = vpack.c.bf16 %v156_v22, %v154_v20  ;;  %v590_v26 = vpack.c.bf16 %v33_v24, %v31_v23  ;;  %v159_v27 = vld [vmem:[%s1667_s1 + $0x448] sm:$0xff]  ;;  %v161_v28 = vld [vmem:[%s1667_s1 + $0x458] sm:$0xff]  ;;  %v30_v29 = vld [vmem:[%s1667_s1 + $0x40] sm:$0xff] }
   0x8   :  { %715 = vmatprep.subr.bf16.mxu0 %v714_v17  ;;  %v718_v30 = vpack.c.bf16 %v161_v28, %v159_v27  ;;  %v32_v31 = vld [vmem:[%s1667_s1 + $0x50] sm:$0xff]  ;;  %v158_v32 = vld [vmem:[%s1667_s1 + $0x440] sm:$0xff]  ;;  %v35_v35 = vld [vmem:[%s1667_s1 + $0x68] sm:$0xff] }
   0x9   :  { %v160_v33 = vld [vmem:[%s1667_s1 + $0x450] sm:$0xff]  ;;  %589 = vmatpush1.bf16.msra.mxu1 %v588_v21  ;;  %v592_v34 = vpack.c.bf16 %v32_v31, %v30_v29  ;;  %v37_v36 = vld [vmem:[%s1667_s1 + $0x78] sm:$0xff]  ;;  %v163_v37 = vld [vmem:[%s1667_s1 + $0x468] sm:$0xff] }
   0xa   :  { %717 = vmatpush1.bf16.msra.mxu0 %v716_v25  ;;  %591 = vmatprep.subr.bf16.mxu1 %v590_v26  ;;  %v720_v38 = vpack.c.bf16 %v160_v33, %v158_v32  ;;  %v594_v39 = vpack.c.bf16 %v37_v36, %v35_v35  ;;  %v165_v40 = vld [vmem:[%s1667_s1 + $0x478] sm:$0xff]  ;;  %v34_v41 = vld [vmem:[%s1667_s1 + $0x60] sm:$0xff]  ;;  %v36_v42 = vld [vmem:[%s1667_s1 + $0x70] sm:$0xff] }
   0xb   :  { %719 = vmatprep.subr.bf16.mxu0 %v718_v30  ;;  %v722_v43 = vpack.c.bf16 %v165_v40, %v163_v37  ;;  %v162_v44 = vld [vmem:[%s1667_s1 + $0x460] sm:$0xff]  ;;  %v164_v45 = vld [vmem:[%s1667_s1 + $0x470] sm:$0xff]  ;;  %v39_v46 = vld [vmem:[%s1667_s1 + $0x88] sm:$0xff]  ;;  %v596_v50 = vpack.c.bf16 %v36_v42, %v34_v41 }
   0xc   :  { %v41_v47 = vld [vmem:[%s1667_s1 + $0x98] sm:$0xff]  ;;  %v167_v48 = vld [vmem:[%s1667_s1 + $0x488] sm:$0xff]  ;;  %v724_v51 = vpack.c.bf16 %v164_v45, %v162_v44  ;;  %v38_v53 = vld [vmem:[%s1667_s1 + $0x80] sm:$0xff] }
   0xd   :  { %v169_v49 = vld [vmem:[%s1667_s1 + $0x498] sm:$0xff]  ;;  %593 = vmatpush1.bf16.msra.mxu1 %v592_v34  ;;  %v598_v52 = vpack.c.bf16 %v41_v47, %v39_v46  ;;  %v40_v54 = vld [vmem:[%s1667_s1 + $0x90] sm:$0xff]  ;;  %v166_v55 = vld [vmem:[%s1667_s1 + $0x480] sm:$0xff] }
   0xe   :  { %721 = vmatpush1.bf16.msra.mxu0 %v720_v38  ;;  %595 = vmatprep.subr.bf16.mxu1 %v594_v39  ;;  %v726_v56 = vpack.c.bf16 %v169_v49, %v167_v48  ;;  %v168_v57 = vld [vmem:[%s1667_s1 + $0x490] sm:$0xff]  ;;  %v43_v58 = vld [vmem:[%s1667_s1 + $0xa8] sm:$0xff]  ;;  %v45_v59 = vld [vmem:[%s1667_s1 + $0xb8] sm:$0xff]  ;;  %v600_v62 = vpack.c.bf16 %v40_v54, %v38_v53 }
   0xf   :  { %723 = vmatprep.subr.bf16.mxu0 %v722_v43  ;;  %v171_v60 = vld [vmem:[%s1667_s1 + $0x4a8] sm:$0xff]  ;;  %v173_v61 = vld [vmem:[%s1667_s1 + $0x4b8] sm:$0xff]  ;;  %v728_v63 = vpack.c.bf16 %v168_v57, %v166_v55  ;;  %v602_v0 = vpack.c.bf16 %v45_v59, %v43_v58  ;;  %v42_v1 = vld [vmem:[%s1667_s1 + $0xa0] sm:$0xff] }
  0x10   :  { %v44_v2 = vld [vmem:[%s1667_s1 + $0xb0] sm:$0xff]  ;;  %v170_v3 = vld [vmem:[%s1667_s1 + $0x4a0] sm:$0xff]  ;;  %v730_v4 = vpack.c.bf16 %v173_v61, %v171_v60  ;;  %v47_v6 = vld [vmem:[%s1667_s1 + $0xc8] sm:$0xff] }
  0x11   :  { %597 = vmatpush1.bf16.msra.mxu1 %v596_v50  ;;  %v172_v5 = vld [vmem:[%s1667_s1 + $0x4b0] sm:$0xff]  ;;  %v49_v7 = vld [vmem:[%s1667_s1 + $0xd8] sm:$0xff]  ;;  %v175_v8 = vld [vmem:[%s1667_s1 + $0x4c8] sm:$0xff]  ;;  %v604_v10 = vpack.c.bf16 %v44_v2, %v42_v1 }
  0x12   :  { %725 = vmatpush1.bf16.msra.mxu0 %v724_v51  ;;  %599 = vmatprep.subr.bf16.mxu1 %v598_v52  ;;  %v177_v9 = vld [vmem:[%s1667_s1 + $0x4d8] sm:$0xff]  ;;  %v732_v11 = vpack.c.bf16 %v172_v5, %v170_v3  ;;  %v606_v12 = vpack.c.bf16 %v49_v7, %v47_v6  ;;  %v46_v13 = vld [vmem:[%s1667_s1 + $0xc0] sm:$0xff]  ;;  %v48_v14 = vld [vmem:[%s1667_s1 + $0xd0] sm:$0xff] }
  0x13   :  { %727 = vmatprep.subr.bf16.mxu0 %v726_v56  ;;  %v174_v15 = vld [vmem:[%s1667_s1 + $0x4c0] sm:$0xff]  ;;  %v734_v16 = vpack.c.bf16 %v177_v9, %v175_v8  ;;  %v176_v17 = vld [vmem:[%s1667_s1 + $0x4d0] sm:$0xff]  ;;  %v51_v18 = vld [vmem:[%s1667_s1 + $0xe8] sm:$0xff]  ;;  %v608_v22 = vpack.c.bf16 %v48_v14, %v46_v13 }
  0x14   :  { %v53_v19 = vld [vmem:[%s1667_s1 + $0xf8] sm:$0xff]  ;;  %v179_v20 = vld [vmem:[%s1667_s1 + $0x4e8] sm:$0xff]  ;;  %v736_v23 = vpack.c.bf16 %v176_v17, %v174_v15  ;;  %v50_v25 = vld [vmem:[%s1667_s1 + $0xe0] sm:$0xff] }
  0x15   :  { %601 = vmatpush1.bf16.msra.mxu1 %v600_v62  ;;  %v181_v21 = vld [vmem:[%s1667_s1 + $0x4f8] sm:$0xff]  ;;  %v610_v24 = vpack.c.bf16 %v53_v19, %v51_v18  ;;  %v52_v26 = vld [vmem:[%s1667_s1 + $0xf0] sm:$0xff]  ;;  %v178_v27 = vld [vmem:[%s1667_s1 + $0x4e0] sm:$0xff] }
  0x16   :  { %729 = vmatpush1.bf16.msra.mxu0 %v728_v63  ;;  %603 = vmatprep.subr.bf16.mxu1 %v602_v0  ;;  %v738_v28 = vpack.c.bf16 %v181_v21, %v179_v20  ;;  %v180_v29 = vld [vmem:[%s1667_s1 + $0x4f0] sm:$0xff]  ;;  %v55_v30 = vld [vmem:[%s1667_s1 + $0x108] sm:$0xff]  ;;  %v57_v31 = vld [vmem:[%s1667_s1 + $0x118] sm:$0xff]  ;;  %v612_v34 = vpack.c.bf16 %v52_v26, %v50_v25 }
  0x17   :  { %731 = vmatprep.subr.bf16.mxu0 %v730_v4  ;;  %v183_v32 = vld [vmem:[%s1667_s1 + $0x508] sm:$0xff]  ;;  %v185_v33 = vld [vmem:[%s1667_s1 + $0x518] sm:$0xff]  ;;  %v740_v35 = vpack.c.bf16 %v180_v29, %v178_v27  ;;  %v614_v36 = vpack.c.bf16 %v57_v31, %v55_v30  ;;  %v54_v37 = vld [vmem:[%s1667_s1 + $0x100] sm:$0xff] }
  0x18   :  { %v56_v38 = vld [vmem:[%s1667_s1 + $0x110] sm:$0xff]  ;;  %v182_v39 = vld [vmem:[%s1667_s1 + $0x500] sm:$0xff]  ;;  %v742_v40 = vpack.c.bf16 %v185_v33, %v183_v32  ;;  %v59_v42 = vld [vmem:[%s1667_s1 + $0x128] sm:$0xff] }
  0x19   :  { %605 = vmatpush1.bf16.msra.mxu1 %v604_v10  ;;  %v184_v41 = vld [vmem:[%s1667_s1 + $0x510] sm:$0xff]  ;;  %v61_v43 = vld [vmem:[%s1667_s1 + $0x138] sm:$0xff]  ;;  %v187_v44 = vld [vmem:[%s1667_s1 + $0x528] sm:$0xff]  ;;  %v616_v46 = vpack.c.bf16 %v56_v38, %v54_v37 }
  0x1a   :  { %733 = vmatpush1.bf16.msra.mxu0 %v732_v11  ;;  %607 = vmatprep.subr.bf16.mxu1 %v606_v12  ;;  %v189_v45 = vld [vmem:[%s1667_s1 + $0x538] sm:$0xff]  ;;  %v744_v47 = vpack.c.bf16 %v184_v41, %v182_v39  ;;  %v618_v48 = vpack.c.bf16 %v61_v43, %v59_v42  ;;  %v58_v49 = vld [vmem:[%s1667_s1 + $0x120] sm:$0xff]  ;;  %v60_v50 = vld [vmem:[%s1667_s1 + $0x130] sm:$0xff] }
  0x1b   :  { %735 = vmatprep.subr.bf16.mxu0 %v734_v16  ;;  %v186_v51 = vld [vmem:[%s1667_s1 + $0x520] sm:$0xff]  ;;  %v746_v52 = vpack.c.bf16 %v189_v45, %v187_v44  ;;  %v188_v53 = vld [vmem:[%s1667_s1 + $0x530] sm:$0xff]  ;;  %v63_v54 = vld [vmem:[%s1667_s1 + $0x148] sm:$0xff]  ;;  %v620_v58 = vpack.c.bf16 %v60_v50, %v58_v49 }
  0x1c   :  { %v65_v55 = vld [vmem:[%s1667_s1 + $0x158] sm:$0xff]  ;;  %v191_v56 = vld [vmem:[%s1667_s1 + $0x548] sm:$0xff]  ;;  %v748_v59 = vpack.c.bf16 %v188_v53, %v186_v51  ;;  %v62_v61 = vld [vmem:[%s1667_s1 + $0x140] sm:$0xff] }
  0x1d   :  { %609 = vmatpush1.bf16.msra.mxu1 %v608_v22  ;;  %v193_v57 = vld [vmem:[%s1667_s1 + $0x558] sm:$0xff]  ;;  %v622_v60 = vpack.c.bf16 %v65_v55, %v63_v54  ;;  %v64_v62 = vld [vmem:[%s1667_s1 + $0x150] sm:$0xff]  ;;  %v190_v63 = vld [vmem:[%s1667_s1 + $0x540] sm:$0xff] }
  0x1e   :  { %737 = vmatpush1.bf16.msra.mxu0 %v736_v23  ;;  %611 = vmatprep.subr.bf16.mxu1 %v610_v24  ;;  %v750_v0 = vpack.c.bf16 %v193_v57, %v191_v56  ;;  %v192_v1 = vld [vmem:[%s1667_s1 + $0x550] sm:$0xff]  ;;  %v67_v2 = vld [vmem:[%s1667_s1 + $0x168] sm:$0xff]  ;;  %v69_v3 = vld [vmem:[%s1667_s1 + $0x178] sm:$0xff]  ;;  %v624_v6 = vpack.c.bf16 %v64_v62, %v62_v61 }
  0x1f   :  { %739 = vmatprep.subr.bf16.mxu0 %v738_v28  ;;  %v195_v4 = vld [vmem:[%s1667_s1 + $0x568] sm:$0xff]  ;;  %v197_v5 = vld [vmem:[%s1667_s1 + $0x578] sm:$0xff]  ;;  %v66_v7 = vld [vmem:[%s1667_s1 + $0x160] sm:$0xff]  ;;  %v752_v8 = vpack.c.bf16 %v192_v1, %v190_v63  ;;  %v626_v9 = vpack.c.bf16 %v69_v3, %v67_v2 }
  0x20   :  { %v68_v10 = vld [vmem:[%s1667_s1 + $0x170] sm:$0xff]  ;;  %v194_v11 = vld [vmem:[%s1667_s1 + $0x560] sm:$0xff]  ;;  %v754_v13 = vpack.c.bf16 %v197_v5, %v195_v4  ;;  %v71_v14 = vld [vmem:[%s1667_s1 + $0x188] sm:$0xff] }
  0x21   :  { %613 = vmatpush1.bf16.msra.mxu1 %v612_v34  ;;  %v196_v12 = vld [vmem:[%s1667_s1 + $0x570] sm:$0xff]  ;;  %v73_v15 = vld [vmem:[%s1667_s1 + $0x198] sm:$0xff]  ;;  %v15_v16 = vld [vmem:[%s1668_s0 + $0x8] sm:$0xff]  ;;  %v628_v20 = vpack.c.bf16 %v68_v10, %v66_v7 }
  0x22   :  { %741 = vmatpush1.bf16.msra.mxu0 %v740_v35  ;;  %615 = vmatprep.subr.bf16.mxu1 %v614_v36  ;;  %v199_v17 = vld [vmem:[%s1667_s1 + $0x588] sm:$0xff]  ;;  %v201_v18 = vld [vmem:[%s1667_s1 + $0x598] sm:$0xff]  ;;  %v756_v21 = vpack.c.bf16 %v196_v12, %v194_v11  ;;  %v630_v22 = vpack.c.bf16 %v73_v15, %v71_v14  ;;  %v70_v23 = vld [vmem:[%s1667_s1 + $0x180] sm:$0xff] }
  0x23   :  { %743 = vmatprep.subr.bf16.mxu0 %v742_v40  ;;  %354 = vmatprep.mubr.f32.mxu1 %v15_v16  ;;  %v19_v19 = vld [vmem:[%s1668_s0 + $0x28] sm:$0xff]  ;;  %v72_v24 = vld [vmem:[%s1667_s1 + $0x190] sm:$0xff]  ;;  %v198_v25 = vld [vmem:[%s1667_s1 + $0x580] sm:$0xff]  ;;  %v758_v26 = vpack.c.bf16 %v201_v18, %v199_v17 }
  0x24   :  { %496 = vmatprep.mubr.f32.mxu0 %v19_v19  ;;  %v200_v27 = vld [vmem:[%s1667_s1 + $0x590] sm:$0xff]  ;;  %v75_v28 = vld [vmem:[%s1667_s1 + $0x1a8] sm:$0xff]  ;;  %v77_v29 = vld [vmem:[%s1667_s1 + $0x1b8] sm:$0xff]  ;;  %v632_v32 = vpack.c.bf16 %v72_v24, %v70_v23 }
  0x25   :  { %617 = vmatpush1.bf16.msra.mxu1 %v616_v46  ;;  %v203_v30 = vld [vmem:[%s1667_s1 + $0x5a8] sm:$0xff]  ;;  %v205_v31 = vld [vmem:[%s1667_s1 + $0x5b8] sm:$0xff]  ;;  %v760_v33 = vpack.c.bf16 %v200_v27, %v198_v25  ;;  %v634_v34 = vpack.c.bf16 %v77_v29, %v75_v28  ;;  %v74_v35 = vld [vmem:[%s1667_s1 + $0x1a0] sm:$0xff] }
  0x26   :  { %745 = vmatpush1.bf16.msra.mxu0 %v744_v47  ;;  %619 = vmatprep.subr.bf16.mxu1 %v618_v48  ;;  %v76_v36 = vld [vmem:[%s1667_s1 + $0x1b0] sm:$0xff]  ;;  %v202_v37 = vld [vmem:[%s1667_s1 + $0x5a0] sm:$0xff]  ;;  %v762_v38 = vpack.c.bf16 %v205_v31, %v203_v30  ;;  %v79_v40 = vld [vmem:[%s1667_s1 + $0x1c8] sm:$0xff] }
  0x27   :  { %747 = vmatprep.subr.bf16.mxu0 %v746_v52  ;;  %v204_v39 = vld [vmem:[%s1667_s1 + $0x5b0] sm:$0xff]  ;;  %v81_v41 = vld [vmem:[%s1667_s1 + $0x1d8] sm:$0xff]  ;;  %v207_v42 = vld [vmem:[%s1667_s1 + $0x5c8] sm:$0xff]  ;;  %v636_v44 = vpack.c.bf16 %v76_v36, %v74_v35 }
  0x28   :  { %v209_v43 = vld [vmem:[%s1667_s1 + $0x5d8] sm:$0xff]  ;;  %v764_v45 = vpack.c.bf16 %v204_v39, %v202_v37  ;;  %v638_v46 = vpack.c.bf16 %v81_v41, %v79_v40  ;;  %v78_v47 = vld [vmem:[%s1667_s1 + $0x1c0] sm:$0xff]  ;;  %v80_v48 = vld [vmem:[%s1667_s1 + $0x1d0] sm:$0xff] }
  0x29   :  { %621 = vmatpush1.bf16.msra.mxu1 %v620_v58  ;;  %v206_v49 = vld [vmem:[%s1667_s1 + $0x5c0] sm:$0xff]  ;;  %v766_v50 = vpack.c.bf16 %v209_v43, %v207_v42  ;;  %v208_v51 = vld [vmem:[%s1667_s1 + $0x5d0] sm:$0xff]  ;;  %v83_v52 = vld [vmem:[%s1667_s1 + $0x1e8] sm:$0xff]  ;;  %v640_v56 = vpack.c.bf16 %v80_v48, %v78_v47 }
  0x2a   :  { %749 = vmatpush1.bf16.msra.mxu0 %v748_v59  ;;  %623 = vmatprep.subr.bf16.mxu1 %v622_v60  ;;  %v85_v53 = vld [vmem:[%s1667_s1 + $0x1f8] sm:$0xff]  ;;  %v211_v54 = vld [vmem:[%s1667_s1 + $0x5e8] sm:$0xff]  ;;  %v768_v57 = vpack.c.bf16 %v208_v51, %v206_v49  ;;  %v82_v59 = vld [vmem:[%s1667_s1 + $0x1e0] sm:$0xff] }
  0x2b   :  { %751 = vmatprep.subr.bf16.mxu0 %v750_v0  ;;  %v213_v55 = vld [vmem:[%s1667_s1 + $0x5f8] sm:$0xff]  ;;  %v642_v58 = vpack.c.bf16 %v85_v53, %v83_v52  ;;  %v84_v60 = vld [vmem:[%s1667_s1 + $0x1f0] sm:$0xff]  ;;  %v210_v61 = vld [vmem:[%s1667_s1 + $0x5e0] sm:$0xff] }
  0x2c   :  { %v770_v62 = vpack.c.bf16 %v213_v55, %v211_v54  ;;  %v212_v63 = vld [vmem:[%s1667_s1 + $0x5f0] sm:$0xff]  ;;  %v87_v0 = vld [vmem:[%s1667_s1 + $0x208] sm:$0xff]  ;;  %v89_v1 = vld [vmem:[%s1667_s1 + $0x218] sm:$0xff]  ;;  %v644_v4 = vpack.c.bf16 %v84_v60, %v82_v59 }
  0x2d   :  { %625 = vmatpush1.bf16.msra.mxu1 %v624_v6  ;;  %v215_v2 = vld [vmem:[%s1667_s1 + $0x608] sm:$0xff]  ;;  %v217_v3 = vld [vmem:[%s1667_s1 + $0x618] sm:$0xff]  ;;  %v772_v5 = vpack.c.bf16 %v212_v63, %v210_v61  ;;  %v646_v6 = vpack.c.bf16 %v89_v1, %v87_v0  ;;  %v86_v7 = vld [vmem:[%s1667_s1 + $0x200] sm:$0xff] }
  0x2e   :  { %753 = vmatpush1.bf16.msra.mxu0 %v752_v8  ;;  %627 = vmatprep.subr.bf16.mxu1 %v626_v9  ;;  %v88_v8 = vld [vmem:[%s1667_s1 + $0x210] sm:$0xff]  ;;  %v214_v9 = vld [vmem:[%s1667_s1 + $0x600] sm:$0xff]  ;;  %v774_v10 = vpack.c.bf16 %v217_v3, %v215_v2  ;;  %v91_v12 = vld [vmem:[%s1667_s1 + $0x228] sm:$0xff] }
  0x2f   :  { %755 = vmatprep.subr.bf16.mxu0 %v754_v13  ;;  %v216_v11 = vld [vmem:[%s1667_s1 + $0x610] sm:$0xff]  ;;  %v93_v13 = vld [vmem:[%s1667_s1 + $0x238] sm:$0xff]  ;;  %v219_v14 = vld [vmem:[%s1667_s1 + $0x628] sm:$0xff]  ;;  %v648_v17 = vpack.c.bf16 %v88_v8, %v86_v7 }
  0x30   :  { %v221_v15 = vld [vmem:[%s1667_s1 + $0x638] sm:$0xff]  ;;  %v14_v16 = vld [vmem:[%s1668_s0] sm:$0xff]  ;;  %v776_v19 = vpack.c.bf16 %v216_v11, %v214_v9  ;;  %v220_v25 = vld [vmem:[%s1667_s1 + $0x630] sm:$0xff] }
  0x31   :  { %629 = vmatpush1.bf16.msra.mxu1 %v628_v20  ;;  %v18_v18 = vld [vmem:[%s1668_s0 + $0x20] sm:$0xff]  ;;  %v650_v20 = vpack.c.bf16 %v93_v13, %v91_v12  ;;  %v778_v24 = vpack.c.bf16 %v221_v15, %v219_v14  ;;  %v97_v27 = vld [vmem:[%s1667_s1 + $0x258] sm:$0xff]  ;;  %v223_v28 = vld [vmem:[%s1667_s1 + $0x648] sm:$0xff] }
  0x32   :  { %757 = vmatpush1.bf16.msra.mxu0 %v756_v21  ;;  %631 = vmatprep.subr.bf16.mxu1 %v630_v22  ;;  %v90_v21 = vld [vmem:[%s1667_s1 + $0x220] sm:$0xff]  ;;  %v92_v22 = vld [vmem:[%s1667_s1 + $0x230] sm:$0xff]  ;;  %v225_v29 = vld [vmem:[%s1667_s1 + $0x658] sm:$0xff] }
  0x33   :  { %759 = vmatprep.subr.bf16.mxu0 %v758_v26  ;;  %v218_v23 = vld [vmem:[%s1667_s1 + $0x620] sm:$0xff]  ;;  %v95_v26 = vld [vmem:[%s1667_s1 + $0x248] sm:$0xff]  ;;  %v652_v30 = vpack.c.bf16 %v92_v22, %v90_v21  ;;  %v782_v36 = vpack.c.bf16 %v225_v29, %v223_v28  ;;  %v224_v37 = vld [vmem:[%s1667_s1 + $0x650] sm:$0xff] }
  0x34   :  { %v780_v31 = vpack.c.bf16 %v220_v25, %v218_v23  ;;  %v222_v35 = vld [vmem:[%s1667_s1 + $0x640] sm:$0xff]  ;;  %v101_v39 = vld [vmem:[%s1667_s1 + $0x278] sm:$0xff]  ;;  %v227_v40 = vld [vmem:[%s1667_s1 + $0x668] sm:$0xff] }
  0x35   :  { %633 = vmatpush1.bf16.msra.mxu1 %v632_v32  ;;  %v654_v32 = vpack.c.bf16 %v97_v27, %v95_v26  ;;  %v229_v41 = vld [vmem:[%s1667_s1 + $0x678] sm:$0xff]  ;;  %v784_v43 = vpack.c.bf16 %v224_v37, %v222_v35  ;;  %v226_v47 = vld [vmem:[%s1667_s1 + $0x660] sm:$0xff]  ;;  %v228_v49 = vld [vmem:[%s1667_s1 + $0x670] sm:$0xff] }
  0x36   :  { %761 = vmatpush1.bf16.msra.mxu0 %v760_v33  ;;  %635 = vmatprep.subr.bf16.mxu1 %v634_v34  ;;  %v94_v33 = vld [vmem:[%s1667_s1 + $0x240] sm:$0xff]  ;;  %v96_v34 = vld [vmem:[%s1667_s1 + $0x250] sm:$0xff]  ;;  %v786_v48 = vpack.c.bf16 %v229_v41, %v227_v40  ;;  %v105_v51 = vld [vmem:[%s1667_s1 + $0x298] sm:$0xff]  ;;  %v788_v55 = vpack.c.bf16 %v228_v49, %v226_v47 }
  0x37   :  { %763 = vmatprep.subr.bf16.mxu0 %v762_v38  ;;  %v99_v38 = vld [vmem:[%s1667_s1 + $0x268] sm:$0xff]  ;;  %v656_v42 = vpack.c.bf16 %v96_v34, %v94_v33  ;;  %v233_v53 = vld [vmem:[%s1667_s1 + $0x698] sm:$0xff]  ;;  %v230_v59 = vld [vmem:[%s1667_s1 + $0x680] sm:$0xff] }
  0x38   :  { %v231_v52 = vld [vmem:[%s1667_s1 + $0x688] sm:$0xff]  ;;  %v232_v61 = vld [vmem:[%s1667_s1 + $0x690] sm:$0xff]  ;;  %v109_v63 = vld [vmem:[%s1667_s1 + $0x2b8] sm:$0xff] }
  0x39   :  { %637 = vmatpush1.bf16.msra.mxu1 %v636_v44  ;;  %v658_v44 = vpack.c.bf16 %v101_v39, %v99_v38  ;;  %v790_v60 = vpack.c.bf16 %v233_v53, %v231_v52  ;;  %v235_v0 = vld [vmem:[%s1667_s1 + $0x6a8] sm:$0xff]  ;;  %v237_v1 = vld [vmem:[%s1667_s1 + $0x6b8] sm:$0xff]  ;;  %v792_v3 = vpack.c.bf16 %v232_v61, %v230_v59  ;;  %v234_v7 = vld [vmem:[%s1667_s1 + $0x6a0] sm:$0xff] }
  0x3a   :  { %765 = vmatpush1.bf16.msra.mxu0 %v764_v45  ;;  %639 = vmatprep.subr.bf16.mxu1 %v638_v46  ;;  %v98_v45 = vld [vmem:[%s1667_s1 + $0x260] sm:$0xff]  ;;  %v100_v46 = vld [vmem:[%s1667_s1 + $0x270] sm:$0xff]  ;;  %v794_v8 = vpack.c.bf16 %v237_v1, %v235_v0  ;;  %v113_v11 = vld [vmem:[%s1667_s1 + $0x2d8] sm:$0xff] }
  0x3b   :  { %767 = vmatprep.subr.bf16.mxu0 %v766_v50  ;;  %v103_v50 = vld [vmem:[%s1667_s1 + $0x288] sm:$0xff]  ;;  %v660_v54 = vpack.c.bf16 %v100_v46, %v98_v45  ;;  %v236_v9 = vld [vmem:[%s1667_s1 + $0x6b0] sm:$0xff]  ;;  %v241_v13 = vld [vmem:[%s1667_s1 + $0x6d8] sm:$0xff] }
  0x3c   :  { %v239_v12 = vld [vmem:[%s1667_s1 + $0x6c8] sm:$0xff]  ;;  %v110_v15 = vld [vmem:[%s1667_s1 + $0x2c0] sm:$0xff]  ;;  %v117_v23 = vld [vmem:[%s1667_s1 + $0x2f8] sm:$0xff] }
  0x3d   :  { %641 = vmatpush1.bf16.msra.mxu1 %v640_v56  ;;  %v662_v56 = vpack.c.bf16 %v105_v51, %v103_v50  ;;  %v798_v21 = vpack.c.bf16 %v241_v13, %v239_v12  ;;  %v115_v22 = vld [vmem:[%s1667_s1 + $0x2e8] sm:$0xff]  ;;  %v245_v26 = vld [vmem:[%s1667_s1 + $0x6f8] sm:$0xff]  ;;  %v242_v33 = vld [vmem:[%s1667_s1 + $0x6e0] sm:$0xff] }
  0x3e   :  { %769 = vmatpush1.bf16.msra.mxu0 %v768_v57  ;;  %643 = vmatprep.subr.bf16.mxu1 %v642_v58  ;;  %v102_v57 = vld [vmem:[%s1667_s1 + $0x280] sm:$0xff]  ;;  %v104_v58 = vld [vmem:[%s1667_s1 + $0x290] sm:$0xff]  ;;  %v243_v25 = vld [vmem:[%s1667_s1 + $0x6e8] sm:$0xff] }
  0x3f   :  { %771 = vmatprep.subr.bf16.mxu0 %v770_v62  ;;  %v107_v62 = vld [vmem:[%s1667_s1 + $0x2a8] sm:$0xff]  ;;  %v664_v2 = vpack.c.bf16 %v104_v58, %v102_v57  ;;  %v21_v27 = vld [vmem:[%s1668_s0 + $0x38] sm:$0xff]  ;;  %v802_v34 = vpack.c.bf16 %v245_v26, %v243_v25  ;;  %v244_v35 = vld [vmem:[%s1667_s1 + $0x6f0] sm:$0xff] }
  0x40   :  { %v121_v37 = vld [vmem:[%s1667_s1 + $0x318] sm:$0xff]  ;;  %v247_v38 = vld [vmem:[%s1667_s1 + $0x708] sm:$0xff]  ;;  %v804_v41 = vpack.c.bf16 %v244_v35, %v242_v33  ;;  %v246_v45 = vld [vmem:[%s1667_s1 + $0x700] sm:$0xff] }
  0x41   :  { %645 = vmatpush1.bf16.msra.mxu1 %v644_v4  ;;  %v666_v4 = vpack.c.bf16 %v109_v63, %v107_v62  ;;  %v249_v39 = vld [vmem:[%s1667_s1 + $0x718] sm:$0xff]  ;;  %v248_v47 = vld [vmem:[%s1667_s1 + $0x710] sm:$0xff]  ;;  %v251_v50 = vld [vmem:[%s1667_s1 + $0x728] sm:$0xff] }
  0x42   :  { %773 = vmatpush1.bf16.msra.mxu0 %v772_v5  ;;  %647 = vmatprep.subr.bf16.mxu1 %v646_v6  ;;  %v106_v5 = vld [vmem:[%s1667_s1 + $0x2a0] sm:$0xff]  ;;  %v108_v6 = vld [vmem:[%s1667_s1 + $0x2b0] sm:$0xff]  ;;  %v806_v46 = vpack.c.bf16 %v249_v39, %v247_v38  ;;  %v125_v49 = vld [vmem:[%s1667_s1 + $0x338] sm:$0xff]  ;;  %v808_v53 = vpack.c.bf16 %v248_v47, %v246_v45 }
  0x43   :  { %775 = vmatprep.subr.bf16.mxu0 %v774_v10  ;;  %v111_v10 = vld [vmem:[%s1667_s1 + $0x2c8] sm:$0xff]  ;;  %v668_v14 = vpack.c.bf16 %v108_v6, %v106_v5  ;;  %v253_v51 = vld [vmem:[%s1667_s1 + $0x738] sm:$0xff]  ;;  %v250_v57 = vld [vmem:[%s1667_s1 + $0x720] sm:$0xff] }
  0x44   :  { %355 = vmatmul.mubr.f32.vlgmr.msra.gmra.mrb[0].mxu1 %v14_v16  ;;  %v796_v16 = vpack.c.bf16 %v236_v9, %v234_v7  ;;  %v810_v58 = vpack.c.bf16 %v253_v51, %v251_v50  ;;  %v252_v59 = vld [vmem:[%s1667_s1 + $0x730] sm:$0xff]  ;;  %v129_v61 = vld [vmem:[%s1667_s1 + $0x358] sm:$0xff]  ;;  %v255_v62 = vld [vmem:[%s1667_s1 + $0x748] sm:$0xff] }
  0x45   :  { %649 = vmatpush1.bf16.msra.mxu1 %v648_v17  ;;  %497 = vmatmul.mubr.f32.vlgmr.msra.gmra.mrb[0].mxu0 %v18_v18  ;;  %v670_v17 = vpack.c.bf16 %v113_v11, %v111_v10  ;;  %v112_v18 = vld [vmem:[%s1667_s1 + $0x2d0] sm:$0xff]  ;;  %v257_v63 = vld [vmem:[%s1667_s1 + $0x758] sm:$0xff]  ;;  %v812_v1 = vpack.c.bf16 %v252_v59, %v250_v57  ;;  %v254_v5 = vld [vmem:[%s1667_s1 + $0x740] sm:$0xff] }
  0x46   :  { %777 = vmatpush1.bf16.msra.mxu0 %v776_v19  ;;  %651 = vmatprep.subr.bf16.mxu1 %v650_v20  ;;  %v238_v19 = vld [vmem:[%s1667_s1 + $0x6c0] sm:$0xff]  ;;  %v240_v20 = vld [vmem:[%s1667_s1 + $0x6d0] sm:$0xff]  ;;  %v672_v28 = vpack.c.bf16 %v112_v18, %v110_v15  ;;  %v814_v6 = vpack.c.bf16 %v257_v63, %v255_v62  ;;  %v133_v9 = vld [vmem:[%s1667_s1 + $0x378] sm:$0xff] }
  0x47   :  { %779 = vmatprep.subr.bf16.mxu0 %v778_v24  ;;  %v17_v24 = vld [vmem:[%s1668_s0 + $0x18] sm:$0xff]  ;;  %567 = vmatprep.mubr.f32.mxu0 %v21_v27  ;;  %v800_v29 = vpack.c.bf16 %v240_v20, %v238_v19  ;;  %v256_v7 = vld [vmem:[%s1667_s1 + $0x750] sm:$0xff]  ;;  %v259_v10 = vld [vmem:[%s1667_s1 + $0x768] sm:$0xff] }
  0x48   :  { %425 = vmatprep.mubr.f32.mxu1 %v17_v24  ;;  %v261_v11 = vld [vmem:[%s1667_s1 + $0x778] sm:$0xff]  ;;  %v816_v13 = vpack.c.bf16 %v256_v7, %v254_v5  ;;  %v130_v15 = vld [vmem:[%s1667_s1 + $0x360] sm:$0xff]  ;;  %v260_v19 = vld [vmem:[%s1667_s1 + $0x770] sm:$0xff] }
  0x49   :  { %653 = vmatpush1.bf16.msra.mxu1 %v652_v30  ;;  %v674_v30 = vpack.c.bf16 %v117_v23, %v115_v22  ;;  %v818_v18 = vpack.c.bf16 %v261_v11, %v259_v10  ;;  %v135_v20 = vld [vmem:[%s1667_s1 + $0x388] sm:$0xff]  ;;  %v265_v23 = vld [vmem:[%s1667_s1 + $0x798] sm:$0xff]  ;;  %v134_v27 = vld [vmem:[%s1667_s1 + $0x380] sm:$0xff] }
  0x4a   :  { %781 = vmatpush1.bf16.msra.mxu0 %v780_v31  ;;  %655 = vmatprep.subr.bf16.mxu1 %v654_v32  ;;  %v114_v31 = vld [vmem:[%s1667_s1 + $0x2e0] sm:$0xff]  ;;  %v116_v32 = vld [vmem:[%s1667_s1 + $0x2f0] sm:$0xff]  ;;  %v263_v22 = vld [vmem:[%s1667_s1 + $0x788] sm:$0xff] }
  0x4b   :  { %783 = vmatprep.subr.bf16.mxu0 %v782_v36  ;;  %v119_v36 = vld [vmem:[%s1667_s1 + $0x308] sm:$0xff]  ;;  %v676_v40 = vpack.c.bf16 %v116_v32, %v114_v31  ;;  %v264_v31 = vld [vmem:[%s1667_s1 + $0x790] sm:$0xff]  ;;  %v141_v33 = vld [vmem:[%s1667_s1 + $0x3b8] sm:$0xff] }
  0x4c   :  { %v139_v32 = vld [vmem:[%s1667_s1 + $0x3a8] sm:$0xff]  ;;  %v269_v35 = vld [vmem:[%s1667_s1 + $0x7b8] sm:$0xff]  ;;  %v138_v39 = vld [vmem:[%s1667_s1 + $0x3a0] sm:$0xff] }
  0x4d   :  { %657 = vmatpush1.bf16.msra.mxu1 %v656_v42  ;;  %v678_v42 = vpack.c.bf16 %v121_v37, %v119_v36  ;;  %v698_v38 = vpack.c.bf16 %v141_v33, %v139_v32  ;;  %v145_v45 = vld [vmem:[%s1667_s1 + $0x3d8] sm:$0xff]  ;;  %v142_v51 = vld [vmem:[%s1667_s1 + $0x3c0] sm:$0xff]  ;;  %v20_v7 = vld [vmem:[%s1668_s0 + $0x30] sm:$0xff] }
  0x4e   :  { %785 = vmatpush1.bf16.msra.mxu0 %v784_v43  ;;  %659 = vmatprep.subr.bf16.mxu1 %v658_v44  ;;  %v118_v43 = vld [vmem:[%s1667_s1 + $0x300] sm:$0xff]  ;;  %v120_v44 = vld [vmem:[%s1667_s1 + $0x310] sm:$0xff]  ;;  %v273_v47 = vld [vmem:[%s1667_s1 + $0x7d8] sm:$0xff] }
  0x4f   :  { %787 = vmatprep.subr.bf16.mxu0 %v786_v48  ;;  %v123_v48 = vld [vmem:[%s1667_s1 + $0x328] sm:$0xff]  ;;  %v680_v52 = vpack.c.bf16 %v120_v44, %v118_v43  ;;  %v268_v43 = vld [vmem:[%s1667_s1 + $0x7b0] sm:$0xff]  ;;  %v149_v57 = vld [vmem:[%s1667_s1 + $0x3f8] sm:$0xff] }
  0x50   :  { %v143_v44 = vld [vmem:[%s1667_s1 + $0x3c8] sm:$0xff]  ;;  %v277_v59 = vld [vmem:[%s1667_s1 + $0x7f8] sm:$0xff]  ;;  %v146_v63 = vld [vmem:[%s1667_s1 + $0x3e0] sm:$0xff] }
  0x51   :  { %661 = vmatpush1.bf16.msra.mxu1 %v660_v54  ;;  %v682_v54 = vpack.c.bf16 %v125_v49, %v123_v48  ;;  %v702_v50 = vpack.c.bf16 %v145_v45, %v143_v44  ;;  %v278_v11 = vld [vmem:[%s1669_s2] sm:$0x3] }
  0x52   :  { %789 = vmatpush1.bf16.msra.mxu0 %v788_v55  ;;  %663 = vmatprep.subr.bf16.mxu1 %v662_v56  ;;  %v122_v55 = vld [vmem:[%s1667_s1 + $0x320] sm:$0xff]  ;;  %v124_v56 = vld [vmem:[%s1667_s1 + $0x330] sm:$0xff] }
  0x53   :  { %791 = vmatprep.subr.bf16.mxu0 %v790_v60  ;;  %v127_v60 = vld [vmem:[%s1667_s1 + $0x348] sm:$0xff]  ;;  %v684_v0 = vpack.c.bf16 %v124_v56, %v122_v55  ;;  %v272_v55 = vld [vmem:[%s1667_s1 + $0x7d0] sm:$0xff] }
  0x54   :  { %v147_v56 = vld [vmem:[%s1667_s1 + $0x3e8] sm:$0xff] }
  0x55   :  { %665 = vmatpush1.bf16.msra.mxu1 %v664_v2  ;;  %v686_v2 = vpack.c.bf16 %v129_v61, %v127_v60  ;;  %v706_v62 = vpack.c.bf16 %v149_v57, %v147_v56 }
  0x56   :  { %793 = vmatpush1.bf16.msra.mxu0 %v792_v3  ;;  %667 = vmatprep.subr.bf16.mxu1 %v666_v4  ;;  %v126_v3 = vld [vmem:[%s1667_s1 + $0x340] sm:$0xff]  ;;  %v128_v4 = vld [vmem:[%s1667_s1 + $0x350] sm:$0xff] }
  0x57   :  { %795 = vmatprep.subr.bf16.mxu0 %v794_v8  ;;  %v131_v8 = vld [vmem:[%s1667_s1 + $0x368] sm:$0xff]  ;;  %v688_v12 = vpack.c.bf16 %v128_v4, %v126_v3  ;;  %v276_v3 = vld [vmem:[%s1667_s1 + $0x7f0] sm:$0xff] }
  0x59   :  { %669 = vmatpush1.bf16.msra.mxu1 %v668_v14  ;;  %v690_v14 = vpack.c.bf16 %v133_v9, %v131_v8  ;;  %v280_v8 = vlaneseq }
  0x5a   :  { %797 = vmatpush1.bf16.msra.mxu0 %v796_v16  ;;  %671 = vmatprep.subr.bf16.mxu1 %v670_v17  ;;  %v132_v16 = vld [vmem:[%s1667_s1 + $0x370] sm:$0xff]  ;;  %v258_v17 = vld [vmem:[%s1667_s1 + $0x760] sm:$0xff] }
  0x5b   :  { %799 = vmatprep.subr.bf16.mxu0 %v798_v21  ;;  %v137_v21 = vld [vmem:[%s1667_s1 + $0x398] sm:$0xff]  ;;  %v692_v24 = vpack.c.bf16 %v132_v16, %v130_v15  ;;  %v820_v25 = vpack.c.bf16 %v260_v19, %v258_v17  ;;  %v281_v9 = vshrl.u32 %v280_v8, 7 }
  0x5c   :  { %v694_v26 = vpack.c.bf16 %v137_v21, %v135_v20 }
  0x5d   :  { %673 = vmatpush1.bf16.msra.mxu1 %v672_v28  ;;  %v136_v28 = vld [vmem:[%s1667_s1 + $0x390] sm:$0xff]  ;;  %v282_v10 = vsub.s32 0, %v281_v9 }
  0x5e   :  { %801 = vmatpush1.bf16.msra.mxu0 %v800_v29  ;;  %675 = vmatprep.subr.bf16.mxu1 %v674_v30  ;;  %v262_v29 = vld [vmem:[%s1667_s1 + $0x780] sm:$0xff]  ;;  %v822_v30 = vpack.c.bf16 %v265_v23, %v263_v22  ;;  %v696_v36 = vpack.c.bf16 %v136_v28, %v134_v27 }
  0x5f   :  { %803 = vmatprep.subr.bf16.mxu0 %v802_v34  ;;  %v267_v34 = vld [vmem:[%s1667_s1 + $0x7a8] sm:$0xff]  ;;  %v824_v37 = vpack.c.bf16 %v264_v31, %v262_v29 }
  0x61   :  { %677 = vmatpush1.bf16.msra.mxu1 %v676_v40  ;;  %v140_v40 = vld [vmem:[%s1667_s1 + $0x3b0] sm:$0xff] }
  0x62   :  { %805 = vmatpush1.bf16.msra.mxu0 %v804_v41  ;;  %679 = vmatprep.subr.bf16.mxu1 %v678_v42  ;;  %v266_v41 = vld [vmem:[%s1667_s1 + $0x7a0] sm:$0xff]  ;;  %v826_v42 = vpack.c.bf16 %v269_v35, %v267_v34  ;;  %v700_v48 = vpack.c.bf16 %v140_v40, %v138_v39 }
  0x63   :  { %807 = vmatprep.subr.bf16.mxu0 %v806_v46  ;;  %v271_v46 = vld [vmem:[%s1667_s1 + $0x7c8] sm:$0xff]  ;;  %v828_v49 = vpack.c.bf16 %v268_v43, %v266_v41 }
  0x65   :  { %681 = vmatpush1.bf16.msra.mxu1 %v680_v52  ;;  %v144_v52 = vld [vmem:[%s1667_s1 + $0x3d0] sm:$0xff] }
  0x66   :  { %809 = vmatpush1.bf16.msra.mxu0 %v808_v53  ;;  %683 = vmatprep.subr.bf16.mxu1 %v682_v54  ;;  %v270_v53 = vld [vmem:[%s1667_s1 + $0x7c0] sm:$0xff]  ;;  %v830_v54 = vpack.c.bf16 %v273_v47, %v271_v46  ;;  %v704_v60 = vpack.c.bf16 %v144_v52, %v142_v51 }
  0x67   :  { %811 = vmatprep.subr.bf16.mxu0 %v810_v58  ;;  %v275_v58 = vld [vmem:[%s1667_s1 + $0x7e8] sm:$0xff]  ;;  %v832_v61 = vpack.c.bf16 %v272_v55, %v270_v53 }
  0x69   :  { %685 = vmatpush1.bf16.msra.mxu1 %v684_v0  ;;  %v148_v0 = vld [vmem:[%s1667_s1 + $0x3f0] sm:$0xff] }
  0x6a   :  { %813 = vmatpush1.bf16.msra.mxu0 %v812_v1  ;;  %687 = vmatprep.subr.bf16.mxu1 %v686_v2  ;;  %v834_v1 = vpack.c.bf16 %v277_v59, %v275_v58  ;;  %v274_v2 = vld [vmem:[%s1667_s1 + $0x7e0] sm:$0xff]  ;;  %v708_v4 = vpack.c.bf16 %v148_v0, %v146_v63 }
  0x6b   :  { %815 = vmatprep.subr.bf16.mxu0 %v814_v6  ;;  %v836_v5 = vpack.c.bf16 %v276_v3, %v274_v2  ;;  %v16_v6 = vld [vmem:[%s1668_s0 + $0x10] sm:$0xff] }
  0x6d   :  { %689 = vmatpush1.bf16.msra.mxu1 %v688_v12  ;;  %v286_v12 = vsub.s32 1, %v281_v9 }
  0x6e   :  { %817 = vmatpush1.bf16.msra.mxu0 %v816_v13  ;;  %691 = vmatprep.subr.bf16.mxu1 %v690_v14  ;;  %v283_v13 = vrot.slane %v278_v11, %v282_v10 }
  0x6f   :  { %819 = vmatprep.subr.bf16.mxu0 %v818_v18  ;;  %v287_v14 = vrot.slane %v278_v11, %v286_v12 }
  0x71   :  { %693 = vmatpush1.bf16.msra.mxu1 %v692_v24 }
  0x72   :  { %821 = vmatpush1.bf16.msra.mxu0 %v820_v25  ;;  %695 = vmatprep.subr.bf16.mxu1 %v694_v26 }
  0x73   :  { %823 = vmatprep.subr.bf16.mxu0 %v822_v30 }
  0x75   :  { %697 = vmatpush1.bf16.msra.mxu1 %v696_v36 }
  0x76   :  { %825 = vmatpush1.bf16.msra.mxu0 %v824_v37  ;;  %699 = vmatprep.subr.bf16.mxu1 %v698_v38 }
  0x77   :  { %827 = vmatprep.subr.bf16.mxu0 %v826_v42 }
  0x79   :  { %701 = vmatpush1.bf16.msra.mxu1 %v700_v48 }
  0x7a   :  { %829 = vmatpush1.bf16.msra.mxu0 %v828_v49  ;;  %703 = vmatprep.subr.bf16.mxu1 %v702_v50 }
  0x7b   :  { %831 = vmatprep.subr.bf16.mxu0 %v830_v54 }
  0x7d   :  { %705 = vmatpush1.bf16.msra.mxu1 %v704_v60 }
  0x7e   :  { %833 = vmatpush1.bf16.msra.mxu0 %v832_v61  ;;  %707 = vmatprep.subr.bf16.mxu1 %v706_v62 }
  0x7f   :  { %835 = vmatprep.subr.bf16.mxu0 %v834_v1 }
  0x81   :  { %709 = vmatpush1.bf16.msra.mxu1 %v708_v4 }
  0x82   :  { %837 = vmatpush1.bf16.msra.mxu0 %v836_v5 }
  0x84   :  { %426 = vmatmul.mubr.f32.vlgmr.msra.gmra.mrb[0].mxu1 %v16_v6 }
  0x85   :  { %568 = vmatmul.mubr.f32.vlgmr.msra.gmra.mrb[0].mxu0 %v20_v7 }
 0x157   :  { %v427_v15 = vpop.f32.mrb[0].mxu1 }
 0x158   :  { %v838_v16 = vadd.f32 %v427_v15, %v283_v13  ;;  %v569_v17 = vpop.f32.mrb[0].mxu0  ;;  %v429_v18 = vpop.f32.mrb[1].mxu1 }
 0x159   :  { %v840_v19 = vadd.f32 %v429_v18, %v287_v14  ;;  %v571_v20 = vpop.f32.mrb[1].mxu0 }
 0x15a   :  { %v839_v21 = vadd.f32 %v838_v16, %v569_v17 }
 0x15b   :  { %v841_v22 = vadd.f32 %v840_v19, %v571_v20 }
 0x15c   :  { %v574_v23 = vmax.f32 %v839_v21, 0.0 }
 0x15d   :  { %v575_v24 = vmax.f32 %v841_v22, 0.0 }
 0x15e   :  { %576 = vst [vmem:[%s1670_s3] sm:$0xff] %v574_v23 }
 0x15f   :  { %577 = vst [vmem:[%s1670_s3 + $0x8] sm:$0xff] %v575_v24 }

// kernel: mixed_resolution_cnn_forward.7
= control target key start
LH: loop header
LB: loop body
LE: loop exit
PB: predicated region body
PF: predicated region fallthrough
CT: control target
= control target key end

     0   :  { %s326_s1 = inlined_call_operand.vmem [shape: f32[256,128], index: 1, kind: input, shape index: {}]   ;;  %s327_s0 = inlined_call_operand.vmem [shape: f32[8,256], index: 0, kind: input, shape index: {}]   ;;  %s328_s2 = inlined_call_operand.vmem [shape: f32[1,128], index: 2, kind: input, shape index: {}]   ;;  %s329_s3 = inlined_call_operand.vmem [shape: f32[8,128], index: 3, kind: output, shape index: {}]  }
   0x1   :  { %v32_v0 = vld [vmem:[%s326_s1 + $0x80] sm:$0xff]  ;;  %v33_v1 = vld [vmem:[%s326_s1 + $0x88] sm:$0xff]  ;;  %v34_v5 = vld [vmem:[%s326_s1 + $0x90] sm:$0xff] }
   0x2   :  { %v16_v2 = vld [vmem:[%s326_s1] sm:$0xff]  ;;  %v166_v3 = vpack.c.bf16 %v33_v1, %v32_v0  ;;  %v17_v4 = vld [vmem:[%s326_s1 + $0x8] sm:$0xff]  ;;  %v35_v6 = vld [vmem:[%s326_s1 + $0x98] sm:$0xff] }
   0x3   :  { %v168_v7 = vpack.c.bf16 %v17_v4, %v16_v2  ;;  %v170_v8 = vpack.c.bf16 %v35_v6, %v34_v5  ;;  %v18_v9 = vld [vmem:[%s326_s1 + $0x10] sm:$0xff]  ;;  %v19_v10 = vld [vmem:[%s326_s1 + $0x18] sm:$0xff]  ;;  %v36_v11 = vld [vmem:[%s326_s1 + $0xa0] sm:$0xff] }
   0x4   :  { %167 = vmatprep.subr.bf16.mxu0 %v166_v3  ;;  %v37_v12 = vld [vmem:[%s326_s1 + $0xa8] sm:$0xff]  ;;  %v172_v13 = vpack.c.bf16 %v19_v10, %v18_v9  ;;  %v20_v15 = vld [vmem:[%s326_s1 + $0x20] sm:$0xff]  ;;  %v38_v17 = vld [vmem:[%s326_s1 + $0xb0] sm:$0xff] }
   0x5   :  { %169 = vmatpush3.bf16.msra.mxu0 %v168_v7  ;;  %v174_v14 = vpack.c.bf16 %v37_v12, %v36_v11  ;;  %v21_v16 = vld [vmem:[%s326_s1 + $0x28] sm:$0xff]  ;;  %v39_v18 = vld [vmem:[%s326_s1 + $0xb8] sm:$0xff]  ;;  %v22_v21 = vld [vmem:[%s326_s1 + $0x30] sm:$0xff] }
   0x6   :  { %171 = vmatprep.subr.bf16.mxu0 %v170_v8  ;;  %v176_v19 = vpack.c.bf16 %v21_v16, %v20_v15  ;;  %v178_v20 = vpack.c.bf16 %v39_v18, %v38_v17  ;;  %v23_v22 = vld [vmem:[%s326_s1 + $0x38] sm:$0xff]  ;;  %v40_v23 = vld [vmem:[%s326_s1 + $0xc0] sm:$0xff]  ;;  %v41_v24 = vld [vmem:[%s326_s1 + $0xc8] sm:$0xff] }
   0x7   :  { %v15_v25 = vld [vmem:[%s327_s0 + $0x8] sm:$0xff]  ;;  %v180_v26 = vpack.c.bf16 %v23_v22, %v22_v21  ;;  %v182_v27 = vpack.c.bf16 %v41_v24, %v40_v23  ;;  %v24_v28 = vld [vmem:[%s326_s1 + $0x40] sm:$0xff]  ;;  %v42_v30 = vld [vmem:[%s326_s1 + $0xd0] sm:$0xff] }
   0x8   :  { %119 = vmatprep.mubr.f32.mxu0 %v15_v25  ;;  %v25_v29 = vld [vmem:[%s326_s1 + $0x48] sm:$0xff]  ;;  %v43_v31 = vld [vmem:[%s326_s1 + $0xd8] sm:$0xff]  ;;  %v26_v34 = vld [vmem:[%s326_s1 + $0x50] sm:$0xff] }
   0x9   :  { %173 = vmatpush3.bf16.msra.mxu0 %v172_v13  ;;  %v184_v32 = vpack.c.bf16 %v25_v29, %v24_v28  ;;  %v186_v33 = vpack.c.bf16 %v43_v31, %v42_v30  ;;  %v27_v35 = vld [vmem:[%s326_s1 + $0x58] sm:$0xff]  ;;  %v44_v36 = vld [vmem:[%s326_s1 + $0xe0] sm:$0xff]  ;;  %v45_v37 = vld [vmem:[%s326_s1 + $0xe8] sm:$0xff] }
   0xa   :  { %175 = vmatprep.subr.bf16.mxu0 %v174_v14  ;;  %v188_v38 = vpack.c.bf16 %v27_v35, %v26_v34  ;;  %v190_v39 = vpack.c.bf16 %v45_v37, %v44_v36  ;;  %v28_v40 = vld [vmem:[%s326_s1 + $0x60] sm:$0xff]  ;;  %v29_v41 = vld [vmem:[%s326_s1 + $0x68] sm:$0xff]  ;;  %v46_v42 = vld [vmem:[%s326_s1 + $0xf0] sm:$0xff] }
   0xb   :  { %v47_v43 = vld [vmem:[%s326_s1 + $0xf8] sm:$0xff]  ;;  %v192_v44 = vpack.c.bf16 %v29_v41, %v28_v40  ;;  %v30_v46 = vld [vmem:[%s326_s1 + $0x70] sm:$0xff]  ;;  %v14_v49 = vld [vmem:[%s327_s0] sm:$0xff] }
   0xc   :  { %v194_v45 = vpack.c.bf16 %v47_v43, %v46_v42  ;;  %v31_v47 = vld [vmem:[%s326_s1 + $0x78] sm:$0xff]  ;;  %v130_v51 = vld [vmem:[%s328_s2] ss:$0 sm:$0xff] }
   0xd   :  { %177 = vmatpush3.bf16.msra.mxu0 %v176_v19  ;;  %v196_v48 = vpack.c.bf16 %v31_v47, %v30_v46 }
   0xe   :  { %179 = vmatprep.subr.bf16.mxu0 %v178_v20 }
  0x11   :  { %181 = vmatpush3.bf16.msra.mxu0 %v180_v26 }
  0x12   :  { %183 = vmatprep.subr.bf16.mxu0 %v182_v27 }
  0x15   :  { %185 = vmatpush3.bf16.msra.mxu0 %v184_v32 }
  0x16   :  { %187 = vmatprep.subr.bf16.mxu0 %v186_v33 }
  0x19   :  { %189 = vmatpush3.bf16.msra.mxu0 %v188_v38 }
  0x1a   :  { %191 = vmatprep.subr.bf16.mxu0 %v190_v39 }
  0x1d   :  { %193 = vmatpush3.bf16.msra.mxu0 %v192_v44 }
  0x1e   :  { %195 = vmatprep.subr.bf16.mxu0 %v194_v45 }
  0x21   :  { %197 = vmatpush3.bf16.msra.mxu0 %v196_v48 }
  0x24   :  { %120 = vmatmul.mubr.f32.vlgmr.msra.gmra.mrb[0].mxu0 %v14_v49 }
  0xf7   :  { %v163_v50 = vpop.f32.mrb[0].mxu0 }
  0xf8   :  { %v164_v52 = vpop.f32.mrb[1].mxu0 }
  0xf9   :  { %v165_v53 = vadd.f32 %v164_v52, %v163_v50 }
  0xfb   :  { %v122_v54 = vadd.f32 %v165_v53, %v130_v51 }
  0xfd   :  { %125 = vst [vmem:[%s329_s3] sm:$0xff] %v122_v54 }

</bundles_post_ra>
